<compile_context>
chip_gen: v5e
topology: v5e:2x2
jax: 0.10.0
libtpu: 0.0.40
codegen_flags: <defaults>
</compile_context>

<pallas_src>
import functools

import jax
import jax.numpy as jnp
from jax import lax
from jax.experimental import pallas as pl
from jax.experimental.pallas import tpu as pltpu


# ------------------------------- fused kernel -------------------------------

def _fused_decoder_kernel(d_model, nhead, num_layers,
                          mem_ref,      # (B*S, D)
                          qpos_ref,     # (B*Q, D)
                          qidc_ref,     # (B*Q, 1)  f32 batch-id per query row
                          qidr_ref,     # (1, B*Q)  f32 batch-id per self-attn key col
                          midr_ref,     # (1, B*S)  f32 batch-id per memory key col
                          qkv_w_ref,    # (6, D, D)  [saQ,saK,saV,caQ,caK,caV], x @ W form
                          qkv_b_ref,    # (6, 1, D)
                          out_w_ref,    # (2, D, D)  [self, cross] out-proj (x @ W form)
                          out_b_ref,    # (2, 1, D)
                          norms_ref,    # (8, 1, D)  [n1g,n1b,n2g,n2b,n3g,n3b,fin_g,fin_b]
                          w1_ref,       # (D, FF)
                          b1_ref,       # (1, FF)
                          w2_ref,       # (FF, D)
                          b2_ref,       # (1, D)
                          cls_w_ref,    # (L+1, D, C)
                          cls_b_ref,    # (L+1, 1, C)
                          out_ref):     # (B*Q, (L+1)*C)
    D = d_model
    dh = D // nhead
    C = cls_b_ref.shape[-1]

    mem = mem_ref[...]                       # (M, D)
    qpos = qpos_ref[...]                     # (N, D)
    N = qpos.shape[0]

    # ---- block-diagonal additive masks, built in-kernel from tiny id vectors ----
    NEG = jnp.float32(-1e30)
    smask = jnp.where(qidc_ref[...] == qidr_ref[...], 0.0, NEG)     # (N, N)
    cmask = jnp.where(qidc_ref[...] == midr_ref[...], 0.0, NEG)     # (N, M)

    # ---- hoisted parameter loads (everything is layer-invariant) ----
    sa_wq, sa_wk, sa_wv = qkv_w_ref[0], qkv_w_ref[1], qkv_w_ref[2]
    ca_wq, ca_wk, ca_wv = qkv_w_ref[3], qkv_w_ref[4], qkv_w_ref[5]
    sa_bq, sa_bk, sa_bv = qkv_b_ref[0], qkv_b_ref[1], qkv_b_ref[2]
    ca_bq, ca_bk, ca_bv = qkv_b_ref[3], qkv_b_ref[4], qkv_b_ref[5]
    sa_wo, ca_wo = out_w_ref[0], out_w_ref[1]
    sa_bo, ca_bo = out_b_ref[0], out_b_ref[1]
    n1_g, n1_b = norms_ref[0], norms_ref[1]
    n2_g, n2_b = norms_ref[2], norms_ref[3]
    n3_g, n3_b = norms_ref[4], norms_ref[5]
    fn_g, fn_b = norms_ref[6], norms_ref[7]
    w1, b1 = w1_ref[...], b1_ref[...]
    w2, b2 = w2_ref[...], b2_ref[...]

    def layernorm(x, g, b, eps=1e-5):
        mu = jnp.mean(x, axis=-1, keepdims=True)
        xc = x - mu
        var = jnp.mean(xc * xc, axis=-1, keepdims=True)
        return xc * lax.rsqrt(var + eps) * g + b

    def proj(x, w, b):
        # full-width projection: (R, D) @ (D, D) + (1, D)
        return jnp.dot(x, w, preferred_element_type=jnp.float32) + b

    def split_heads(x2):
        # (R, D) -> (nhead, R, dh) via static lane slices (no big relayout).
        return jnp.stack([x2[:, h * dh:(h + 1) * dh] for h in range(nhead)], axis=0)

    def attention_core(q3, k3, v3, mask2, wo, bo):
        # q3: (h, Nq, dh) (scale already folded into Wq); k3/v3: (h, Nk, dh)
        s = jnp.einsum('hqd,hkd->hqk', q3, k3,
                       preferred_element_type=jnp.float32) + mask2[None]
        m = jnp.max(s, axis=-1, keepdims=True)
        p = jnp.exp(s - m)
        p = p / jnp.sum(p, axis=-1, keepdims=True)               # exact softmax
        ctx = jnp.einsum('hqk,hkd->hqd', p, v3, preferred_element_type=jnp.float32)
        # concat heads along lanes, then one fused (D, D) out-proj matmul
        ctx2 = jnp.concatenate([ctx[h] for h in range(nhead)], axis=-1)   # (Nq, D)
        return jnp.dot(ctx2, wo, preferred_element_type=jnp.float32) + bo

    # ---- cross-attention K/V depend only on memory + shared weights: compute once ----
    ca_k3 = split_heads(proj(mem, ca_wk, ca_bk))
    ca_v3 = split_heads(proj(mem, ca_wv, ca_bv))

    # tgt = zeros_like(query_embed expanded)
    x = jnp.zeros((N, D), jnp.float32)

    for i in range(num_layers):                                  # static, shared weights
        # --- self attention: q = k = tgt, value = tgt (no pos embed, per reference) ---
        sa = attention_core(split_heads(proj(x, sa_wq, sa_bq)),   # 1/sqrt(dh) folded in
                            split_heads(proj(x, sa_wk, sa_bk)),
                            split_heads(proj(x, sa_wv, sa_bv)),
                            smask, sa_wo, sa_bo)
        x = layernorm(x + sa, n1_g, n1_b)                        # dropout1 = identity

        # --- cross attention: query = x + query_pos, key = value = memory ---
        ca = attention_core(split_heads(proj(x + qpos, ca_wq, ca_bq)),
                            ca_k3, ca_v3, cmask,
                            ca_wo, ca_bo)                        # 1/temperature folded in
        x = layernorm(x + ca, n2_g, n2_b)                        # dropout2 = identity

        # --- feed-forward: Linear -> ReLU -> (Dropout) -> Linear ---
        h = jnp.maximum(jnp.dot(x, w1, preferred_element_type=jnp.float32) + b1, 0.0)
        f = jnp.dot(h, w2, preferred_element_type=jnp.float32) + b2
        x = layernorm(x + f, n3_g, n3_b)                         # dropout3 = identity

        # --- per-layer class head, written straight into the packed output ---
        y = layernorm(x, fn_g, fn_b)
        out_ref[:, i * C:(i + 1) * C] = (
            jnp.dot(y, cls_w_ref[i], preferred_element_type=jnp.float32) + cls_b_ref[i])

    # extra head (class_embed[-1]) on the final normed output
    y = layernorm(x, fn_g, fn_b)
    out_ref[:, num_layers * C:(num_layers + 1) * C] = (
        jnp.dot(y, cls_w_ref[num_layers], preferred_element_type=jnp.float32)
        + cls_b_ref[num_layers])


# --------------------------------- parameters ---------------------------------

def init_params(key, D, nhead, FF, num_layers, Q, C=10):
    """Parameters in PyTorch layout (one shared decoder layer, L+1 class heads)."""
    keys = iter(jax.random.split(key, 32))

    def nrm(shape, scale=0.02):
        return (scale * jax.random.normal(next(keys), shape)).astype(jnp.float32)

    ones = lambda n: jnp.ones((n,), jnp.float32)
    zeros = lambda n: jnp.zeros((n,), jnp.float32)

    return {
        "query_embed": nrm((Q, D), 1.0),                 # torch.randn(num_queries, d_model)
        # shared decoder layer (the PyTorch ModuleList repeats the same object)
        "sa_in_w": nrm((3 * D, D)), "sa_in_b": nrm((3 * D,)),
        "sa_out_w": nrm((D, D)),    "sa_out_b": nrm((D,)),
        "ca_in_w": nrm((3 * D, D)), "ca_in_b": nrm((3 * D,)),
        "ca_out_w": nrm((D, D)),    "ca_out_b": nrm((D,)),
        "n1_g": ones(D), "n1_b": zeros(D),
        "n2_g": ones(D), "n2_b": zeros(D),
        "n3_g": ones(D), "n3_b": zeros(D),
        "ffn_w1": nrm((FF, D)), "ffn_b1": nrm((FF,)),
        "ffn_w2": nrm((D, FF)), "ffn_b2": nrm((D,)),
        "norm_g": ones(D), "norm_b": zeros(D),
        "cls_w": nrm((num_layers + 1, C, D)), "cls_b": nrm((num_layers + 1, C)),
    }


def _pack_params(params, D, nhead, temperature):
    """Repack PyTorch-layout params into lane-dense, kernel-friendly operands.

    Folds the 1/sqrt(dh) query scaling into the Q projections and the TemperatureMHA
    1/temperature into the cross-attention out-projection (exact weight transforms).
    """
    dh = D // nhead
    scale = 1.0 / (dh ** 0.5)
    inv_temp = 1.0 / float(temperature)

    def split3(in_w, in_b):           # in_proj_weight (3D, D) / in_proj_bias (3D,)
        ws = [in_w[i * D:(i + 1) * D].T for i in range(3)]     # each (D_in, D_out)
        bs = [in_b[i * D:(i + 1) * D][None, :] for i in range(3)]
        return ws, bs

    sa_ws, sa_bs = split3(params["sa_in_w"], params["sa_in_b"])
    ca_ws, ca_bs = split3(params["ca_in_w"], params["ca_in_b"])
    sa_ws[0] = sa_ws[0] * scale
    sa_bs[0] = sa_bs[0] * scale
    ca_ws[0] = ca_ws[0] * scale
    ca_bs[0] = ca_bs[0] * scale

    qkv_w = jnp.stack(sa_ws + ca_ws)                            # (6, D, D)
    qkv_b = jnp.stack(sa_bs + ca_bs)                            # (6, 1, D)
    out_w = jnp.stack([params["sa_out_w"].T,
                       params["ca_out_w"].T * inv_temp])        # (2, D, D)
    out_b = jnp.stack([params["sa_out_b"][None, :],
                       params["ca_out_b"][None, :] * inv_temp])  # (2, 1, D)
    norms = jnp.stack([params[k][None, :] for k in
                       ("n1_g", "n1_b", "n2_g", "n2_b",
                        "n3_g", "n3_b", "norm_g", "norm_b")])    # (8, 1, D)
    w1T = params["ffn_w1"].T                                    # (D, FF)
    b1 = params["ffn_b1"][None, :]                              # (1, FF)
    w2T = params["ffn_w2"].T                                    # (FF, D)
    b2 = params["ffn_b2"][None, :]                              # (1, D)
    cls_wT = jnp.transpose(params["cls_w"], (0, 2, 1))          # (L+1, D, C)
    cls_b = params["cls_b"][:, None, :]                         # (L+1, 1, C)
    return qkv_w, qkv_b, out_w, out_b, norms, w1T, b1, w2T, b2, cls_wT, cls_b


# ---------------------------------- forward -----------------------------------

def transformer_decoder_forward(memory, params, *, nhead, num_layers, temperature=1.0):
    B, S, D = memory.shape
    Q = params["query_embed"].shape[0]
    C = params["cls_w"].shape[1]
    N, M = B * Q, B * S
    assert D % nhead == 0

    packed = _pack_params(params, D, nhead, temperature)

    mem_flat = memory.reshape(M, D).astype(jnp.float32)
    qpos = jnp.tile(params["query_embed"], (B, 1)).astype(jnp.float32)   # (B*Q, D)

    # Tiny batch-id vectors; the kernel builds the block-diagonal masks from these,
    # avoiding O((B*Q)^2) mask operands.
    qid = jnp.repeat(jnp.arange(B, dtype=jnp.float32), Q)       # (N,)
    mid = jnp.repeat(jnp.arange(B, dtype=jnp.float32), S)       # (M,)
    qid_col = qid[:, None]                                      # (N, 1)
    qid_row = qid[None, :]                                      # (1, N)
    mid_row = mid[None, :]                                      # (1, M)

    kernel = functools.partial(_fused_decoder_kernel, D, nhead, num_layers)
    n_in = 5 + len(packed)
    out = pl.pallas_call(
        kernel,
        out_shape=jax.ShapeDtypeStruct((N, (num_layers + 1) * C), jnp.float32),
        in_specs=[pl.BlockSpec(memory_space=pltpu.MemorySpace.VMEM)] * n_in,
        out_specs=pl.BlockSpec(memory_space=pltpu.MemorySpace.VMEM),
    )(mem_flat, qpos, qid_col, qid_row, mid_row, *packed)

    # (B*Q, (L+1)*C) -> (L+1, B, Q, C), matching torch.stack(intermediate)
    out = out.reshape(B, Q, num_layers + 1, C)
    return jnp.transpose(out, (2, 0, 1, 3))


# ------------------------------------ main -------------------------------------

if __name__ == "__main__":
    # Small shapes consistent with the module (d_model divisible by nhead=5).
    B, S = 2, 16
    D, NHEAD, FF, Q, NUM_LAYERS, C = 40, 5, 64, 5, 3, 10

    key = jax.random.PRNGKey(0)
    pkey, mkey = jax.random.split(key)
    params = init_params(pkey, D, NHEAD, FF, NUM_LAYERS, Q, C)
    memory = jax.random.normal(mkey, (B, S, D), dtype=jnp.float32)

    fwd = jax.jit(functools.partial(transformer_decoder_forward,
                                    nhead=NHEAD, num_layers=NUM_LAYERS, temperature=1.0))
    out = fwd(memory, params)
    jax.block_until_ready(out)
    assert out.shape == (NUM_LAYERS + 1, B, Q, C), out.shape
    assert bool(jnp.all(jnp.isfinite(out)))
    print("KERNEL_OK")
</pallas_src>

<mosaic_0001>
module attributes {stable_mosaic.version = 11 : i64} {
  func.func @_fused_decoder_kernel(%arg0: memref<32x40xf32, #tpu.memory_space<vmem>>, %arg1: memref<10x40xf32, #tpu.memory_space<vmem>>, %arg2: memref<10x1xf32, #tpu.memory_space<vmem>>, %arg3: memref<1x10xf32, #tpu.memory_space<vmem>>, %arg4: memref<1x32xf32, #tpu.memory_space<vmem>>, %arg5: memref<6x40x40xf32, #tpu.memory_space<vmem>>, %arg6: memref<6x1x40xf32, #tpu.memory_space<vmem>>, %arg7: memref<2x40x40xf32, #tpu.memory_space<vmem>>, %arg8: memref<2x1x40xf32, #tpu.memory_space<vmem>>, %arg9: memref<8x1x40xf32, #tpu.memory_space<vmem>>, %arg10: memref<40x64xf32, #tpu.memory_space<vmem>>, %arg11: memref<1x64xf32, #tpu.memory_space<vmem>>, %arg12: memref<64x40xf32, #tpu.memory_space<vmem>>, %arg13: memref<1x40xf32, #tpu.memory_space<vmem>>, %arg14: memref<4x40x10xf32, #tpu.memory_space<vmem>>, %arg15: memref<4x1x10xf32, #tpu.memory_space<vmem>>, %arg16: memref<10x40xf32, #tpu.memory_space<vmem>>) attributes {dimension_semantics = [], scalar_prefetch = 0 : i64, scratch_operands = 0 : i64, tpu.core_type = #tpu.core_type<tc>} {
    %c0 = arith.constant 0 : index
    %c0_0 = arith.constant 0 : index
    %0 = vector.load %arg0[%c0, %c0_0] : memref<32x40xf32, #tpu.memory_space<vmem>>, vector<32x40xf32>
    %c0_1 = arith.constant 0 : index
    %c0_2 = arith.constant 0 : index
    %1 = vector.load %arg1[%c0_1, %c0_2] : memref<10x40xf32, #tpu.memory_space<vmem>>, vector<10x40xf32>
    %c0_3 = arith.constant 0 : index
    %c0_4 = arith.constant 0 : index
    %2 = vector.load %arg2[%c0_3, %c0_4] : memref<10x1xf32, #tpu.memory_space<vmem>>, vector<10x1xf32>
    %c0_5 = arith.constant 0 : index
    %c0_6 = arith.constant 0 : index
    %3 = vector.load %arg3[%c0_5, %c0_6] : memref<1x10xf32, #tpu.memory_space<vmem>>, vector<1x10xf32>
    %4 = vector.broadcast %2 : vector<10x1xf32> to vector<10x10xf32>
    %5 = vector.broadcast %3 : vector<1x10xf32> to vector<10x10xf32>
    %6 = arith.cmpf oeq, %4, %5 : vector<10x10xf32>
    %cst = arith.constant 0.000000e+00 : f32
    %cst_7 = arith.constant -1.000000e+30 : f32
    %7 = vector.broadcast %cst : f32 to vector<10x10xf32>
    %8 = vector.broadcast %cst_7 : f32 to vector<10x10xf32>
    %9 = arith.select %6, %7, %8 : vector<10x10xi1>, vector<10x10xf32>
    %c0_8 = arith.constant 0 : index
    %c0_9 = arith.constant 0 : index
    %10 = vector.load %arg2[%c0_8, %c0_9] : memref<10x1xf32, #tpu.memory_space<vmem>>, vector<10x1xf32>
    %c0_10 = arith.constant 0 : index
    %c0_11 = arith.constant 0 : index
    %11 = vector.load %arg4[%c0_10, %c0_11] : memref<1x32xf32, #tpu.memory_space<vmem>>, vector<1x32xf32>
    %12 = vector.broadcast %10 : vector<10x1xf32> to vector<10x32xf32>
    %13 = vector.broadcast %11 : vector<1x32xf32> to vector<10x32xf32>
    %14 = arith.cmpf oeq, %12, %13 : vector<10x32xf32>
    %cst_12 = arith.constant 0.000000e+00 : f32
    %cst_13 = arith.constant -1.000000e+30 : f32
    %15 = vector.broadcast %cst_12 : f32 to vector<10x32xf32>
    %16 = vector.broadcast %cst_13 : f32 to vector<10x32xf32>
    %17 = arith.select %14, %15, %16 : vector<10x32xi1>, vector<10x32xf32>
    %c0_14 = arith.constant 0 : index
    %c0_15 = arith.constant 0 : index
    %c0_16 = arith.constant 0 : index
    %18 = vector.load %arg5[%c0_14, %c0_15, %c0_16] : memref<6x40x40xf32, #tpu.memory_space<vmem>>, vector<1x40x40xf32>
    %19 = vector.shape_cast %18 : vector<1x40x40xf32> to vector<40x40xf32>
    %c1 = arith.constant 1 : index
    %c0_17 = arith.constant 0 : index
    %c0_18 = arith.constant 0 : index
    %20 = vector.load %arg5[%c1, %c0_17, %c0_18] : memref<6x40x40xf32, #tpu.memory_space<vmem>>, vector<1x40x40xf32>
    %21 = vector.shape_cast %20 : vector<1x40x40xf32> to vector<40x40xf32>
    %c2 = arith.constant 2 : index
    %c0_19 = arith.constant 0 : index
    %c0_20 = arith.constant 0 : index
    %22 = vector.load %arg5[%c2, %c0_19, %c0_20] : memref<6x40x40xf32, #tpu.memory_space<vmem>>, vector<1x40x40xf32>
    %23 = vector.shape_cast %22 : vector<1x40x40xf32> to vector<40x40xf32>
    %c3 = arith.constant 3 : index
    %c0_21 = arith.constant 0 : index
    %c0_22 = arith.constant 0 : index
    %24 = vector.load %arg5[%c3, %c0_21, %c0_22] : memref<6x40x40xf32, #tpu.memory_space<vmem>>, vector<1x40x40xf32>
    %25 = vector.shape_cast %24 : vector<1x40x40xf32> to vector<40x40xf32>
    %c4 = arith.constant 4 : index
    %c0_23 = arith.constant 0 : index
    %c0_24 = arith.constant 0 : index
    %26 = vector.load %arg5[%c4, %c0_23, %c0_24] : memref<6x40x40xf32, #tpu.memory_space<vmem>>, vector<1x40x40xf32>
    %27 = vector.shape_cast %26 : vector<1x40x40xf32> to vector<40x40xf32>
    %c5 = arith.constant 5 : index
    %c0_25 = arith.constant 0 : index
    %c0_26 = arith.constant 0 : index
    %28 = vector.load %arg5[%c5, %c0_25, %c0_26] : memref<6x40x40xf32, #tpu.memory_space<vmem>>, vector<1x40x40xf32>
    %29 = vector.shape_cast %28 : vector<1x40x40xf32> to vector<40x40xf32>
    %c0_27 = arith.constant 0 : index
    %c0_28 = arith.constant 0 : index
    %c0_29 = arith.constant 0 : index
    %30 = vector.load %arg6[%c0_27, %c0_28, %c0_29] : memref<6x1x40xf32, #tpu.memory_space<vmem>>, vector<1x1x40xf32>
    %31 = vector.shape_cast %30 : vector<1x1x40xf32> to vector<1x40xf32>
    %c1_30 = arith.constant 1 : index
    %c0_31 = arith.constant 0 : index
    %c0_32 = arith.constant 0 : index
    %32 = vector.load %arg6[%c1_30, %c0_31, %c0_32] : memref<6x1x40xf32, #tpu.memory_space<vmem>>, vector<1x1x40xf32>
    %33 = vector.shape_cast %32 : vector<1x1x40xf32> to vector<1x40xf32>
    %c2_33 = arith.constant 2 : index
    %c0_34 = arith.constant 0 : index
    %c0_35 = arith.constant 0 : index
    %34 = vector.load %arg6[%c2_33, %c0_34, %c0_35] : memref<6x1x40xf32, #tpu.memory_space<vmem>>, vector<1x1x40xf32>
    %35 = vector.shape_cast %34 : vector<1x1x40xf32> to vector<1x40xf32>
    %c3_36 = arith.constant 3 : index
    %c0_37 = arith.constant 0 : index
    %c0_38 = arith.constant 0 : index
    %36 = vector.load %arg6[%c3_36, %c0_37, %c0_38] : memref<6x1x40xf32, #tpu.memory_space<vmem>>, vector<1x1x40xf32>
    %37 = vector.shape_cast %36 : vector<1x1x40xf32> to vector<1x40xf32>
    %c4_39 = arith.constant 4 : index
    %c0_40 = arith.constant 0 : index
    %c0_41 = arith.constant 0 : index
    %38 = vector.load %arg6[%c4_39, %c0_40, %c0_41] : memref<6x1x40xf32, #tpu.memory_space<vmem>>, vector<1x1x40xf32>
    %39 = vector.shape_cast %38 : vector<1x1x40xf32> to vector<1x40xf32>
    %c5_42 = arith.constant 5 : index
    %c0_43 = arith.constant 0 : index
    %c0_44 = arith.constant 0 : index
    %40 = vector.load %arg6[%c5_42, %c0_43, %c0_44] : memref<6x1x40xf32, #tpu.memory_space<vmem>>, vector<1x1x40xf32>
    %41 = vector.shape_cast %40 : vector<1x1x40xf32> to vector<1x40xf32>
    %c0_45 = arith.constant 0 : index
    %c0_46 = arith.constant 0 : index
    %c0_47 = arith.constant 0 : index
    %42 = vector.load %arg7[%c0_45, %c0_46, %c0_47] : memref<2x40x40xf32, #tpu.memory_space<vmem>>, vector<1x40x40xf32>
    %43 = vector.shape_cast %42 : vector<1x40x40xf32> to vector<40x40xf32>
    %c1_48 = arith.constant 1 : index
    %c0_49 = arith.constant 0 : index
    %c0_50 = arith.constant 0 : index
    %44 = vector.load %arg7[%c1_48, %c0_49, %c0_50] : memref<2x40x40xf32, #tpu.memory_space<vmem>>, vector<1x40x40xf32>
    %45 = vector.shape_cast %44 : vector<1x40x40xf32> to vector<40x40xf32>
    %c0_51 = arith.constant 0 : index
    %c0_52 = arith.constant 0 : index
    %c0_53 = arith.constant 0 : index
    %46 = vector.load %arg8[%c0_51, %c0_52, %c0_53] : memref<2x1x40xf32, #tpu.memory_space<vmem>>, vector<1x1x40xf32>
    %47 = vector.shape_cast %46 : vector<1x1x40xf32> to vector<1x40xf32>
    %c1_54 = arith.constant 1 : index
    %c0_55 = arith.constant 0 : index
    %c0_56 = arith.constant 0 : index
    %48 = vector.load %arg8[%c1_54, %c0_55, %c0_56] : memref<2x1x40xf32, #tpu.memory_space<vmem>>, vector<1x1x40xf32>
    %49 = vector.shape_cast %48 : vector<1x1x40xf32> to vector<1x40xf32>
    %c0_57 = arith.constant 0 : index
    %c0_58 = arith.constant 0 : index
    %c0_59 = arith.constant 0 : index
    %50 = vector.load %arg9[%c0_57, %c0_58, %c0_59] : memref<8x1x40xf32, #tpu.memory_space<vmem>>, vector<1x1x40xf32>
    %51 = vector.shape_cast %50 : vector<1x1x40xf32> to vector<1x40xf32>
    %c1_60 = arith.constant 1 : index
    %c0_61 = arith.constant 0 : index
    %c0_62 = arith.constant 0 : index
    %52 = vector.load %arg9[%c1_60, %c0_61, %c0_62] : memref<8x1x40xf32, #tpu.memory_space<vmem>>, vector<1x1x40xf32>
    %53 = vector.shape_cast %52 : vector<1x1x40xf32> to vector<1x40xf32>
    %c2_63 = arith.constant 2 : index
    %c0_64 = arith.constant 0 : index
    %c0_65 = arith.constant 0 : index
    %54 = vector.load %arg9[%c2_63, %c0_64, %c0_65] : memref<8x1x40xf32, #tpu.memory_space<vmem>>, vector<1x1x40xf32>
    %55 = vector.shape_cast %54 : vector<1x1x40xf32> to vector<1x40xf32>
    %c3_66 = arith.constant 3 : index
    %c0_67 = arith.constant 0 : index
    %c0_68 = arith.constant 0 : index
    %56 = vector.load %arg9[%c3_66, %c0_67, %c0_68] : memref<8x1x40xf32, #tpu.memory_space<vmem>>, vector<1x1x40xf32>
    %57 = vector.shape_cast %56 : vector<1x1x40xf32> to vector<1x40xf32>
    %c4_69 = arith.constant 4 : index
    %c0_70 = arith.constant 0 : index
    %c0_71 = arith.constant 0 : index
    %58 = vector.load %arg9[%c4_69, %c0_70, %c0_71] : memref<8x1x40xf32, #tpu.memory_space<vmem>>, vector<1x1x40xf32>
    %59 = vector.shape_cast %58 : vector<1x1x40xf32> to vector<1x40xf32>
    %c5_72 = arith.constant 5 : index
    %c0_73 = arith.constant 0 : index
    %c0_74 = arith.constant 0 : index
    %60 = vector.load %arg9[%c5_72, %c0_73, %c0_74] : memref<8x1x40xf32, #tpu.memory_space<vmem>>, vector<1x1x40xf32>
    %61 = vector.shape_cast %60 : vector<1x1x40xf32> to vector<1x40xf32>
    %c6 = arith.constant 6 : index
    %c0_75 = arith.constant 0 : index
    %c0_76 = arith.constant 0 : index
    %62 = vector.load %arg9[%c6, %c0_75, %c0_76] : memref<8x1x40xf32, #tpu.memory_space<vmem>>, vector<1x1x40xf32>
    %63 = vector.shape_cast %62 : vector<1x1x40xf32> to vector<1x40xf32>
    %c7 = arith.constant 7 : index
    %c0_77 = arith.constant 0 : index
    %c0_78 = arith.constant 0 : index
    %64 = vector.load %arg9[%c7, %c0_77, %c0_78] : memref<8x1x40xf32, #tpu.memory_space<vmem>>, vector<1x1x40xf32>
    %65 = vector.shape_cast %64 : vector<1x1x40xf32> to vector<1x40xf32>
    %c0_79 = arith.constant 0 : index
    %c0_80 = arith.constant 0 : index
    %66 = vector.load %arg10[%c0_79, %c0_80] : memref<40x64xf32, #tpu.memory_space<vmem>>, vector<40x64xf32>
    %c0_81 = arith.constant 0 : index
    %c0_82 = arith.constant 0 : index
    %67 = vector.load %arg11[%c0_81, %c0_82] : memref<1x64xf32, #tpu.memory_space<vmem>>, vector<1x64xf32>
    %c0_83 = arith.constant 0 : index
    %c0_84 = arith.constant 0 : index
    %68 = vector.load %arg12[%c0_83, %c0_84] : memref<64x40xf32, #tpu.memory_space<vmem>>, vector<64x40xf32>
    %c0_85 = arith.constant 0 : index
    %c0_86 = arith.constant 0 : index
    %69 = vector.load %arg13[%c0_85, %c0_86] : memref<1x40xf32, #tpu.memory_space<vmem>>, vector<1x40xf32>
    %cst_87 = arith.constant dense<0.000000e+00> : vector<32x40xf32>
    %70 = tpu.matmul %0, %27, %cst_87 {dimension_numbers = #tpu.dot_dimension_numbers<[1], [0], [0], [1], [0, 0, 1, 1], [], []>} : vector<32x40xf32>, vector<40x40xf32>, vector<32x40xf32> -> vector<32x40xf32>
    %71 = vector.broadcast %39 : vector<1x40xf32> to vector<32x40xf32>
    %72 = arith.addf %70, %71 : vector<32x40xf32>
    %73 = vector.extract_strided_slice %72 {offsets = [0, 0], sizes = [32, 8], strides = [1, 1]} : vector<32x40xf32> to vector<32x8xf32>
    %74 = vector.extract_strided_slice %72 {offsets = [0, 8], sizes = [32, 8], strides = [1, 1]} : vector<32x40xf32> to vector<32x8xf32>
    %75 = vector.extract_strided_slice %72 {offsets = [0, 16], sizes = [32, 8], strides = [1, 1]} : vector<32x40xf32> to vector<32x8xf32>
    %76 = vector.extract_strided_slice %72 {offsets = [0, 24], sizes = [32, 8], strides = [1, 1]} : vector<32x40xf32> to vector<32x8xf32>
    %77 = vector.extract_strided_slice %72 {offsets = [0, 32], sizes = [32, 8], strides = [1, 1]} : vector<32x40xf32> to vector<32x8xf32>
    %78 = vector.shape_cast %73 : vector<32x8xf32> to vector<1x32x8xf32>
    %79 = vector.shape_cast %74 : vector<32x8xf32> to vector<1x32x8xf32>
    %80 = vector.shape_cast %75 : vector<32x8xf32> to vector<1x32x8xf32>
    %81 = vector.shape_cast %76 : vector<32x8xf32> to vector<1x32x8xf32>
    %82 = vector.shape_cast %77 : vector<32x8xf32> to vector<1x32x8xf32>
    %83 = tpu.concatenate %78, %79, %80, %81, %82 in 0 : vector<1x32x8xf32>, vector<1x32x8xf32>, vector<1x32x8xf32>, vector<1x32x8xf32>, vector<1x32x8xf32> -> vector<5x32x8xf32>
    %cst_88 = arith.constant dense<0.000000e+00> : vector<32x40xf32>
    %84 = tpu.matmul %0, %29, %cst_88 {dimension_numbers = #tpu.dot_dimension_numbers<[1], [0], [0], [1], [0, 0, 1, 1], [], []>} : vector<32x40xf32>, vector<40x40xf32>, vector<32x40xf32> -> vector<32x40xf32>
    %85 = vector.broadcast %41 : vector<1x40xf32> to vector<32x40xf32>
    %86 = arith.addf %84, %85 : vector<32x40xf32>
    %87 = vector.extract_strided_slice %86 {offsets = [0, 0], sizes = [32, 8], strides = [1, 1]} : vector<32x40xf32> to vector<32x8xf32>
    %88 = vector.extract_strided_slice %86 {offsets = [0, 8], sizes = [32, 8], strides = [1, 1]} : vector<32x40xf32> to vector<32x8xf32>
    %89 = vector.extract_strided_slice %86 {offsets = [0, 16], sizes = [32, 8], strides = [1, 1]} : vector<32x40xf32> to vector<32x8xf32>
    %90 = vector.extract_strided_slice %86 {offsets = [0, 24], sizes = [32, 8], strides = [1, 1]} : vector<32x40xf32> to vector<32x8xf32>
    %91 = vector.extract_strided_slice %86 {offsets = [0, 32], sizes = [32, 8], strides = [1, 1]} : vector<32x40xf32> to vector<32x8xf32>
    %92 = vector.shape_cast %87 : vector<32x8xf32> to vector<1x32x8xf32>
    %93 = vector.shape_cast %88 : vector<32x8xf32> to vector<1x32x8xf32>
    %94 = vector.shape_cast %89 : vector<32x8xf32> to vector<1x32x8xf32>
    %95 = vector.shape_cast %90 : vector<32x8xf32> to vector<1x32x8xf32>
    %96 = vector.shape_cast %91 : vector<32x8xf32> to vector<1x32x8xf32>
    %97 = tpu.concatenate %92, %93, %94, %95, %96 in 0 : vector<1x32x8xf32>, vector<1x32x8xf32>, vector<1x32x8xf32>, vector<1x32x8xf32>, vector<1x32x8xf32> -> vector<5x32x8xf32>
    %cst_89 = arith.constant 0.000000e+00 : f32
    %98 = vector.broadcast %cst_89 : f32 to vector<10x40xf32>
    %cst_90 = arith.constant dense<0.000000e+00> : vector<10x40xf32>
    %99 = tpu.matmul %98, %19, %cst_90 {dimension_numbers = #tpu.dot_dimension_numbers<[1], [0], [0], [1], [0, 0, 1, 1], [], []>} : vector<10x40xf32>, vector<40x40xf32>, vector<10x40xf32> -> vector<10x40xf32>
    %100 = vector.broadcast %31 : vector<1x40xf32> to vector<10x40xf32>
    %101 = arith.addf %99, %100 : vector<10x40xf32>
    %102 = vector.extract_strided_slice %101 {offsets = [0, 0], sizes = [10, 8], strides = [1, 1]} : vector<10x40xf32> to vector<10x8xf32>
    %103 = vector.extract_strided_slice %101 {offsets = [0, 8], sizes = [10, 8], strides = [1, 1]} : vector<10x40xf32> to vector<10x8xf32>
    %104 = vector.extract_strided_slice %101 {offsets = [0, 16], sizes = [10, 8], strides = [1, 1]} : vector<10x40xf32> to vector<10x8xf32>
    %105 = vector.extract_strided_slice %101 {offsets = [0, 24], sizes = [10, 8], strides = [1, 1]} : vector<10x40xf32> to vector<10x8xf32>
    %106 = vector.extract_strided_slice %101 {offsets = [0, 32], sizes = [10, 8], strides = [1, 1]} : vector<10x40xf32> to vector<10x8xf32>
    %107 = vector.shape_cast %102 : vector<10x8xf32> to vector<1x10x8xf32>
    %108 = vector.shape_cast %103 : vector<10x8xf32> to vector<1x10x8xf32>
    %109 = vector.shape_cast %104 : vector<10x8xf32> to vector<1x10x8xf32>
    %110 = vector.shape_cast %105 : vector<10x8xf32> to vector<1x10x8xf32>
    %111 = vector.shape_cast %106 : vector<10x8xf32> to vector<1x10x8xf32>
    %112 = tpu.concatenate %107, %108, %109, %110, %111 in 0 : vector<1x10x8xf32>, vector<1x10x8xf32>, vector<1x10x8xf32>, vector<1x10x8xf32>, vector<1x10x8xf32> -> vector<5x10x8xf32>
    %cst_91 = arith.constant dense<0.000000e+00> : vector<10x40xf32>
    %113 = tpu.matmul %98, %21, %cst_91 {dimension_numbers = #tpu.dot_dimension_numbers<[1], [0], [0], [1], [0, 0, 1, 1], [], []>} : vector<10x40xf32>, vector<40x40xf32>, vector<10x40xf32> -> vector<10x40xf32>
    %114 = vector.broadcast %33 : vector<1x40xf32> to vector<10x40xf32>
    %115 = arith.addf %113, %114 : vector<10x40xf32>
    %116 = vector.extract_strided_slice %115 {offsets = [0, 0], sizes = [10, 8], strides = [1, 1]} : vector<10x40xf32> to vector<10x8xf32>
    %117 = vector.extract_strided_slice %115 {offsets = [0, 8], sizes = [10, 8], strides = [1, 1]} : vector<10x40xf32> to vector<10x8xf32>
    %118 = vector.extract_strided_slice %115 {offsets = [0, 16], sizes = [10, 8], strides = [1, 1]} : vector<10x40xf32> to vector<10x8xf32>
    %119 = vector.extract_strided_slice %115 {offsets = [0, 24], sizes = [10, 8], strides = [1, 1]} : vector<10x40xf32> to vector<10x8xf32>
    %120 = vector.extract_strided_slice %115 {offsets = [0, 32], sizes = [10, 8], strides = [1, 1]} : vector<10x40xf32> to vector<10x8xf32>
    %121 = vector.shape_cast %116 : vector<10x8xf32> to vector<1x10x8xf32>
    %122 = vector.shape_cast %117 : vector<10x8xf32> to vector<1x10x8xf32>
    %123 = vector.shape_cast %118 : vector<10x8xf32> to vector<1x10x8xf32>
    %124 = vector.shape_cast %119 : vector<10x8xf32> to vector<1x10x8xf32>
    %125 = vector.shape_cast %120 : vector<10x8xf32> to vector<1x10x8xf32>
    %126 = tpu.concatenate %121, %122, %123, %124, %125 in 0 : vector<1x10x8xf32>, vector<1x10x8xf32>, vector<1x10x8xf32>, vector<1x10x8xf32>, vector<1x10x8xf32> -> vector<5x10x8xf32>
    %cst_92 = arith.constant dense<0.000000e+00> : vector<10x40xf32>
    %127 = tpu.matmul %98, %23, %cst_92 {dimension_numbers = #tpu.dot_dimension_numbers<[1], [0], [0], [1], [0, 0, 1, 1], [], []>} : vector<10x40xf32>, vector<40x40xf32>, vector<10x40xf32> -> vector<10x40xf32>
    %128 = vector.broadcast %35 : vector<1x40xf32> to vector<10x40xf32>
    %129 = arith.addf %127, %128 : vector<10x40xf32>
    %130 = vector.extract_strided_slice %129 {offsets = [0, 0], sizes = [10, 8], strides = [1, 1]} : vector<10x40xf32> to vector<10x8xf32>
    %131 = vector.extract_strided_slice %129 {offsets = [0, 8], sizes = [10, 8], strides = [1, 1]} : vector<10x40xf32> to vector<10x8xf32>
    %132 = vector.extract_strided_slice %129 {offsets = [0, 16], sizes = [10, 8], strides = [1, 1]} : vector<10x40xf32> to vector<10x8xf32>
    %133 = vector.extract_strided_slice %129 {offsets = [0, 24], sizes = [10, 8], strides = [1, 1]} : vector<10x40xf32> to vector<10x8xf32>
    %134 = vector.extract_strided_slice %129 {offsets = [0, 32], sizes = [10, 8], strides = [1, 1]} : vector<10x40xf32> to vector<10x8xf32>
    %135 = vector.shape_cast %130 : vector<10x8xf32> to vector<1x10x8xf32>
    %136 = vector.shape_cast %131 : vector<10x8xf32> to vector<1x10x8xf32>
    %137 = vector.shape_cast %132 : vector<10x8xf32> to vector<1x10x8xf32>
    %138 = vector.shape_cast %133 : vector<10x8xf32> to vector<1x10x8xf32>
    %139 = vector.shape_cast %134 : vector<10x8xf32> to vector<1x10x8xf32>
    %140 = tpu.concatenate %135, %136, %137, %138, %139 in 0 : vector<1x10x8xf32>, vector<1x10x8xf32>, vector<1x10x8xf32>, vector<1x10x8xf32>, vector<1x10x8xf32> -> vector<5x10x8xf32>
    "tpu.trace_start"() <{level = 10 : i32, message = "hqd,hkd->hqk"}> : () -> ()
    %cst_93 = arith.constant dense<0.000000e+00> : vector<5x10x10xf32>
    %141 = tpu.matmul %112, %126, %cst_93 {dimension_numbers = #tpu.dot_dimension_numbers<[2], [2], [1], [1], [0, 0, 0, 1, 1, 1], [0], [0]>} : vector<5x10x8xf32>, vector<5x10x8xf32>, vector<5x10x10xf32> -> vector<5x10x10xf32>
    "tpu.trace_stop"() : () -> ()
    %142 = vector.shape_cast %9 : vector<10x10xf32> to vector<1x10x10xf32>
    %143 = vector.broadcast %142 : vector<1x10x10xf32> to vector<5x10x10xf32>
    %144 = arith.addf %141, %143 : vector<5x10x10xf32>
    %cst_94 = arith.constant dense<0xFF800000> : vector<5x10xf32>
    %145 = vector.multi_reduction <maximumf>, %144, %cst_94 [2] : vector<5x10x10xf32> to vector<5x10xf32>
    %146 = vector.shape_cast %145 : vector<5x10xf32> to vector<5x10x1xf32>
    %147 = vector.broadcast %146 : vector<5x10x1xf32> to vector<5x10x10xf32>
    %148 = arith.subf %144, %147 : vector<5x10x10xf32>
    %149 = math.exp %148 : vector<5x10x10xf32>
    %cst_95 = arith.constant dense<0.000000e+00> : vector<5x10xf32>
    %150 = vector.multi_reduction <add>, %149, %cst_95 [2] : vector<5x10x10xf32> to vector<5x10xf32>
    %151 = vector.shape_cast %150 : vector<5x10xf32> to vector<5x10x1xf32>
    %152 = vector.broadcast %151 : vector<5x10x1xf32> to vector<5x10x10xf32>
    %153 = arith.divf %149, %152 : vector<5x10x10xf32>
    "tpu.trace_start"() <{level = 10 : i32, message = "hqk,hkd->hqd"}> : () -> ()
    %cst_96 = arith.constant dense<0.000000e+00> : vector<5x10x8xf32>
    %154 = tpu.matmul %153, %140, %cst_96 {dimension_numbers = #tpu.dot_dimension_numbers<[2], [1], [1], [2], [0, 0, 0, 1, 1, 2], [0], [0]>} : vector<5x10x10xf32>, vector<5x10x8xf32>, vector<5x10x8xf32> -> vector<5x10x8xf32>
    "tpu.trace_stop"() : () -> ()
    %155 = vector.extract_strided_slice %154 {offsets = [0, 0, 0], sizes = [1, 10, 8], strides = [1, 1, 1]} : vector<5x10x8xf32> to vector<1x10x8xf32>
    %156 = vector.shape_cast %155 : vector<1x10x8xf32> to vector<10x8xf32>
    %157 = vector.extract_strided_slice %154 {offsets = [1, 0, 0], sizes = [1, 10, 8], strides = [1, 1, 1]} : vector<5x10x8xf32> to vector<1x10x8xf32>
    %158 = vector.shape_cast %157 : vector<1x10x8xf32> to vector<10x8xf32>
    %159 = vector.extract_strided_slice %154 {offsets = [2, 0, 0], sizes = [1, 10, 8], strides = [1, 1, 1]} : vector<5x10x8xf32> to vector<1x10x8xf32>
    %160 = vector.shape_cast %159 : vector<1x10x8xf32> to vector<10x8xf32>
    %161 = vector.extract_strided_slice %154 {offsets = [3, 0, 0], sizes = [1, 10, 8], strides = [1, 1, 1]} : vector<5x10x8xf32> to vector<1x10x8xf32>
    %162 = vector.shape_cast %161 : vector<1x10x8xf32> to vector<10x8xf32>
    %163 = vector.extract_strided_slice %154 {offsets = [4, 0, 0], sizes = [1, 10, 8], strides = [1, 1, 1]} : vector<5x10x8xf32> to vector<1x10x8xf32>
    %164 = vector.shape_cast %163 : vector<1x10x8xf32> to vector<10x8xf32>
    %165 = tpu.concatenate %156, %158, %160, %162, %164 in 1 : vector<10x8xf32>, vector<10x8xf32>, vector<10x8xf32>, vector<10x8xf32>, vector<10x8xf32> -> vector<10x40xf32>
    %cst_97 = arith.constant dense<0.000000e+00> : vector<10x40xf32>
    %166 = tpu.matmul %165, %43, %cst_97 {dimension_numbers = #tpu.dot_dimension_numbers<[1], [0], [0], [1], [0, 0, 1, 1], [], []>} : vector<10x40xf32>, vector<40x40xf32>, vector<10x40xf32> -> vector<10x40xf32>
    %167 = vector.broadcast %47 : vector<1x40xf32> to vector<10x40xf32>
    %168 = arith.addf %166, %167 : vector<10x40xf32>
    %169 = arith.addf %98, %168 : vector<10x40xf32>
    %cst_98 = arith.constant dense<0.000000e+00> : vector<10xf32>
    %170 = vector.multi_reduction <add>, %169, %cst_98 [1] : vector<10x40xf32> to vector<10xf32>
    %171 = vector.shape_cast %170 : vector<10xf32> to vector<10x1xf32>
    %cst_99 = arith.constant 4.000000e+01 : f32
    %172 = vector.broadcast %cst_99 : f32 to vector<10x1xf32>
    %173 = arith.divf %171, %172 : vector<10x1xf32>
    %174 = vector.broadcast %173 : vector<10x1xf32> to vector<10x40xf32>
    %175 = arith.subf %169, %174 : vector<10x40xf32>
    %176 = arith.mulf %175, %175 : vector<10x40xf32>
    %cst_100 = arith.constant dense<0.000000e+00> : vector<10xf32>
    %177 = vector.multi_reduction <add>, %176, %cst_100 [1] : vector<10x40xf32> to vector<10xf32>
    %178 = vector.shape_cast %177 : vector<10xf32> to vector<10x1xf32>
    %cst_101 = arith.constant 4.000000e+01 : f32
    %179 = vector.broadcast %cst_101 : f32 to vector<10x1xf32>
    %180 = arith.divf %178, %179 : vector<10x1xf32>
    %cst_102 = arith.constant 9.99999974E-6 : f32
    %181 = vector.broadcast %cst_102 : f32 to vector<10x1xf32>
    %182 = arith.addf %180, %181 : vector<10x1xf32>
    %183 = math.rsqrt %182 : vector<10x1xf32>
    %184 = vector.broadcast %183 : vector<10x1xf32> to vector<10x40xf32>
    %185 = arith.mulf %175, %184 : vector<10x40xf32>
    %186 = vector.broadcast %51 : vector<1x40xf32> to vector<10x40xf32>
    %187 = arith.mulf %185, %186 : vector<10x40xf32>
    %188 = vector.broadcast %53 : vector<1x40xf32> to vector<10x40xf32>
    %189 = arith.addf %187, %188 : vector<10x40xf32>
    %190 = arith.addf %189, %1 : vector<10x40xf32>
    %cst_103 = arith.constant dense<0.000000e+00> : vector<10x40xf32>
    %191 = tpu.matmul %190, %25, %cst_103 {dimension_numbers = #tpu.dot_dimension_numbers<[1], [0], [0], [1], [0, 0, 1, 1], [], []>} : vector<10x40xf32>, vector<40x40xf32>, vector<10x40xf32> -> vector<10x40xf32>
    %192 = vector.broadcast %37 : vector<1x40xf32> to vector<10x40xf32>
    %193 = arith.addf %191, %192 : vector<10x40xf32>
    %194 = vector.extract_strided_slice %193 {offsets = [0, 0], sizes = [10, 8], strides = [1, 1]} : vector<10x40xf32> to vector<10x8xf32>
    %195 = vector.extract_strided_slice %193 {offsets = [0, 8], sizes = [10, 8], strides = [1, 1]} : vector<10x40xf32> to vector<10x8xf32>
    %196 = vector.extract_strided_slice %193 {offsets = [0, 16], sizes = [10, 8], strides = [1, 1]} : vector<10x40xf32> to vector<10x8xf32>
    %197 = vector.extract_strided_slice %193 {offsets = [0, 24], sizes = [10, 8], strides = [1, 1]} : vector<10x40xf32> to vector<10x8xf32>
    %198 = vector.extract_strided_slice %193 {offsets = [0, 32], sizes = [10, 8], strides = [1, 1]} : vector<10x40xf32> to vector<10x8xf32>
    %199 = vector.shape_cast %194 : vector<10x8xf32> to vector<1x10x8xf32>
    %200 = vector.shape_cast %195 : vector<10x8xf32> to vector<1x10x8xf32>
    %201 = vector.shape_cast %196 : vector<10x8xf32> to vector<1x10x8xf32>
    %202 = vector.shape_cast %197 : vector<10x8xf32> to vector<1x10x8xf32>
    %203 = vector.shape_cast %198 : vector<10x8xf32> to vector<1x10x8xf32>
    %204 = tpu.concatenate %199, %200, %201, %202, %203 in 0 : vector<1x10x8xf32>, vector<1x10x8xf32>, vector<1x10x8xf32>, vector<1x10x8xf32>, vector<1x10x8xf32> -> vector<5x10x8xf32>
    "tpu.trace_start"() <{level = 10 : i32, message = "hqd,hkd->hqk"}> : () -> ()
    %cst_104 = arith.constant dense<0.000000e+00> : vector<5x10x32xf32>
    %205 = tpu.matmul %204, %83, %cst_104 {dimension_numbers = #tpu.dot_dimension_numbers<[2], [2], [1], [1], [0, 0, 0, 1, 1, 1], [0], [0]>} : vector<5x10x8xf32>, vector<5x32x8xf32>, vector<5x10x32xf32> -> vector<5x10x32xf32>
    "tpu.trace_stop"() : () -> ()
    %206 = vector.shape_cast %17 : vector<10x32xf32> to vector<1x10x32xf32>
    %207 = vector.broadcast %206 : vector<1x10x32xf32> to vector<5x10x32xf32>
    %208 = arith.addf %205, %207 : vector<5x10x32xf32>
    %cst_105 = arith.constant dense<0xFF800000> : vector<5x10xf32>
    %209 = vector.multi_reduction <maximumf>, %208, %cst_105 [2] : vector<5x10x32xf32> to vector<5x10xf32>
    %210 = vector.shape_cast %209 : vector<5x10xf32> to vector<5x10x1xf32>
    %211 = vector.broadcast %210 : vector<5x10x1xf32> to vector<5x10x32xf32>
    %212 = arith.subf %208, %211 : vector<5x10x32xf32>
    %213 = math.exp %212 : vector<5x10x32xf32>
    %cst_106 = arith.constant dense<0.000000e+00> : vector<5x10xf32>
    %214 = vector.multi_reduction <add>, %213, %cst_106 [2] : vector<5x10x32xf32> to vector<5x10xf32>
    %215 = vector.shape_cast %214 : vector<5x10xf32> to vector<5x10x1xf32>
    %216 = vector.broadcast %215 : vector<5x10x1xf32> to vector<5x10x32xf32>
    %217 = arith.divf %213, %216 : vector<5x10x32xf32>
    "tpu.trace_start"() <{level = 10 : i32, message = "hqk,hkd->hqd"}> : () -> ()
    %cst_107 = arith.constant dense<0.000000e+00> : vector<5x10x8xf32>
    %218 = tpu.matmul %217, %97, %cst_107 {dimension_numbers = #tpu.dot_dimension_numbers<[2], [1], [1], [2], [0, 0, 0, 1, 1, 2], [0], [0]>} : vector<5x10x32xf32>, vector<5x32x8xf32>, vector<5x10x8xf32> -> vector<5x10x8xf32>
    "tpu.trace_stop"() : () -> ()
    %219 = vector.extract_strided_slice %218 {offsets = [0, 0, 0], sizes = [1, 10, 8], strides = [1, 1, 1]} : vector<5x10x8xf32> to vector<1x10x8xf32>
    %220 = vector.shape_cast %219 : vector<1x10x8xf32> to vector<10x8xf32>
    %221 = vector.extract_strided_slice %218 {offsets = [1, 0, 0], sizes = [1, 10, 8], strides = [1, 1, 1]} : vector<5x10x8xf32> to vector<1x10x8xf32>
    %222 = vector.shape_cast %221 : vector<1x10x8xf32> to vector<10x8xf32>
    %223 = vector.extract_strided_slice %218 {offsets = [2, 0, 0], sizes = [1, 10, 8], strides = [1, 1, 1]} : vector<5x10x8xf32> to vector<1x10x8xf32>
    %224 = vector.shape_cast %223 : vector<1x10x8xf32> to vector<10x8xf32>
    %225 = vector.extract_strided_slice %218 {offsets = [3, 0, 0], sizes = [1, 10, 8], strides = [1, 1, 1]} : vector<5x10x8xf32> to vector<1x10x8xf32>
    %226 = vector.shape_cast %225 : vector<1x10x8xf32> to vector<10x8xf32>
    %227 = vector.extract_strided_slice %218 {offsets = [4, 0, 0], sizes = [1, 10, 8], strides = [1, 1, 1]} : vector<5x10x8xf32> to vector<1x10x8xf32>
    %228 = vector.shape_cast %227 : vector<1x10x8xf32> to vector<10x8xf32>
    %229 = tpu.concatenate %220, %222, %224, %226, %228 in 1 : vector<10x8xf32>, vector<10x8xf32>, vector<10x8xf32>, vector<10x8xf32>, vector<10x8xf32> -> vector<10x40xf32>
    %cst_108 = arith.constant dense<0.000000e+00> : vector<10x40xf32>
    %230 = tpu.matmul %229, %45, %cst_108 {dimension_numbers = #tpu.dot_dimension_numbers<[1], [0], [0], [1], [0, 0, 1, 1], [], []>} : vector<10x40xf32>, vector<40x40xf32>, vector<10x40xf32> -> vector<10x40xf32>
    %231 = vector.broadcast %49 : vector<1x40xf32> to vector<10x40xf32>
    %232 = arith.addf %230, %231 : vector<10x40xf32>
    %233 = arith.addf %189, %232 : vector<10x40xf32>
    %cst_109 = arith.constant dense<0.000000e+00> : vector<10xf32>
    %234 = vector.multi_reduction <add>, %233, %cst_109 [1] : vector<10x40xf32> to vector<10xf32>
    %235 = vector.shape_cast %234 : vector<10xf32> to vector<10x1xf32>
    %cst_110 = arith.constant 4.000000e+01 : f32
    %236 = vector.broadcast %cst_110 : f32 to vector<10x1xf32>
    %237 = arith.divf %235, %236 : vector<10x1xf32>
    %238 = vector.broadcast %237 : vector<10x1xf32> to vector<10x40xf32>
    %239 = arith.subf %233, %238 : vector<10x40xf32>
    %240 = arith.mulf %239, %239 : vector<10x40xf32>
    %cst_111 = arith.constant dense<0.000000e+00> : vector<10xf32>
    %241 = vector.multi_reduction <add>, %240, %cst_111 [1] : vector<10x40xf32> to vector<10xf32>
    %242 = vector.shape_cast %241 : vector<10xf32> to vector<10x1xf32>
    %cst_112 = arith.constant 4.000000e+01 : f32
    %243 = vector.broadcast %cst_112 : f32 to vector<10x1xf32>
    %244 = arith.divf %242, %243 : vector<10x1xf32>
    %cst_113 = arith.constant 9.99999974E-6 : f32
    %245 = vector.broadcast %cst_113 : f32 to vector<10x1xf32>
    %246 = arith.addf %244, %245 : vector<10x1xf32>
    %247 = math.rsqrt %246 : vector<10x1xf32>
    %248 = vector.broadcast %247 : vector<10x1xf32> to vector<10x40xf32>
    %249 = arith.mulf %239, %248 : vector<10x40xf32>
    %250 = vector.broadcast %55 : vector<1x40xf32> to vector<10x40xf32>
    %251 = arith.mulf %249, %250 : vector<10x40xf32>
    %252 = vector.broadcast %57 : vector<1x40xf32> to vector<10x40xf32>
    %253 = arith.addf %251, %252 : vector<10x40xf32>
    %cst_114 = arith.constant dense<0.000000e+00> : vector<10x64xf32>
    %254 = tpu.matmul %253, %66, %cst_114 {dimension_numbers = #tpu.dot_dimension_numbers<[1], [0], [0], [1], [0, 0, 1, 1], [], []>} : vector<10x40xf32>, vector<40x64xf32>, vector<10x64xf32> -> vector<10x64xf32>
    %255 = vector.broadcast %67 : vector<1x64xf32> to vector<10x64xf32>
    %256 = arith.addf %254, %255 : vector<10x64xf32>
    %cst_115 = arith.constant 0.000000e+00 : f32
    %257 = vector.broadcast %cst_115 : f32 to vector<10x64xf32>
    %258 = arith.maximumf %256, %257 : vector<10x64xf32>
    %cst_116 = arith.constant dense<0.000000e+00> : vector<10x40xf32>
    %259 = tpu.matmul %258, %68, %cst_116 {dimension_numbers = #tpu.dot_dimension_numbers<[1], [0], [0], [1], [0, 0, 1, 1], [], []>} : vector<10x64xf32>, vector<64x40xf32>, vector<10x40xf32> -> vector<10x40xf32>
    %260 = vector.broadcast %69 : vector<1x40xf32> to vector<10x40xf32>
    %261 = arith.addf %259, %260 : vector<10x40xf32>
    %262 = arith.addf %253, %261 : vector<10x40xf32>
    %cst_117 = arith.constant dense<0.000000e+00> : vector<10xf32>
    %263 = vector.multi_reduction <add>, %262, %cst_117 [1] : vector<10x40xf32> to vector<10xf32>
    %264 = vector.shape_cast %263 : vector<10xf32> to vector<10x1xf32>
    %cst_118 = arith.constant 4.000000e+01 : f32
    %265 = vector.broadcast %cst_118 : f32 to vector<10x1xf32>
    %266 = arith.divf %264, %265 : vector<10x1xf32>
    %267 = vector.broadcast %266 : vector<10x1xf32> to vector<10x40xf32>
    %268 = arith.subf %262, %267 : vector<10x40xf32>
    %269 = arith.mulf %268, %268 : vector<10x40xf32>
    %cst_119 = arith.constant dense<0.000000e+00> : vector<10xf32>
    %270 = vector.multi_reduction <add>, %269, %cst_119 [1] : vector<10x40xf32> to vector<10xf32>
    %271 = vector.shape_cast %270 : vector<10xf32> to vector<10x1xf32>
    %cst_120 = arith.constant 4.000000e+01 : f32
    %272 = vector.broadcast %cst_120 : f32 to vector<10x1xf32>
    %273 = arith.divf %271, %272 : vector<10x1xf32>
    %cst_121 = arith.constant 9.99999974E-6 : f32
    %274 = vector.broadcast %cst_121 : f32 to vector<10x1xf32>
    %275 = arith.addf %273, %274 : vector<10x1xf32>
    %276 = math.rsqrt %275 : vector<10x1xf32>
    %277 = vector.broadcast %276 : vector<10x1xf32> to vector<10x40xf32>
    %278 = arith.mulf %268, %277 : vector<10x40xf32>
    %279 = vector.broadcast %59 : vector<1x40xf32> to vector<10x40xf32>
    %280 = arith.mulf %278, %279 : vector<10x40xf32>
    %281 = vector.broadcast %61 : vector<1x40xf32> to vector<10x40xf32>
    %282 = arith.addf %280, %281 : vector<10x40xf32>
    %cst_122 = arith.constant dense<0.000000e+00> : vector<10xf32>
    %283 = vector.multi_reduction <add>, %282, %cst_122 [1] : vector<10x40xf32> to vector<10xf32>
    %284 = vector.shape_cast %283 : vector<10xf32> to vector<10x1xf32>
    %cst_123 = arith.constant 4.000000e+01 : f32
    %285 = vector.broadcast %cst_123 : f32 to vector<10x1xf32>
    %286 = arith.divf %284, %285 : vector<10x1xf32>
    %287 = vector.broadcast %286 : vector<10x1xf32> to vector<10x40xf32>
    %288 = arith.subf %282, %287 : vector<10x40xf32>
    %289 = arith.mulf %288, %288 : vector<10x40xf32>
    %cst_124 = arith.constant dense<0.000000e+00> : vector<10xf32>
    %290 = vector.multi_reduction <add>, %289, %cst_124 [1] : vector<10x40xf32> to vector<10xf32>
    %291 = vector.shape_cast %290 : vector<10xf32> to vector<10x1xf32>
    %cst_125 = arith.constant 4.000000e+01 : f32
    %292 = vector.broadcast %cst_125 : f32 to vector<10x1xf32>
    %293 = arith.divf %291, %292 : vector<10x1xf32>
    %cst_126 = arith.constant 9.99999974E-6 : f32
    %294 = vector.broadcast %cst_126 : f32 to vector<10x1xf32>
    %295 = arith.addf %293, %294 : vector<10x1xf32>
    %296 = math.rsqrt %295 : vector<10x1xf32>
    %297 = vector.broadcast %296 : vector<10x1xf32> to vector<10x40xf32>
    %298 = arith.mulf %288, %297 : vector<10x40xf32>
    %299 = vector.broadcast %63 : vector<1x40xf32> to vector<10x40xf32>
    %300 = arith.mulf %298, %299 : vector<10x40xf32>
    %301 = vector.broadcast %65 : vector<1x40xf32> to vector<10x40xf32>
    %302 = arith.addf %300, %301 : vector<10x40xf32>
    %c0_127 = arith.constant 0 : index
    %c0_128 = arith.constant 0 : index
    %c0_129 = arith.constant 0 : index
    %303 = vector.load %arg14[%c0_127, %c0_128, %c0_129] : memref<4x40x10xf32, #tpu.memory_space<vmem>>, vector<1x40x10xf32>
    %304 = vector.shape_cast %303 : vector<1x40x10xf32> to vector<40x10xf32>
    %cst_130 = arith.constant dense<0.000000e+00> : vector<10x10xf32>
    %305 = tpu.matmul %302, %304, %cst_130 {dimension_numbers = #tpu.dot_dimension_numbers<[1], [0], [0], [1], [0, 0, 1, 1], [], []>} : vector<10x40xf32>, vector<40x10xf32>, vector<10x10xf32> -> vector<10x10xf32>
    %c0_131 = arith.constant 0 : index
    %c0_132 = arith.constant 0 : index
    %c0_133 = arith.constant 0 : index
    %306 = vector.load %arg15[%c0_131, %c0_132, %c0_133] : memref<4x1x10xf32, #tpu.memory_space<vmem>>, vector<1x1x10xf32>
    %307 = vector.shape_cast %306 : vector<1x1x10xf32> to vector<1x10xf32>
    %308 = vector.broadcast %307 : vector<1x10xf32> to vector<10x10xf32>
    %309 = arith.addf %305, %308 : vector<10x10xf32>
    %c0_134 = arith.constant 0 : index
    %c0_135 = arith.constant 0 : index
    %310 = vector.load %arg16[%c0_134, %c0_135] : memref<10x40xf32, #tpu.memory_space<vmem>>, vector<10x10xf32>
    tpu.vector_store %arg16[%c0_134, %c0_135], %309 {strides = array<i32>} : memref<10x40xf32, #tpu.memory_space<vmem>>, vector<10x10xf32>,
    %cst_136 = arith.constant dense<0.000000e+00> : vector<10x40xf32>
    %311 = tpu.matmul %282, %19, %cst_136 {dimension_numbers = #tpu.dot_dimension_numbers<[1], [0], [0], [1], [0, 0, 1, 1], [], []>} : vector<10x40xf32>, vector<40x40xf32>, vector<10x40xf32> -> vector<10x40xf32>
    %312 = vector.broadcast %31 : vector<1x40xf32> to vector<10x40xf32>
    %313 = arith.addf %311, %312 : vector<10x40xf32>
    %314 = vector.extract_strided_slice %313 {offsets = [0, 0], sizes = [10, 8], strides = [1, 1]} : vector<10x40xf32> to vector<10x8xf32>
    %315 = vector.extract_strided_slice %313 {offsets = [0, 8], sizes = [10, 8], strides = [1, 1]} : vector<10x40xf32> to vector<10x8xf32>
    %316 = vector.extract_strided_slice %313 {offsets = [0, 16], sizes = [10, 8], strides = [1, 1]} : vector<10x40xf32> to vector<10x8xf32>
    %317 = vector.extract_strided_slice %313 {offsets = [0, 24], sizes = [10, 8], strides = [1, 1]} : vector<10x40xf32> to vector<10x8xf32>
    %318 = vector.extract_strided_slice %313 {offsets = [0, 32], sizes = [10, 8], strides = [1, 1]} : vector<10x40xf32> to vector<10x8xf32>
    %319 = vector.shape_cast %314 : vector<10x8xf32> to vector<1x10x8xf32>
    %320 = vector.shape_cast %315 : vector<10x8xf32> to vector<1x10x8xf32>
    %321 = vector.shape_cast %316 : vector<10x8xf32> to vector<1x10x8xf32>
    %322 = vector.shape_cast %317 : vector<10x8xf32> to vector<1x10x8xf32>
    %323 = vector.shape_cast %318 : vector<10x8xf32> to vector<1x10x8xf32>
    %324 = tpu.concatenate %319, %320, %321, %322, %323 in 0 : vector<1x10x8xf32>, vector<1x10x8xf32>, vector<1x10x8xf32>, vector<1x10x8xf32>, vector<1x10x8xf32> -> vector<5x10x8xf32>
    %cst_137 = arith.constant dense<0.000000e+00> : vector<10x40xf32>
    %325 = tpu.matmul %282, %21, %cst_137 {dimension_numbers = #tpu.dot_dimension_numbers<[1], [0], [0], [1], [0, 0, 1, 1], [], []>} : vector<10x40xf32>, vector<40x40xf32>, vector<10x40xf32> -> vector<10x40xf32>
    %326 = vector.broadcast %33 : vector<1x40xf32> to vector<10x40xf32>
    %327 = arith.addf %325, %326 : vector<10x40xf32>
    %328 = vector.extract_strided_slice %327 {offsets = [0, 0], sizes = [10, 8], strides = [1, 1]} : vector<10x40xf32> to vector<10x8xf32>
    %329 = vector.extract_strided_slice %327 {offsets = [0, 8], sizes = [10, 8], strides = [1, 1]} : vector<10x40xf32> to vector<10x8xf32>
    %330 = vector.extract_strided_slice %327 {offsets = [0, 16], sizes = [10, 8], strides = [1, 1]} : vector<10x40xf32> to vector<10x8xf32>
    %331 = vector.extract_strided_slice %327 {offsets = [0, 24], sizes = [10, 8], strides = [1, 1]} : vector<10x40xf32> to vector<10x8xf32>
    %332 = vector.extract_strided_slice %327 {offsets = [0, 32], sizes = [10, 8], strides = [1, 1]} : vector<10x40xf32> to vector<10x8xf32>
    %333 = vector.shape_cast %328 : vector<10x8xf32> to vector<1x10x8xf32>
    %334 = vector.shape_cast %329 : vector<10x8xf32> to vector<1x10x8xf32>
    %335 = vector.shape_cast %330 : vector<10x8xf32> to vector<1x10x8xf32>
    %336 = vector.shape_cast %331 : vector<10x8xf32> to vector<1x10x8xf32>
    %337 = vector.shape_cast %332 : vector<10x8xf32> to vector<1x10x8xf32>
    %338 = tpu.concatenate %333, %334, %335, %336, %337 in 0 : vector<1x10x8xf32>, vector<1x10x8xf32>, vector<1x10x8xf32>, vector<1x10x8xf32>, vector<1x10x8xf32> -> vector<5x10x8xf32>
    %cst_138 = arith.constant dense<0.000000e+00> : vector<10x40xf32>
    %339 = tpu.matmul %282, %23, %cst_138 {dimension_numbers = #tpu.dot_dimension_numbers<[1], [0], [0], [1], [0, 0, 1, 1], [], []>} : vector<10x40xf32>, vector<40x40xf32>, vector<10x40xf32> -> vector<10x40xf32>
    %340 = vector.broadcast %35 : vector<1x40xf32> to vector<10x40xf32>
    %341 = arith.addf %339, %340 : vector<10x40xf32>
    %342 = vector.extract_strided_slice %341 {offsets = [0, 0], sizes = [10, 8], strides = [1, 1]} : vector<10x40xf32> to vector<10x8xf32>
    %343 = vector.extract_strided_slice %341 {offsets = [0, 8], sizes = [10, 8], strides = [1, 1]} : vector<10x40xf32> to vector<10x8xf32>
    %344 = vector.extract_strided_slice %341 {offsets = [0, 16], sizes = [10, 8], strides = [1, 1]} : vector<10x40xf32> to vector<10x8xf32>
    %345 = vector.extract_strided_slice %341 {offsets = [0, 24], sizes = [10, 8], strides = [1, 1]} : vector<10x40xf32> to vector<10x8xf32>
    %346 = vector.extract_strided_slice %341 {offsets = [0, 32], sizes = [10, 8], strides = [1, 1]} : vector<10x40xf32> to vector<10x8xf32>
    %347 = vector.shape_cast %342 : vector<10x8xf32> to vector<1x10x8xf32>
    %348 = vector.shape_cast %343 : vector<10x8xf32> to vector<1x10x8xf32>
    %349 = vector.shape_cast %344 : vector<10x8xf32> to vector<1x10x8xf32>
    %350 = vector.shape_cast %345 : vector<10x8xf32> to vector<1x10x8xf32>
    %351 = vector.shape_cast %346 : vector<10x8xf32> to vector<1x10x8xf32>
    %352 = tpu.concatenate %347, %348, %349, %350, %351 in 0 : vector<1x10x8xf32>, vector<1x10x8xf32>, vector<1x10x8xf32>, vector<1x10x8xf32>, vector<1x10x8xf32> -> vector<5x10x8xf32>
    "tpu.trace_start"() <{level = 10 : i32, message = "hqd,hkd->hqk"}> : () -> ()
    %cst_139 = arith.constant dense<0.000000e+00> : vector<5x10x10xf32>
    %353 = tpu.matmul %324, %338, %cst_139 {dimension_numbers = #tpu.dot_dimension_numbers<[2], [2], [1], [1], [0, 0, 0, 1, 1, 1], [0], [0]>} : vector<5x10x8xf32>, vector<5x10x8xf32>, vector<5x10x10xf32> -> vector<5x10x10xf32>
    "tpu.trace_stop"() : () -> ()
    %354 = vector.shape_cast %9 : vector<10x10xf32> to vector<1x10x10xf32>
    %355 = vector.broadcast %354 : vector<1x10x10xf32> to vector<5x10x10xf32>
    %356 = arith.addf %353, %355 : vector<5x10x10xf32>
    %cst_140 = arith.constant dense<0xFF800000> : vector<5x10xf32>
    %357 = vector.multi_reduction <maximumf>, %356, %cst_140 [2] : vector<5x10x10xf32> to vector<5x10xf32>
    %358 = vector.shape_cast %357 : vector<5x10xf32> to vector<5x10x1xf32>
    %359 = vector.broadcast %358 : vector<5x10x1xf32> to vector<5x10x10xf32>
    %360 = arith.subf %356, %359 : vector<5x10x10xf32>
    %361 = math.exp %360 : vector<5x10x10xf32>
    %cst_141 = arith.constant dense<0.000000e+00> : vector<5x10xf32>
    %362 = vector.multi_reduction <add>, %361, %cst_141 [2] : vector<5x10x10xf32> to vector<5x10xf32>
    %363 = vector.shape_cast %362 : vector<5x10xf32> to vector<5x10x1xf32>
    %364 = vector.broadcast %363 : vector<5x10x1xf32> to vector<5x10x10xf32>
    %365 = arith.divf %361, %364 : vector<5x10x10xf32>
    "tpu.trace_start"() <{level = 10 : i32, message = "hqk,hkd->hqd"}> : () -> ()
    %cst_142 = arith.constant dense<0.000000e+00> : vector<5x10x8xf32>
    %366 = tpu.matmul %365, %352, %cst_142 {dimension_numbers = #tpu.dot_dimension_numbers<[2], [1], [1], [2], [0, 0, 0, 1, 1, 2], [0], [0]>} : vector<5x10x10xf32>, vector<5x10x8xf32>, vector<5x10x8xf32> -> vector<5x10x8xf32>
    "tpu.trace_stop"() : () -> ()
    %367 = vector.extract_strided_slice %366 {offsets = [0, 0, 0], sizes = [1, 10, 8], strides = [1, 1, 1]} : vector<5x10x8xf32> to vector<1x10x8xf32>
    %368 = vector.shape_cast %367 : vector<1x10x8xf32> to vector<10x8xf32>
    %369 = vector.extract_strided_slice %366 {offsets = [1, 0, 0], sizes = [1, 10, 8], strides = [1, 1, 1]} : vector<5x10x8xf32> to vector<1x10x8xf32>
    %370 = vector.shape_cast %369 : vector<1x10x8xf32> to vector<10x8xf32>
    %371 = vector.extract_strided_slice %366 {offsets = [2, 0, 0], sizes = [1, 10, 8], strides = [1, 1, 1]} : vector<5x10x8xf32> to vector<1x10x8xf32>
    %372 = vector.shape_cast %371 : vector<1x10x8xf32> to vector<10x8xf32>
    %373 = vector.extract_strided_slice %366 {offsets = [3, 0, 0], sizes = [1, 10, 8], strides = [1, 1, 1]} : vector<5x10x8xf32> to vector<1x10x8xf32>
    %374 = vector.shape_cast %373 : vector<1x10x8xf32> to vector<10x8xf32>
    %375 = vector.extract_strided_slice %366 {offsets = [4, 0, 0], sizes = [1, 10, 8], strides = [1, 1, 1]} : vector<5x10x8xf32> to vector<1x10x8xf32>
    %376 = vector.shape_cast %375 : vector<1x10x8xf32> to vector<10x8xf32>
    %377 = tpu.concatenate %368, %370, %372, %374, %376 in 1 : vector<10x8xf32>, vector<10x8xf32>, vector<10x8xf32>, vector<10x8xf32>, vector<10x8xf32> -> vector<10x40xf32>
    %cst_143 = arith.constant dense<0.000000e+00> : vector<10x40xf32>
    %378 = tpu.matmul %377, %43, %cst_143 {dimension_numbers = #tpu.dot_dimension_numbers<[1], [0], [0], [1], [0, 0, 1, 1], [], []>} : vector<10x40xf32>, vector<40x40xf32>, vector<10x40xf32> -> vector<10x40xf32>
    %379 = vector.broadcast %47 : vector<1x40xf32> to vector<10x40xf32>
    %380 = arith.addf %378, %379 : vector<10x40xf32>
    %381 = arith.addf %282, %380 : vector<10x40xf32>
    %cst_144 = arith.constant dense<0.000000e+00> : vector<10xf32>
    %382 = vector.multi_reduction <add>, %381, %cst_144 [1] : vector<10x40xf32> to vector<10xf32>
    %383 = vector.shape_cast %382 : vector<10xf32> to vector<10x1xf32>
    %cst_145 = arith.constant 4.000000e+01 : f32
    %384 = vector.broadcast %cst_145 : f32 to vector<10x1xf32>
    %385 = arith.divf %383, %384 : vector<10x1xf32>
    %386 = vector.broadcast %385 : vector<10x1xf32> to vector<10x40xf32>
    %387 = arith.subf %381, %386 : vector<10x40xf32>
    %388 = arith.mulf %387, %387 : vector<10x40xf32>
    %cst_146 = arith.constant dense<0.000000e+00> : vector<10xf32>
    %389 = vector.multi_reduction <add>, %388, %cst_146 [1] : vector<10x40xf32> to vector<10xf32>
    %390 = vector.shape_cast %389 : vector<10xf32> to vector<10x1xf32>
    %cst_147 = arith.constant 4.000000e+01 : f32
    %391 = vector.broadcast %cst_147 : f32 to vector<10x1xf32>
    %392 = arith.divf %390, %391 : vector<10x1xf32>
    %cst_148 = arith.constant 9.99999974E-6 : f32
    %393 = vector.broadcast %cst_148 : f32 to vector<10x1xf32>
    %394 = arith.addf %392, %393 : vector<10x1xf32>
    %395 = math.rsqrt %394 : vector<10x1xf32>
    %396 = vector.broadcast %395 : vector<10x1xf32> to vector<10x40xf32>
    %397 = arith.mulf %387, %396 : vector<10x40xf32>
    %398 = vector.broadcast %51 : vector<1x40xf32> to vector<10x40xf32>
    %399 = arith.mulf %397, %398 : vector<10x40xf32>
    %400 = vector.broadcast %53 : vector<1x40xf32> to vector<10x40xf32>
    %401 = arith.addf %399, %400 : vector<10x40xf32>
    %402 = arith.addf %401, %1 : vector<10x40xf32>
    %cst_149 = arith.constant dense<0.000000e+00> : vector<10x40xf32>
    %403 = tpu.matmul %402, %25, %cst_149 {dimension_numbers = #tpu.dot_dimension_numbers<[1], [0], [0], [1], [0, 0, 1, 1], [], []>} : vector<10x40xf32>, vector<40x40xf32>, vector<10x40xf32> -> vector<10x40xf32>
    %404 = vector.broadcast %37 : vector<1x40xf32> to vector<10x40xf32>
    %405 = arith.addf %403, %404 : vector<10x40xf32>
    %406 = vector.extract_strided_slice %405 {offsets = [0, 0], sizes = [10, 8], strides = [1, 1]} : vector<10x40xf32> to vector<10x8xf32>
    %407 = vector.extract_strided_slice %405 {offsets = [0, 8], sizes = [10, 8], strides = [1, 1]} : vector<10x40xf32> to vector<10x8xf32>
    %408 = vector.extract_strided_slice %405 {offsets = [0, 16], sizes = [10, 8], strides = [1, 1]} : vector<10x40xf32> to vector<10x8xf32>
    %409 = vector.extract_strided_slice %405 {offsets = [0, 24], sizes = [10, 8], strides = [1, 1]} : vector<10x40xf32> to vector<10x8xf32>
    %410 = vector.extract_strided_slice %405 {offsets = [0, 32], sizes = [10, 8], strides = [1, 1]} : vector<10x40xf32> to vector<10x8xf32>
    %411 = vector.shape_cast %406 : vector<10x8xf32> to vector<1x10x8xf32>
    %412 = vector.shape_cast %407 : vector<10x8xf32> to vector<1x10x8xf32>
    %413 = vector.shape_cast %408 : vector<10x8xf32> to vector<1x10x8xf32>
    %414 = vector.shape_cast %409 : vector<10x8xf32> to vector<1x10x8xf32>
    %415 = vector.shape_cast %410 : vector<10x8xf32> to vector<1x10x8xf32>
    %416 = tpu.concatenate %411, %412, %413, %414, %415 in 0 : vector<1x10x8xf32>, vector<1x10x8xf32>, vector<1x10x8xf32>, vector<1x10x8xf32>, vector<1x10x8xf32> -> vector<5x10x8xf32>
    "tpu.trace_start"() <{level = 10 : i32, message = "hqd,hkd->hqk"}> : () -> ()
    %cst_150 = arith.constant dense<0.000000e+00> : vector<5x10x32xf32>
    %417 = tpu.matmul %416, %83, %cst_150 {dimension_numbers = #tpu.dot_dimension_numbers<[2], [2], [1], [1], [0, 0, 0, 1, 1, 1], [0], [0]>} : vector<5x10x8xf32>, vector<5x32x8xf32>, vector<5x10x32xf32> -> vector<5x10x32xf32>
    "tpu.trace_stop"() : () -> ()
    %418 = vector.shape_cast %17 : vector<10x32xf32> to vector<1x10x32xf32>
    %419 = vector.broadcast %418 : vector<1x10x32xf32> to vector<5x10x32xf32>
    %420 = arith.addf %417, %419 : vector<5x10x32xf32>
    %cst_151 = arith.constant dense<0xFF800000> : vector<5x10xf32>
    %421 = vector.multi_reduction <maximumf>, %420, %cst_151 [2] : vector<5x10x32xf32> to vector<5x10xf32>
    %422 = vector.shape_cast %421 : vector<5x10xf32> to vector<5x10x1xf32>
    %423 = vector.broadcast %422 : vector<5x10x1xf32> to vector<5x10x32xf32>
    %424 = arith.subf %420, %423 : vector<5x10x32xf32>
    %425 = math.exp %424 : vector<5x10x32xf32>
    %cst_152 = arith.constant dense<0.000000e+00> : vector<5x10xf32>
    %426 = vector.multi_reduction <add>, %425, %cst_152 [2] : vector<5x10x32xf32> to vector<5x10xf32>
    %427 = vector.shape_cast %426 : vector<5x10xf32> to vector<5x10x1xf32>
    %428 = vector.broadcast %427 : vector<5x10x1xf32> to vector<5x10x32xf32>
    %429 = arith.divf %425, %428 : vector<5x10x32xf32>
    "tpu.trace_start"() <{level = 10 : i32, message = "hqk,hkd->hqd"}> : () -> ()
    %cst_153 = arith.constant dense<0.000000e+00> : vector<5x10x8xf32>
    %430 = tpu.matmul %429, %97, %cst_153 {dimension_numbers = #tpu.dot_dimension_numbers<[2], [1], [1], [2], [0, 0, 0, 1, 1, 2], [0], [0]>} : vector<5x10x32xf32>, vector<5x32x8xf32>, vector<5x10x8xf32> -> vector<5x10x8xf32>
    "tpu.trace_stop"() : () -> ()
    %431 = vector.extract_strided_slice %430 {offsets = [0, 0, 0], sizes = [1, 10, 8], strides = [1, 1, 1]} : vector<5x10x8xf32> to vector<1x10x8xf32>
    %432 = vector.shape_cast %431 : vector<1x10x8xf32> to vector<10x8xf32>
    %433 = vector.extract_strided_slice %430 {offsets = [1, 0, 0], sizes = [1, 10, 8], strides = [1, 1, 1]} : vector<5x10x8xf32> to vector<1x10x8xf32>
    %434 = vector.shape_cast %433 : vector<1x10x8xf32> to vector<10x8xf32>
    %435 = vector.extract_strided_slice %430 {offsets = [2, 0, 0], sizes = [1, 10, 8], strides = [1, 1, 1]} : vector<5x10x8xf32> to vector<1x10x8xf32>
    %436 = vector.shape_cast %435 : vector<1x10x8xf32> to vector<10x8xf32>
    %437 = vector.extract_strided_slice %430 {offsets = [3, 0, 0], sizes = [1, 10, 8], strides = [1, 1, 1]} : vector<5x10x8xf32> to vector<1x10x8xf32>
    %438 = vector.shape_cast %437 : vector<1x10x8xf32> to vector<10x8xf32>
    %439 = vector.extract_strided_slice %430 {offsets = [4, 0, 0], sizes = [1, 10, 8], strides = [1, 1, 1]} : vector<5x10x8xf32> to vector<1x10x8xf32>
    %440 = vector.shape_cast %439 : vector<1x10x8xf32> to vector<10x8xf32>
    %441 = tpu.concatenate %432, %434, %436, %438, %440 in 1 : vector<10x8xf32>, vector<10x8xf32>, vector<10x8xf32>, vector<10x8xf32>, vector<10x8xf32> -> vector<10x40xf32>
    %cst_154 = arith.constant dense<0.000000e+00> : vector<10x40xf32>
    %442 = tpu.matmul %441, %45, %cst_154 {dimension_numbers = #tpu.dot_dimension_numbers<[1], [0], [0], [1], [0, 0, 1, 1], [], []>} : vector<10x40xf32>, vector<40x40xf32>, vector<10x40xf32> -> vector<10x40xf32>
    %443 = vector.broadcast %49 : vector<1x40xf32> to vector<10x40xf32>
    %444 = arith.addf %442, %443 : vector<10x40xf32>
    %445 = arith.addf %401, %444 : vector<10x40xf32>
    %cst_155 = arith.constant dense<0.000000e+00> : vector<10xf32>
    %446 = vector.multi_reduction <add>, %445, %cst_155 [1] : vector<10x40xf32> to vector<10xf32>
    %447 = vector.shape_cast %446 : vector<10xf32> to vector<10x1xf32>
    %cst_156 = arith.constant 4.000000e+01 : f32
    %448 = vector.broadcast %cst_156 : f32 to vector<10x1xf32>
    %449 = arith.divf %447, %448 : vector<10x1xf32>
    %450 = vector.broadcast %449 : vector<10x1xf32> to vector<10x40xf32>
    %451 = arith.subf %445, %450 : vector<10x40xf32>
    %452 = arith.mulf %451, %451 : vector<10x40xf32>
    %cst_157 = arith.constant dense<0.000000e+00> : vector<10xf32>
    %453 = vector.multi_reduction <add>, %452, %cst_157 [1] : vector<10x40xf32> to vector<10xf32>
    %454 = vector.shape_cast %453 : vector<10xf32> to vector<10x1xf32>
    %cst_158 = arith.constant 4.000000e+01 : f32
    %455 = vector.broadcast %cst_158 : f32 to vector<10x1xf32>
    %456 = arith.divf %454, %455 : vector<10x1xf32>
    %cst_159 = arith.constant 9.99999974E-6 : f32
    %457 = vector.broadcast %cst_159 : f32 to vector<10x1xf32>
    %458 = arith.addf %456, %457 : vector<10x1xf32>
    %459 = math.rsqrt %458 : vector<10x1xf32>
    %460 = vector.broadcast %459 : vector<10x1xf32> to vector<10x40xf32>
    %461 = arith.mulf %451, %460 : vector<10x40xf32>
    %462 = vector.broadcast %55 : vector<1x40xf32> to vector<10x40xf32>
    %463 = arith.mulf %461, %462 : vector<10x40xf32>
    %464 = vector.broadcast %57 : vector<1x40xf32> to vector<10x40xf32>
    %465 = arith.addf %463, %464 : vector<10x40xf32>
    %cst_160 = arith.constant dense<0.000000e+00> : vector<10x64xf32>
    %466 = tpu.matmul %465, %66, %cst_160 {dimension_numbers = #tpu.dot_dimension_numbers<[1], [0], [0], [1], [0, 0, 1, 1], [], []>} : vector<10x40xf32>, vector<40x64xf32>, vector<10x64xf32> -> vector<10x64xf32>
    %467 = vector.broadcast %67 : vector<1x64xf32> to vector<10x64xf32>
    %468 = arith.addf %466, %467 : vector<10x64xf32>
    %cst_161 = arith.constant 0.000000e+00 : f32
    %469 = vector.broadcast %cst_161 : f32 to vector<10x64xf32>
    %470 = arith.maximumf %468, %469 : vector<10x64xf32>
    %cst_162 = arith.constant dense<0.000000e+00> : vector<10x40xf32>
    %471 = tpu.matmul %470, %68, %cst_162 {dimension_numbers = #tpu.dot_dimension_numbers<[1], [0], [0], [1], [0, 0, 1, 1], [], []>} : vector<10x64xf32>, vector<64x40xf32>, vector<10x40xf32> -> vector<10x40xf32>
    %472 = vector.broadcast %69 : vector<1x40xf32> to vector<10x40xf32>
    %473 = arith.addf %471, %472 : vector<10x40xf32>
    %474 = arith.addf %465, %473 : vector<10x40xf32>
    %cst_163 = arith.constant dense<0.000000e+00> : vector<10xf32>
    %475 = vector.multi_reduction <add>, %474, %cst_163 [1] : vector<10x40xf32> to vector<10xf32>
    %476 = vector.shape_cast %475 : vector<10xf32> to vector<10x1xf32>
    %cst_164 = arith.constant 4.000000e+01 : f32
    %477 = vector.broadcast %cst_164 : f32 to vector<10x1xf32>
    %478 = arith.divf %476, %477 : vector<10x1xf32>
    %479 = vector.broadcast %478 : vector<10x1xf32> to vector<10x40xf32>
    %480 = arith.subf %474, %479 : vector<10x40xf32>
    %481 = arith.mulf %480, %480 : vector<10x40xf32>
    %cst_165 = arith.constant dense<0.000000e+00> : vector<10xf32>
    %482 = vector.multi_reduction <add>, %481, %cst_165 [1] : vector<10x40xf32> to vector<10xf32>
    %483 = vector.shape_cast %482 : vector<10xf32> to vector<10x1xf32>
    %cst_166 = arith.constant 4.000000e+01 : f32
    %484 = vector.broadcast %cst_166 : f32 to vector<10x1xf32>
    %485 = arith.divf %483, %484 : vector<10x1xf32>
    %cst_167 = arith.constant 9.99999974E-6 : f32
    %486 = vector.broadcast %cst_167 : f32 to vector<10x1xf32>
    %487 = arith.addf %485, %486 : vector<10x1xf32>
    %488 = math.rsqrt %487 : vector<10x1xf32>
    %489 = vector.broadcast %488 : vector<10x1xf32> to vector<10x40xf32>
    %490 = arith.mulf %480, %489 : vector<10x40xf32>
    %491 = vector.broadcast %59 : vector<1x40xf32> to vector<10x40xf32>
    %492 = arith.mulf %490, %491 : vector<10x40xf32>
    %493 = vector.broadcast %61 : vector<1x40xf32> to vector<10x40xf32>
    %494 = arith.addf %492, %493 : vector<10x40xf32>
    %cst_168 = arith.constant dense<0.000000e+00> : vector<10xf32>
    %495 = vector.multi_reduction <add>, %494, %cst_168 [1] : vector<10x40xf32> to vector<10xf32>
    %496 = vector.shape_cast %495 : vector<10xf32> to vector<10x1xf32>
    %cst_169 = arith.constant 4.000000e+01 : f32
    %497 = vector.broadcast %cst_169 : f32 to vector<10x1xf32>
    %498 = arith.divf %496, %497 : vector<10x1xf32>
    %499 = vector.broadcast %498 : vector<10x1xf32> to vector<10x40xf32>
    %500 = arith.subf %494, %499 : vector<10x40xf32>
    %501 = arith.mulf %500, %500 : vector<10x40xf32>
    %cst_170 = arith.constant dense<0.000000e+00> : vector<10xf32>
    %502 = vector.multi_reduction <add>, %501, %cst_170 [1] : vector<10x40xf32> to vector<10xf32>
    %503 = vector.shape_cast %502 : vector<10xf32> to vector<10x1xf32>
    %cst_171 = arith.constant 4.000000e+01 : f32
    %504 = vector.broadcast %cst_171 : f32 to vector<10x1xf32>
    %505 = arith.divf %503, %504 : vector<10x1xf32>
    %cst_172 = arith.constant 9.99999974E-6 : f32
    %506 = vector.broadcast %cst_172 : f32 to vector<10x1xf32>
    %507 = arith.addf %505, %506 : vector<10x1xf32>
    %508 = math.rsqrt %507 : vector<10x1xf32>
    %509 = vector.broadcast %508 : vector<10x1xf32> to vector<10x40xf32>
    %510 = arith.mulf %500, %509 : vector<10x40xf32>
    %511 = vector.broadcast %63 : vector<1x40xf32> to vector<10x40xf32>
    %512 = arith.mulf %510, %511 : vector<10x40xf32>
    %513 = vector.broadcast %65 : vector<1x40xf32> to vector<10x40xf32>
    %514 = arith.addf %512, %513 : vector<10x40xf32>
    %c1_173 = arith.constant 1 : index
    %c0_174 = arith.constant 0 : index
    %c0_175 = arith.constant 0 : index
    %515 = vector.load %arg14[%c1_173, %c0_174, %c0_175] : memref<4x40x10xf32, #tpu.memory_space<vmem>>, vector<1x40x10xf32>
    %516 = vector.shape_cast %515 : vector<1x40x10xf32> to vector<40x10xf32>
    %cst_176 = arith.constant dense<0.000000e+00> : vector<10x10xf32>
    %517 = tpu.matmul %514, %516, %cst_176 {dimension_numbers = #tpu.dot_dimension_numbers<[1], [0], [0], [1], [0, 0, 1, 1], [], []>} : vector<10x40xf32>, vector<40x10xf32>, vector<10x10xf32> -> vector<10x10xf32>
    %c1_177 = arith.constant 1 : index
    %c0_178 = arith.constant 0 : index
    %c0_179 = arith.constant 0 : index
    %518 = vector.load %arg15[%c1_177, %c0_178, %c0_179] : memref<4x1x10xf32, #tpu.memory_space<vmem>>, vector<1x1x10xf32>
    %519 = vector.shape_cast %518 : vector<1x1x10xf32> to vector<1x10xf32>
    %520 = vector.broadcast %519 : vector<1x10xf32> to vector<10x10xf32>
    %521 = arith.addf %517, %520 : vector<10x10xf32>
    %c0_180 = arith.constant 0 : index
    %c10 = arith.constant 10 : index
    %522 = vector.load %arg16[%c0_180, %c10] : memref<10x40xf32, #tpu.memory_space<vmem>>, vector<10x10xf32>
    tpu.vector_store %arg16[%c0_180, %c10], %521 {strides = array<i32>} : memref<10x40xf32, #tpu.memory_space<vmem>>, vector<10x10xf32>,
    %cst_181 = arith.constant dense<0.000000e+00> : vector<10x40xf32>
    %523 = tpu.matmul %494, %19, %cst_181 {dimension_numbers = #tpu.dot_dimension_numbers<[1], [0], [0], [1], [0, 0, 1, 1], [], []>} : vector<10x40xf32>, vector<40x40xf32>, vector<10x40xf32> -> vector<10x40xf32>
    %524 = vector.broadcast %31 : vector<1x40xf32> to vector<10x40xf32>
    %525 = arith.addf %523, %524 : vector<10x40xf32>
    %526 = vector.extract_strided_slice %525 {offsets = [0, 0], sizes = [10, 8], strides = [1, 1]} : vector<10x40xf32> to vector<10x8xf32>
    %527 = vector.extract_strided_slice %525 {offsets = [0, 8], sizes = [10, 8], strides = [1, 1]} : vector<10x40xf32> to vector<10x8xf32>
    %528 = vector.extract_strided_slice %525 {offsets = [0, 16], sizes = [10, 8], strides = [1, 1]} : vector<10x40xf32> to vector<10x8xf32>
    %529 = vector.extract_strided_slice %525 {offsets = [0, 24], sizes = [10, 8], strides = [1, 1]} : vector<10x40xf32> to vector<10x8xf32>
    %530 = vector.extract_strided_slice %525 {offsets = [0, 32], sizes = [10, 8], strides = [1, 1]} : vector<10x40xf32> to vector<10x8xf32>
    %531 = vector.shape_cast %526 : vector<10x8xf32> to vector<1x10x8xf32>
    %532 = vector.shape_cast %527 : vector<10x8xf32> to vector<1x10x8xf32>
    %533 = vector.shape_cast %528 : vector<10x8xf32> to vector<1x10x8xf32>
    %534 = vector.shape_cast %529 : vector<10x8xf32> to vector<1x10x8xf32>
    %535 = vector.shape_cast %530 : vector<10x8xf32> to vector<1x10x8xf32>
    %536 = tpu.concatenate %531, %532, %533, %534, %535 in 0 : vector<1x10x8xf32>, vector<1x10x8xf32>, vector<1x10x8xf32>, vector<1x10x8xf32>, vector<1x10x8xf32> -> vector<5x10x8xf32>
    %cst_182 = arith.constant dense<0.000000e+00> : vector<10x40xf32>
    %537 = tpu.matmul %494, %21, %cst_182 {dimension_numbers = #tpu.dot_dimension_numbers<[1], [0], [0], [1], [0, 0, 1, 1], [], []>} : vector<10x40xf32>, vector<40x40xf32>, vector<10x40xf32> -> vector<10x40xf32>
    %538 = vector.broadcast %33 : vector<1x40xf32> to vector<10x40xf32>
    %539 = arith.addf %537, %538 : vector<10x40xf32>
    %540 = vector.extract_strided_slice %539 {offsets = [0, 0], sizes = [10, 8], strides = [1, 1]} : vector<10x40xf32> to vector<10x8xf32>
    %541 = vector.extract_strided_slice %539 {offsets = [0, 8], sizes = [10, 8], strides = [1, 1]} : vector<10x40xf32> to vector<10x8xf32>
    %542 = vector.extract_strided_slice %539 {offsets = [0, 16], sizes = [10, 8], strides = [1, 1]} : vector<10x40xf32> to vector<10x8xf32>
    %543 = vector.extract_strided_slice %539 {offsets = [0, 24], sizes = [10, 8], strides = [1, 1]} : vector<10x40xf32> to vector<10x8xf32>
    %544 = vector.extract_strided_slice %539 {offsets = [0, 32], sizes = [10, 8], strides = [1, 1]} : vector<10x40xf32> to vector<10x8xf32>
    %545 = vector.shape_cast %540 : vector<10x8xf32> to vector<1x10x8xf32>
    %546 = vector.shape_cast %541 : vector<10x8xf32> to vector<1x10x8xf32>
    %547 = vector.shape_cast %542 : vector<10x8xf32> to vector<1x10x8xf32>
    %548 = vector.shape_cast %543 : vector<10x8xf32> to vector<1x10x8xf32>
    %549 = vector.shape_cast %544 : vector<10x8xf32> to vector<1x10x8xf32>
    %550 = tpu.concatenate %545, %546, %547, %548, %549 in 0 : vector<1x10x8xf32>, vector<1x10x8xf32>, vector<1x10x8xf32>, vector<1x10x8xf32>, vector<1x10x8xf32> -> vector<5x10x8xf32>
    %cst_183 = arith.constant dense<0.000000e+00> : vector<10x40xf32>
    %551 = tpu.matmul %494, %23, %cst_183 {dimension_numbers = #tpu.dot_dimension_numbers<[1], [0], [0], [1], [0, 0, 1, 1], [], []>} : vector<10x40xf32>, vector<40x40xf32>, vector<10x40xf32> -> vector<10x40xf32>
    %552 = vector.broadcast %35 : vector<1x40xf32> to vector<10x40xf32>
    %553 = arith.addf %551, %552 : vector<10x40xf32>
    %554 = vector.extract_strided_slice %553 {offsets = [0, 0], sizes = [10, 8], strides = [1, 1]} : vector<10x40xf32> to vector<10x8xf32>
    %555 = vector.extract_strided_slice %553 {offsets = [0, 8], sizes = [10, 8], strides = [1, 1]} : vector<10x40xf32> to vector<10x8xf32>
    %556 = vector.extract_strided_slice %553 {offsets = [0, 16], sizes = [10, 8], strides = [1, 1]} : vector<10x40xf32> to vector<10x8xf32>
    %557 = vector.extract_strided_slice %553 {offsets = [0, 24], sizes = [10, 8], strides = [1, 1]} : vector<10x40xf32> to vector<10x8xf32>
    %558 = vector.extract_strided_slice %553 {offsets = [0, 32], sizes = [10, 8], strides = [1, 1]} : vector<10x40xf32> to vector<10x8xf32>
    %559 = vector.shape_cast %554 : vector<10x8xf32> to vector<1x10x8xf32>
    %560 = vector.shape_cast %555 : vector<10x8xf32> to vector<1x10x8xf32>
    %561 = vector.shape_cast %556 : vector<10x8xf32> to vector<1x10x8xf32>
    %562 = vector.shape_cast %557 : vector<10x8xf32> to vector<1x10x8xf32>
    %563 = vector.shape_cast %558 : vector<10x8xf32> to vector<1x10x8xf32>
    %564 = tpu.concatenate %559, %560, %561, %562, %563 in 0 : vector<1x10x8xf32>, vector<1x10x8xf32>, vector<1x10x8xf32>, vector<1x10x8xf32>, vector<1x10x8xf32> -> vector<5x10x8xf32>
    "tpu.trace_start"() <{level = 10 : i32, message = "hqd,hkd->hqk"}> : () -> ()
    %cst_184 = arith.constant dense<0.000000e+00> : vector<5x10x10xf32>
    %565 = tpu.matmul %536, %550, %cst_184 {dimension_numbers = #tpu.dot_dimension_numbers<[2], [2], [1], [1], [0, 0, 0, 1, 1, 1], [0], [0]>} : vector<5x10x8xf32>, vector<5x10x8xf32>, vector<5x10x10xf32> -> vector<5x10x10xf32>
    "tpu.trace_stop"() : () -> ()
    %566 = vector.shape_cast %9 : vector<10x10xf32> to vector<1x10x10xf32>
    %567 = vector.broadcast %566 : vector<1x10x10xf32> to vector<5x10x10xf32>
    %568 = arith.addf %565, %567 : vector<5x10x10xf32>
    %cst_185 = arith.constant dense<0xFF800000> : vector<5x10xf32>
    %569 = vector.multi_reduction <maximumf>, %568, %cst_185 [2] : vector<5x10x10xf32> to vector<5x10xf32>
    %570 = vector.shape_cast %569 : vector<5x10xf32> to vector<5x10x1xf32>
    %571 = vector.broadcast %570 : vector<5x10x1xf32> to vector<5x10x10xf32>
    %572 = arith.subf %568, %571 : vector<5x10x10xf32>
    %573 = math.exp %572 : vector<5x10x10xf32>
    %cst_186 = arith.constant dense<0.000000e+00> : vector<5x10xf32>
    %574 = vector.multi_reduction <add>, %573, %cst_186 [2] : vector<5x10x10xf32> to vector<5x10xf32>
    %575 = vector.shape_cast %574 : vector<5x10xf32> to vector<5x10x1xf32>
    %576 = vector.broadcast %575 : vector<5x10x1xf32> to vector<5x10x10xf32>
    %577 = arith.divf %573, %576 : vector<5x10x10xf32>
    "tpu.trace_start"() <{level = 10 : i32, message = "hqk,hkd->hqd"}> : () -> ()
    %cst_187 = arith.constant dense<0.000000e+00> : vector<5x10x8xf32>
    %578 = tpu.matmul %577, %564, %cst_187 {dimension_numbers = #tpu.dot_dimension_numbers<[2], [1], [1], [2], [0, 0, 0, 1, 1, 2], [0], [0]>} : vector<5x10x10xf32>, vector<5x10x8xf32>, vector<5x10x8xf32> -> vector<5x10x8xf32>
    "tpu.trace_stop"() : () -> ()
    %579 = vector.extract_strided_slice %578 {offsets = [0, 0, 0], sizes = [1, 10, 8], strides = [1, 1, 1]} : vector<5x10x8xf32> to vector<1x10x8xf32>
    %580 = vector.shape_cast %579 : vector<1x10x8xf32> to vector<10x8xf32>
    %581 = vector.extract_strided_slice %578 {offsets = [1, 0, 0], sizes = [1, 10, 8], strides = [1, 1, 1]} : vector<5x10x8xf32> to vector<1x10x8xf32>
    %582 = vector.shape_cast %581 : vector<1x10x8xf32> to vector<10x8xf32>
    %583 = vector.extract_strided_slice %578 {offsets = [2, 0, 0], sizes = [1, 10, 8], strides = [1, 1, 1]} : vector<5x10x8xf32> to vector<1x10x8xf32>
    %584 = vector.shape_cast %583 : vector<1x10x8xf32> to vector<10x8xf32>
    %585 = vector.extract_strided_slice %578 {offsets = [3, 0, 0], sizes = [1, 10, 8], strides = [1, 1, 1]} : vector<5x10x8xf32> to vector<1x10x8xf32>
    %586 = vector.shape_cast %585 : vector<1x10x8xf32> to vector<10x8xf32>
    %587 = vector.extract_strided_slice %578 {offsets = [4, 0, 0], sizes = [1, 10, 8], strides = [1, 1, 1]} : vector<5x10x8xf32> to vector<1x10x8xf32>
    %588 = vector.shape_cast %587 : vector<1x10x8xf32> to vector<10x8xf32>
    %589 = tpu.concatenate %580, %582, %584, %586, %588 in 1 : vector<10x8xf32>, vector<10x8xf32>, vector<10x8xf32>, vector<10x8xf32>, vector<10x8xf32> -> vector<10x40xf32>
    %cst_188 = arith.constant dense<0.000000e+00> : vector<10x40xf32>
    %590 = tpu.matmul %589, %43, %cst_188 {dimension_numbers = #tpu.dot_dimension_numbers<[1], [0], [0], [1], [0, 0, 1, 1], [], []>} : vector<10x40xf32>, vector<40x40xf32>, vector<10x40xf32> -> vector<10x40xf32>
    %591 = vector.broadcast %47 : vector<1x40xf32> to vector<10x40xf32>
    %592 = arith.addf %590, %591 : vector<10x40xf32>
    %593 = arith.addf %494, %592 : vector<10x40xf32>
    %cst_189 = arith.constant dense<0.000000e+00> : vector<10xf32>
    %594 = vector.multi_reduction <add>, %593, %cst_189 [1] : vector<10x40xf32> to vector<10xf32>
    %595 = vector.shape_cast %594 : vector<10xf32> to vector<10x1xf32>
    %cst_190 = arith.constant 4.000000e+01 : f32
    %596 = vector.broadcast %cst_190 : f32 to vector<10x1xf32>
    %597 = arith.divf %595, %596 : vector<10x1xf32>
    %598 = vector.broadcast %597 : vector<10x1xf32> to vector<10x40xf32>
    %599 = arith.subf %593, %598 : vector<10x40xf32>
    %600 = arith.mulf %599, %599 : vector<10x40xf32>
    %cst_191 = arith.constant dense<0.000000e+00> : vector<10xf32>
    %601 = vector.multi_reduction <add>, %600, %cst_191 [1] : vector<10x40xf32> to vector<10xf32>
    %602 = vector.shape_cast %601 : vector<10xf32> to vector<10x1xf32>
    %cst_192 = arith.constant 4.000000e+01 : f32
    %603 = vector.broadcast %cst_192 : f32 to vector<10x1xf32>
    %604 = arith.divf %602, %603 : vector<10x1xf32>
    %cst_193 = arith.constant 9.99999974E-6 : f32
    %605 = vector.broadcast %cst_193 : f32 to vector<10x1xf32>
    %606 = arith.addf %604, %605 : vector<10x1xf32>
    %607 = math.rsqrt %606 : vector<10x1xf32>
    %608 = vector.broadcast %607 : vector<10x1xf32> to vector<10x40xf32>
    %609 = arith.mulf %599, %608 : vector<10x40xf32>
    %610 = vector.broadcast %51 : vector<1x40xf32> to vector<10x40xf32>
    %611 = arith.mulf %609, %610 : vector<10x40xf32>
    %612 = vector.broadcast %53 : vector<1x40xf32> to vector<10x40xf32>
    %613 = arith.addf %611, %612 : vector<10x40xf32>
    %614 = arith.addf %613, %1 : vector<10x40xf32>
    %cst_194 = arith.constant dense<0.000000e+00> : vector<10x40xf32>
    %615 = tpu.matmul %614, %25, %cst_194 {dimension_numbers = #tpu.dot_dimension_numbers<[1], [0], [0], [1], [0, 0, 1, 1], [], []>} : vector<10x40xf32>, vector<40x40xf32>, vector<10x40xf32> -> vector<10x40xf32>
    %616 = vector.broadcast %37 : vector<1x40xf32> to vector<10x40xf32>
    %617 = arith.addf %615, %616 : vector<10x40xf32>
    %618 = vector.extract_strided_slice %617 {offsets = [0, 0], sizes = [10, 8], strides = [1, 1]} : vector<10x40xf32> to vector<10x8xf32>
    %619 = vector.extract_strided_slice %617 {offsets = [0, 8], sizes = [10, 8], strides = [1, 1]} : vector<10x40xf32> to vector<10x8xf32>
    %620 = vector.extract_strided_slice %617 {offsets = [0, 16], sizes = [10, 8], strides = [1, 1]} : vector<10x40xf32> to vector<10x8xf32>
    %621 = vector.extract_strided_slice %617 {offsets = [0, 24], sizes = [10, 8], strides = [1, 1]} : vector<10x40xf32> to vector<10x8xf32>
    %622 = vector.extract_strided_slice %617 {offsets = [0, 32], sizes = [10, 8], strides = [1, 1]} : vector<10x40xf32> to vector<10x8xf32>
    %623 = vector.shape_cast %618 : vector<10x8xf32> to vector<1x10x8xf32>
    %624 = vector.shape_cast %619 : vector<10x8xf32> to vector<1x10x8xf32>
    %625 = vector.shape_cast %620 : vector<10x8xf32> to vector<1x10x8xf32>
    %626 = vector.shape_cast %621 : vector<10x8xf32> to vector<1x10x8xf32>
    %627 = vector.shape_cast %622 : vector<10x8xf32> to vector<1x10x8xf32>
    %628 = tpu.concatenate %623, %624, %625, %626, %627 in 0 : vector<1x10x8xf32>, vector<1x10x8xf32>, vector<1x10x8xf32>, vector<1x10x8xf32>, vector<1x10x8xf32> -> vector<5x10x8xf32>
    "tpu.trace_start"() <{level = 10 : i32, message = "hqd,hkd->hqk"}> : () -> ()
    %cst_195 = arith.constant dense<0.000000e+00> : vector<5x10x32xf32>
    %629 = tpu.matmul %628, %83, %cst_195 {dimension_numbers = #tpu.dot_dimension_numbers<[2], [2], [1], [1], [0, 0, 0, 1, 1, 1], [0], [0]>} : vector<5x10x8xf32>, vector<5x32x8xf32>, vector<5x10x32xf32> -> vector<5x10x32xf32>
    "tpu.trace_stop"() : () -> ()
    %630 = vector.shape_cast %17 : vector<10x32xf32> to vector<1x10x32xf32>
    %631 = vector.broadcast %630 : vector<1x10x32xf32> to vector<5x10x32xf32>
    %632 = arith.addf %629, %631 : vector<5x10x32xf32>
    %cst_196 = arith.constant dense<0xFF800000> : vector<5x10xf32>
    %633 = vector.multi_reduction <maximumf>, %632, %cst_196 [2] : vector<5x10x32xf32> to vector<5x10xf32>
    %634 = vector.shape_cast %633 : vector<5x10xf32> to vector<5x10x1xf32>
    %635 = vector.broadcast %634 : vector<5x10x1xf32> to vector<5x10x32xf32>
    %636 = arith.subf %632, %635 : vector<5x10x32xf32>
    %637 = math.exp %636 : vector<5x10x32xf32>
    %cst_197 = arith.constant dense<0.000000e+00> : vector<5x10xf32>
    %638 = vector.multi_reduction <add>, %637, %cst_197 [2] : vector<5x10x32xf32> to vector<5x10xf32>
    %639 = vector.shape_cast %638 : vector<5x10xf32> to vector<5x10x1xf32>
    %640 = vector.broadcast %639 : vector<5x10x1xf32> to vector<5x10x32xf32>
    %641 = arith.divf %637, %640 : vector<5x10x32xf32>
    "tpu.trace_start"() <{level = 10 : i32, message = "hqk,hkd->hqd"}> : () -> ()
    %cst_198 = arith.constant dense<0.000000e+00> : vector<5x10x8xf32>
    %642 = tpu.matmul %641, %97, %cst_198 {dimension_numbers = #tpu.dot_dimension_numbers<[2], [1], [1], [2], [0, 0, 0, 1, 1, 2], [0], [0]>} : vector<5x10x32xf32>, vector<5x32x8xf32>, vector<5x10x8xf32> -> vector<5x10x8xf32>
    "tpu.trace_stop"() : () -> ()
    %643 = vector.extract_strided_slice %642 {offsets = [0, 0, 0], sizes = [1, 10, 8], strides = [1, 1, 1]} : vector<5x10x8xf32> to vector<1x10x8xf32>
    %644 = vector.shape_cast %643 : vector<1x10x8xf32> to vector<10x8xf32>
    %645 = vector.extract_strided_slice %642 {offsets = [1, 0, 0], sizes = [1, 10, 8], strides = [1, 1, 1]} : vector<5x10x8xf32> to vector<1x10x8xf32>
    %646 = vector.shape_cast %645 : vector<1x10x8xf32> to vector<10x8xf32>
    %647 = vector.extract_strided_slice %642 {offsets = [2, 0, 0], sizes = [1, 10, 8], strides = [1, 1, 1]} : vector<5x10x8xf32> to vector<1x10x8xf32>
    %648 = vector.shape_cast %647 : vector<1x10x8xf32> to vector<10x8xf32>
    %649 = vector.extract_strided_slice %642 {offsets = [3, 0, 0], sizes = [1, 10, 8], strides = [1, 1, 1]} : vector<5x10x8xf32> to vector<1x10x8xf32>
    %650 = vector.shape_cast %649 : vector<1x10x8xf32> to vector<10x8xf32>
    %651 = vector.extract_strided_slice %642 {offsets = [4, 0, 0], sizes = [1, 10, 8], strides = [1, 1, 1]} : vector<5x10x8xf32> to vector<1x10x8xf32>
    %652 = vector.shape_cast %651 : vector<1x10x8xf32> to vector<10x8xf32>
    %653 = tpu.concatenate %644, %646, %648, %650, %652 in 1 : vector<10x8xf32>, vector<10x8xf32>, vector<10x8xf32>, vector<10x8xf32>, vector<10x8xf32> -> vector<10x40xf32>
    %cst_199 = arith.constant dense<0.000000e+00> : vector<10x40xf32>
    %654 = tpu.matmul %653, %45, %cst_199 {dimension_numbers = #tpu.dot_dimension_numbers<[1], [0], [0], [1], [0, 0, 1, 1], [], []>} : vector<10x40xf32>, vector<40x40xf32>, vector<10x40xf32> -> vector<10x40xf32>
    %655 = vector.broadcast %49 : vector<1x40xf32> to vector<10x40xf32>
    %656 = arith.addf %654, %655 : vector<10x40xf32>
    %657 = arith.addf %613, %656 : vector<10x40xf32>
    %cst_200 = arith.constant dense<0.000000e+00> : vector<10xf32>
    %658 = vector.multi_reduction <add>, %657, %cst_200 [1] : vector<10x40xf32> to vector<10xf32>
    %659 = vector.shape_cast %658 : vector<10xf32> to vector<10x1xf32>
    %cst_201 = arith.constant 4.000000e+01 : f32
    %660 = vector.broadcast %cst_201 : f32 to vector<10x1xf32>
    %661 = arith.divf %659, %660 : vector<10x1xf32>
    %662 = vector.broadcast %661 : vector<10x1xf32> to vector<10x40xf32>
    %663 = arith.subf %657, %662 : vector<10x40xf32>
    %664 = arith.mulf %663, %663 : vector<10x40xf32>
    %cst_202 = arith.constant dense<0.000000e+00> : vector<10xf32>
    %665 = vector.multi_reduction <add>, %664, %cst_202 [1] : vector<10x40xf32> to vector<10xf32>
    %666 = vector.shape_cast %665 : vector<10xf32> to vector<10x1xf32>
    %cst_203 = arith.constant 4.000000e+01 : f32
    %667 = vector.broadcast %cst_203 : f32 to vector<10x1xf32>
    %668 = arith.divf %666, %667 : vector<10x1xf32>
    %cst_204 = arith.constant 9.99999974E-6 : f32
    %669 = vector.broadcast %cst_204 : f32 to vector<10x1xf32>
    %670 = arith.addf %668, %669 : vector<10x1xf32>
    %671 = math.rsqrt %670 : vector<10x1xf32>
    %672 = vector.broadcast %671 : vector<10x1xf32> to vector<10x40xf32>
    %673 = arith.mulf %663, %672 : vector<10x40xf32>
    %674 = vector.broadcast %55 : vector<1x40xf32> to vector<10x40xf32>
    %675 = arith.mulf %673, %674 : vector<10x40xf32>
    %676 = vector.broadcast %57 : vector<1x40xf32> to vector<10x40xf32>
    %677 = arith.addf %675, %676 : vector<10x40xf32>
    %cst_205 = arith.constant dense<0.000000e+00> : vector<10x64xf32>
    %678 = tpu.matmul %677, %66, %cst_205 {dimension_numbers = #tpu.dot_dimension_numbers<[1], [0], [0], [1], [0, 0, 1, 1], [], []>} : vector<10x40xf32>, vector<40x64xf32>, vector<10x64xf32> -> vector<10x64xf32>
    %679 = vector.broadcast %67 : vector<1x64xf32> to vector<10x64xf32>
    %680 = arith.addf %678, %679 : vector<10x64xf32>
    %cst_206 = arith.constant 0.000000e+00 : f32
    %681 = vector.broadcast %cst_206 : f32 to vector<10x64xf32>
    %682 = arith.maximumf %680, %681 : vector<10x64xf32>
    %cst_207 = arith.constant dense<0.000000e+00> : vector<10x40xf32>
    %683 = tpu.matmul %682, %68, %cst_207 {dimension_numbers = #tpu.dot_dimension_numbers<[1], [0], [0], [1], [0, 0, 1, 1], [], []>} : vector<10x64xf32>, vector<64x40xf32>, vector<10x40xf32> -> vector<10x40xf32>
    %684 = vector.broadcast %69 : vector<1x40xf32> to vector<10x40xf32>
    %685 = arith.addf %683, %684 : vector<10x40xf32>
    %686 = arith.addf %677, %685 : vector<10x40xf32>
    %cst_208 = arith.constant dense<0.000000e+00> : vector<10xf32>
    %687 = vector.multi_reduction <add>, %686, %cst_208 [1] : vector<10x40xf32> to vector<10xf32>
    %688 = vector.shape_cast %687 : vector<10xf32> to vector<10x1xf32>
    %cst_209 = arith.constant 4.000000e+01 : f32
    %689 = vector.broadcast %cst_209 : f32 to vector<10x1xf32>
    %690 = arith.divf %688, %689 : vector<10x1xf32>
    %691 = vector.broadcast %690 : vector<10x1xf32> to vector<10x40xf32>
    %692 = arith.subf %686, %691 : vector<10x40xf32>
    %693 = arith.mulf %692, %692 : vector<10x40xf32>
    %cst_210 = arith.constant dense<0.000000e+00> : vector<10xf32>
    %694 = vector.multi_reduction <add>, %693, %cst_210 [1] : vector<10x40xf32> to vector<10xf32>
    %695 = vector.shape_cast %694 : vector<10xf32> to vector<10x1xf32>
    %cst_211 = arith.constant 4.000000e+01 : f32
    %696 = vector.broadcast %cst_211 : f32 to vector<10x1xf32>
    %697 = arith.divf %695, %696 : vector<10x1xf32>
    %cst_212 = arith.constant 9.99999974E-6 : f32
    %698 = vector.broadcast %cst_212 : f32 to vector<10x1xf32>
    %699 = arith.addf %697, %698 : vector<10x1xf32>
    %700 = math.rsqrt %699 : vector<10x1xf32>
    %701 = vector.broadcast %700 : vector<10x1xf32> to vector<10x40xf32>
    %702 = arith.mulf %692, %701 : vector<10x40xf32>
    %703 = vector.broadcast %59 : vector<1x40xf32> to vector<10x40xf32>
    %704 = arith.mulf %702, %703 : vector<10x40xf32>
    %705 = vector.broadcast %61 : vector<1x40xf32> to vector<10x40xf32>
    %706 = arith.addf %704, %705 : vector<10x40xf32>
    %cst_213 = arith.constant dense<0.000000e+00> : vector<10xf32>
    %707 = vector.multi_reduction <add>, %706, %cst_213 [1] : vector<10x40xf32> to vector<10xf32>
    %708 = vector.shape_cast %707 : vector<10xf32> to vector<10x1xf32>
    %cst_214 = arith.constant 4.000000e+01 : f32
    %709 = vector.broadcast %cst_214 : f32 to vector<10x1xf32>
    %710 = arith.divf %708, %709 : vector<10x1xf32>
    %711 = vector.broadcast %710 : vector<10x1xf32> to vector<10x40xf32>
    %712 = arith.subf %706, %711 : vector<10x40xf32>
    %713 = arith.mulf %712, %712 : vector<10x40xf32>
    %cst_215 = arith.constant dense<0.000000e+00> : vector<10xf32>
    %714 = vector.multi_reduction <add>, %713, %cst_215 [1] : vector<10x40xf32> to vector<10xf32>
    %715 = vector.shape_cast %714 : vector<10xf32> to vector<10x1xf32>
    %cst_216 = arith.constant 4.000000e+01 : f32
    %716 = vector.broadcast %cst_216 : f32 to vector<10x1xf32>
    %717 = arith.divf %715, %716 : vector<10x1xf32>
    %cst_217 = arith.constant 9.99999974E-6 : f32
    %718 = vector.broadcast %cst_217 : f32 to vector<10x1xf32>
    %719 = arith.addf %717, %718 : vector<10x1xf32>
    %720 = math.rsqrt %719 : vector<10x1xf32>
    %721 = vector.broadcast %720 : vector<10x1xf32> to vector<10x40xf32>
    %722 = arith.mulf %712, %721 : vector<10x40xf32>
    %723 = vector.broadcast %63 : vector<1x40xf32> to vector<10x40xf32>
    %724 = arith.mulf %722, %723 : vector<10x40xf32>
    %725 = vector.broadcast %65 : vector<1x40xf32> to vector<10x40xf32>
    %726 = arith.addf %724, %725 : vector<10x40xf32>
    %c2_218 = arith.constant 2 : index
    %c0_219 = arith.constant 0 : index
    %c0_220 = arith.constant 0 : index
    %727 = vector.load %arg14[%c2_218, %c0_219, %c0_220] : memref<4x40x10xf32, #tpu.memory_space<vmem>>, vector<1x40x10xf32>
    %728 = vector.shape_cast %727 : vector<1x40x10xf32> to vector<40x10xf32>
    %cst_221 = arith.constant dense<0.000000e+00> : vector<10x10xf32>
    %729 = tpu.matmul %726, %728, %cst_221 {dimension_numbers = #tpu.dot_dimension_numbers<[1], [0], [0], [1], [0, 0, 1, 1], [], []>} : vector<10x40xf32>, vector<40x10xf32>, vector<10x10xf32> -> vector<10x10xf32>
    %c2_222 = arith.constant 2 : index
    %c0_223 = arith.constant 0 : index
    %c0_224 = arith.constant 0 : index
    %730 = vector.load %arg15[%c2_222, %c0_223, %c0_224] : memref<4x1x10xf32, #tpu.memory_space<vmem>>, vector<1x1x10xf32>
    %731 = vector.shape_cast %730 : vector<1x1x10xf32> to vector<1x10xf32>
    %732 = vector.broadcast %731 : vector<1x10xf32> to vector<10x10xf32>
    %733 = arith.addf %729, %732 : vector<10x10xf32>
    %c0_225 = arith.constant 0 : index
    %c20 = arith.constant 20 : index
    %734 = vector.load %arg16[%c0_225, %c20] : memref<10x40xf32, #tpu.memory_space<vmem>>, vector<10x10xf32>
    tpu.vector_store %arg16[%c0_225, %c20], %733 {strides = array<i32>} : memref<10x40xf32, #tpu.memory_space<vmem>>, vector<10x10xf32>,
    %cst_226 = arith.constant dense<0.000000e+00> : vector<10xf32>
    %735 = vector.multi_reduction <add>, %706, %cst_226 [1] : vector<10x40xf32> to vector<10xf32>
    %736 = vector.shape_cast %735 : vector<10xf32> to vector<10x1xf32>
    %cst_227 = arith.constant 4.000000e+01 : f32
    %737 = vector.broadcast %cst_227 : f32 to vector<10x1xf32>
    %738 = arith.divf %736, %737 : vector<10x1xf32>
    %739 = vector.broadcast %738 : vector<10x1xf32> to vector<10x40xf32>
    %740 = arith.subf %706, %739 : vector<10x40xf32>
    %741 = arith.mulf %740, %740 : vector<10x40xf32>
    %cst_228 = arith.constant dense<0.000000e+00> : vector<10xf32>
    %742 = vector.multi_reduction <add>, %741, %cst_228 [1] : vector<10x40xf32> to vector<10xf32>
    %743 = vector.shape_cast %742 : vector<10xf32> to vector<10x1xf32>
    %cst_229 = arith.constant 4.000000e+01 : f32
    %744 = vector.broadcast %cst_229 : f32 to vector<10x1xf32>
    %745 = arith.divf %743, %744 : vector<10x1xf32>
    %cst_230 = arith.constant 9.99999974E-6 : f32
    %746 = vector.broadcast %cst_230 : f32 to vector<10x1xf32>
    %747 = arith.addf %745, %746 : vector<10x1xf32>
    %748 = math.rsqrt %747 : vector<10x1xf32>
    %749 = vector.broadcast %748 : vector<10x1xf32> to vector<10x40xf32>
    %750 = arith.mulf %740, %749 : vector<10x40xf32>
    %751 = vector.broadcast %63 : vector<1x40xf32> to vector<10x40xf32>
    %752 = arith.mulf %750, %751 : vector<10x40xf32>
    %753 = vector.broadcast %65 : vector<1x40xf32> to vector<10x40xf32>
    %754 = arith.addf %752, %753 : vector<10x40xf32>
    %c3_231 = arith.constant 3 : index
    %c0_232 = arith.constant 0 : index
    %c0_233 = arith.constant 0 : index
    %755 = vector.load %arg14[%c3_231, %c0_232, %c0_233] : memref<4x40x10xf32, #tpu.memory_space<vmem>>, vector<1x40x10xf32>
    %756 = vector.shape_cast %755 : vector<1x40x10xf32> to vector<40x10xf32>
    %cst_234 = arith.constant dense<0.000000e+00> : vector<10x10xf32>
    %757 = tpu.matmul %754, %756, %cst_234 {dimension_numbers = #tpu.dot_dimension_numbers<[1], [0], [0], [1], [0, 0, 1, 1], [], []>} : vector<10x40xf32>, vector<40x10xf32>, vector<10x10xf32> -> vector<10x10xf32>
    %c3_235 = arith.constant 3 : index
    %c0_236 = arith.constant 0 : index
    %c0_237 = arith.constant 0 : index
    %758 = vector.load %arg15[%c3_235, %c0_236, %c0_237] : memref<4x1x10xf32, #tpu.memory_space<vmem>>, vector<1x1x10xf32>
    %759 = vector.shape_cast %758 : vector<1x1x10xf32> to vector<1x10xf32>
    %760 = vector.broadcast %759 : vector<1x10xf32> to vector<10x10xf32>
    %761 = arith.addf %757, %760 : vector<10x10xf32>
    %c0_238 = arith.constant 0 : index
    %c30 = arith.constant 30 : index
    %762 = vector.load %arg16[%c0_238, %c30] : memref<10x40xf32, #tpu.memory_space<vmem>>, vector<10x10xf32>
    tpu.vector_store %arg16[%c0_238, %c30], %761 {strides = array<i32>} : memref<10x40xf32, #tpu.memory_space<vmem>>, vector<10x10xf32>,
    return
  }
}

</mosaic_0001>

<bundles_post_ra>
// kernel: tile.9
= control target key start
LH: loop header
LB: loop body
LE: loop exit
PB: predicated region body
PF: predicated region fallthrough
CT: control target
= control target key end

     0   :  { %vm3_vm0 = vcmask 326656   ;;  %s34_s0 = inlined_call_operand.vmem [shape: f32[2,5,40], index: 0, kind: input, shape index: {}]   ;;  %s35_s1 = inlined_call_operand.vmem [shape: f32[10,40], index: 1, kind: output, shape index: {}]  }
   0x1   :  { %v2_v0 = vld [vmem:[%s34_s0] sm:$0x1f]   ;;  %v10_v1 = vld [vmem:[%s34_s0 + $0x8] sm:$0x1f]  }
   0x2   :  { %4 = vst.msk [vmem:[%s35_s1] sm:$0x1f] %vm3_vm0, %v2_v0  }
   0x3   :  { %11 = vst.msk [vmem:[%s35_s1 + $0x5] sm:$0x1f] %vm3_vm0, %v10_v1  }

// kernel: transformer_decoder_forward.1
= control target key start
LH: loop header
LB: loop body
LE: loop exit
PB: predicated region body
PF: predicated region fallthrough
CT: control target
= control target key end

     0   :  { %v6421_v11 = vmov 0.0   ;;  %s6422_s28 = smov 112   ;;  %s6423_s29 = smov 104   ;;  %v6424_v22 = vmov 0   ;;  %vm481_vm0 = vcmask 64512   ;;  %vm180_vm1 = vcmask 326656   ;;  %s9076_s5 = inlined_call_operand.vmem [shape: f32[6,40,40], index: 5, kind: input, shape index: {}]   ;;  %s9077_s6 = inlined_call_operand.vmem [shape: f32[6,1,40], index: 6, kind: input, shape index: {}]   ;;  %s9078_s3 = inlined_call_operand.vmem [shape: f32[1,10], index: 3, kind: input, shape index: {}]   ;;  %s9079_s4 = inlined_call_operand.vmem [shape: f32[1,32], index: 4, kind: input, shape index: {}]   ;;  %s9080_s2 = inlined_call_operand.vmem [shape: f32[10,1], index: 2, kind: input, shape index: {}]   ;;  %s9081_s0 = inlined_call_operand.vmem [shape: f32[32,40], index: 0, kind: input, shape index: {}]   ;;  %s9082_s8 = inlined_call_operand.vmem [shape: f32[2,1,40], index: 8, kind: input, shape index: {}]   ;;  %s9083_s7 = inlined_call_operand.vmem [shape: f32[2,40,40], index: 7, kind: input, shape index: {}]   ;;  %s9084_s9 = inlined_call_operand.vmem [shape: f32[8,1,40], index: 9, kind: input, shape index: {}]   ;;  %s9085_s1 = inlined_call_operand.vmem [shape: f32[10,40], index: 1, kind: input, shape index: {}]   ;;  %s9086_s11 = inlined_call_operand.vmem [shape: f32[1,64], index: 11, kind: input, shape index: {}]   ;;  %s9087_s10 = inlined_call_operand.vmem [shape: f32[40,64], index: 10, kind: input, shape index: {}]   ;;  %s9088_s12 = inlined_call_operand.vmem [shape: f32[64,40], index: 12, kind: input, shape index: {}]   ;;  %s9089_s13 = inlined_call_operand.vmem [shape: f32[1,40], index: 13, kind: input, shape index: {}]   ;;  %s9090_s14 = inlined_call_operand.vmem [shape: f32[4,40,10], index: 14, kind: input, shape index: {}]   ;;  %s9091_s15 = inlined_call_operand.vmem [shape: f32[4,1,10], index: 15, kind: input, shape index: {}]   ;;  %s9092_s16 = inlined_call_operand.vmem [shape: f32[10,40], index: 16, kind: output, shape index: {}]  }
   0x1   :  { %9141 = sst [smem:[#allocation23_spill]] %s9076_s5  ;;  %v5984_v16 = vld [vmem:[%s9077_s6] ss:$0 sm:$0xff]  ;;  %v5985_v17 = vld [vmem:[%s9077_s6 + $0x1] ss:$0 sm:$0xff]  ;;  %5941 = vset.pattern.permute.xlu1 %v6424_v22  ;;  %5942 = vset.pattern.permute.xlu2 %v6424_v22  ;;  %s6425_s30 = smov 96  }
   0x2   :  { %s9142_s23 = sld [smem:[#allocation23_spill]]  ;;  %5983 = vset.pattern.permute.xlu0 %v6424_v22  ;;  %s6426_s27 = smov 120   ;;  %v59_v32 = vld [vmem:[%s9080_s2] sm:$0xff]  ;;  %v60_v33 = vld [vmem:[%s9080_s2 + $0x8] sm:$0x3]  ;;  %v55_v40 = vld [vmem:[%s9081_s0 + $0x10] sm:$0xff] }
   0x3   :  { %v53_v34 = vld [vmem:[%s9081_s0] sm:$0xff]  ;;  %v54_v35 = vld [vmem:[%s9081_s0 + $0x8] sm:$0xff]  ;;  %v56_v45 = vld [vmem:[%s9081_s0 + $0x18] sm:$0xff]  ;;  %vm9134_vm3 = vcmask 1041408   ;;  %vm9111_vm4 = vcmask 74752   ;;  %vm9137_vm6 = vcmask 80896  }
   0x4   :  { %v5986_v42 = vld [vmem:[%s9077_s6 + $0x2] ss:$0 sm:$0xff]  ;;  %v5987_v61 = vld [vmem:[%s9078_s3] ss:$0 sm:$0xff]  ;;  %s6428_s20 = smov 16   ;;  %s6429_s21 = smov 8  }
   0x5   :  { %s6430_s22 = smov 24   ;;  %s9094_s24 = smov 32  }
   0x6   :  { %s6433_s18 = smov 10   ;;  %s6435_s25 = smov 20  }
   0x8   :  { %v91_v0 = vld [vmem:[%s9142_s23 + $0x20] sm:$0xff]  ;;  %v5586_v1 = vld [vmem:[%s9142_s23 + $0x48] sm:$0xff]  ;;  %v90_v2 = vld [vmem:[%s9142_s23 + $0x18] sm:$0xff] }
   0x9   :  { %359 = vmatpush.msra.mxu2 %v91_v0  ;;  %403 = vmatpush.msra.mxu3 %v5586_v1  ;;  %v5585_v3 = vld [vmem:[%s9142_s23 + $0x40] sm:$0xff]  ;;  %v89_v4 = vld [vmem:[%s9142_s23 + $0x10] sm:$0xff]  ;;  %v5584_v5 = vld [vmem:[%s9142_s23 + $0x38] sm:$0xff] }
   0xa   :  { %v88_v6 = vld [vmem:[%s9142_s23 + $0x8] sm:$0xff]  ;;  %v5583_v7 = vld [vmem:[%s9142_s23 + $0x30] sm:$0xff]  ;;  %v87_v8 = vld [vmem:[%s9142_s23] sm:$0xff] }
   0xb   :  { %360 = vmatpush.msra.mxu2 %v90_v2  ;;  %404 = vmatpush.msra.mxu3 %v5585_v3  ;;  %v5582_v9 = vld [vmem:[%s9142_s23 + $0x28] sm:$0xff]  ;;  %v5591_v10 = vld [vmem:[%s9142_s23 + $0x70] sm:$0xff]  ;;  %v5589_v13 = vld [vmem:[%s9142_s23 + $0x60] sm:$0xff]  ;;  %v6427_v2 = vmov -1e+30  }
   0xc   :  { %v5590_v12 = vld [vmem:[%s9142_s23 + $0x68] sm:$0xff]  ;;  %v5588_v14 = vld [vmem:[%s9142_s23 + $0x58] sm:$0xff]  ;;  %v5587_v15 = vld [vmem:[%s9142_s23 + $0x50] sm:$0xff] }
   0xd   :  { %361 = vmatpush.msra.mxu2 %v89_v4  ;;  %405 = vmatpush.msra.mxu3 %v5584_v5  ;;  %v5601_v25 = vld [vmem:[%s9142_s23 + $0xc0] sm:$0xff]  ;;  %v5600_v26 = vld [vmem:[%s9142_s23 + $0xb8] sm:$0xff]  ;;  %v5599_v27 = vld [vmem:[%s9142_s23 + $0xb0] sm:$0xff] }
   0xe   :  { %204 = vmatpush.msra.mxu0 %v5601_v25  ;;  %v5598_v28 = vld [vmem:[%s9142_s23 + $0xa8] sm:$0xff]  ;;  %v5597_v29 = vld [vmem:[%s9142_s23 + $0xa0] sm:$0xff]  ;;  %v5604_v38 = vld [vmem:[%s9142_s23 + $0xd8] sm:$0xff] }
   0xf   :  { %362 = vmatpush.msra.mxu2 %v88_v6  ;;  %406 = vmatpush.msra.mxu3 %v5583_v7  ;;  %v5606_v36 = vld [vmem:[%s9142_s23 + $0xe8] sm:$0xff]  ;;  %v5605_v37 = vld [vmem:[%s9142_s23 + $0xe0] sm:$0xff]  ;;  %v5603_v39 = vld [vmem:[%s9142_s23 + $0xd0] sm:$0xff] }
  0x10   :  { %205 = vmatpush.msra.mxu0 %v5600_v26  ;;  %272 = vmatpush.msra.mxu1 %v5606_v36  ;;  %v5602_v41 = vld [vmem:[%s9142_s23 + $0xc8] sm:$0xff] }
  0x11   :  { %363 = vmatpush.msra.mxu2 %v87_v8  ;;  %407 = vmatpush.msra.mxu3 %v5582_v9 }
  0x12   :  { %364 = vmatmul.f32.vlgmr.msra.gmra.mxu2 %v6421_v11  ;;  %408 = vmatmul.f32.vlgmr.msra.gmra.mxu3 %v6421_v11 }
  0x13   :  { %447 = vmatpush.msrb.mxu2 %v5591_v10  ;;  %206 = vmatpush.msra.mxu0 %v5599_v27 }
  0x14   :  { %273 = vmatpush.msra.mxu1 %v5605_v37 }
  0x15   :  { %448 = vmatpush.msrb.mxu2 %v5590_v12  ;;  %207 = vmatpush.msra.mxu0 %v5598_v28 }
  0x16   :  { %274 = vmatpush.msra.mxu1 %v5604_v38 }
  0x17   :  { %449 = vmatpush.msrb.mxu2 %v5589_v13  ;;  %208 = vmatpush.msra.mxu0 %v5597_v29 }
  0x18   :  { %5625 = vmatmul.msk.f32.vlgmr.msra.gmra.mxu0 %vm180_vm1, %v53_v34  ;;  %275 = vmatpush.msra.mxu1 %v5603_v39 }
  0x19   :  { %450 = vmatpush.msrb.mxu2 %v5588_v14 }
  0x1a   :  { %411 = vmatmul.f32.gmra.mxu3 %v6421_v11  ;;  %367 = vmatmul.f32.gmra.mxu2 %v6421_v11 }
  0x1b   :  { %451 = vmatpush.msrb.mxu2 %v5587_v15  ;;  %276 = vmatpush.msra.mxu1 %v5602_v41 }
  0x1c   :  { %5629 = vmatmul.msk.f32.vlgmr.msra.gmra.mxu1 %vm180_vm1, %v53_v34 }
  0x20   :  { %5626 = vmatmul.msk.f32.gmra.mxu0 %vm180_vm1, %v54_v35 }
  0x22   :  { %452 = vmatmul.f32.vlgmr.msrb.gmra.mxu2 %v6421_v11 }
  0x24   :  { %5630 = vmatmul.msk.f32.gmra.mxu1 %vm180_vm1, %v54_v35 }
  0x28   :  { %5627 = vmatmul.msk.f32.gmra.mxu0 %vm180_vm1, %v55_v40 }
  0x2a   :  { %455 = vmatmul.f32.gmra.mxu2 %v6421_v11 }
  0x2c   :  { %5631 = vmatmul.msk.f32.gmra.mxu1 %vm180_vm1, %v55_v40 }
  0x30   :  { %5628 = vmatmul.msk.f32.gmra.mxu0 %vm180_vm1, %v56_v45 }
  0x34   :  { %5632 = vmatmul.msk.f32.gmra.mxu1 %vm180_vm1, %v56_v45 }
  0x95   :  { %v365_v18 = vpop.f32.mrf.mxu2  ;;  %v409_v19 = vpop.f32.mrf.mxu3 }
  0x96   :  { %v366_v20 = vadd.f32 %v5984_v16, %v365_v18  ;;  %v410_v21 = vadd.f32 %v5985_v17, %v409_v19  ;;  %v210_v13 = vpop.f32.mrf.mxu0 }
  0x98   :  { %421 = vrot.lane.b32.xlu2 %v410_v21, %s6422_s28  ;;  %425 = vrot.lane.b32.xlu0 %v410_v21, %s6423_s29 }
  0x99   :  { %381 = vrot.lane.b32.xlu1 %v366_v20, %s6423_s29 }
  0x9d   :  { %v412_v23 = vpop.f32.mrf.mxu3  ;;  %v368_v30 = vpop.f32.mrf.mxu2 }
  0x9e   :  { %v413_v24 = vadd.f32 %v5985_v17, %v412_v23  ;;  %v369_v31 = vadd.f32 %v5984_v16, %v368_v30  ;;  %v213_v14 = vpop.f32.mrf.mxu0  ;;  %v5989_v17 = vld [vmem:[%s9077_s6 + $0x4] ss:$0 sm:$0xff] }
  0x9f   :  { %v6717_v22 = vadd.f32 %v5989_v17, %v210_v13 }
  0xa0   :  { %5633 = vmatpush.xpose.msk.msrb.mxu3 %vm481_vm0, %v413_v24  ;;  %427 = vrot.lane.b32.xlu0 %v413_v24, %s6423_s29 }
  0xa1   :  { %377 = vrot.lane.b32.xlu2 %v366_v20, %s6422_s28  ;;  %429 = vrot.lane.b32.xlu1 %v410_v21, %s6425_s30 }
  0xa4   :  { %5634 = vmatpush.xpose.msk.msrb.mxu3 %vm481_vm0, %v410_v21 }
  0xa5   :  { %v453_v43 = vpop.f32.mrf.mxu2 }
  0xa6   :  { %v6644_v44 = vadd.f32 %v5986_v42, %v453_v43  ;;  %v216_v16 = vpop.f32.mrf.mxu0 }
  0xa7   :  { %5635 = vmatmul.msk.f32.vlgmr.msrb.gmra.mxu3 %vm481_vm0, %v366_v20 }
  0xa8   :  { %385 = vrot.lane.b32.xlu0 %v366_v20, %s6425_s30 }
  0xa9   :  { %431 = vrot.lane.b32.xlu2 %v413_v24, %s6425_s30  ;;  %423 = vrot.lane.b32.xlu1 %v413_v24, %s6422_s28 }
  0xad   :  { %v456_v46 = vpop.f32.mrf.mxu2 }
  0xae   :  { %v6655_v47 = vadd.f32 %v5986_v42, %v456_v46  ;;  %v219_v18 = vpop.f32.mrf.mxu0 }
  0xaf   :  { %5636 = vmatmul.msk.f32.gmra.mxu3 %vm481_vm0, %v369_v31  ;;  %v6707_v19 = vadd.f32 %v5989_v17, %v219_v18 }
  0xb0   :  { %419 = vrot.lane.b32.xlu0 %v413_v24, %s6426_s27  ;;  %v6723_v24 = vpop.f32.mrf.mxu1 }
  0xb1   :  { %417 = vrot.lane.b32.xlu1 %v410_v21, %s6426_s27  ;;  %383 = vrot.lane.b32.xlu2 %v369_v31, %s6423_s29  ;;  %v6713_v21 = vadd.f32 %v5989_v17, %v213_v14 }
  0xb8   :  { %373 = vrot.lane.b32.xlu0 %v366_v20, %s6426_s27  ;;  %v6709_v20 = vadd.f32 %v5989_v17, %v216_v16  ;;  %v6727_v27 = vpop.f32.mrf.mxu1 }
  0xb9   :  { %379 = vrot.lane.b32.xlu1 %v369_v31, %s6422_s28  ;;  %387 = vrot.lane.b32.xlu2 %v369_v31, %s6425_s30 }
  0xc0   :  { %375 = vrot.lane.b32.xlu0 %v369_v31, %s6426_s27  ;;  %v6729_v28 = vpop.f32.mrf.mxu1 }
  0xc1   :  { %64 = vperm.xlu1 %5941, %v59_v32   ;;  %69 = vperm.xlu2 %5942, %v60_v33  }
  0xc8   :  { %466 = vrot.lane.b32.xlu0 %v6644_v44, %s6422_s28  ;;  %v6731_v29 = vpop.f32.mrf.mxu1 }
  0xc9   :  { %471 = vrot.lane.b32.xlu1 %v6644_v44, %s6423_s29  ;;  %473 = vrot.lane.b32.xlu2 %v6655_v47, %s6423_s29 }
  0xd0   :  { %463 = vrot.lane.b32.xlu0 %v6655_v47, %s6426_s27 }
  0xd1   :  { %468 = vrot.lane.b32.xlu1 %v6655_v47, %s6422_s28 }
  0xf2   :  { %v422_v48 = vpop.permute.xlu2 %421 }
  0xfb   :  { %v378_v49 = vpop.permute.xlu2 %377 }
 0x103   :  { %v432_v50 = vpop.permute.xlu2 %431 }
 0x104   :  { %5649 = vmatpush.xpose.msk.msra.mxu3 %vm481_vm0, %v432_v50 }
 0x10a   :  { %v426_v51 = vpop.permute.xlu0 %425 }
 0x10b   :  { %v382_v52 = vpop.permute.xlu1 %381  ;;  %v384_v55 = vpop.permute.xlu2 %383 }
 0x112   :  { %v428_v53 = vpop.permute.xlu0 %427 }
 0x113   :  { %v430_v54 = vpop.permute.xlu1 %429  ;;  %5645 = vmatpush.xpose.msk.msra.mxu2 %vm481_vm0, %v428_v53  ;;  %v388_v58 = vpop.permute.xlu2 %387 }
 0x114   :  { %5650 = vmatpush.xpose.msk.msra.mxu3 %vm481_vm0, %v430_v54 }
 0x117   :  { %5646 = vmatpush.xpose.msk.msra.mxu2 %vm481_vm0, %v426_v51 }
 0x11a   :  { %v386_v56 = vpop.permute.xlu0 %385  ;;  %5647 = vmatmul.msk.f32.vlgmr.msra.gmra.mxu2 %vm481_vm0, %v382_v52 }
 0x11b   :  { %v424_v57 = vpop.permute.xlu1 %423  ;;  %5651 = vmatmul.msk.f32.vlgmr.msra.gmra.mxu3 %vm481_vm0, %v386_v56  ;;  %v6681_v62 = vpop.permute.xlu2 %69 }
 0x11c   :  { %5641 = vmatpush.xpose.msk.msrb.mxu1 %vm481_vm0, %v424_v57  ;;  %vm76_vm2 = vcmp.eq.f32.partialorder %v6681_v62, %v5987_v61 }
 0x11d   :  { %v6689_v3 = vsel %vm76_vm2, 0.0, %v6427_v2 }
 0x11e   :  { %9143 = vst [vmem:[#allocation2_spill] sm:$0xff] %v6689_v3 }
 0x120   :  { %5642 = vmatpush.xpose.msk.msrb.mxu1 %vm481_vm0, %v422_v48 }
 0x122   :  { %v420_v59 = vpop.permute.xlu0 %419  ;;  %5648 = vmatmul.msk.f32.gmra.mxu2 %vm481_vm0, %v384_v55 }
 0x123   :  { %v418_v60 = vpop.permute.xlu1 %417  ;;  %5643 = vmatmul.msk.f32.vlgmr.msrb.gmra.mxu1 %vm481_vm0, %v378_v49  ;;  %5637 = vmatpush.xpose.msk.msrb.mxu0 %vm481_vm0, %v420_v59  ;;  %v474_v12 = vpop.permute.xlu2 %473 }
 0x124   :  { %5652 = vmatmul.msk.f32.gmra.mxu3 %vm481_vm0, %v388_v58 }
 0x125   :  { %5662 = vmatpush.msk.msrb.mxu3 %vm9134_vm3, %v474_v12 }
 0x127   :  { %5638 = vmatpush.xpose.msk.msrb.mxu0 %vm481_vm0, %v418_v60 }
 0x12a   :  { %v374_v63 = vpop.permute.xlu0 %373  ;;  %v507_v0 = vpop.f32.mrf.mxu3 }
 0x12b   :  { %v380_v1 = vpop.permute.xlu1 %379  ;;  %5639 = vmatmul.msk.f32.vlgmr.msrb.gmra.mxu0 %vm481_vm0, %v374_v63 }
 0x12c   :  { %5644 = vmatmul.msk.f32.gmra.mxu1 %vm481_vm0, %v380_v1  ;;  %5653 = vmatpush.msk.msra.mxu0 %vm9134_vm3, %v6655_v47 }
 0x12e   :  { %903 = vmatpush.msra.mxu0 %v6644_v44 }
 0x132   :  { %v376_v4 = vpop.permute.xlu0 %375  ;;  %v510_v5 = vpop.f32.mrf.mxu3 }
 0x133   :  { %v511_v6 = vadd.f32 %v510_v5, %v6689_v3  ;;  %v6693_v7 = vpop.permute.xlu1 %64  ;;  %5640 = vmatmul.msk.f32.gmra.mxu0 %vm481_vm0, %v376_v4 }
 0x134   :  { %vm75_vm5 = vcmp.eq.f32.partialorder %v6693_v7, %v5987_v61 }
 0x135   :  { %v6698_v8 = vsel %vm75_vm5, 0.0, %v6427_v2  ;;  %v642_v9 = vsel %vm9111_vm4, %v511_v6, -inf }
 0x136   :  { %9144 = vst [vmem:[#allocation3_spill] sm:$0xff] %v6698_v8  ;;  %643 = vmax.xlane.f32.xlu1 %v642_v9  ;;  %v508_v10 = vadd.f32 %v507_v0, %v6698_v8 }
 0x138   :  { %v638_v11 = vsel %vm9137_vm6, %v508_v10, -inf }
 0x139   :  { %639 = vmax.xlane.f32.xlu0 %v638_v11 }
 0x13a   :  { %v467_v23 = vpop.permute.xlu0 %466 }
 0x13b   :  { %v472_v15 = vpop.permute.xlu1 %471 }
 0x13c   :  { %996 = vmatpush.msrb.mxu3 %v472_v15 }
 0x13e   :  { %5672 = vmatpush.xpose.msk.msra.mxu3 %vm481_vm0, %v6707_v19 }
 0x142   :  { %5673 = vmatpush.xpose.msk.msra.mxu3 %vm481_vm0, %v6709_v20  ;;  %v464_v26 = vpop.permute.xlu0 %463 }
 0x143   :  { %v469_v25 = vpop.permute.xlu1 %468  ;;  %5656 = vmatpush.msk.msra.mxu1 %vm9134_vm3, %v464_v26 }
 0x144   :  { %5659 = vmatpush.msk.msrb.mxu2 %vm9134_vm3, %v469_v25 }
 0x146   :  { %5674 = vmatpush.xpose.msk.msra.mxu3 %vm481_vm0, %v6713_v21  ;;  %965 = vmatpush.msrb.mxu2 %v467_v23 }
 0x14a   :  { %5675 = vmatpush.xpose.msk.msra.mxu3 %vm481_vm0, %v6717_v22 }
 0x19d   :  { %v600_v32 = vpop.f32.mrf.mxu2 }
 0x19e   :  { %v601_v34 = vadd.f32 %v600_v32, %v6698_v8  ;;  %v631_v39 = vpop.f32.mrf.mxu3 }
 0x19f   :  { %v632_v50 = vadd.f32 %v631_v39, %v6698_v8 }
 0x1a0   :  { %v569_v30 = vpop.f32.mrf.mxu1  ;;  %v657_v42 = vsel %vm9137_vm6, %v601_v34, -inf }
 0x1a1   :  { %v570_v31 = vadd.f32 %v569_v30, %v6698_v8  ;;  %v663_v56 = vsel %vm9137_vm6, %v632_v50, -inf }
 0x1a3   :  { %v651_v33 = vsel %vm9137_vm6, %v570_v31, -inf }
 0x1a4   :  { %652 = vmax.xlane.f32.xlu2 %v651_v33 }
 0x1a5   :  { %v603_v46 = vpop.f32.mrf.mxu2 }
 0x1a6   :  { %v604_v53 = vadd.f32 %v603_v46, %v6689_v3 }
 0x1a7   :  { %v634_v59 = vpop.f32.mrf.mxu3 }
 0x1a8   :  { %v538_v35 = vpop.f32.mrf.mxu0  ;;  %v660_v58 = vsel %vm9111_vm4, %v604_v53, -inf  ;;  %v635_v60 = vadd.f32 %v634_v59, %v6689_v3 }
 0x1a9   :  { %v539_v36 = vadd.f32 %v538_v35, %v6698_v8  ;;  %v572_v37 = vpop.f32.mrf.mxu1  ;;  %v644_v38 = vpop.xlane.xlu1 %643 }
 0x1aa   :  { %v573_v40 = vadd.f32 %v572_v37, %v6689_v3  ;;  %v670_v41 = vsub.f32 %v511_v6, %v644_v38  ;;  %v666_v0 = vsel %vm9111_vm4, %v635_v60, -inf }
 0x1ab   :  { %v645_v43 = vsel %vm9137_vm6, %v539_v36, -inf }
 0x1ac   :  { %v640_v45 = vpop.xlane.xlu0 %639  ;;  %658 = vmax.xlane.f32.xlu2 %v657_v42  ;;  %v654_v48 = vsel %vm9111_vm4, %v573_v40, -inf  ;;  %646 = vmax.xlane.f32.xlu0 %v645_v43  ;;  %v681_v51 = vmul.f32 1.442695, %v670_v41 }
 0x1ad   :  { %v669_v49 = vsub.f32 %v508_v10, %v640_v45  ;;  %655 = vmax.xlane.f32.xlu1 %v654_v48 }
 0x1af   :  { %v679_v52 = vmul.f32 1.442695, %v669_v49 }
 0x1b0   :  { %v541_v54 = vpop.f32.mrf.mxu0 }
 0x1b1   :  { %v542_v55 = vadd.f32 %v541_v54, %v6689_v3  ;;  %6008 = vpow2.f32 %v679_v52 }
 0x1b2   :  { %6010 = vpow2.f32 %v681_v51 }
 0x1b3   :  { %v648_v57 = vsel %vm9111_vm4, %v542_v55, -inf }
 0x1b4   :  { %664 = vmax.xlane.f32.xlu2 %v663_v56  ;;  %661 = vmax.xlane.f32.xlu0 %v660_v58 }
 0x1b5   :  { %649 = vmax.xlane.f32.xlu1 %v648_v57 }
 0x1b7   :  { %v6748_v61 = vpop.eup %6008 }
 0x1b8   :  { %v6750_v63 = vpop.eup %6010  ;;  %v699_v1 = vsel %vm9137_vm6, %v6748_v61, 0.0 }
 0x1b9   :  { %v702_v4 = vsel %vm9111_vm4, %v6750_v63, 0.0 }
 0x1bc   :  { %667 = vmax.xlane.f32.xlu2 %v666_v0  ;;  %700 = vadd.xlane.f32.xlu0 %v699_v1 }
 0x1bd   :  { %703 = vadd.xlane.f32.xlu1 %v702_v4 }
 0x217   :  { %v653_v5 = vpop.xlane.xlu2 %652 }
 0x218   :  { %v673_v6 = vsub.f32 %v570_v31, %v653_v5 }
 0x21a   :  { %v687_v9 = vmul.f32 1.442695, %v673_v6 }
 0x21c   :  { %6012 = vpow2.f32 %v687_v9 }
 0x21f   :  { %v659_v10 = vpop.xlane.xlu2 %658  ;;  %v647_v11 = vpop.xlane.xlu0 %646 }
 0x220   :  { %v675_v12 = vsub.f32 %v601_v34, %v659_v10  ;;  %v656_v13 = vpop.xlane.xlu1 %655  ;;  %v671_v14 = vsub.f32 %v539_v36, %v647_v11 }
 0x221   :  { %v674_v15 = vsub.f32 %v573_v40, %v656_v13 }
 0x222   :  { %v6757_v16 = vpop.eup %6012  ;;  %v691_v17 = vmul.f32 1.442695, %v675_v12  ;;  %v683_v18 = vmul.f32 1.442695, %v671_v14 }
 0x223   :  { %v689_v23 = vmul.f32 1.442695, %v674_v15  ;;  %v711_v25 = vsel %vm9137_vm6, %v6757_v16, 0.0 }
 0x224   :  { %6014 = vpow2.f32 %v691_v17  ;;  %712 = vadd.xlane.f32.xlu2 %v711_v25 }
 0x225   :  { %6016 = vpow2.f32 %v689_v23 }
 0x226   :  { %6018 = vpow2.f32 %v683_v18 }
 0x227   :  { %v665_v26 = vpop.xlane.xlu2 %664  ;;  %v662_v30 = vpop.xlane.xlu0 %661 }
 0x228   :  { %v677_v31 = vsub.f32 %v632_v50, %v665_v26  ;;  %v650_v32 = vpop.xlane.xlu1 %649  ;;  %v676_v33 = vsub.f32 %v604_v53, %v662_v30 }
 0x229   :  { %v672_v34 = vsub.f32 %v542_v55, %v650_v32 }
 0x22a   :  { %v6761_v35 = vpop.eup %6014  ;;  %v695_v36 = vmul.f32 1.442695, %v677_v31  ;;  %v693_v37 = vmul.f32 1.442695, %v676_v33 }
 0x22b   :  { %v6763_v38 = vpop.eup %6016  ;;  %v685_v39 = vmul.f32 1.442695, %v672_v34  ;;  %v717_v40 = vsel %vm9137_vm6, %v6761_v35, 0.0 }
 0x22c   :  { %v6767_v41 = vpop.eup %6018  ;;  %6020 = vpow2.f32 %v695_v36  ;;  %718 = vadd.xlane.f32.xlu0 %v717_v40  ;;  %v714_v42 = vsel %vm9111_vm4, %v6763_v38, 0.0 }
 0x22d   :  { %6022 = vpow2.f32 %v685_v39  ;;  %715 = vadd.xlane.f32.xlu2 %v714_v42  ;;  %v705_v43 = vsel %vm9137_vm6, %v6767_v41, 0.0 }
 0x22e   :  { %6024 = vpow2.f32 %v693_v37  ;;  %706 = vadd.xlane.f32.xlu1 %v705_v43 }
 0x22f   :  { %v668_v45 = vpop.xlane.xlu2 %667  ;;  %v701_v46 = vpop.xlane.xlu0 %700 }
 0x230   :  { %v678_v48 = vsub.f32 %v635_v60, %v668_v45  ;;  %v704_v49 = vpop.xlane.xlu1 %703  ;;  %6026 = vrcp.f32 %v701_v46  ;;  %v740_v5 = vand.u32 2147483648, %v701_v46  ;;  %v738_v9 = vand.u32 2147483647, %v701_v46 }
 0x231   :  { %6028 = vrcp.f32 %v704_v49  ;;  %vm734_vm8 = vweird.f32 %v701_v46  ;;  %v755_v18 = vand.u32 2147483648, %v704_v49  ;;  %vm749_vm12 = vweird.f32 %v704_v49 }
 0x232   :  { %v6773_v50 = vpop.eup %6020  ;;  %v697_v51 = vmul.f32 1.442695, %v678_v48  ;;  %v741_v13 = vor.u32 1.1754944e-38, %v740_v5  ;;  %vm739_vm10 = vcmp.eq.f32.partialorder %v738_v9, 8.507059e+37  ;;  %v753_v25 = vand.u32 2147483647, %v704_v49 }
 0x233   :  { %v6775_v52 = vpop.eup %6022  ;;  %v723_v53 = vsel %vm9137_vm6, %v6773_v50, 0.0  ;;  %v756_v30 = vor.u32 1.1754944e-38, %v755_v18 }
 0x234   :  { %v6779_v54 = vpop.eup %6024  ;;  %6030 = vpow2.f32 %v697_v51  ;;  %724 = vadd.xlane.f32.xlu0 %v723_v53  ;;  %v708_v55 = vsel %vm9111_vm4, %v6775_v52, 0.0  ;;  %vm754_vm14 = vcmp.eq.f32.partialorder %v753_v25, 8.507059e+37 }
 0x235   :  { %709 = vadd.xlane.f32.xlu2 %v708_v55  ;;  %v720_v56 = vsel %vm9111_vm4, %v6779_v54, 0.0 }
 0x236   :  { %v6027_v57 = vpop.eup %6026  ;;  %721 = vadd.xlane.f32.xlu1 %v720_v56 }
 0x237   :  { %v6029_v58 = vpop.eup %6028  ;;  %v730_v59 = vmul.f32 %v6027_v57, %v701_v46  ;;  %vm735_vm7 = vweird.f32 %v6027_v57 }
 0x238   :  { %v745_v60 = vmul.f32 %v6029_v58, %v704_v49  ;;  %vm736_vm9 = vmor %vm734_vm8, %vm735_vm7  ;;  %vm750_vm11 = vweird.f32 %v6029_v58 }
 0x239   :  { %v731_v0 = vsub.f32 1.0, %v730_v59  ;;  %vm751_vm13 = vmor %vm749_vm12, %vm750_vm11 }
 0x23a   :  { %v6785_v1 = vpop.eup %6030  ;;  %v746_v4 = vsub.f32 1.0, %v745_v60 }
 0x23b   :  { %v732_v6 = vmul.f32 %v6027_v57, %v731_v0  ;;  %v726_v10 = vsel %vm9111_vm4, %v6785_v1, 0.0 }
 0x23c   :  { %727 = vadd.xlane.f32.xlu0 %v726_v10  ;;  %v747_v11 = vmul.f32 %v6029_v58, %v746_v4 }
 0x23d   :  { %v733_v12 = vadd.f32 %v6027_v57, %v732_v6 }
 0x23e   :  { %v748_v15 = vadd.f32 %v6029_v58, %v747_v11 }
 0x23f   :  { %v737_v14 = vsel %vm736_vm9, %v6027_v57, %v733_v12 }
 0x240   :  { %v742_v17 = vsel %vm739_vm10, %v741_v13, %v737_v14  ;;  %v752_v26 = vsel %vm751_vm13, %v6029_v58, %v748_v15 }
 0x241   :  { %v743_v23 = vmul.f32 %v6748_v61, %v742_v17  ;;  %v757_v31 = vsel %vm754_vm14, %v756_v30, %v752_v26 }
 0x242   :  { %v758_v32 = vmul.f32 %v6750_v63, %v757_v31 }
 0x243   :  { %5654 = vmatmul.msk.f32.vlgmr.msra.gmra.mxu0 %vm9137_vm6, %v743_v23 }
 0x24b   :  { %5655 = vmatmul.msk.f32.gmra.mxu0 %vm9137_vm6, %v758_v32 }
 0x24d   :  { %461 = vrot.lane.b32.xlu2 %v6644_v44, %s6426_s27 }
 0x24f   :  { %478 = vrot.lane.b32.xlu1 %v6655_v47, %s6425_s30 }
 0x250   :  { %476 = vrot.lane.b32.xlu0 %v6644_v44, %s6425_s30 }
 0x297   :  { %v713_v61 = vpop.xlane.xlu2 %712 }
 0x298   :  { %6032 = vrcp.f32 %v713_v61  ;;  %v798_v40 = vand.u32 2147483647, %v713_v61  ;;  %v800_v42 = vand.u32 2147483648, %v713_v61  ;;  %vm794_vm2 = vweird.f32 %v713_v61 }
 0x29a   :  { %vm6806_vm7 = vcmp.eq.f32.partialorder %v798_v40, 8.507059e+37  ;;  %v801_v49 = vor.u32 1.1754944e-38, %v800_v42 }
 0x29e   :  { %v6033_v33 = vpop.eup %6032 }
 0x29f   :  { %v790_v34 = vmul.f32 %v6033_v33, %v713_v61  ;;  %v719_v36 = vpop.xlane.xlu0 %718  ;;  %vm795_vm15 = vweird.f32 %v6033_v33 }
 0x2a0   :  { %6034 = vrcp.f32 %v719_v36  ;;  %v6799_v37 = vpop.xlane.xlu2 %715  ;;  %v828_v44 = vand.u32 2147483647, %v719_v36  ;;  %vm6802_vm5 = vmor %vm794_vm2, %vm795_vm15  ;;  %vm824_vm8 = vweird.f32 %v719_v36  ;;  %v830_v56 = vand.u32 2147483648, %v719_v36 }
 0x2a1   :  { %v791_v63 = vsub.f32 1.0, %v790_v34  ;;  %6036 = vrcp.f32 %v6799_v37  ;;  %v707_v39 = vpop.xlane.xlu1 %706  ;;  %vm809_vm9 = vweird.f32 %v6799_v37  ;;  %v813_v0 = vand.u32 2147483647, %v6799_v37 }
 0x2a2   :  { %6038 = vrcp.f32 %v707_v39  ;;  %vm6823_vm10 = vcmp.eq.f32.partialorder %v828_v44, 8.507059e+37  ;;  %v768_v9 = vand.u32 2147483647, %v707_v39  ;;  %v770_v12 = vand.u32 2147483648, %v707_v39 }
 0x2a3   :  { %v792_v43 = vmul.f32 %v6033_v33, %v791_v63  ;;  %v815_v23 = vand.u32 2147483648, %v6799_v37  ;;  %v831_v26 = vor.u32 1.1754944e-38, %v830_v56  ;;  %vm764_vm15 = vweird.f32 %v707_v39 }
 0x2a4   :  { %vm6844_vm2 = vcmp.eq.f32.partialorder %v768_v9, 8.507059e+37  ;;  %v771_v63 = vor.u32 1.1754944e-38, %v770_v12 }
 0x2a5   :  { %v793_v47 = vadd.f32 %v6033_v33, %v792_v43  ;;  %v816_v46 = vor.u32 1.1754944e-38, %v815_v23 }
 0x2a6   :  { %v6035_v45 = vpop.eup %6034 }
 0x2a7   :  { %v6810_v51 = vpop.eup %6036  ;;  %v797_v53 = vsel %vm6802_vm5, %v6033_v33, %v793_v47  ;;  %v820_v55 = vmul.f32 %v6035_v45, %v719_v36  ;;  %v6814_v57 = vpop.xlane.xlu0 %724  ;;  %vm825_vm11 = vweird.f32 %v6035_v45  ;;  %vm6850_vm5 = vcmp.eq.f32.partialorder %v813_v0, 8.507059e+37 }
 0x2a8   :  { %v6039_v58 = vpop.eup %6038  ;;  %v805_v59 = vmul.f32 %v6810_v51, %v6799_v37  ;;  %6040 = vrcp.f32 %v6814_v57  ;;  %v6819_v60 = vpop.xlane.xlu2 %709  ;;  %v802_v13 = vsel %vm6806_vm7, %v801_v49, %v797_v53  ;;  %vm810_vm12 = vweird.f32 %v6810_v51  ;;  %vm6840_vm14 = vmor %vm824_vm8, %vm825_vm11 }
 0x2a9   :  { %v821_v4 = vsub.f32 1.0, %v820_v55  ;;  %v760_v6 = vmul.f32 %v6039_v58, %v707_v39  ;;  %v6827_v10 = vpop.xlane.xlu1 %721  ;;  %6042 = vrcp.f32 %v6819_v60  ;;  %v803_v17 = vmul.f32 %v6757_v16, %v802_v13  ;;  %vm6864_vm7 = vmor %vm809_vm9, %vm810_vm12 }
 0x2aa   :  { %v806_v11 = vsub.f32 1.0, %v805_v59  ;;  %6044 = vrcp.f32 %v6827_v10  ;;  %vm765_vm13 = vweird.f32 %v6039_v58  ;;  %v845_v12 = vand.u32 2147483648, %v6827_v10 }
 0x2ab   :  { %v822_v14 = vmul.f32 %v6035_v45, %v821_v4  ;;  %v761_v15 = vsub.f32 1.0, %v760_v6  ;;  %5660 = vmatmul.msk.f32.vlgmr.msrb.gmra.mxu2 %vm9137_vm6, %v803_v17  ;;  %vm766_vm8 = vmor %vm764_vm15, %vm765_vm13  ;;  %v783_v6 = vand.u32 2147483647, %v6819_v60  ;;  %vm779_vm11 = vweird.f32 %v6819_v60 }
 0x2ac   :  { %v807_v18 = vmul.f32 %v6810_v51, %v806_v11  ;;  %vm839_vm12 = vweird.f32 %v6827_v10  ;;  %v860_v32 = vand.u32 2147483648, %v6814_v57 }
 0x2ad   :  { %v823_v25 = vadd.f32 %v6035_v45, %v822_v14  ;;  %v762_v30 = vmul.f32 %v6039_v58, %v761_v15  ;;  %vm784_vm15 = vcmp.eq.f32.partialorder %v783_v6, 8.507059e+37  ;;  %v133_v6 = vld [vmem:[%s9083_s7] sm:$0xff] }
 0x2ae   :  { %v6837_v31 = vpop.eup %6040  ;;  %v808_v61 = vadd.f32 %v6810_v51, %v807_v18 }
 0x2af   :  { %v827_v34 = vsel %vm6840_vm14, %v6035_v45, %v823_v25  ;;  %v763_v36 = vadd.f32 %v6039_v58, %v762_v30  ;;  %v850_v39 = vmul.f32 %v6837_v31, %v6814_v57  ;;  %v6858_v40 = vpop.xlane.xlu0 %727  ;;  %v6043_v43 = vpop.eup %6042  ;;  %vm855_vm13 = vweird.f32 %v6837_v31 }
 0x2b0   :  { %6046 = vrcp.f32 %v6858_v40  ;;  %v462_v47 = vpop.permute.xlu2 %461  ;;  %v832_v44 = vsel %vm6823_vm10, %v831_v26, %v827_v34  ;;  %v812_v45 = vsel %vm6864_vm7, %v6810_v51, %v808_v61  ;;  %v6045_v48 = vpop.eup %6044  ;;  %v775_v53 = vmul.f32 %v6043_v43, %v6819_v60 }
 0x2b1   :  { %v767_v37 = vsel %vm766_vm8, %v6039_v58, %v763_v36  ;;  %v851_v49 = vsub.f32 1.0, %v850_v39  ;;  %934 = vmatpush.msra.mxu1 %v462_v47  ;;  %v833_v55 = vmul.f32 %v6761_v35, %v832_v44  ;;  %v835_v56 = vmul.f32 %v6045_v48, %v6827_v10 }
 0x2b2   :  { %v772_v59 = vsel %vm6844_vm2, %v771_v63, %v767_v37  ;;  %v817_v0 = vsel %vm6850_vm5, %v816_v46, %v812_v45  ;;  %v776_v4 = vsub.f32 1.0, %v775_v53  ;;  %v785_v35 = vand.u32 2147483648, %v6819_v60 }
 0x2b3   :  { %5663 = vmatmul.msk.f32.vlgmr.msrb.gmra.mxu3 %vm9137_vm6, %v833_v55  ;;  %v773_v51 = vmul.f32 %v6767_v41, %v772_v59  ;;  %v818_v58 = vmul.f32 %v6763_v38, %v817_v0  ;;  %v836_v5 = vsub.f32 1.0, %v835_v56  ;;  %v852_v9 = vmul.f32 %v6837_v31, %v851_v49 }
 0x2b4   :  { %v777_v11 = vmul.f32 %v6043_v43, %v776_v4  ;;  %vm780_vm9 = vweird.f32 %v6043_v43  ;;  %vm840_vm10 = vweird.f32 %v6045_v48  ;;  %v843_v38 = vand.u32 2147483647, %v6827_v10  ;;  %v137_v4 = vld [vmem:[%s9083_s7 + $0x20] sm:$0xff] }
 0x2b5   :  { %5657 = vmatmul.msk.f32.vlgmr.msra.gmra.mxu1 %vm9137_vm6, %v773_v51  ;;  %5661 = vmatmul.msk.f32.gmra.mxu2 %vm9137_vm6, %v818_v58  ;;  %v837_v14 = vmul.f32 %v6045_v48, %v836_v5  ;;  %vm781_vm14 = vmor %vm779_vm11, %vm780_vm9  ;;  %v786_v17 = vor.u32 1.1754944e-38, %v785_v35  ;;  %v853_v23 = vadd.f32 %v6837_v31, %v852_v9  ;;  %v846_v30 = vor.u32 1.1754944e-38, %v845_v12  ;;  %v136_v51 = vld [vmem:[%s9083_s7 + $0x18] sm:$0xff]  ;;  %v135_v58 = vld [vmem:[%s9083_s7 + $0x10] sm:$0xff] }
 0x2b6   :  { %v6047_v13 = vpop.eup %6046  ;;  %v778_v15 = vadd.f32 %v6043_v43, %v777_v11  ;;  %vm841_vm2 = vmor %vm839_vm12, %vm840_vm10  ;;  %vm844_vm5 = vcmp.eq.f32.partialorder %v843_v38, 8.507059e+37  ;;  %vm854_vm7 = vweird.f32 %v6814_v57  ;;  %v858_v60 = vand.u32 2147483647, %v6814_v57  ;;  %1098 = vmatpush.msrb.mxu1 %v137_v4  ;;  %v134_v5 = vld [vmem:[%s9083_s7 + $0x8] sm:$0xff] }
 0x2b7   :  { %v865_v41 = vmul.f32 %v6047_v13, %v6858_v40  ;;  %v838_v18 = vadd.f32 %v6045_v48, %v837_v14  ;;  %vm856_vm8 = vmor %vm854_vm7, %vm855_vm13  ;;  %v861_v39 = vor.u32 1.1754944e-38, %v860_v32  ;;  %vm870_vm10 = vweird.f32 %v6047_v13 }
 0x2b8   :  { %v782_v26 = vsel %vm781_vm14, %v6043_v43, %v778_v15  ;;  %v857_v36 = vsel %vm856_vm8, %v6837_v31, %v853_v23  ;;  %vm859_vm9 = vcmp.eq.f32.partialorder %v858_v60, 8.507059e+37  ;;  %v875_v47 = vand.u32 2147483648, %v6858_v40  ;;  %1099 = vmatpush.msrb.mxu1 %v136_v51 }
 0x2b9   :  { %v866_v25 = vsub.f32 1.0, %v865_v41  ;;  %v787_v16 = vsel %vm784_vm15, %v786_v17, %v782_v26  ;;  %v842_v61 = vsel %vm841_vm2, %v6045_v48, %v838_v18  ;;  %v862_v42 = vsel %vm859_vm9, %v861_v39, %v857_v36  ;;  %v5596_v39 = vld [vmem:[%s9142_s23 + $0x98] sm:$0xff] }
 0x2ba   :  { %v788_v10 = vmul.f32 %v6775_v52, %v787_v16  ;;  %v847_v33 = vsel %vm844_vm5, %v846_v30, %v842_v61  ;;  %vm869_vm11 = vweird.f32 %v6858_v40  ;;  %v873_v31 = vand.u32 2147483647, %v6858_v40  ;;  %1100 = vmatpush.msrb.mxu1 %v135_v58  ;;  %v5991_v16 = vld [vmem:[%s9082_s8] ss:$0 sm:$0xff]  ;;  %1196 = vmatpush.msra.mxu2 %v5596_v39 }
 0x2bb   :  { %v848_v34 = vmul.f32 %v6779_v54, %v847_v33  ;;  %v867_v63 = vmul.f32 %v6047_v13, %v866_v25  ;;  %v863_v54 = vmul.f32 %v6773_v50, %v862_v42  ;;  %vm871_vm12 = vmor %vm869_vm11, %vm870_vm10  ;;  %v876_v45 = vor.u32 1.1754944e-38, %v875_v47  ;;  %v5595_v47 = vld [vmem:[%s9142_s23 + $0x90] sm:$0xff] }
 0x2bc   :  { %vm874_vm13 = vcmp.eq.f32.partialorder %v873_v31, 8.507059e+37  ;;  %1101 = vmatpush.msrb.mxu1 %v134_v5  ;;  %vm1069_vm14 = vcmask 130048   ;;  %vm1072_vm15 = vcmask 195584   ;;  %vm1075_vm2 = vcmask 261120   ;;  %1197 = vmatpush.msra.mxu2 %v5595_v47  ;;  %v5593_v31 = vld [vmem:[%s9142_s23 + $0x80] sm:$0xff] }
 0x2bd   :  { %5658 = vmatmul.msk.f32.gmra.mxu1 %vm9137_vm6, %v788_v10  ;;  %5664 = vmatmul.msk.f32.gmra.mxu3 %vm9137_vm6, %v848_v34  ;;  %v868_v57 = vadd.f32 %v6047_v13, %v867_v63  ;;  %vm1115_vm5 = vcmask 320512   ;;  %v6432_v63 = vmov 40.0  }
 0x2be   :  { %1102 = vmatpush.msrb.mxu1 %v133_v6  ;;  %6048 = vrcp.f32 %v6432_v63 }
 0x2bf   :  { %v872_v44 = vsel %vm871_vm12, %v6047_v13, %v868_v57 }
 0x2c0   :  { %v877_v46 = vsel %vm874_vm13, %v876_v45, %v872_v44  ;;  %v905_v37 = vpop.f32.mrf.mxu0  ;;  %v5592_v45 = vld [vmem:[%s9142_s23 + $0x78] sm:$0xff] }
 0x2c1   :  { %v479_v43 = vpop.permute.xlu1 %478  ;;  %v878_v48 = vmul.f32 %v6785_v1, %v877_v46 }
 0x2c2   :  { %5665 = vmatpush.msk.msrb.mxu0 %vm9134_vm3, %v479_v43  ;;  %v477_v52 = vpop.permute.xlu0 %476 }
 0x2c4   :  { %1027 = vmatpush.msrb.mxu0 %v477_v52  ;;  %v6049_v42 = vpop.eup %6048 }
 0x2c5   :  { %5666 = vmatmul.msk.f32.vlgmr.msrb.gmra.mxu0 %vm9137_vm6, %v863_v54  ;;  %v1120_v43 = vmul.f32 40.0, %v6049_v42  ;;  %v5594_v54 = vld [vmem:[%s9142_s23 + $0x88] sm:$0xff]  ;;  %vm1124_vm7 = vweird.f32 %v6049_v42 }
 0x2c6   :  { %1198 = vmatpush.msra.mxu2 %v5594_v54  ;;  %v58_v54 = vld [vmem:[%s9085_s1 + $0x8] sm:$0x3] }
 0x2c7   :  { %v1121_v57 = vsub.f32 1.0, %v1120_v43 }
 0x2c8   :  { %v908_v53 = vpop.f32.mrf.mxu0  ;;  %1199 = vmatpush.msra.mxu2 %v5593_v31 }
 0x2c9   :  { %v1122_v52 = vmul.f32 %v6049_v42, %v1121_v57 }
 0x2ca   :  { %1200 = vmatpush.msra.mxu2 %v5592_v45 }
 0x2cb   :  { %v1123_v44 = vadd.f32 %v6049_v42, %v1122_v52 }
 0x2cd   :  { %5667 = vmatmul.msk.f32.gmra.mxu0 %vm9137_vm6, %v878_v48  ;;  %v6978_v46 = vsel %vm1124_vm7, %v6049_v42, %v1123_v44 }
 0x2ce   :  { %9159 = vst [vmem:[#allocation4_spill] sm:$0xff] %v6978_v46 }
 0x32e   :  { %v967_v49 = vpop.f32.mrf.mxu2 }
 0x32f   :  { %1045 = vrot.lane.b32.xlu1 %v967_v49, %s6428_s20 }
 0x332   :  { %v936_v50 = vpop.f32.mrf.mxu1 }
 0x333   :  { %1037 = vrot.lane.b32.xlu2 %v936_v50, %s6429_s21 }
 0x336   :  { %v998_v40 = vpop.f32.mrf.mxu3 }
 0x337   :  { %1053 = vrot.lane.b32.xlu0 %v998_v40, %s6430_s22 }
 0x338   :  { %v970_v1 = vpop.f32.mrf.mxu2 }
 0x33a   :  { %v939_v55 = vpop.f32.mrf.mxu1 }
 0x33b   :  { %1039 = vrot.lane.b32.xlu1 %v939_v55, %s6429_s21 }
 0x33f   :  { %1047 = vrot.lane.b32.xlu0 %v970_v1, %s6428_s20 }
 0x340   :  { %v1001_v59 = vpop.f32.mrf.mxu3 }
 0x342   :  { %v1029_v56 = vpop.f32.mrf.mxu0 }
 0x343   :  { %1061 = vrot.lane.b32.xlu2 %v1029_v56, %s9094_s24 }
 0x34a   :  { %v1032_v0 = vpop.f32.mrf.mxu0 }
 0x34b   :  { %1055 = vrot.lane.b32.xlu2 %v1001_v59, %s6430_s22  ;;  %1063 = vrot.lane.b32.xlu1 %v1032_v0, %s9094_s24  ;;  %s6434_s24 = smov 30  }
 0x38d   :  { %v1038_v35 = vpop.permute.xlu2 %1037 }
 0x38e   :  { %v1067_v11 = vsel %vm481_vm0, %v905_v37, %v1038_v35 }
 0x39d   :  { %v1062_v14 = vpop.permute.xlu2 %1061 }
 0x3a1   :  { %v1046_v9 = vpop.permute.xlu1 %1045 }
 0x3a2   :  { %v1070_v12 = vsel %vm1069_vm14, %v1067_v11, %v1046_v9 }
 0x3a5   :  { %v1056_v25 = vpop.permute.xlu2 %1055 }
 0x3a9   :  { %v1054_v13 = vpop.permute.xlu0 %1053 }
 0x3aa   :  { %v1073_v38 = vsel %vm1072_vm15, %v1070_v12, %v1054_v13 }
 0x3ab   :  { %v1076_v41 = vsel %vm1075_vm2, %v1073_v38, %v1062_v14 }
 0x3ac   :  { %5668 = vmatmul.msk.f32.vlgmr.msrb.gmra.mxu1 %vm180_vm1, %v1076_v41 }
 0x3ad   :  { %v1040_v15 = vpop.permute.xlu1 %1039 }
 0x3ae   :  { %v1068_v18 = vsel %vm481_vm0, %v908_v53, %v1040_v15  ;;  %v5992_v15 = vld [vmem:[%s9084_s9] ss:$0 sm:$0xff] }
 0x3b1   :  { %v1048_v17 = vpop.permute.xlu0 %1047 }
 0x3b2   :  { %v1071_v23 = vsel %vm1069_vm14, %v1068_v18, %v1048_v17 }
 0x3b3   :  { %v1074_v30 = vsel %vm1072_vm15, %v1071_v23, %v1056_v25  ;;  %v5993_v25 = vld [vmem:[%s9084_s9 + $0x1] ss:$0 sm:$0xff] }
 0x3bd   :  { %v1064_v26 = vpop.permute.xlu1 %1063 }
 0x3be   :  { %v1077_v32 = vsel %vm1075_vm2, %v1074_v30, %v1064_v26 }
 0x3bf   :  { %5669 = vmatmul.msk.f32.gmra.mxu1 %vm180_vm1, %v1077_v32  ;;  %v57_v32 = vld [vmem:[%s9085_s1] sm:$0xff] }
 0x429   :  { %v1104_v61 = vpop.f32.mrf.mxu1 }
 0x42a   :  { %v1105_v60 = vadd.f32 %v5991_v16, %v1104_v61 }
 0x42c   :  { %v1112_v10 = vsel %vm180_vm1, %v1105_v60, 0.0 }
 0x42d   :  { %1113 = vadd.xlane.f32.xlu0 %v1112_v10 }
 0x43c   :  { %v1107_v33 = vpop.f32.mrf.mxu1 }
 0x43d   :  { %v1108_v34 = vadd.f32 %v5991_v16, %v1107_v33 }
 0x43f   :  { %v1116_v36 = vsel %vm1115_vm5, %v1108_v34, 0.0 }
 0x440   :  { %1117 = vadd.xlane.f32.xlu2 %v1116_v36 }
 0x458   :  { %248 = vrot.lane.b32.xlu2 %v6707_v19, %s6423_s29 }
 0x460   :  { %256 = vrot.lane.b32.xlu2 %v6707_v19, %s6425_s30 }
 0x468   :  { %232 = vrot.lane.b32.xlu2 %v6707_v19, %s6426_s27 }
 0x470   :  { %236 = vrot.lane.b32.xlu2 %v6713_v21, %s6422_s28 }
 0x478   :  { %250 = vrot.lane.b32.xlu2 %v6717_v22, %s6425_s30 }
 0x4a0   :  { %v1114_v48 = vpop.xlane.xlu0 %1113 }
 0x4a1   :  { %v1126_v37 = vmul.f32 %v6978_v46, %v1114_v48 }
 0x4a3   :  { %v1128_v49 = vsub.f32 %v1105_v60, %v1126_v37 }
 0x4a5   :  { %v1130_v50 = vmul.f32 %v1128_v49, %v1128_v49 }
 0x4a7   :  { %v1132_v40 = vsel %vm180_vm1, %v1130_v50, 0.0 }
 0x4a8   :  { %1133 = vadd.xlane.f32.xlu1 %v1132_v40 }
 0x4b3   :  { %v1118_v53 = vpop.xlane.xlu2 %1117 }
 0x4b4   :  { %v1127_v55 = vmul.f32 %v6978_v46, %v1118_v53 }
 0x4b6   :  { %v6983_v1 = vsub.f32 %v1108_v34, %v1127_v55  ;;  %v5990_v55 = vld [vmem:[%s9077_s6 + $0x5] ss:$0 sm:$0xff] }
 0x4b8   :  { %v1131_v56 = vmul.f32 %v6983_v1, %v6983_v1 }
 0x4ba   :  { %v1135_v59 = vsel %vm1115_vm5, %v1131_v56, 0.0 }
 0x4bb   :  { %1136 = vadd.xlane.f32.xlu0 %v1135_v59  ;;  %v6988_v0 = vpop.permute.xlu2 %248 }
 0x4bc   :  { %5690 = vmatpush.xpose.msk.msrb.mxu2 %vm481_vm0, %v6988_v0 }
 0x4c1   :  { %246 = vrot.lane.b32.xlu1 %v6709_v20, %s6423_s29 }
 0x4c3   :  { %v6994_v4 = vpop.permute.xlu2 %256 }
 0x4c4   :  { %5696 = vmatpush.xpose.msk.msrb.mxu3 %vm481_vm0, %v6994_v4 }
 0x4c9   :  { %238 = vrot.lane.b32.xlu1 %v6709_v20, %s6422_s28 }
 0x4cb   :  { %v7000_v51 = vpop.permute.xlu2 %232 }
 0x4cc   :  { %5678 = vmatpush.xpose.msk.msra.mxu0 %vm481_vm0, %v7000_v51 }
 0x4cf   :  { %240 = vrot.lane.b32.xlu0 %v6707_v19, %s6422_s28 }
 0x4d1   :  { %242 = vrot.lane.b32.xlu1 %v6717_v22, %s6423_s29 }
 0x4d3   :  { %v7055_v31 = vpop.permute.xlu2 %236 }
 0x4d7   :  { %244 = vrot.lane.b32.xlu0 %v6713_v21, %s6423_s29 }
 0x4d9   :  { %252 = vrot.lane.b32.xlu1 %v6713_v21, %s6425_s30 }
 0x4db   :  { %v7079_v40 = vpop.permute.xlu2 %250 }
 0x4df   :  { %254 = vrot.lane.b32.xlu0 %v6709_v20, %s6425_s30 }
 0x4e1   :  { %228 = vrot.lane.b32.xlu1 %v6713_v21, %s6426_s27 }
 0x4e7   :  { %230 = vrot.lane.b32.xlu0 %v6709_v20, %s6426_s27 }
 0x4e9   :  { %226 = vrot.lane.b32.xlu1 %v6717_v22, %s6426_s27 }
 0x4ef   :  { %234 = vrot.lane.b32.xlu0 %v6717_v22, %s6422_s28 }
 0x51b   :  { %v1134_v58 = vpop.xlane.xlu1 %1133 }
 0x51c   :  { %v1138_v5 = vmul.f32 %v1134_v58, %v6978_v46  ;;  %v7104_v58 = vadd.f32 %v5990_v55, %v6729_v28 }
 0x51e   :  { %v1140_v6 = vadd.f32 1e-05, %v1138_v5  ;;  %v7108_v5 = vadd.f32 %v5990_v55, %v6727_v27 }
 0x520   :  { %6050 = vrsqrt.f32 %v1140_v6  ;;  %vm1148_vm9 = vweird.f32 %v1140_v6 }
 0x526   :  { %v6051_v35 = vpop.eup %6050 }
 0x527   :  { %v1143_v9 = vmul.f32 %v6051_v35, %v1140_v6  ;;  %vm1149_vm8 = vweird.f32 %v6051_v35  ;;  %v5994_v6 = vld [vmem:[%s9077_s6 + $0x3] ss:$0 sm:$0xff] }
 0x528   :  { %vm1150_vm10 = vmor %vm1148_vm9, %vm1149_vm8  ;;  %vm9110_vm9 = vcmask 254976  }
 0x529   :  { %v1144_v11 = vmul.f32 %v6051_v35, %v1143_v9 }
 0x52b   :  { %v1145_v12 = vmul.f32 0.5, %v1144_v11 }
 0x52d   :  { %v1146_v13 = vsub.f32 1.5, %v1145_v12 }
 0x52e   :  { %v1137_v14 = vpop.xlane.xlu0 %1136 }
 0x52f   :  { %v1147_v38 = vmul.f32 %v6051_v35, %v1146_v13  ;;  %v1139_v41 = vmul.f32 %v1137_v14, %v6978_v46 }
 0x531   :  { %v1151_v17 = vsel %vm1150_vm10, %v6051_v35, %v1147_v38  ;;  %v1141_v18 = vadd.f32 1e-05, %v1139_v41 }
 0x532   :  { %v1162_v23 = vmul.f32 %v1151_v17, %v1128_v49 }
 0x533   :  { %6052 = vrsqrt.f32 %v1141_v18  ;;  %v7030_v26 = vpop.permute.xlu1 %246  ;;  %vm1158_vm12 = vweird.f32 %v1141_v18 }
 0x534   :  { %v1167_v30 = vmul.f32 %v5992_v15, %v1162_v23  ;;  %5691 = vmatpush.xpose.msk.msrb.mxu2 %vm481_vm0, %v7030_v26  ;;  %v5988_v23 = vld [vmem:[%s9079_s4] ss:$0 sm:$0xff]  ;;  %s9176_s4 = smov 32  }
 0x535   :  { %vm83_vm7 = vcmp.eq.f32.partialorder %v6693_v7, %v5988_v23  ;;  %vm84_vm8 = vcmp.eq.f32.partialorder %v6681_v62, %v5988_v23 }
 0x536   :  { %v7037_v16 = vadd.f32 %v5993_v25, %v1167_v30 }
 0x538   :  { %v1174_v61 = vadd.f32 %v7037_v16, %v57_v32 }
 0x539   :  { %v6053_v60 = vpop.eup %6052 }
 0x53a   :  { %v1153_v10 = vmul.f32 %v6053_v60, %v1141_v18  ;;  %5670 = vmatmul.msk.f32.vlgmr.msra.gmra.mxu2 %vm180_vm1, %v1174_v61  ;;  %vm1159_vm11 = vweird.f32 %v6053_v60  ;;  %v7169_v61 = vsel %vm83_vm7, 0.0, %v6427_v2 }
 0x53b   :  { %v7041_v33 = vpop.permute.xlu1 %238  ;;  %vm1160_vm13 = vmor %vm1158_vm12, %vm1159_vm11  ;;  %9162 = vst [vmem:[#allocation7_spill] sm:$0xff] %v7169_v61 }
 0x53c   :  { %v1154_v34 = vmul.f32 %v6053_v60, %v1153_v10 }
 0x53e   :  { %v1155_v36 = vmul.f32 0.5, %v1154_v34 }
 0x540   :  { %v1156_v63 = vsub.f32 1.5, %v1155_v36 }
 0x541   :  { %v7043_v39 = vpop.permute.xlu0 %240 }
 0x542   :  { %v1157_v42 = vmul.f32 %v6053_v60, %v1156_v63  ;;  %5684 = vmatpush.xpose.msk.msra.mxu1 %vm481_vm0, %v7043_v39 }
 0x543   :  { %v7047_v43 = vpop.permute.xlu1 %242 }
 0x544   :  { %v1161_v57 = vsel %vm1160_vm13, %v6053_v60, %v1157_v42 }
 0x545   :  { %v1163_v52 = vmul.f32 %v1161_v57, %v6983_v1  ;;  %v7093_v1 = vadd.f32 %v5990_v55, %v6731_v29  ;;  %v7112_v29 = vadd.f32 %v5990_v55, %v6723_v24  ;;  %v7186_v55 = vsel %vm84_vm8, 0.0, %v6427_v2 }
 0x546   :  { %5685 = vmatpush.xpose.msk.msra.mxu1 %vm481_vm0, %v7041_v33  ;;  %9166 = vst [vmem:[#allocation11_spill] sm:$0xff] %v7186_v55 }
 0x547   :  { %v1168_v47 = vmul.f32 %v5992_v15, %v1163_v52  ;;  %v7130_v9 = vpack.i.bf16 %v7104_v58, %v7093_v1  ;;  %v7139_v11 = vpack.i.bf16 %v7112_v29, %v7108_v5 }
 0x549   :  { %v7057_v44 = vpop.permute.xlu0 %244  ;;  %v7059_v45 = vadd.f32 %v5993_v25, %v1168_v47 }
 0x54a   :  { %5686 = vmatpush.xpose.msk.msra.mxu1 %vm481_vm0, %v7055_v31  ;;  %5692 = vmatpush.xpose.msk.msrb.mxu2 %vm481_vm0, %v7057_v44 }
 0x54b   :  { %v1175_v48 = vadd.f32 %v7059_v45, %v58_v54  ;;  %v7066_v37 = vpop.permute.xlu1 %252 }
 0x54d   :  { %5671 = vmatmul.msk.f32.gmra.mxu2 %vm180_vm1, %v1175_v48 }
 0x54e   :  { %5693 = vmatpush.xpose.msk.msrb.mxu2 %vm481_vm0, %v7047_v43 }
 0x551   :  { %v7071_v49 = vpop.permute.xlu0 %254 }
 0x552   :  { %5697 = vmatpush.xpose.msk.msrb.mxu3 %vm481_vm0, %v7071_v49 }
 0x553   :  { %v7077_v50 = vpop.permute.xlu1 %228 }
 0x556   :  { %5698 = vmatpush.xpose.msk.msrb.mxu3 %vm481_vm0, %v7066_v37 }
 0x559   :  { %v7081_v53 = vpop.permute.xlu0 %230 }
 0x55a   :  { %5679 = vmatpush.xpose.msk.msra.mxu0 %vm481_vm0, %v7081_v53  ;;  %5699 = vmatpush.xpose.msk.msrb.mxu3 %vm481_vm0, %v7079_v40 }
 0x55b   :  { %v7095_v56 = vpop.permute.xlu1 %226 }
 0x55e   :  { %5680 = vmatpush.xpose.msk.msra.mxu0 %vm481_vm0, %v7077_v50 }
 0x561   :  { %v7097_v59 = vpop.permute.xlu0 %234 }
 0x562   :  { %5681 = vmatpush.xpose.msk.msra.mxu0 %vm481_vm0, %v7095_v56  ;;  %5687 = vmatpush.xpose.msk.msra.mxu1 %vm481_vm0, %v7097_v59 }
 0x566   :  { %1660 = vmatpush.msrb.mxu0 %v7093_v1 }
 0x568   :  { %1661 = vmatpush.msrb.mxu0 %v7104_v58 }
 0x56a   :  { %1662 = vmatpush.msrb.mxu0 %v7108_v5 }
 0x56c   :  { %1663 = vmatpush.msrb.mxu0 %v7112_v29 }
 0x5bd   :  { %v1202_v28 = vpop.f32.mrf.mxu2 }
 0x5be   :  { %v1203_v35 = vadd.f32 %v5994_v6, %v1202_v28 }
 0x5c0   :  { %1218 = vrot.lane.b32.xlu2 %v1203_v35, %s6423_s29  ;;  %1214 = vrot.lane.b32.xlu0 %v1203_v35, %s6422_s28 }
 0x5c1   :  { %1210 = vrot.lane.b32.xlu1 %v1203_v35, %s6426_s27  ;;  %5676 = vmatmul.msk.f32.vlgmr.msra.gmra.mxu3 %vm481_vm0, %v1203_v35 }
 0x5c8   :  { %1222 = vrot.lane.b32.xlu2 %v1203_v35, %s6425_s30 }
 0x5d0   :  { %v1205_v24 = vpop.f32.mrf.mxu2 }
 0x5d1   :  { %v1206_v27 = vadd.f32 %v5994_v6, %v1205_v24 }
 0x5d3   :  { %1216 = vrot.lane.b32.xlu2 %v1206_v27, %s6422_s28  ;;  %1220 = vrot.lane.b32.xlu0 %v1206_v27, %s6423_s29 }
 0x5d4   :  { %1212 = vrot.lane.b32.xlu1 %v1206_v27, %s6426_s27  ;;  %5677 = vmatmul.msk.f32.gmra.mxu3 %vm481_vm0, %v1206_v27 }
 0x5db   :  { %5944 = vrot.lane.b32.xlu2 %v7130_v9, %s6422_s28  ;;  %1224 = vrot.lane.b32.xlu0 %v1206_v27, %s6425_s30 }
 0x5dc   :  { %5949 = vrot.lane.b32.xlu1 %v7130_v9, %s6423_s29 }
 0x5e3   :  { %5959 = vrot.lane.b32.xlu2 %v7130_v9, %s6426_s27  ;;  %5954 = vrot.lane.b32.xlu0 %v7139_v11, %s6422_s28 }
 0x5e4   :  { %5964 = vrot.lane.b32.xlu1 %v7139_v11, %s6423_s29 }
 0x61a   :  { %v1219_v12 = vpop.permute.xlu2 %1218 }
 0x61b   :  { %5694 = vmatmul.msk.f32.vlgmr.msrb.gmra.mxu2 %vm481_vm0, %v1219_v12 }
 0x622   :  { %v1223_v13 = vpop.permute.xlu2 %1222 }
 0x623   :  { %5700 = vmatmul.msk.f32.vlgmr.msrb.gmra.mxu3 %vm481_vm0, %v1223_v13 }
 0x62d   :  { %v1217_v14 = vpop.permute.xlu2 %1216 }
 0x632   :  { %v1215_v38 = vpop.permute.xlu0 %1214 }
 0x633   :  { %v1211_v41 = vpop.permute.xlu1 %1210  ;;  %5688 = vmatmul.msk.f32.vlgmr.msra.gmra.mxu1 %vm481_vm0, %v1215_v38 }
 0x634   :  { %5682 = vmatmul.msk.f32.vlgmr.msra.gmra.mxu0 %vm481_vm0, %v1211_v41 }
 0x635   :  { %v5945_v15 = vpop.permute.xlu2 %5944 }
 0x636   :  { %v7151_v17 = vunpack.i.l.bf16 %v5945_v15  ;;  %v7153_v18 = vunpack.i.h.bf16 %v5945_v15 }
 0x638   :  { %9160 = vst [vmem:[#allocation5_spill] sm:$0xff] %v7151_v17  ;;  %1718 = vmatpush.msra.mxu2 %v7151_v17 }
 0x639   :  { %9161 = vst [vmem:[#allocation6_spill] sm:$0xff] %v7153_v18 }
 0x63a   :  { %1719 = vmatpush.msra.mxu2 %v7153_v18 }
 0x63b   :  { %5689 = vmatmul.msk.f32.gmra.mxu1 %vm481_vm0, %v1217_v14 }
 0x63d   :  { %v5960_v25 = vpop.permute.xlu2 %5959 }
 0x63e   :  { %v7161_v30 = vunpack.i.l.bf16 %v5960_v25  ;;  %v7163_v32 = vunpack.i.h.bf16 %v5960_v25 }
 0x640   :  { %1689 = vmatpush.msrb.mxu1 %v7161_v30 }
 0x642   :  { %1690 = vmatpush.msrb.mxu1 %v7163_v32 }
 0x644   :  { %v1255_v60 = vpop.f32.mrf.mxu3 }
 0x645   :  { %v1256_v10 = vadd.f32 %v1255_v60, %v7169_v61  ;;  %v1221_v34 = vpop.permute.xlu0 %1220 }
 0x646   :  { %v1213_v36 = vpop.permute.xlu1 %1212  ;;  %5695 = vmatmul.msk.f32.gmra.mxu2 %vm481_vm0, %v1221_v34 }
 0x647   :  { %5683 = vmatmul.msk.f32.gmra.mxu0 %vm481_vm0, %v1213_v36  ;;  %v1401_v63 = vsel %vm1075_vm2, %v1256_v10, -inf }
 0x648   :  { %1402 = vmax.xlane.f32.xlu2 %v1401_v63 }
 0x64d   :  { %v1225_v42 = vpop.permute.xlu0 %1224 }
 0x64e   :  { %v5950_v57 = vpop.permute.xlu1 %5949  ;;  %5701 = vmatmul.msk.f32.gmra.mxu3 %vm481_vm0, %v1225_v42 }
 0x64f   :  { %v7176_v7 = vunpack.i.l.bf16 %v5950_v57  ;;  %v7178_v52 = vunpack.i.h.bf16 %v5950_v57 }
 0x651   :  { %9163 = vst [vmem:[#allocation8_spill] sm:$0xff] %v7176_v7  ;;  %1747 = vmatpush.msra.mxu3 %v7176_v7 }
 0x652   :  { %9164 = vst [vmem:[#allocation9_spill] sm:$0xff] %v7178_v52 }
 0x653   :  { %1748 = vmatpush.msra.mxu3 %v7178_v52 }
 0x655   :  { %v5955_v47 = vpop.permute.xlu0 %5954 }
 0x656   :  { %v7183_v54 = vunpack.i.l.bf16 %v5955_v47  ;;  %v5965_v48 = vpop.permute.xlu1 %5964  ;;  %v7190_v35 = vunpack.i.h.bf16 %v5955_v47 }
 0x657   :  { %v7188_v6 = vunpack.i.l.bf16 %v5965_v48  ;;  %v1258_v28 = vpop.f32.mrf.mxu3  ;;  %v7194_v27 = vunpack.i.h.bf16 %v5965_v48 }
 0x658   :  { %9165 = vst [vmem:[#allocation10_spill] sm:$0xff] %v7183_v54  ;;  %v1259_v24 = vadd.f32 %v1258_v28, %v7186_v55  ;;  %1720 = vmatpush.msra.mxu2 %v7183_v54 }
 0x659   :  { %9167 = vst [vmem:[#allocation12_spill] sm:$0xff] %v7188_v6  ;;  %1749 = vmatpush.msra.mxu3 %v7188_v6 }
 0x65a   :  { %9168 = vst [vmem:[#allocation13_spill] sm:$0xff] %v7190_v35  ;;  %1721 = vmatpush.msra.mxu2 %v7190_v35  ;;  %v1405_v62 = vsel %vm9110_vm9, %v1259_v24, -inf }
 0x65b   :  { %9169 = vst [vmem:[#allocation14_spill] sm:$0xff] %v7194_v27  ;;  %1750 = vmatpush.msra.mxu3 %v7194_v27  ;;  %1406 = vmax.xlane.f32.xlu0 %v1405_v62 }
 0x69e   :  { %v1360_v2 = vpop.f32.mrf.mxu2 }
 0x69f   :  { %v1361_v12 = vadd.f32 %v1360_v2, %v7169_v61 }
 0x6a1   :  { %v1420_v13 = vsel %vm1075_vm2, %v1361_v12, -inf }
 0x6a2   :  { %1421 = vmax.xlane.f32.xlu2 %v1420_v13 }
 0x6a6   :  { %v1395_v14 = vpop.f32.mrf.mxu3 }
 0x6a7   :  { %v1396_v38 = vadd.f32 %v1395_v14, %v7169_v61 }
 0x6a9   :  { %v1426_v41 = vsel %vm1075_vm2, %v1396_v38, -inf }
 0x6aa   :  { %1427 = vmax.xlane.f32.xlu2 %v1426_v41 }
 0x6b0   :  { %v1325_v15 = vpop.f32.mrf.mxu1 }
 0x6b1   :  { %v1290_v23 = vpop.f32.mrf.mxu0  ;;  %v1326_v25 = vadd.f32 %v1325_v15, %v7169_v61 }
 0x6b2   :  { %v1291_v60 = vadd.f32 %v1290_v23, %v7169_v61 }
 0x6b3   :  { %v1414_v34 = vsel %vm1075_vm2, %v1326_v25, -inf }
 0x6b4   :  { %1415 = vmax.xlane.f32.xlu1 %v1414_v34  ;;  %v1408_v36 = vsel %vm1075_vm2, %v1291_v60, -inf }
 0x6b5   :  { %1409 = vmax.xlane.f32.xlu0 %v1408_v36 }
 0x6b8   :  { %v1328_v63 = vpop.f32.mrf.mxu1 }
 0x6b9   :  { %v1329_v42 = vadd.f32 %v1328_v63, %v7186_v55 }
 0x6bb   :  { %v1417_v57 = vsel %vm9110_vm9, %v1329_v42, -inf  ;;  %v1403_v47 = vpop.xlane.xlu2 %1402 }
 0x6bc   :  { %1418 = vmax.xlane.f32.xlu1 %v1417_v57  ;;  %v1432_v48 = vsub.f32 %v1256_v10, %v1403_v47 }
 0x6be   :  { %v1442_v2 = vmul.f32 1.442695, %v1432_v48 }
 0x6c0   :  { %6054 = vpow2.f32 %v1442_v2 }
 0x6c4   :  { %v1293_v28 = vpop.f32.mrf.mxu0 }
 0x6c5   :  { %v1294_v62 = vadd.f32 %v1293_v28, %v7186_v55 }
 0x6c6   :  { %v7214_v36 = vpop.eup %6054 }
 0x6c7   :  { %v1411_v13 = vsel %vm9110_vm9, %v1294_v62, -inf  ;;  %v1462_v48 = vsel %vm1075_vm2, %v7214_v36, 0.0 }
 0x6c8   :  { %1412 = vmax.xlane.f32.xlu1 %v1411_v13 }
 0x6c9   :  { %v1363_v14 = vpop.f32.mrf.mxu2 }
 0x6ca   :  { %v1364_v41 = vadd.f32 %v1363_v14, %v7186_v55 }
 0x6cc   :  { %v1423_v15 = vsel %vm9110_vm9, %v1364_v41, -inf }
 0x6cd   :  { %1424 = vmax.xlane.f32.xlu0 %v1423_v15 }
 0x6ce   :  { %v1407_v23 = vpop.xlane.xlu0 %1406 }
 0x6cf   :  { %v1433_v34 = vsub.f32 %v1259_v24, %v1407_v23 }
 0x6d1   :  { %v1444_v63 = vmul.f32 1.442695, %v1433_v34  ;;  %v1398_v10 = vpop.f32.mrf.mxu3 }
 0x6d2   :  { %v1399_v57 = vadd.f32 %v1398_v10, %v7186_v55 }
 0x6d3   :  { %6056 = vpow2.f32 %v1444_v63 }
 0x6d4   :  { %v1429_v47 = vsel %vm9110_vm9, %v1399_v57, -inf }
 0x6d5   :  { %1430 = vmax.xlane.f32.xlu2 %v1429_v47  ;;  %1463 = vadd.xlane.f32.xlu0 %v1462_v48 }
 0x6d9   :  { %v7220_v28 = vpop.eup %6056 }
 0x6da   :  { %v1465_v2 = vsel %vm9110_vm9, %v7220_v28, 0.0 }
 0x6db   :  { %1466 = vadd.xlane.f32.xlu1 %v1465_v2 }
 0x715   :  { %v1422_v24 = vpop.xlane.xlu2 %1421 }
 0x716   :  { %v1438_v13 = vsub.f32 %v1361_v12, %v1422_v24 }
 0x718   :  { %v1454_v14 = vmul.f32 1.442695, %v1438_v13 }
 0x71a   :  { %6058 = vpow2.f32 %v1454_v14 }
 0x71d   :  { %v1428_v15 = vpop.xlane.xlu2 %1427 }
 0x71e   :  { %v1440_v23 = vsub.f32 %v1396_v38, %v1428_v15 }
 0x720   :  { %v7224_v34 = vpop.eup %6058  ;;  %v1458_v63 = vmul.f32 1.442695, %v1440_v23 }
 0x721   :  { %v1480_v10 = vsel %vm1075_vm2, %v7224_v34, 0.0 }
 0x722   :  { %6060 = vpow2.f32 %v1458_v63  ;;  %1481 = vadd.xlane.f32.xlu0 %v1480_v10 }
 0x727   :  { %v1416_v47 = vpop.xlane.xlu1 %1415 }
 0x728   :  { %v7228_v48 = vpop.eup %6060  ;;  %v1436_v55 = vsub.f32 %v1326_v25, %v1416_v47  ;;  %v1410_v61 = vpop.xlane.xlu0 %1409 }
 0x729   :  { %v1434_v2 = vsub.f32 %v1291_v60, %v1410_v61  ;;  %v1486_v12 = vsel %vm1075_vm2, %v7228_v48, 0.0 }
 0x72a   :  { %v1450_v24 = vmul.f32 1.442695, %v1436_v55  ;;  %1487 = vadd.xlane.f32.xlu0 %v1486_v12 }
 0x72b   :  { %v1446_v38 = vmul.f32 1.442695, %v1434_v2 }
 0x72c   :  { %6062 = vpow2.f32 %v1450_v24 }
 0x72d   :  { %6064 = vpow2.f32 %v1446_v38 }
 0x72f   :  { %v1419_v13 = vpop.xlane.xlu1 %1418 }
 0x730   :  { %v1437_v14 = vsub.f32 %v1329_v42, %v1419_v13 }
 0x732   :  { %v7232_v15 = vpop.eup %6062  ;;  %v1452_v23 = vmul.f32 1.442695, %v1437_v14 }
 0x733   :  { %v7234_v63 = vpop.eup %6064  ;;  %v1474_v25 = vsel %vm1075_vm2, %v7232_v15, 0.0 }
 0x734   :  { %6066 = vpow2.f32 %v1452_v23  ;;  %v1468_v61 = vsel %vm1075_vm2, %v7234_v63, 0.0  ;;  %1475 = vadd.xlane.f32.xlu2 %v1474_v25 }
 0x735   :  { %1469 = vadd.xlane.f32.xlu1 %v1468_v61 }
 0x73a   :  { %v7240_v55 = vpop.eup %6066 }
 0x73b   :  { %v1413_v60 = vpop.xlane.xlu1 %1412  ;;  %v1477_v42 = vsel %vm9110_vm9, %v7240_v55, 0.0 }
 0x73c   :  { %v1435_v10 = vsub.f32 %v1294_v62, %v1413_v60  ;;  %1478 = vadd.xlane.f32.xlu2 %v1477_v42 }
 0x73e   :  { %v1448_v47 = vmul.f32 1.442695, %v1435_v10 }
 0x740   :  { %6068 = vpow2.f32 %v1448_v47  ;;  %v1425_v2 = vpop.xlane.xlu0 %1424 }
 0x741   :  { %v1439_v12 = vsub.f32 %v1364_v41, %v1425_v2 }
 0x743   :  { %v1456_v24 = vmul.f32 1.442695, %v1439_v12 }
 0x745   :  { %6070 = vpow2.f32 %v1456_v24 }
 0x746   :  { %v7244_v38 = vpop.eup %6068 }
 0x747   :  { %v1471_v13 = vsel %vm9110_vm9, %v7244_v38, 0.0 }
 0x748   :  { %1472 = vadd.xlane.f32.xlu0 %v1471_v13  ;;  %v1464_v14 = vpop.xlane.xlu0 %1463  ;;  %v1431_v23 = vpop.xlane.xlu2 %1430 }
 0x749   :  { %6072 = vrcp.f32 %v1464_v14  ;;  %v1441_v25 = vsub.f32 %v1399_v57, %v1431_v23  ;;  %v1503_v2 = vand.u32 2147483648, %v1464_v14  ;;  %v1501_v13 = vand.u32 2147483647, %v1464_v14 }
 0x74a   :  { %vm1497_vm11 = vweird.f32 %v1464_v14 }
 0x74b   :  { %v7248_v61 = vpop.eup %6070  ;;  %v1460_v62 = vmul.f32 1.442695, %v1441_v25  ;;  %vm1502_vm13 = vcmp.eq.f32.partialorder %v1501_v13, 8.507059e+37 }
 0x74c   :  { %v1483_v60 = vsel %vm9110_vm9, %v7248_v61, 0.0 }
 0x74d   :  { %1484 = vadd.xlane.f32.xlu1 %v1483_v60  ;;  %6074 = vpow2.f32 %v1460_v62  ;;  %v1504_v60 = vor.u32 1.1754944e-38, %v1503_v2 }
 0x74e   :  { %v1467_v41 = vpop.xlane.xlu1 %1466 }
 0x74f   :  { %v6073_v42 = vpop.eup %6072  ;;  %6076 = vrcp.f32 %v1467_v41  ;;  %vm1512_vm8 = vweird.f32 %v1467_v41 }
 0x750   :  { %v1493_v10 = vmul.f32 %v6073_v42, %v1464_v14  ;;  %vm1498_vm10 = vweird.f32 %v6073_v42 }
 0x751   :  { %vm1499_vm12 = vmor %vm1497_vm11, %vm1498_vm10 }
 0x752   :  { %v1494_v47 = vsub.f32 1.0, %v1493_v10 }
 0x753   :  { %v7252_v12 = vpop.eup %6074 }
 0x754   :  { %v1495_v24 = vmul.f32 %v6073_v42, %v1494_v47  ;;  %5969 = vrot.lane.b32.xlu2 %v7130_v9, %s6425_s30  ;;  %v1489_v23 = vsel %vm9110_vm9, %v7252_v12, 0.0  ;;  %v1518_v47 = vand.u32 2147483648, %v1467_v41  ;;  %v1516_v9 = vand.u32 2147483647, %v1467_v41 }
 0x755   :  { %v6077_v57 = vpop.eup %6076  ;;  %1490 = vadd.xlane.f32.xlu0 %v1489_v23 }
 0x756   :  { %v1496_v25 = vadd.f32 %v6073_v42, %v1495_v24  ;;  %v1508_v62 = vmul.f32 %v6077_v57, %v1467_v41  ;;  %vm1513_vm7 = vweird.f32 %v6077_v57  ;;  %v1519_v14 = vor.u32 1.1754944e-38, %v1518_v47 }
 0x757   :  { %vm1514_vm9 = vmor %vm1512_vm8, %vm1513_vm7  ;;  %vm1517_vm4 = vcmp.eq.f32.partialorder %v1516_v9, 8.507059e+37 }
 0x758   :  { %v1500_v10 = vsel %vm1499_vm12, %v6073_v42, %v1496_v25  ;;  %v1509_v27 = vsub.f32 1.0, %v1508_v62 }
 0x759   :  { %v1505_v6 = vsel %vm1502_vm13, %v1504_v60, %v1500_v10 }
 0x75a   :  { %v1506_v52 = vmul.f32 %v7214_v36, %v1505_v6  ;;  %v1510_v7 = vmul.f32 %v6077_v57, %v1509_v27 }
 0x75c   :  { %5702 = vmatmul.msk.f32.vlgmr.msrb.gmra.mxu0 %vm1075_vm2, %v1506_v52  ;;  %v1511_v35 = vadd.f32 %v6077_v57, %v1510_v7 }
 0x75e   :  { %v1515_v24 = vsel %vm1514_vm9, %v6077_v57, %v1511_v35 }
 0x75f   :  { %v1520_v23 = vsel %vm1517_vm4, %v1519_v14, %v1515_v24 }
 0x760   :  { %v1521_v42 = vmul.f32 %v7220_v28, %v1520_v23 }
 0x764   :  { %5703 = vmatmul.msk.f32.gmra.mxu0 %vm1075_vm2, %v1521_v42 }
 0x766   :  { %5974 = vrot.lane.b32.xlu1 %v7139_v11, %s6426_s27 }
 0x769   :  { %5979 = vrot.lane.b32.xlu0 %v7139_v11, %s6425_s30 }
 0x795   :  { %v1482_v6 = vpop.xlane.xlu0 %1481 }
 0x796   :  { %6078 = vrcp.f32 %v1482_v6  ;;  %v1593_v36 = vand.u32 2147483648, %v1482_v6  ;;  %v1591_v35 = vand.u32 2147483647, %v1482_v6  ;;  %vm1587_vm4 = vweird.f32 %v1482_v6 }
 0x798   :  { %v1594_v28 = vor.u32 1.1754944e-38, %v1593_v36  ;;  %vm1592_vm11 = vcmp.eq.f32.partialorder %v1591_v35, 8.507059e+37 }
 0x79c   :  { %v6079_v52 = vpop.eup %6078 }
 0x79d   :  { %v1583_v7 = vmul.f32 %v6079_v52, %v1482_v6  ;;  %vm1588_vm9 = vweird.f32 %v6079_v52  ;;  %v7272_v35 = vpop.xlane.xlu0 %1487 }
 0x79e   :  { %vm1589_vm10 = vmor %vm1587_vm4, %vm1588_vm9 }
 0x79f   :  { %v1584_v27 = vsub.f32 1.0, %v1583_v7 }
 0x7a1   :  { %v1585_v41 = vmul.f32 %v6079_v52, %v1584_v27 }
 0x7a3   :  { %v1586_v2 = vadd.f32 %v6079_v52, %v1585_v41 }
 0x7a5   :  { %v1590_v13 = vsel %vm1589_vm10, %v6079_v52, %v1586_v2 }
 0x7a6   :  { %v1595_v57 = vsel %vm1592_vm11, %v1594_v28, %v1590_v13 }
 0x7a7   :  { %v1476_v25 = vpop.xlane.xlu2 %1475  ;;  %v1596_v62 = vmul.f32 %v7224_v34, %v1595_v57 }
 0x7a8   :  { %6080 = vrcp.f32 %v1476_v25  ;;  %v1563_v9 = vand.u32 2147483648, %v1476_v25  ;;  %v1561_v24 = vand.u32 2147483647, %v1476_v25  ;;  %vm1557_vm13 = vweird.f32 %v1476_v25  ;;  %v7268_v27 = vpop.xlane.xlu1 %1469 }
 0x7a9   :  { %5708 = vmatmul.msk.f32.vlgmr.msra.gmra.mxu3 %vm1075_vm2, %v1596_v62 }
 0x7aa   :  { %v1564_v6 = vor.u32 1.1754944e-38, %v1563_v9  ;;  %vm1562_vm8 = vcmp.eq.f32.partialorder %v1561_v24, 8.507059e+37 }
 0x7ae   :  { %v6081_v11 = vpop.eup %6080 }
 0x7af   :  { %v1553_v60 = vmul.f32 %v6081_v11, %v1476_v25  ;;  %v1479_v10 = vpop.xlane.xlu2 %1478  ;;  %vm1558_vm12 = vweird.f32 %v6081_v11 }
 0x7b0   :  { %6082 = vrcp.f32 %v1479_v10  ;;  %vm1559_vm7 = vmor %vm1557_vm13, %vm1558_vm12  ;;  %v1578_v57 = vand.u32 2147483648, %v1479_v10  ;;  %v1576_v62 = vand.u32 2147483647, %v1479_v10  ;;  %vm1572_vm4 = vweird.f32 %v1479_v10 }
 0x7b1   :  { %v1554_v47 = vsub.f32 1.0, %v1553_v60  ;;  %6084 = vrcp.f32 %v7268_v27 }
 0x7b2   :  { %v1579_v60 = vor.u32 1.1754944e-38, %v1578_v57  ;;  %vm1577_vm11 = vcmp.eq.f32.partialorder %v1576_v62, 8.507059e+37  ;;  %6086 = vrcp.f32 %v7272_v35 }
 0x7b3   :  { %v1555_v14 = vmul.f32 %v6081_v11, %v1554_v47 }
 0x7b5   :  { %v1556_v23 = vadd.f32 %v6081_v11, %v1555_v14 }
 0x7b6   :  { %v6083_v42 = vpop.eup %6082 }
 0x7b7   :  { %v1560_v52 = vsel %vm1559_vm7, %v6081_v11, %v1556_v23  ;;  %v1568_v34 = vmul.f32 %v6083_v42, %v1479_v10  ;;  %v5970_v7 = vpop.permute.xlu2 %5969  ;;  %vm1573_vm9 = vweird.f32 %v6083_v42  ;;  %v6085_v23 = vpop.eup %6084 }
 0x7b8   :  { %v7270_v36 = vunpack.i.l.bf16 %v5970_v7  ;;  %v1565_v41 = vsel %vm1562_vm8, %v1564_v6, %v1560_v52  ;;  %v7275_v13 = vunpack.i.h.bf16 %v5970_v7  ;;  %vm1574_vm10 = vmor %vm1572_vm4, %vm1573_vm9  ;;  %v7287_v6 = vpop.eup %6086  ;;  %v1523_v10 = vmul.f32 %v6085_v23, %v7268_v27 }
 0x7b9   :  { %v1569_v2 = vsub.f32 1.0, %v1568_v34  ;;  %v1566_v28 = vmul.f32 %v7232_v15, %v1565_v41  ;;  %v1613_v34 = vmul.f32 %v7287_v6, %v7272_v35  ;;  %vm1528_vm9 = vweird.f32 %v6085_v23 }
 0x7ba   :  { %9170 = vst [vmem:[#allocation15_spill] sm:$0xff] %v7270_v36  ;;  %1776 = vmatpush.msra.mxu0 %v7270_v36  ;;  %v1524_v41 = vsub.f32 1.0, %v1523_v10  ;;  %vm1527_vm4 = vweird.f32 %v7268_v27 }
 0x7bb   :  { %9171 = vst [vmem:[#allocation16_spill] sm:$0xff] %v7275_v13  ;;  %5706 = vmatmul.msk.f32.vlgmr.msra.gmra.mxu2 %vm1075_vm2, %v1566_v28  ;;  %v1570_v25 = vmul.f32 %v6083_v42, %v1569_v2  ;;  %v7282_v14 = vpop.xlane.xlu0 %1472  ;;  %v1614_v62 = vsub.f32 1.0, %v1613_v34 }
 0x7bc   :  { %1777 = vmatpush.msra.mxu0 %v7275_v13 }
 0x7bd   :  { %v1571_v11 = vadd.f32 %v6083_v42, %v1570_v25 }
 0x7bf   :  { %v1575_v47 = vsel %vm1574_vm10, %v6083_v42, %v1571_v11  ;;  %v1525_v11 = vmul.f32 %v6085_v23, %v1524_v41  ;;  %vm1618_vm10 = vweird.f32 %v7287_v6 }
 0x7c0   :  { %v1485_v15 = vpop.xlane.xlu1 %1484  ;;  %v1580_v9 = vsel %vm1577_vm11, %v1579_v60, %v1575_v47  ;;  %vm1529_vm11 = vmor %vm1527_vm4, %vm1528_vm9  ;;  %vm1542_vm4 = vweird.f32 %v7282_v14 }
 0x7c1   :  { %6088 = vrcp.f32 %v1485_v15  ;;  %v1581_v24 = vmul.f32 %v7240_v55, %v1580_v9  ;;  %v1608_v28 = vand.u32 2147483648, %v1485_v15  ;;  %v1606_v25 = vand.u32 2147483647, %v1485_v15 }
 0x7c2   :  { %6090 = vrcp.f32 %v7282_v14  ;;  %vm1602_vm13 = vweird.f32 %v1485_v15 }
 0x7c3   :  { %5707 = vmatmul.msk.f32.gmra.mxu2 %vm1075_vm2, %v1581_v24  ;;  %v1609_v9 = vor.u32 1.1754944e-38, %v1608_v28  ;;  %vm1607_vm8 = vcmp.eq.f32.partialorder %v1606_v25, 8.507059e+37 }
 0x7c7   :  { %v6089_v42 = vpop.eup %6088 }
 0x7c8   :  { %v1598_v52 = vmul.f32 %v6089_v42, %v1485_v15  ;;  %v7292_v7 = vpop.xlane.xlu0 %1490  ;;  %v7295_v55 = vpop.eup %6090  ;;  %vm1603_vm12 = vweird.f32 %v6089_v42  ;;  %v1531_v15 = vand.u32 2147483647, %v7268_v27 }
 0x7c9   :  { %6092 = vrcp.f32 %v7292_v7  ;;  %v1538_v60 = vmul.f32 %v7295_v55, %v7282_v14  ;;  %vm1604_vm7 = vmor %vm1602_vm13, %vm1603_vm12  ;;  %vm1617_vm12 = vweird.f32 %v7272_v35 }
 0x7ca   :  { %v1599_v2 = vsub.f32 1.0, %v1598_v52  ;;  %v1615_v52 = vmul.f32 %v7287_v6, %v1614_v62  ;;  %vm1532_vm13 = vcmp.eq.f32.partialorder %v1531_v15, 8.507059e+37 }
 0x7cb   :  { %v1539_v36 = vsub.f32 1.0, %v1538_v60 }
 0x7cc   :  { %v1600_v57 = vmul.f32 %v6089_v42, %v1599_v2  ;;  %v1526_v2 = vadd.f32 %v6085_v23, %v1525_v11  ;;  %v1623_v11 = vand.u32 2147483648, %v7272_v35 }
 0x7cd   :  { %v1540_v62 = vmul.f32 %v7295_v55, %v1539_v36 }
 0x7ce   :  { %v1601_v47 = vadd.f32 %v6089_v42, %v1600_v57  ;;  %v1533_v57 = vand.u32 2147483648, %v7268_v27  ;;  %v1530_v28 = vsel %vm1529_vm11, %v6085_v23, %v1526_v2  ;;  %v1548_v2 = vand.u32 2147483648, %v7282_v14 }
 0x7cf   :  { %v7299_v24 = vpop.eup %6092  ;;  %v1541_v23 = vadd.f32 %v7295_v55, %v1540_v62 }
 0x7d0   :  { %v1605_v10 = vsel %vm1604_vm7, %v6089_v42, %v1601_v47  ;;  %v1628_v34 = vmul.f32 %v7299_v24, %v7292_v7  ;;  %v1616_v42 = vadd.f32 %v7287_v6, %v1615_v52  ;;  %vm7315_vm7 = vmor %vm1617_vm12, %vm1618_vm10  ;;  %vm1633_vm11 = vweird.f32 %v7299_v24 }
 0x7d1   :  { %v1610_v13 = vsel %vm1607_vm8, %v1609_v9, %v1605_v10  ;;  %vm1543_vm8 = vweird.f32 %v7295_v55 }
 0x7d2   :  { %v1611_v41 = vmul.f32 %v7248_v61, %v1610_v13  ;;  %v1629_v25 = vsub.f32 1.0, %v1628_v34  ;;  %v1534_v61 = vor.u32 1.1754944e-38, %v1533_v57  ;;  %v1621_v13 = vand.u32 2147483647, %v7272_v35  ;;  %vm1544_vm10 = vmor %vm1542_vm4, %vm1543_vm8 }
 0x7d3   :  { %v1620_v36 = vsel %vm7315_vm7, %v7287_v6, %v1616_v42  ;;  %v1624_v35 = vor.u32 1.1754944e-38, %v1623_v11  ;;  %v1546_v6 = vand.u32 2147483647, %v7282_v14  ;;  %v1545_v42 = vsel %vm1544_vm10, %v7295_v55, %v1541_v23 }
 0x7d4   :  { %5709 = vmatmul.msk.f32.gmra.mxu3 %vm1075_vm2, %v1611_v41  ;;  %v1535_v9 = vsel %vm1532_vm13, %v1534_v61, %v1530_v28  ;;  %v1630_v10 = vmul.f32 %v7299_v24, %v1629_v25  ;;  %vm1622_vm9 = vcmp.eq.f32.partialorder %v1621_v13, 8.507059e+37  ;;  %v1638_v14 = vand.u32 2147483648, %v7292_v7 }
 0x7d5   :  { %v1536_v41 = vmul.f32 %v7234_v63, %v1535_v9  ;;  %v1625_v15 = vsel %vm1622_vm9, %v1624_v35, %v1620_v36  ;;  %v1549_v63 = vor.u32 1.1754944e-38, %v1548_v2  ;;  %vm1547_vm12 = vcmp.eq.f32.partialorder %v1546_v6, 8.507059e+37  ;;  %v5614_v6 = vld [vmem:[%s9083_s7 + $0x38] sm:$0xff] }
 0x7d6   :  { %v1631_v28 = vadd.f32 %v7299_v24, %v1630_v10  ;;  %v1626_v62 = vmul.f32 %v7228_v48, %v1625_v15  ;;  %vm1632_vm13 = vweird.f32 %v7292_v7  ;;  %v1636_v11 = vand.u32 2147483647, %v7292_v7  ;;  %v5613_v15 = vld [vmem:[%s9083_s7 + $0x30] sm:$0xff] }
 0x7d7   :  { %v1550_v55 = vsel %vm1547_vm12, %v1549_v63, %v1545_v42  ;;  %vm1634_vm7 = vmor %vm1632_vm13, %vm1633_vm11  ;;  %v1639_v13 = vor.u32 1.1754944e-38, %v1638_v14  ;;  %v5612_v42 = vld [vmem:[%s9083_s7 + $0x28] sm:$0xff]  ;;  %v6299_v63 = vld [vmem:[%s9142_s23 + $0x18] sm:$0xff] }
 0x7d8   :  { %v5975_v27 = vpop.permute.xlu1 %5974  ;;  %v1635_v61 = vsel %vm1634_vm7, %v7299_v24, %v1631_v28  ;;  %vm1637_vm8 = vcmp.eq.f32.partialorder %v1636_v11, 8.507059e+37  ;;  %v6298_v28 = vld [vmem:[%s9142_s23 + $0x20] sm:$0xff]  ;;  %v6300_v14 = vld [vmem:[%s9142_s23 + $0x10] sm:$0xff]  ;;  %vm1952_vm7 = vcmask 523264  }
 0x7d9   :  { %v7319_v47 = vunpack.i.l.bf16 %v5975_v27  ;;  %v7327_v52 = vunpack.i.h.bf16 %v5975_v27  ;;  %v1551_v27 = vmul.f32 %v7244_v38, %v1550_v55  ;;  %v1640_v60 = vsel %vm1637_vm8, %v1639_v13, %v1635_v61  ;;  %v1665_v24 = vpop.f32.mrf.mxu0  ;;  %v6302_v11 = vld [vmem:[%s9142_s23] sm:$0xff] }
 0x7da   :  { %v1641_v48 = vmul.f32 %v7252_v12, %v1640_v60 }
 0x7db   :  { %1691 = vmatpush.msrb.mxu1 %v7319_v47  ;;  %v5980_v34 = vpop.permute.xlu0 %5979 }
 0x7dc   :  { %v7334_v57 = vunpack.i.l.bf16 %v5980_v34  ;;  %v7341_v25 = vunpack.i.h.bf16 %v5980_v34  ;;  %v5616_v34 = vld [vmem:[%s9083_s7 + $0x48] sm:$0xff] }
 0x7dd   :  { %1692 = vmatpush.msrb.mxu1 %v7327_v52 }
 0x7de   :  { %9174 = vst [vmem:[#allocation17_spill] sm:$0xff] %v7334_v57  ;;  %5704 = vmatmul.msk.f32.vlgmr.msrb.gmra.mxu1 %vm1075_vm2, %v1536_v41  ;;  %1778 = vmatpush.msra.mxu0 %v7334_v57  ;;  %v5615_v41 = vld [vmem:[%s9083_s7 + $0x40] sm:$0xff] }
 0x7df   :  { %9175 = vst [vmem:[#allocation18_spill] sm:$0xff] %v7341_v25  ;;  %1847 = vmatpush.msra.mxu1 %v5616_v34 }
 0x7e0   :  { %1779 = vmatpush.msra.mxu0 %v7341_v25 }
 0x7e1   :  { %5710 = vmatmul.msk.f32.vlgmr.msra.gmra.mxu0 %vm1075_vm2, %v1626_v62  ;;  %v1668_v23 = vpop.f32.mrf.mxu0  ;;  %1848 = vmatpush.msra.mxu1 %v5615_v41  ;;  %v6301_v62 = vld [vmem:[%s9142_s23 + $0x8] sm:$0xff]  ;;  %v5995_v41 = vld [vmem:[%s9082_s8 + $0x1] ss:$0 sm:$0xff] }
 0x7e3   :  { %1849 = vmatpush.msra.mxu1 %v5614_v6 }
 0x7e5   :  { %1850 = vmatpush.msra.mxu1 %v5613_v15 }
 0x7e6   :  { %5705 = vmatmul.msk.f32.gmra.mxu1 %vm1075_vm2, %v1551_v27 }
 0x7e7   :  { %1851 = vmatpush.msra.mxu1 %v5612_v42 }
 0x7e9   :  { %5711 = vmatmul.msk.f32.gmra.mxu0 %vm1075_vm2, %v1641_v48  ;;  %2149 = vmatpush.msrb.mxu1 %v6298_v28 }
 0x7eb   :  { %2150 = vmatpush.msrb.mxu1 %v6299_v63 }
 0x7ed   :  { %2151 = vmatpush.msrb.mxu1 %v6300_v14 }
 0x7ef   :  { %2152 = vmatpush.msrb.mxu1 %v6301_v62 }
 0x7f1   :  { %2153 = vmatpush.msrb.mxu1 %v6302_v11 }
 0x82c   :  { %v1752_v7 = vpop.f32.mrf.mxu3 }
 0x82d   :  { %1805 = vrot.lane.b32.xlu0 %v1752_v7, %s6430_s22 }
 0x83e   :  { %v1723_v9 = vpop.f32.mrf.mxu2 }
 0x83f   :  { %1797 = vrot.lane.b32.xlu1 %v1723_v9, %s6428_s20 }
 0x846   :  { %v1726_v36 = vpop.f32.mrf.mxu2 }
 0x847   :  { %1799 = vrot.lane.b32.xlu0 %v1726_v36, %s6428_s20 }
 0x857   :  { %v1755_v12 = vpop.f32.mrf.mxu3 }
 0x85b   :  { %v1694_v38 = vpop.f32.mrf.mxu1 }
 0x85c   :  { %1789 = vrot.lane.b32.xlu2 %v1694_v38, %s6429_s21 }
 0x85e   :  { %v1781_v10 = vpop.f32.mrf.mxu0 }
 0x863   :  { %v1697_v35 = vpop.f32.mrf.mxu1 }
 0x864   :  { %1791 = vrot.lane.b32.xlu1 %v1697_v35, %s6429_s21  ;;  %1813 = vrot.lane.b32.xlu2 %v1781_v10, %s9176_s4 }
 0x866   :  { %v1784_v2 = vpop.f32.mrf.mxu0 }
 0x86c   :  { %1807 = vrot.lane.b32.xlu2 %v1755_v12, %s6430_s22  ;;  %1815 = vrot.lane.b32.xlu1 %v1784_v2, %s9176_s4 }
 0x89f   :  { %v1806_v60 = vpop.permute.xlu0 %1805 }
 0x8b1   :  { %v1798_v13 = vpop.permute.xlu1 %1797 }
 0x8b6   :  { %v1790_v55 = vpop.permute.xlu2 %1789 }
 0x8b7   :  { %v1819_v61 = vsel %vm481_vm0, %v1665_v24, %v1790_v55 }
 0x8b8   :  { %v1821_v27 = vsel %vm1069_vm14, %v1819_v61, %v1798_v13 }
 0x8b9   :  { %v1823_v48 = vsel %vm1072_vm15, %v1821_v27, %v1806_v60  ;;  %v1800_v10 = vpop.permute.xlu0 %1799 }
 0x8be   :  { %v1814_v7 = vpop.permute.xlu2 %1813 }
 0x8bf   :  { %v1825_v9 = vsel %vm1075_vm2, %v1823_v48, %v1814_v7 }
 0x8c0   :  { %5712 = vmatmul.msk.f32.vlgmr.msra.gmra.mxu1 %vm180_vm1, %v1825_v9  ;;  %v166_v9 = vld [vmem:[%s9087_s10 + $0x20] sm:$0xff] }
 0x8c1   :  { %1935 = vmatpush.msrb.mxu2 %v166_v9  ;;  %v174_v9 = vld [vmem:[%s9088_s12 + $0x30] sm:$0xff] }
 0x8c6   :  { %v1808_v12 = vpop.permute.xlu2 %1807 }
 0x8d6   :  { %v1792_v36 = vpop.permute.xlu1 %1791 }
 0x8d7   :  { %v1820_v38 = vsel %vm481_vm0, %v1668_v23, %v1792_v36  ;;  %v165_v36 = vld [vmem:[%s9087_s10 + $0x18] sm:$0xff] }
 0x8d8   :  { %v1822_v35 = vsel %vm1069_vm14, %v1820_v38, %v1800_v10  ;;  %v164_v38 = vld [vmem:[%s9087_s10 + $0x10] sm:$0xff]  ;;  %1936 = vmatpush.msrb.mxu2 %v165_v36  ;;  %v163_v10 = vld [vmem:[%s9087_s10 + $0x8] sm:$0xff] }
 0x8d9   :  { %v1824_v24 = vsel %vm1072_vm15, %v1822_v35, %v1808_v12  ;;  %v162_v35 = vld [vmem:[%s9087_s10] sm:$0xff] }
 0x8da   :  { %1937 = vmatpush.msrb.mxu2 %v164_v38 }
 0x8dc   :  { %1938 = vmatpush.msrb.mxu2 %v163_v10  ;;  %v172_v10 = vld [vmem:[%s9088_s12 + $0x20] sm:$0xff] }
 0x8de   :  { %v1816_v2 = vpop.permute.xlu1 %1815  ;;  %1939 = vmatpush.msrb.mxu2 %v162_v35 }
 0x8df   :  { %v1826_v34 = vsel %vm1075_vm2, %v1824_v24, %v1816_v2 }
 0x8e0   :  { %5713 = vmatmul.msk.f32.gmra.mxu1 %vm180_vm1, %v1826_v34  ;;  %v6303_v34 = vld [vmem:[%s9142_s23 + $0x48] sm:$0xff] }
 0x8e1   :  { %2190 = vmatpush.msra.mxu2 %v6303_v34 }
 0x93d   :  { %v1853_v6 = vpop.f32.mrf.mxu1 }
 0x93e   :  { %v1854_v15 = vadd.f32 %v5995_v41, %v1853_v6  ;;  %v6305_v6 = vld [vmem:[%s9142_s23 + $0x38] sm:$0xff] }
 0x940   :  { %v1859_v42 = vadd.f32 %v1854_v15, %v7037_v16  ;;  %v6306_v15 = vld [vmem:[%s9142_s23 + $0x30] sm:$0xff] }
 0x942   :  { %v1861_v23 = vsel %vm180_vm1, %v1859_v42, 0.0 }
 0x943   :  { %1862 = vadd.xlane.f32.xlu0 %v1861_v23  ;;  %v6307_v23 = vld [vmem:[%s9142_s23 + $0x28] sm:$0xff] }
 0x95d   :  { %v1856_v28 = vpop.f32.mrf.mxu1 }
 0x95e   :  { %v1857_v63 = vadd.f32 %v5995_v41, %v1856_v28  ;;  %v6304_v41 = vld [vmem:[%s9142_s23 + $0x40] sm:$0xff] }
 0x95f   :  { %2191 = vmatpush.msra.mxu2 %v6304_v41 }
 0x960   :  { %v1860_v14 = vadd.f32 %v1857_v63, %v7059_v45 }
 0x961   :  { %2192 = vmatpush.msra.mxu2 %v6305_v6 }
 0x962   :  { %v1864_v62 = vsel %vm1115_vm5, %v1860_v14, 0.0 }
 0x963   :  { %1865 = vadd.xlane.f32.xlu2 %v1864_v62  ;;  %2193 = vmatpush.msra.mxu2 %v6306_v15 }
 0x965   :  { %2194 = vmatpush.msra.mxu2 %v6307_v23 }
 0x9b6   :  { %v1863_v11 = vpop.xlane.xlu0 %1862 }
 0x9b7   :  { %v1867_v55 = vmul.f32 %v1863_v11, %v6978_v46 }
 0x9b9   :  { %v1869_v61 = vsub.f32 %v1859_v42, %v1867_v55  ;;  %v5996_v55 = vld [vmem:[%s9084_s9 + $0x2] ss:$0 sm:$0xff] }
 0x9bb   :  { %v1871_v13 = vmul.f32 %v1869_v61, %v1869_v61 }
 0x9bd   :  { %v1873_v27 = vsel %vm180_vm1, %v1871_v13, 0.0 }
 0x9be   :  { %1874 = vadd.xlane.f32.xlu1 %v1873_v27 }
 0x9d6   :  { %v1866_v60 = vpop.xlane.xlu2 %1865 }
 0x9d7   :  { %v1868_v16 = vmul.f32 %v1866_v60, %v6978_v46  ;;  %v5997_v60 = vld [vmem:[%s9084_s9 + $0x3] ss:$0 sm:$0xff] }
 0x9d9   :  { %v7413_v48 = vsub.f32 %v1860_v14, %v1868_v16 }
 0x9db   :  { %v1872_v7 = vmul.f32 %v7413_v48, %v7413_v48 }
 0x9dd   :  { %v1876_v45 = vsel %vm1115_vm5, %v1872_v7, 0.0 }
 0x9de   :  { %1877 = vadd.xlane.f32.xlu0 %v1876_v45  ;;  %v175_v45 = vld [vmem:[%s9088_s12 + $0x38] sm:$0xff] }
 0x9df   :  { %1967 = vmatpush.msrb.mxu3 %v175_v45 }
 0x9e1   :  { %1968 = vmatpush.msrb.mxu3 %v174_v9 }
 0xa31   :  { %v1875_v12 = vpop.xlane.xlu1 %1874 }
 0xa32   :  { %v1879_v2 = vmul.f32 %v1875_v12, %v6978_v46  ;;  %v171_v12 = vld [vmem:[%s9088_s12 + $0x18] sm:$0xff] }
 0xa34   :  { %v1881_v24 = vadd.f32 1e-05, %v1879_v2 }
 0xa36   :  { %6094 = vrsqrt.f32 %v1881_v24  ;;  %vm1889_vm4 = vweird.f32 %v1881_v24 }
 0xa3c   :  { %v6095_v42 = vpop.eup %6094 }
 0xa3d   :  { %v1884_v28 = vmul.f32 %v6095_v42, %v1881_v24  ;;  %vm1890_vm9 = vweird.f32 %v6095_v42 }
 0xa3e   :  { %vm1891_vm10 = vmor %vm1889_vm4, %vm1890_vm9 }
 0xa3f   :  { %v1885_v63 = vmul.f32 %v6095_v42, %v1884_v28 }
 0xa41   :  { %v1886_v14 = vmul.f32 0.5, %v1885_v63 }
 0xa43   :  { %v1887_v62 = vsub.f32 1.5, %v1886_v14  ;;  %v170_v14 = vld [vmem:[%s9088_s12 + $0x10] sm:$0xff] }
 0xa45   :  { %v1888_v11 = vmul.f32 %v6095_v42, %v1887_v62  ;;  %v169_v62 = vld [vmem:[%s9088_s12 + $0x8] sm:$0xff] }
 0xa47   :  { %v1892_v13 = vsel %vm1891_vm10, %v6095_v42, %v1888_v11  ;;  %v168_v11 = vld [vmem:[%s9088_s12] sm:$0xff] }
 0xa48   :  { %v1903_v27 = vmul.f32 %v1892_v13, %v1869_v61  ;;  %v173_v61 = vld [vmem:[%s9088_s12 + $0x28] sm:$0xff]  ;;  %v6310_v13 = vld [vmem:[%s9142_s23 + $0x60] sm:$0xff] }
 0xa49   :  { %1969 = vmatpush.msrb.mxu3 %v173_v61 }
 0xa4a   :  { %v1908_v16 = vmul.f32 %v5996_v55, %v1903_v27  ;;  %v6311_v27 = vld [vmem:[%s9142_s23 + $0x58] sm:$0xff] }
 0xa4b   :  { %1970 = vmatpush.msrb.mxu3 %v172_v10 }
 0xa4c   :  { %v1913_v7 = vadd.f32 %v5997_v60, %v1908_v16  ;;  %v5998_v16 = vld [vmem:[%s9086_s11] ss:$0 sm:$0xff] }
 0xa4d   :  { %1971 = vmatpush.msrb.mxu3 %v171_v12 }
 0xa4e   :  { %5714 = vmatmul.msk.f32.vlgmr.msrb.gmra.mxu2 %vm180_vm1, %v1913_v7 }
 0xa4f   :  { %1972 = vmatpush.msrb.mxu3 %v170_v14 }
 0xa51   :  { %v1878_v36 = vpop.xlane.xlu0 %1877  ;;  %1973 = vmatpush.msrb.mxu3 %v169_v62 }
 0xa52   :  { %v1880_v38 = vmul.f32 %v1878_v36, %v6978_v46 }
 0xa53   :  { %1974 = vmatpush.msrb.mxu3 %v168_v11 }
 0xa54   :  { %v1882_v35 = vadd.f32 1e-05, %v1880_v38 }
 0xa56   :  { %6096 = vrsqrt.f32 %v1882_v35  ;;  %vm1899_vm12 = vweird.f32 %v1882_v35 }
 0xa5c   :  { %v6097_v2 = vpop.eup %6096 }
 0xa5d   :  { %v1894_v24 = vmul.f32 %v6097_v2, %v1882_v35  ;;  %vm1900_vm11 = vweird.f32 %v6097_v2  ;;  %v5999_v35 = vld [vmem:[%s9089_s13] ss:$0 sm:$0xff] }
 0xa5e   :  { %vm1901_vm13 = vmor %vm1899_vm12, %vm1900_vm11 }
 0xa5f   :  { %v1895_v34 = vmul.f32 %v6097_v2, %v1894_v24 }
 0xa61   :  { %v1896_v41 = vmul.f32 0.5, %v1895_v34 }
 0xa63   :  { %v1897_v6 = vsub.f32 1.5, %v1896_v41 }
 0xa65   :  { %v1898_v15 = vmul.f32 %v6097_v2, %v1897_v6 }
 0xa67   :  { %v1902_v42 = vsel %vm1901_vm13, %v6097_v2, %v1898_v15 }
 0xa68   :  { %v1904_v23 = vmul.f32 %v1902_v42, %v7413_v48  ;;  %v6308_v48 = vld [vmem:[%s9142_s23 + $0x70] sm:$0xff] }
 0xa69   :  { %2231 = vmatpush.msra.mxu3 %v6308_v48 }
 0xa6a   :  { %v1909_v28 = vmul.f32 %v5996_v55, %v1904_v23  ;;  %v6309_v55 = vld [vmem:[%s9142_s23 + $0x68] sm:$0xff] }
 0xa6b   :  { %2232 = vmatpush.msra.mxu3 %v6309_v55 }
 0xa6c   :  { %v1914_v63 = vadd.f32 %v5997_v60, %v1909_v28  ;;  %v6312_v60 = vld [vmem:[%s9142_s23 + $0x50] sm:$0xff] }
 0xa6d   :  { %2233 = vmatpush.msra.mxu3 %v6310_v13 }
 0xa6e   :  { %5715 = vmatmul.msk.f32.gmra.mxu2 %vm180_vm1, %v1914_v63 }
 0xa6f   :  { %2234 = vmatpush.msra.mxu3 %v6311_v27 }
 0xa71   :  { %2235 = vmatpush.msra.mxu3 %v6312_v60 }
 0xad1   :  { %v1941_v45 = vpop.f32.mrf.mxu2 }
 0xad2   :  { %v1942_v9 = vadd.f32 %v5998_v16, %v1941_v45 }
 0xad4   :  { %v1947_v61 = vmax.f32 %v1942_v9, 0.0 }
 0xad6   :  { %5716 = vmatmul.msk.f32.vlgmr.msrb.gmra.mxu3 %vm1952_vm7, %v1947_v61 }
 0xaf1   :  { %v1944_v36 = vpop.f32.mrf.mxu2 }
 0xaf2   :  { %v1945_v38 = vadd.f32 %v5998_v16, %v1944_v36 }
 0xaf4   :  { %v1948_v10 = vmax.f32 %v1945_v38, 0.0 }
 0xaf6   :  { %5717 = vmatmul.msk.f32.gmra.mxu3 %vm1952_vm7, %v1948_v10 }
 0xb59   :  { %v1976_v12 = vpop.f32.mrf.mxu3 }
 0xb5a   :  { %v1977_v2 = vadd.f32 %v5999_v35, %v1976_v12 }
 0xb5c   :  { %v1982_v24 = vadd.f32 %v1977_v2, %v1913_v7  ;;  %v6001_v2 = vld [vmem:[%s9084_s9 + $0x5] ss:$0 sm:$0xff] }
 0xb5e   :  { %v1984_v34 = vsel %vm180_vm1, %v1982_v24, 0.0 }
 0xb5f   :  { %1985 = vadd.xlane.f32.xlu2 %v1984_v34 }
 0xb79   :  { %v1979_v41 = vpop.f32.mrf.mxu3 }
 0xb7a   :  { %v1980_v6 = vadd.f32 %v5999_v35, %v1979_v41  ;;  %v6000_v35 = vld [vmem:[%s9084_s9 + $0x4] ss:$0 sm:$0xff] }
 0xb7c   :  { %v1983_v15 = vadd.f32 %v1980_v6, %v1914_v63 }
 0xb7e   :  { %v1987_v42 = vsel %vm1115_vm5, %v1983_v15, 0.0 }
 0xb7f   :  { %1988 = vadd.xlane.f32.xlu1 %v1987_v42 }
 0xbd2   :  { %v1986_v23 = vpop.xlane.xlu2 %1985 }
 0xbd3   :  { %v1990_v28 = vmul.f32 %v1986_v23, %v6978_v46 }
 0xbd5   :  { %v1992_v14 = vsub.f32 %v1982_v24, %v1990_v28 }
 0xbd7   :  { %v1994_v62 = vmul.f32 %v1992_v14, %v1992_v14 }
 0xbd9   :  { %v1996_v11 = vsel %vm180_vm1, %v1994_v62, 0.0 }
 0xbda   :  { %1997 = vadd.xlane.f32.xlu0 %v1996_v11 }
 0xbf2   :  { %v1989_v48 = vpop.xlane.xlu1 %1988 }
 0xbf3   :  { %v1991_v7 = vmul.f32 %v1989_v48, %v6978_v46 }
 0xbf5   :  { %v1993_v55 = vsub.f32 %v1983_v15, %v1991_v7 }
 0xbf7   :  { %v1995_v13 = vmul.f32 %v1993_v55, %v1993_v55 }
 0xbf9   :  { %v1999_v27 = vsel %vm1115_vm5, %v1995_v13, 0.0 }
 0xbfa   :  { %2000 = vadd.xlane.f32.xlu2 %v1999_v27 }
 0xc4d   :  { %v1998_v63 = vpop.xlane.xlu0 %1997 }
 0xc4e   :  { %v2002_v60 = vmul.f32 %v1998_v63, %v6978_v46 }
 0xc50   :  { %v2004_v16 = vadd.f32 1e-05, %v2002_v60 }
 0xc52   :  { %6098 = vrsqrt.f32 %v2004_v16  ;;  %vm2012_vm9 = vweird.f32 %v2004_v16 }
 0xc58   :  { %v6099_v45 = vpop.eup %6098 }
 0xc59   :  { %v2007_v9 = vmul.f32 %v6099_v45, %v2004_v16  ;;  %vm2013_vm8 = vweird.f32 %v6099_v45 }
 0xc5a   :  { %vm2014_vm4 = vmor %vm2012_vm9, %vm2013_vm8 }
 0xc5b   :  { %v2008_v61 = vmul.f32 %v6099_v45, %v2007_v9 }
 0xc5d   :  { %v2009_v36 = vmul.f32 0.5, %v2008_v61 }
 0xc5f   :  { %v2010_v38 = vsub.f32 1.5, %v2009_v36 }
 0xc61   :  { %v2011_v10 = vmul.f32 %v6099_v45, %v2010_v38  ;;  %v2096_v38 = vld [vmem:[%s9090_s14 + $0x20] sm:$0xff] }
 0xc62   :  { %2118 = vmatpush.msrb.mxu0 %v2096_v38 }
 0xc63   :  { %v2015_v12 = vsel %vm2014_vm4, %v6099_v45, %v2011_v10 }
 0xc64   :  { %v2026_v24 = vmul.f32 %v2015_v12, %v1992_v14 }
 0xc66   :  { %v2031_v34 = vmul.f32 %v6000_v35, %v2026_v24  ;;  %v2094_v24 = vld [vmem:[%s9090_s14 + $0x10] sm:$0xff] }
 0xc68   :  { %v7519_v41 = vadd.f32 %v6001_v2, %v2031_v34  ;;  %v2093_v34 = vld [vmem:[%s9090_s14 + $0x8] sm:$0xff] }
 0xc6a   :  { %9177 = vst [vmem:[#allocation19_spill] sm:$0xff] %v7519_v41  ;;  %5720 = vmatmul.msk.f32.vlgmr.msrb.gmra.mxu1 %vm180_vm1, %v7519_v41  ;;  %5722 = vmatmul.msk.f32.vlgmr.msra.gmra.mxu2 %vm180_vm1, %v7519_v41  ;;  %v2038_v6 = vsel %vm180_vm1, %v7519_v41, 0.0 }
 0xc6b   :  { %5724 = vmatmul.msk.f32.vlgmr.msra.gmra.mxu3 %vm180_vm1, %v7519_v41  ;;  %2039 = vadd.xlane.f32.xlu1 %v2038_v6 }
 0xc6d   :  { %v2001_v15 = vpop.xlane.xlu2 %2000 }
 0xc6e   :  { %v2003_v42 = vmul.f32 %v2001_v15, %v6978_v46  ;;  %v2092_v15 = vld [vmem:[%s9090_s14] sm:$0xff] }
 0xc70   :  { %v2005_v23 = vadd.f32 1e-05, %v2003_v42  ;;  %v6314_v42 = vld [vmem:[%s9077_s6 + $0x1] ss:$0 sm:$0xff] }
 0xc72   :  { %6100 = vrsqrt.f32 %v2005_v23  ;;  %vm2022_vm11 = vweird.f32 %v2005_v23 }
 0xc78   :  { %v6101_v28 = vpop.eup %6100 }
 0xc79   :  { %v2017_v14 = vmul.f32 %v6101_v28, %v2005_v23  ;;  %vm2023_vm10 = vweird.f32 %v6101_v28 }
 0xc7a   :  { %vm2024_vm12 = vmor %vm2022_vm11, %vm2023_vm10 }
 0xc7b   :  { %v2018_v62 = vmul.f32 %v6101_v28, %v2017_v14 }
 0xc7d   :  { %v2019_v11 = vmul.f32 0.5, %v2018_v62 }
 0xc7f   :  { %v2020_v48 = vsub.f32 1.5, %v2019_v11 }
 0xc81   :  { %v2021_v7 = vmul.f32 %v6101_v28, %v2020_v48 }
 0xc83   :  { %v2025_v13 = vsel %vm2024_vm12, %v6101_v28, %v2021_v7  ;;  %vm9179_vm12 = vcmask 74752  }
 0xc84   :  { %v2027_v27 = vmul.f32 %v2025_v13, %v1993_v55 }
 0xc86   :  { %v2032_v63 = vmul.f32 %v6000_v35, %v2027_v27  ;;  %v6313_v35 = vld [vmem:[%s9077_s6] ss:$0 sm:$0xff] }
 0xc88   :  { %v7530_v60 = vadd.f32 %v6001_v2, %v2032_v63  ;;  %v2095_v2 = vld [vmem:[%s9090_s14 + $0x18] sm:$0xff] }
 0xc89   :  { %2119 = vmatpush.msrb.mxu0 %v2095_v2 }
 0xc8a   :  { %9178 = vst [vmem:[#allocation20_spill] sm:$0xff] %v7530_v60  ;;  %5721 = vmatmul.msk.f32.gmra.mxu1 %vm180_vm1, %v7530_v60  ;;  %5723 = vmatmul.msk.f32.gmra.mxu2 %vm180_vm1, %v7530_v60  ;;  %v2041_v16 = vsel %vm1115_vm5, %v7530_v60, 0.0 }
 0xc8b   :  { %5725 = vmatmul.msk.f32.gmra.mxu3 %vm180_vm1, %v7530_v60  ;;  %2042 = vadd.xlane.f32.xlu0 %v2041_v16 }
 0xc8c   :  { %2120 = vmatpush.msrb.mxu0 %v2094_v24 }
 0xc8e   :  { %2121 = vmatpush.msrb.mxu0 %v2093_v34 }
 0xc90   :  { %2122 = vmatpush.msrb.mxu0 %v2092_v15 }
 0xcde   :  { %v2040_v45 = vpop.xlane.xlu1 %2039 }
 0xcdf   :  { %v2044_v9 = vmul.f32 %v2040_v45, %v6978_v46 }
 0xce1   :  { %v7542_v55 = vsub.f32 %v7519_v41, %v2044_v9  ;;  %v7605_v9 = vld [vmem:[%s9077_s6 + $0x2] ss:$0 sm:$0xff] }
 0xce3   :  { %v2048_v61 = vmul.f32 %v7542_v55, %v7542_v55 }
 0xce5   :  { %v2050_v36 = vsel %vm180_vm1, %v2048_v61, 0.0 }
 0xce6   :  { %2051 = vadd.xlane.f32.xlu2 %v2050_v36 }
 0xce7   :  { %v2155_v10 = vpop.f32.mrf.mxu1 }
 0xce8   :  { %v7553_v12 = vadd.f32 %v6313_v35, %v2155_v10 }
 0xcea   :  { %2167 = vrot.lane.b32.xlu0 %v7553_v12, %s6422_s28 }
 0xced   :  { %v2196_v6 = vpop.f32.mrf.mxu2 }
 0xcee   :  { %v2197_v23 = vadd.f32 %v6314_v42, %v2196_v6  ;;  %v7597_v16 = vpop.f32.mrf.mxu3 }
 0xcf2   :  { %2204 = vrot.lane.b32.xlu0 %v2197_v23, %s6426_s27 }
 0xcfe   :  { %2163 = vrot.lane.b32.xlu2 %v7553_v12, %s6426_s27  ;;  %v2043_v28 = vpop.xlane.xlu0 %2042 }
 0xcff   :  { %v2045_v14 = vmul.f32 %v2043_v28, %v6978_v46  ;;  %v6002_v28 = vld [vmem:[%s9084_s9 + $0x6] ss:$0 sm:$0xff] }
 0xd01   :  { %v7577_v62 = vsub.f32 %v7530_v60, %v2045_v14 }
 0xd03   :  { %v2049_v11 = vmul.f32 %v7577_v62, %v7577_v62 }
 0xd05   :  { %v2053_v48 = vsel %vm1115_vm5, %v2049_v11, 0.0 }
 0xd06   :  { %2208 = vrot.lane.b32.xlu2 %v2197_v23, %s6422_s28  ;;  %2054 = vadd.xlane.f32.xlu1 %v2053_v48  ;;  %v6003_v48 = vld [vmem:[%s9084_s9 + $0x7] ss:$0 sm:$0xff] }
 0xd07   :  { %v2158_v27 = vpop.f32.mrf.mxu1 }
 0xd08   :  { %v7587_v63 = vadd.f32 %v6313_v35, %v2158_v27 }
 0xd0d   :  { %v2199_v7 = vpop.f32.mrf.mxu2 }
 0xd0e   :  { %v2200_v13 = vadd.f32 %v6314_v42, %v2199_v7  ;;  %v2240_v45 = vpop.f32.mrf.mxu3 }
 0xd0f   :  { %v7608_v61 = vadd.f32 %v7605_v9, %v2240_v45 }
 0xd10   :  { %2214 = vrot.lane.b32.xlu2 %v2200_v13, %s6423_s29  ;;  %5726 = vmatpush.xpose.msk.msra.mxu0 %vm481_vm0, %v2200_v13 }
 0xd11   :  { %2210 = vrot.lane.b32.xlu0 %v2200_v13, %s6422_s28 }
 0xd14   :  { %5727 = vmatpush.xpose.msk.msra.mxu0 %vm481_vm0, %v2197_v23 }
 0xd18   :  { %2169 = vrot.lane.b32.xlu2 %v7587_v63, %s6422_s28 }
 0xd19   :  { %2171 = vrot.lane.b32.xlu0 %v7553_v12, %s6423_s29 }
 0xd1f   :  { %2212 = vrot.lane.b32.xlu1 %v2197_v23, %s6423_s29 }
 0xd20   :  { %2175 = vrot.lane.b32.xlu2 %v7553_v12, %s6425_s30 }
 0xd21   :  { %2216 = vrot.lane.b32.xlu0 %v2197_v23, %s6425_s30 }
 0xd27   :  { %2206 = vrot.lane.b32.xlu1 %v2200_v13, %s6426_s27 }
 0xd29   :  { %2173 = vrot.lane.b32.xlu0 %v7587_v63, %s6423_s29 }
 0xd2f   :  { %2218 = vrot.lane.b32.xlu1 %v2200_v13, %s6425_s30 }
 0xd31   :  { %2247 = vrot.lane.b32.xlu0 %v7608_v61, %s6426_s27 }
 0xd37   :  { %2165 = vrot.lane.b32.xlu1 %v7587_v63, %s6426_s27 }
 0xd3f   :  { %2177 = vrot.lane.b32.xlu1 %v7587_v63, %s6425_s30 }
 0xd59   :  { %v2052_v36 = vpop.xlane.xlu2 %2051 }
 0xd5a   :  { %v2056_v38 = vmul.f32 %v2052_v36, %v6978_v46 }
 0xd5c   :  { %v2058_v10 = vadd.f32 1e-05, %v2056_v38  ;;  %v2168_v7 = vpop.permute.xlu0 %2167 }
 0xd5e   :  { %6102 = vrsqrt.f32 %v2058_v10  ;;  %vm2066_vm8 = vweird.f32 %v2058_v10 }
 0xd61   :  { %v2164_v35 = vpop.permute.xlu2 %2163 }
 0xd64   :  { %v6103_v2 = vpop.eup %6102 }
 0xd65   :  { %v2061_v24 = vmul.f32 %v6103_v2, %v2058_v10  ;;  %vm2067_vm13 = vweird.f32 %v6103_v2  ;;  %v2205_v10 = vpop.permute.xlu0 %2204 }
 0xd66   :  { %vm2068_vm9 = vmor %vm2066_vm8, %vm2067_vm13 }
 0xd67   :  { %v2062_v34 = vmul.f32 %v6103_v2, %v2061_v24  ;;  %vm9180_vm13 = vmmov %vm9179_vm12 }
 0xd68   :  { %vm9181_vm8 = vmmov %vm9179_vm12 }
 0xd69   :  { %v2063_v6 = vmul.f32 0.5, %v2062_v34  ;;  %v2209_v15 = vpop.permute.xlu2 %2208 }
 0xd6b   :  { %v2064_v42 = vsub.f32 1.5, %v2063_v6 }
 0xd6d   :  { %v2065_v23 = vmul.f32 %v6103_v2, %v2064_v42 }
 0xd6f   :  { %v2069_v14 = vsel %vm2068_vm9, %v6103_v2, %v2065_v23  ;;  %vm9182_vm9 = vmmov %vm9181_vm8 }
 0xd70   :  { %v2080_v11 = vmul.f32 %v2069_v14, %v7542_v55 }
 0xd71   :  { %v2215_v13 = vpop.permute.xlu2 %2214 }
 0xd72   :  { %v2085_v27 = vmul.f32 %v6002_v28, %v2080_v11  ;;  %5738 = vmatpush.xpose.msk.msrb.mxu3 %vm481_vm0, %v2215_v13 }
 0xd74   :  { %v2090_v45 = vadd.f32 %v6003_v48, %v2085_v27 }
 0xd76   :  { %5718 = vmatmul.msk.f32.vlgmr.msrb.gmra.mxu0 %vm180_vm1, %v2090_v45 }
 0xd79   :  { %v2055_v36 = vpop.xlane.xlu1 %2054 }
 0xd7a   :  { %v2057_v38 = vmul.f32 %v2055_v36, %v6978_v46  ;;  %v2170_v36 = vpop.permute.xlu2 %2169 }
 0xd7c   :  { %v2059_v24 = vadd.f32 1e-05, %v2057_v38 }
 0xd7e   :  { %6104 = vrsqrt.f32 %v2059_v24  ;;  %vm2076_vm10 = vweird.f32 %v2059_v24 }
 0xd83   :  { %v2211_v2 = vpop.permute.xlu0 %2210 }
 0xd84   :  { %v6105_v55 = vpop.eup %6104  ;;  %5734 = vmatpush.xpose.msk.msrb.mxu2 %vm481_vm0, %v2211_v2 }
 0xd85   :  { %v2071_v34 = vmul.f32 %v6105_v55, %v2059_v24  ;;  %vm2077_vm4 = vweird.f32 %v6105_v55 }
 0xd86   :  { %vm2078_vm11 = vmor %vm2076_vm10, %vm2077_vm4 }
 0xd87   :  { %v2072_v6 = vmul.f32 %v6105_v55, %v2071_v34  ;;  %vm9183_vm4 = vmmov %vm9181_vm8 }
 0xd88   :  { %5735 = vmatpush.xpose.msk.msrb.mxu2 %vm481_vm0, %v2209_v15  ;;  %vm9184_vm10 = vmmov %vm9183_vm4 }
 0xd89   :  { %v2073_v42 = vmul.f32 0.5, %v2072_v6 }
 0xd8b   :  { %v2074_v23 = vsub.f32 1.5, %v2073_v42  ;;  %v2172_v14 = vpop.permute.xlu0 %2171  ;;  %5736 = vmatmul.msk.f32.vlgmr.msrb.gmra.mxu2 %vm481_vm0, %v2168_v7 }
 0xd8d   :  { %v2075_v11 = vmul.f32 %v6105_v55, %v2074_v23 }
 0xd8f   :  { %v2079_v13 = vsel %vm2078_vm11, %v6105_v55, %v2075_v11  ;;  %vm9185_vm11 = vmmov %vm9183_vm4 }
 0xd90   :  { %v2081_v27 = vmul.f32 %v2079_v13, %v7577_v62  ;;  %v7645_v62 = vadd.f32 %v7605_v9, %v7597_v16  ;;  %v2176_v16 = vpop.permute.xlu2 %2175 }
 0xd91   :  { %v2213_v45 = vpop.permute.xlu1 %2212 }
 0xd92   :  { %5739 = vmatpush.xpose.msk.msrb.mxu3 %vm481_vm0, %v2213_v45  ;;  %v2086_v38 = vmul.f32 %v6002_v28, %v2081_v27 }
 0xd93   :  { %v2217_v2 = vpop.permute.xlu0 %2216  ;;  %5737 = vmatmul.msk.f32.gmra.mxu2 %vm481_vm0, %v2170_v36 }
 0xd94   :  { %v2091_v15 = vadd.f32 %v6003_v48, %v2086_v38 }
 0xd95   :  { %5740 = vmatmul.msk.f32.vlgmr.msrb.gmra.mxu3 %vm481_vm0, %v2172_v14 }
 0xd96   :  { %5719 = vmatmul.msk.f32.gmra.mxu0 %vm180_vm1, %v2091_v15 }
 0xd99   :  { %v2207_v7 = vpop.permute.xlu1 %2206 }
 0xd9a   :  { %5730 = vmatpush.xpose.msk.msra.mxu1 %vm481_vm0, %v2207_v7 }
 0xd9b   :  { %v2174_v24 = vpop.permute.xlu0 %2173 }
 0xd9d   :  { %5741 = vmatmul.msk.f32.gmra.mxu3 %vm481_vm0, %v2174_v24 }
 0xd9e   :  { %5728 = vmatmul.msk.f32.vlgmr.msra.gmra.mxu0 %vm481_vm0, %v7553_v12  ;;  %5731 = vmatpush.xpose.msk.msra.mxu1 %vm481_vm0, %v2205_v10 }
 0xda1   :  { %v2219_v28 = vpop.permute.xlu1 %2218  ;;  %5732 = vmatmul.msk.f32.vlgmr.msra.gmra.mxu1 %vm481_vm0, %v2164_v35  ;;  %v6004_v35 = vld [vmem:[%s9091_s15] ss:$0 sm:$0xff] }
 0xda2   :  { %5746 = vmatpush.msk.msrb.mxu1 %vm9134_vm3, %v7608_v61  ;;  %5742 = vmatpush.xpose.msk.msrb.mxu0 %vm481_vm0, %v2219_v28 }
 0xda3   :  { %v2248_v48 = vpop.permute.xlu0 %2247 }
 0xda4   :  { %2683 = vmatpush.msrb.mxu1 %v7645_v62  ;;  %5749 = vmatpush.msk.msra.mxu2 %vm9134_vm3, %v2248_v48 }
 0xda6   :  { %5729 = vmatmul.msk.f32.gmra.mxu0 %vm481_vm0, %v7587_v63 }
 0xda7   :  { %5743 = vmatpush.xpose.msk.msrb.mxu0 %vm481_vm0, %v2217_v2 }
 0xda9   :  { %v2166_v12 = vpop.permute.xlu1 %2165 }
 0xdaa   :  { %5733 = vmatmul.msk.f32.gmra.mxu1 %vm481_vm0, %v2166_v12 }
 0xdae   :  { %5744 = vmatmul.msk.f32.vlgmr.msrb.gmra.mxu0 %vm481_vm0, %v2176_v16 }
 0xdb1   :  { %v2178_v9 = vpop.permute.xlu1 %2177 }
 0xdb6   :  { %5745 = vmatmul.msk.f32.gmra.mxu0 %vm481_vm0, %v2178_v9 }
 0xdf3   :  { %v2124_v10 = vpop.f32.mrf.mxu0 }
 0xdf4   :  { %v2125_v55 = vadd.f32 %v6004_v35, %v2124_v10 }
 0xdf6   :  { %2130 = vst.msk [vmem:[%s9092_s16] sm:$0xff] %vm9137_vm6, %v2125_v55 }
 0xe0e   :  { %v2352_v63 = vpop.f32.mrf.mxu2 }
 0xe0f   :  { %v2353_v34 = vadd.f32 %v2352_v63, %v6698_v8 }
 0xe11   :  { %v2432_v6 = vsel %vm9137_vm6, %v2353_v34, -inf }
 0xe12   :  { %2433 = vmax.xlane.f32.xlu2 %v2432_v6 }
 0xe13   :  { %v2127_v42 = vpop.f32.mrf.mxu0 }
 0xe14   :  { %v2128_v23 = vadd.f32 %v6004_v35, %v2127_v42 }
 0xe16   :  { %2131 = vst.msk [vmem:[%s9092_s16 + $0x8] sm:$0x3] %vm9179_vm12, %v2128_v23  ;;  %v2355_v14 = vpop.f32.mrf.mxu2  ;;  %vm9186_vm12 = vmmov %vm9183_vm4 }
 0xe17   :  { %v7671_v11 = vadd.f32 %v2355_v14, %v6689_v3 }
 0xe18   :  { %v2383_v13 = vpop.f32.mrf.mxu3 }
 0xe19   :  { %v2384_v27 = vadd.f32 %v2383_v13, %v6698_v8  ;;  %v2435_v45 = vsel %vm9180_vm13, %v7671_v11, -inf  ;;  %vm9187_vm13 = vmmov %vm9183_vm4 }
 0xe1a   :  { %2436 = vmax.xlane.f32.xlu1 %v2435_v45 }
 0xe1b   :  { %v2290_v36 = vpop.f32.mrf.mxu0  ;;  %v2438_v38 = vsel %vm9137_vm6, %v2384_v27, -inf }
 0xe1c   :  { %2439 = vmax.xlane.f32.xlu2 %v2438_v38  ;;  %v7684_v35 = vadd.f32 %v2290_v36, %v6698_v8 }
 0xe1e   :  { %v2321_v2 = vpop.f32.mrf.mxu1  ;;  %v2420_v6 = vsel %vm9137_vm6, %v7684_v35, -inf }
 0xe1f   :  { %v2322_v15 = vadd.f32 %v2321_v2, %v6698_v8 }
 0xe20   :  { %v2386_v7 = vpop.f32.mrf.mxu3 }
 0xe21   :  { %v2387_v24 = vadd.f32 %v2386_v7, %v6689_v3  ;;  %v2426_v28 = vsel %vm9137_vm6, %v2322_v15, -inf }
 0xe22   :  { %2427 = vmax.xlane.f32.xlu0 %v2426_v28 }
 0xe23   :  { %v2293_v48 = vpop.f32.mrf.mxu0  ;;  %v2441_v12 = vsel %vm9181_vm8, %v2387_v24, -inf  ;;  %vm9188_vm8 = vmmov %vm9183_vm4 }
 0xe24   :  { %v2294_v16 = vadd.f32 %v2293_v48, %v6689_v3  ;;  %2442 = vmax.xlane.f32.xlu2 %v2441_v12 }
 0xe26   :  { %v2423_v9 = vsel %vm9182_vm9, %v2294_v16, -inf  ;;  %vm9189_vm9 = vmmov %vm9183_vm4 }
 0xe27   :  { %v2324_v10 = vpop.f32.mrf.mxu1  ;;  %2424 = vmax.xlane.f32.xlu1 %v2423_v9 }
 0xe28   :  { %v2325_v55 = vadd.f32 %v2324_v10, %v6689_v3 }
 0xe2a   :  { %v2429_v63 = vsel %vm9183_vm4, %v2325_v55, -inf }
 0xe2b   :  { %2430 = vmax.xlane.f32.xlu0 %v2429_v63  ;;  %v2414_v42 = vpop.f32.mrf.mxu0 }
 0xe2c   :  { %2421 = vmax.xlane.f32.xlu2 %v2420_v6  ;;  %v7697_v14 = vadd.f32 %v2414_v42, %v6698_v8 }
 0xe2e   :  { %v2444_v45 = vsel %vm9137_vm6, %v7697_v14, -inf }
 0xe33   :  { %v2417_v23 = vpop.f32.mrf.mxu0 }
 0xe34   :  { %v7700_v13 = vadd.f32 %v2417_v23, %v6689_v3 }
 0xe36   :  { %v2447_v36 = vsel %vm9184_vm10, %v7700_v13, -inf }
 0xe3f   :  { %2250 = vrot.lane.b32.xlu0 %v7645_v62, %s6422_s28 }
 0xe40   :  { %2252 = vrot.lane.b32.xlu1 %v7608_v61, %s6422_s28 }
 0xe44   :  { %2245 = vrot.lane.b32.xlu2 %v7645_v62, %s6426_s27 }
 0xe69   :  { %2445 = vmax.xlane.f32.xlu0 %v2444_v45 }
 0xe6a   :  { %2448 = vmax.xlane.f32.xlu1 %v2447_v36 }
 0xe7d   :  { %2257 = vrot.lane.b32.xlu0 %v7608_v61, %s6423_s29 }
 0xe85   :  { %v2434_v38 = vpop.xlane.xlu2 %2433 }
 0xe86   :  { %v2454_v12 = vsub.f32 %v2353_v34, %v2434_v38 }
 0xe88   :  { %v2468_v23 = vmul.f32 1.442695, %v2454_v12 }
 0xe8d   :  { %v2437_v28 = vpop.xlane.xlu1 %2436 }
 0xe8e   :  { %v2455_v34 = vsub.f32 %v7671_v11, %v2437_v28 }
 0xe8f   :  { %v2440_v2 = vpop.xlane.xlu2 %2439 }
 0xe90   :  { %v2456_v7 = vsub.f32 %v2384_v27, %v2440_v2 }
 0xe92   :  { %v2472_v48 = vmul.f32 1.442695, %v2456_v7  ;;  %v2470_v7 = vmul.f32 1.442695, %v2455_v34 }
 0xe94   :  { %6106 = vpow2.f32 %v2472_v48 }
 0xe95   :  { %v2428_v9 = vpop.xlane.xlu0 %2427 }
 0xe96   :  { %v2452_v10 = vsub.f32 %v2322_v15, %v2428_v9 }
 0xe97   :  { %v2443_v63 = vpop.xlane.xlu2 %2442 }
 0xe98   :  { %v2464_v6 = vmul.f32 1.442695, %v2452_v10  ;;  %v2457_v42 = vsub.f32 %v2387_v24, %v2443_v63  ;;  %v6316_v63 = vld [vmem:[%s9083_s7 + $0x20] sm:$0xff] }
 0xe9a   :  { %v7708_v45 = vpop.eup %6106  ;;  %6108 = vpow2.f32 %v2464_v6  ;;  %v2474_v36 = vmul.f32 1.442695, %v2457_v42  ;;  %v2425_v8 = vpop.xlane.xlu1 %2424 }
 0xe9b   :  { %v2451_v3 = vsub.f32 %v2294_v16, %v2425_v8  ;;  %v2498_v25 = vsel %vm9137_vm6, %v7708_v45, 0.0 }
 0xe9c   :  { %6110 = vpow2.f32 %v2474_v36  ;;  %2499 = vadd.xlane.f32.xlu1 %v2498_v25  ;;  %v6318_v36 = vld [vmem:[%s9083_s7 + $0x10] sm:$0xff] }
 0xe9d   :  { %6112 = vpow2.f32 %v2468_v23  ;;  %v2462_v27 = vmul.f32 1.442695, %v2451_v3  ;;  %v6317_v23 = vld [vmem:[%s9083_s7 + $0x18] sm:$0xff] }
 0xe9e   :  { %v2431_v15 = vpop.xlane.xlu0 %2430 }
 0xe9f   :  { %v2453_v38 = vsub.f32 %v2325_v55, %v2431_v15  ;;  %v2422_v2 = vpop.xlane.xlu2 %2421  ;;  %6114 = vpow2.f32 %v2462_v27  ;;  %v6319_v27 = vld [vmem:[%s9083_s7 + $0x8] sm:$0xff]  ;;  %v6320_v15 = vld [vmem:[%s9083_s7] sm:$0xff] }
 0xea0   :  { %v7713_v24 = vpop.eup %6108  ;;  %v2450_v25 = vsub.f32 %v7684_v35, %v2422_v2 }
 0xea1   :  { %v2466_v48 = vmul.f32 1.442695, %v2453_v38  ;;  %v2486_v12 = vsel %vm9137_vm6, %v7713_v24, 0.0 }
 0xea2   :  { %v7717_v8 = vpop.eup %6110  ;;  %2487 = vadd.xlane.f32.xlu2 %v2486_v12  ;;  %v2460_v10 = vmul.f32 1.442695, %v2450_v25  ;;  %v6321_v12 = vld [vmem:[%s9142_s23 + $0x98] sm:$0xff]  ;;  %v6323_v25 = vld [vmem:[%s9142_s23 + $0x88] sm:$0xff] }
 0xea3   :  { %v7719_v16 = vpop.eup %6112  ;;  %6116 = vpow2.f32 %v2466_v48  ;;  %v2501_v3 = vsel %vm9185_vm11, %v7717_v8, 0.0 }
 0xea4   :  { %2502 = vadd.xlane.f32.xlu1 %v2501_v3  ;;  %6118 = vpow2.f32 %v2470_v7  ;;  %v2492_v11 = vsel %vm9137_vm6, %v7719_v16, 0.0  ;;  %v6322_v3 = vld [vmem:[%s9142_s23 + $0x90] sm:$0xff] }
 0xea5   :  { %v7726_v28 = vpop.eup %6114  ;;  %6120 = vpow2.f32 %v2460_v10 }
 0xea6   :  { %v2483_v42 = vsel %vm9187_vm13, %v7726_v28, 0.0 }
 0xea7   :  { %2493 = vadd.xlane.f32.xlu0 %v2492_v11  ;;  %v2246_v55 = vpop.permute.xlu2 %2245  ;;  %v6324_v11 = vld [vmem:[%s9142_s23 + $0x80] sm:$0xff] }
 0xea8   :  { %2714 = vmatpush.msra.mxu2 %v2246_v55  ;;  %v6325_v55 = vld [vmem:[%s9142_s23 + $0x78] sm:$0xff] }
 0xea9   :  { %v7728_v9 = vpop.eup %6116 }
 0xeaa   :  { %2872 = vmatpush.msrb.mxu2 %v6316_v63  ;;  %v2489_v6 = vsel %vm9186_vm12, %v7728_v9, 0.0  ;;  %v7735_v35 = vpop.eup %6118 }
 0xeab   :  { %2490 = vadd.xlane.f32.xlu2 %v2489_v6  ;;  %v2495_v34 = vsel %vm9188_vm8, %v7735_v35, 0.0  ;;  %v7753_v2 = vpop.eup %6120 }
 0xeac   :  { %2873 = vmatpush.msrb.mxu2 %v6317_v23  ;;  %2484 = vadd.xlane.f32.xlu1 %v2483_v42  ;;  %v2480_v48 = vsel %vm9137_vm6, %v7753_v2, 0.0 }
 0xeae   :  { %2874 = vmatpush.msrb.mxu2 %v6318_v36 }
 0xeaf   :  { %2496 = vadd.xlane.f32.xlu0 %v2495_v34 }
 0xeb0   :  { %2875 = vmatpush.msrb.mxu2 %v6319_v27 }
 0xeb1   :  { %v2251_v7 = vpop.permute.xlu0 %2250 }
 0xeb2   :  { %2876 = vmatpush.msrb.mxu2 %v6320_v15  ;;  %v2253_v38 = vpop.permute.xlu1 %2252 }
 0xeb3   :  { %5752 = vmatpush.msk.msra.mxu3 %vm9134_vm3, %v2253_v38 }
 0xeb5   :  { %2745 = vmatpush.msra.mxu3 %v2251_v7 }
 0xeb7   :  { %2953 = vmatpush.msrb.mxu3 %v6321_v12  ;;  %2481 = vadd.xlane.f32.xlu0 %v2480_v48 }
 0xeb9   :  { %2954 = vmatpush.msrb.mxu3 %v6322_v3 }
 0xebb   :  { %2955 = vmatpush.msrb.mxu3 %v6323_v25 }
 0xebd   :  { %2956 = vmatpush.msrb.mxu3 %v6324_v11 }
 0xebf   :  { %2957 = vmatpush.msrb.mxu3 %v6325_v55 }
 0xec5   :  { %2262 = vrot.lane.b32.xlu1 %v7608_v61, %s6425_s30 }
 0xecb   :  { %2260 = vrot.lane.b32.xlu0 %v7645_v62, %s6425_s30 }
 0xedc   :  { %v2446_v10 = vpop.xlane.xlu0 %2445 }
 0xedd   :  { %v2458_v63 = vsub.f32 %v7697_v14, %v2446_v10  ;;  %v2449_v6 = vpop.xlane.xlu1 %2448 }
 0xede   :  { %v2459_v23 = vsub.f32 %v7700_v13, %v2449_v6 }
 0xedf   :  { %v2476_v42 = vmul.f32 1.442695, %v2458_v63 }
 0xee0   :  { %v2478_v36 = vmul.f32 1.442695, %v2459_v23 }
 0xee1   :  { %6122 = vpow2.f32 %v2476_v42 }
 0xee2   :  { %6124 = vpow2.f32 %v2478_v36 }
 0xee7   :  { %v7779_v34 = vpop.eup %6122 }
 0xee8   :  { %v2504_v27 = vsel %vm9137_vm6, %v7779_v34, 0.0  ;;  %v7783_v61 = vpop.eup %6124 }
 0xee9   :  { %2505 = vadd.xlane.f32.xlu2 %v2504_v27  ;;  %v2507_v14 = vsel %vm9189_vm9, %v7783_v61, 0.0 }
 0xeef   :  { %v2258_v15 = vpop.permute.xlu0 %2257 }
 0xef0   :  { %5755 = vmatpush.msk.msra.mxu0 %vm9134_vm3, %v2258_v15 }
 0xef1   :  { %2508 = vadd.xlane.f32.xlu2 %v2507_v14 }
 0xf09   :  { %2255 = vrot.lane.b32.xlu2 %v7645_v62, %s6423_s29 }
 0xf0f   :  { %v7790_v13 = vpop.xlane.xlu1 %2499 }
 0xf15   :  { %v2488_v38 = vpop.xlane.xlu2 %2487 }
 0xf16   :  { %6126 = vrcp.f32 %v2488_v38  ;;  %v2551_v55 = vand.u32 2147483648, %v2488_v38  ;;  %v2549_v6 = vand.u32 2147483647, %v2488_v38  ;;  %vm2545_vm10 = vweird.f32 %v2488_v38 }
 0xf17   :  { %v7792_v7 = vpop.xlane.xlu1 %2502 }
 0xf18   :  { %v2552_v27 = vor.u32 1.1754944e-38, %v2551_v55  ;;  %vm2550_vm12 = vcmp.eq.f32.partialorder %v2549_v6, 8.507059e+37 }
 0xf1a   :  { %v2494_v48 = vpop.xlane.xlu0 %2493 }
 0xf1b   :  { %6128 = vrcp.f32 %v2494_v48  ;;  %v2581_v57 = vand.u32 2147483648, %v2494_v48  ;;  %v2579_v17 = vand.u32 2147483647, %v2494_v48  ;;  %vm2575_vm8 = vweird.f32 %v2494_v48 }
 0xf1c   :  { %v6127_v12 = vpop.eup %6126 }
 0xf1d   :  { %v2541_v3 = vmul.f32 %v6127_v12, %v2488_v38  ;;  %vm2546_vm4 = vweird.f32 %v6127_v12 }
 0xf1e   :  { %v2491_v25 = vpop.xlane.xlu2 %2490  ;;  %vm2547_vm11 = vmor %vm2545_vm10, %vm2546_vm4  ;;  %vm2580_vm10 = vcmp.eq.f32.partialorder %v2579_v17, 8.507059e+37 }
 0xf1f   :  { %v2542_v11 = vsub.f32 1.0, %v2541_v3  ;;  %6130 = vrcp.f32 %v2491_v25  ;;  %v7794_v62 = vpop.xlane.xlu1 %2484  ;;  %v2564_v60 = vand.u32 2147483647, %v2491_v25  ;;  %v2566_v6 = vand.u32 2147483648, %v2491_v25 }
 0xf21   :  { %v6129_v10 = vpop.eup %6128  ;;  %v2543_v63 = vmul.f32 %v6127_v12, %v2542_v11 }
 0xf22   :  { %v2571_v42 = vmul.f32 %v6129_v10, %v2494_v48  ;;  %v7796_v23 = vpop.xlane.xlu0 %2496  ;;  %vm2576_vm13 = vweird.f32 %v6129_v10 }
 0xf23   :  { %v2544_v36 = vadd.f32 %v6127_v12, %v2543_v63  ;;  %6132 = vrcp.f32 %v7796_v23  ;;  %vm7801_vm9 = vmor %vm2575_vm8, %vm2576_vm13 }
 0xf24   :  { %v2572_v15 = vsub.f32 1.0, %v2571_v42  ;;  %6134 = vrcp.f32 %v7794_v62 }
 0xf25   :  { %v6131_v14 = vpop.eup %6130  ;;  %v2548_v3 = vsel %vm2547_vm11, %v6127_v12, %v2544_v36  ;;  %v2582_v12 = vor.u32 1.1754944e-38, %v2581_v57  ;;  %vm2560_vm11 = vweird.f32 %v2491_v25 }
 0xf26   :  { %v2573_v11 = vmul.f32 %v6129_v10, %v2572_v15  ;;  %v2556_v54 = vmul.f32 %v6131_v14, %v2491_v25  ;;  %v2553_v18 = vsel %vm2550_vm12, %v2552_v27, %v2548_v3  ;;  %vm2561_vm4 = vweird.f32 %v6131_v14 }
 0xf27   :  { %v2554_v46 = vmul.f32 %v7713_v24, %v2553_v18  ;;  %vm2565_vm12 = vcmp.eq.f32.partialorder %v2564_v60, 8.507059e+37  ;;  %vm2562_vm13 = vmor %vm2560_vm11, %vm2561_vm4  ;;  %v2594_v15 = vand.u32 2147483647, %v7796_v23  ;;  %v2596_v3 = vand.u32 2147483648, %v7796_v23 }
 0xf28   :  { %v2574_v63 = vadd.f32 %v6129_v10, %v2573_v11  ;;  %v2557_v38 = vsub.f32 1.0, %v2556_v54 }
 0xf29   :  { %v6133_v41 = vpop.eup %6132  ;;  %5750 = vmatmul.msk.f32.vlgmr.msra.gmra.mxu2 %vm9137_vm6, %v2554_v46  ;;  %v2597_v55 = vor.u32 1.1754944e-38, %v2596_v3  ;;  %v2536_v3 = vand.u32 2147483648, %v7794_v62 }
 0xf2a   :  { %v2578_v42 = vsel %vm7801_vm9, %v6129_v10, %v2574_v63  ;;  %v2586_v36 = vmul.f32 %v6133_v41, %v7796_v23  ;;  %5777 = vmatpush.xpose.msk.msra.mxu2 %vm481_vm0, %v7043_v39  ;;  %v2482_v18 = vpop.xlane.xlu0 %2481  ;;  %v2558_v54 = vmul.f32 %v6131_v14, %v2557_v38  ;;  %v7811_v24 = vpop.eup %6134  ;;  %v2567_v10 = vor.u32 1.1754944e-38, %v2566_v6 }
 0xf2b   :  { %6136 = vrcp.f32 %v2482_v18  ;;  %v2583_v48 = vsel %vm2580_vm10, %v2582_v12, %v2578_v42  ;;  %v2526_v11 = vmul.f32 %v7811_v24, %v7794_v62  ;;  %vm2591_vm8 = vweird.f32 %v6133_v41 }
 0xf2c   :  { %v2587_v57 = vsub.f32 1.0, %v2586_v36  ;;  %v2559_v46 = vadd.f32 %v6131_v14, %v2558_v54  ;;  %v2584_v27 = vmul.f32 %v7719_v16, %v2583_v48  ;;  %vm2590_vm9 = vweird.f32 %v7796_v23 }
 0xf2d   :  { %vm2592_vm4 = vmor %vm2590_vm9, %vm2591_vm8  ;;  %v2527_v12 = vsub.f32 1.0, %v2526_v11  ;;  %vm2595_vm10 = vcmp.eq.f32.partialorder %v2594_v15, 8.507059e+37  ;;  %v2521_v23 = vand.u32 2147483648, %v2482_v18  ;;  %vm2531_vm9 = vweird.f32 %v7811_v24 }
 0xf2e   :  { %5778 = vmatpush.xpose.msk.msra.mxu2 %vm481_vm0, %v7041_v33  ;;  %v2563_v17 = vsel %vm2562_vm13, %v6131_v14, %v2559_v46  ;;  %v2588_v25 = vmul.f32 %v6133_v41, %v2587_v57  ;;  %5753 = vmatmul.msk.f32.vlgmr.msra.gmra.mxu3 %vm9137_vm6, %v2584_v27  ;;  %v2519_v57 = vand.u32 2147483647, %v2482_v18  ;;  %v2534_v11 = vand.u32 2147483647, %v7794_v62 }
 0xf2f   :  { %v2568_v60 = vsel %vm2565_vm12, %v2567_v10, %v2563_v17  ;;  %5783 = vmatpush.xpose.msk.msra.mxu3 %vm481_vm0, %v6988_v0  ;;  %v2528_v48 = vmul.f32 %v7811_v24, %v2527_v12  ;;  %vm2515_vm12 = vweird.f32 %v2482_v18  ;;  %6138 = vrcp.f32 %v7790_v13 }
 0xf30   :  { %v2569_v16 = vmul.f32 %v7728_v9, %v2568_v60  ;;  %v2589_v63 = vadd.f32 %v6133_v41, %v2588_v25  ;;  %vm2520_vm8 = vcmp.eq.f32.partialorder %v2519_v57, 8.507059e+37  ;;  %v2537_v60 = vor.u32 1.1754944e-38, %v2536_v3 }
 0xf31   :  { %v6137_v38 = vpop.eup %6136  ;;  %v2529_v10 = vadd.f32 %v7811_v24, %v2528_v48  ;;  %6140 = vrcp.f32 %v7792_v7 }
 0xf32   :  { %v2511_v6 = vmul.f32 %v6137_v38, %v2482_v18  ;;  %5779 = vmatpush.xpose.msk.msra.mxu2 %vm481_vm0, %v7055_v31  ;;  %v2593_v14 = vsel %vm2592_vm4, %v6133_v41, %v2589_v63  ;;  %vm2516_vm11 = vweird.f32 %v6137_v38  ;;  %vm2530_vm4 = vweird.f32 %v7794_v62 }
 0xf33   :  { %5751 = vmatmul.msk.f32.gmra.mxu2 %vm9137_vm6, %v2569_v16  ;;  %v2598_v42 = vsel %vm2595_vm10, %v2597_v55, %v2593_v14  ;;  %5784 = vmatpush.xpose.msk.msra.mxu3 %vm481_vm0, %v7030_v26  ;;  %vm2517_vm13 = vmor %vm2515_vm12, %vm2516_vm11  ;;  %vm2535_vm11 = vcmp.eq.f32.partialorder %v2534_v11, 8.507059e+37 }
 0xf34   :  { %v2512_v36 = vsub.f32 1.0, %v2511_v6  ;;  %v2599_v9 = vmul.f32 %v7735_v35, %v2598_v42  ;;  %v2522_v35 = vor.u32 1.1754944e-38, %v2521_v23  ;;  %vm2532_vm10 = vmor %vm2530_vm4, %vm2531_vm9 }
 0xf35   :  { %v2533_v25 = vsel %vm2532_vm10, %v7811_v24, %v2529_v10  ;;  %v6139_v62 = vpop.eup %6138 }
 0xf36   :  { %v2513_v54 = vmul.f32 %v6137_v38, %v2512_v36  ;;  %5780 = vmatpush.xpose.msk.msra.mxu2 %vm481_vm0, %v7097_v59  ;;  %5754 = vmatmul.msk.f32.gmra.mxu3 %vm9137_vm6, %v2599_v9  ;;  %v2538_v16 = vsel %vm2535_vm11, %v2537_v60, %v2533_v25  ;;  %v2601_v24 = vmul.f32 %v6139_v62, %v7790_v13  ;;  %vm2606_vm12 = vweird.f32 %v6139_v62 }
 0xf37   :  { %v2263_v41 = vpop.permute.xlu1 %2262  ;;  %5785 = vmatpush.xpose.msk.msra.mxu3 %vm481_vm0, %v7057_v44  ;;  %v2611_v36 = vand.u32 2147483648, %v7790_v13  ;;  %v2609_v9 = vand.u32 2147483647, %v7790_v13  ;;  %v2626_v25 = vand.u32 2147483648, %v7792_v7 }
 0xf38   :  { %v2514_v46 = vadd.f32 %v6137_v38, %v2513_v54  ;;  %5758 = vmatpush.msk.msra.mxu1 %vm9134_vm3, %v2263_v41  ;;  %v2602_v63 = vsub.f32 1.0, %v2601_v24 }
 0xf39   :  { %vm2610_vm9 = vcmp.eq.f32.partialorder %v2609_v9, 8.507059e+37 }
 0xf3a   :  { %v2518_v27 = vsel %vm2517_vm13, %v6137_v38, %v2514_v46  ;;  %v6141_v38 = vpop.eup %6140  ;;  %vm2605_vm13 = vweird.f32 %v7790_v13  ;;  %v2612_v46 = vor.u32 1.1754944e-38, %v2611_v36 }
 0xf3b   :  { %v2523_v15 = vsel %vm2520_vm8, %v2522_v35, %v2518_v27  ;;  %5786 = vmatpush.xpose.msk.msra.mxu3 %vm481_vm0, %v7047_v43  ;;  %v2616_v12 = vmul.f32 %v6141_v38, %v7792_v7  ;;  %vm2607_vm8 = vmor %vm2605_vm13, %vm2606_vm12  ;;  %vm2621_vm11 = vweird.f32 %v6141_v38  ;;  %vm2620_vm12 = vweird.f32 %v7792_v7 }
 0xf3c   :  { %v2524_v18 = vmul.f32 %v7753_v2, %v2523_v15  ;;  %v2539_v2 = vmul.f32 %v7726_v28, %v2538_v16  ;;  %v2603_v28 = vmul.f32 %v6139_v62, %v2602_v63 }
 0xf3d   :  { %v2261_v17 = vpop.permute.xlu0 %2260  ;;  %v2617_v14 = vsub.f32 1.0, %v2616_v12  ;;  %v2627_v12 = vor.u32 1.1754944e-38, %v2626_v25 }
 0xf3e   :  { %5747 = vmatmul.msk.f32.vlgmr.msrb.gmra.mxu1 %vm9137_vm6, %v2524_v18  ;;  %v2604_v6 = vadd.f32 %v6139_v62, %v2603_v28 }
 0xf3f   :  { %2807 = vmatpush.msra.mxu1 %v2261_v17  ;;  %v2618_v41 = vmul.f32 %v6141_v38, %v2617_v14  ;;  %v2624_v17 = vand.u32 2147483647, %v7792_v7 }
 0xf40   :  { %v2608_v57 = vsel %vm2607_vm8, %v6139_v62, %v2604_v6  ;;  %vm2622_vm8 = vmor %vm2620_vm12, %vm2621_vm11 }
 0xf41   :  { %5771 = vmatpush.xpose.msk.msrb.mxu1 %vm481_vm0, %v7000_v51  ;;  %v2613_v15 = vsel %vm2610_vm9, %v2612_v46, %v2608_v57  ;;  %v2619_v18 = vadd.f32 %v6141_v38, %v2618_v41 }
 0xf42   :  { %v2614_v62 = vmul.f32 %v7708_v45, %v2613_v15 }
 0xf43   :  { %v2623_v28 = vsel %vm2622_vm8, %v6141_v38, %v2619_v18 }
 0xf45   :  { %5772 = vmatpush.xpose.msk.msrb.mxu1 %vm481_vm0, %v7081_v53 }
 0xf46   :  { %5748 = vmatmul.msk.f32.gmra.mxu1 %vm9137_vm6, %v2539_v2 }
 0xf49   :  { %5773 = vmatpush.xpose.msk.msrb.mxu1 %vm481_vm0, %v7077_v50 }
 0xf4d   :  { %5774 = vmatpush.xpose.msk.msrb.mxu1 %vm481_vm0, %v7095_v56 }
 0xf5c   :  { %v2506_v55 = vpop.xlane.xlu2 %2505 }
 0xf5d   :  { %6142 = vrcp.f32 %v2506_v55  ;;  %v2641_v35 = vand.u32 2147483648, %v2506_v55  ;;  %v2639_v10 = vand.u32 2147483647, %v2506_v55  ;;  %vm2635_vm10 = vweird.f32 %v2506_v55 }
 0xf5f   :  { %v2642_v13 = vor.u32 1.1754944e-38, %v2641_v35  ;;  %vm2640_vm13 = vcmp.eq.f32.partialorder %v2639_v10, 8.507059e+37 }
 0xf63   :  { %v6143_v42 = vpop.eup %6142 }
 0xf64   :  { %v2631_v23 = vmul.f32 %v6143_v42, %v2506_v55  ;;  %v2509_v54 = vpop.xlane.xlu2 %2508  ;;  %vm2636_vm4 = vweird.f32 %v6143_v42 }
 0xf65   :  { %6144 = vrcp.f32 %v2509_v54  ;;  %vm2637_vm3 = vmor %vm2635_vm10, %vm2636_vm4  ;;  %v2656_v7 = vand.u32 2147483648, %v2509_v54  ;;  %v2654_v45 = vand.u32 2147483647, %v2509_v54  ;;  %vm2650_vm4 = vweird.f32 %v2509_v54 }
 0xf66   :  { %v2632_v48 = vsub.f32 1.0, %v2631_v23 }
 0xf67   :  { %vm2655_vm11 = vcmp.eq.f32.partialorder %v2654_v45, 8.507059e+37 }
 0xf68   :  { %v2633_v27 = vmul.f32 %v6143_v42, %v2632_v48 }
 0xf6a   :  { %v2634_v3 = vadd.f32 %v6143_v42, %v2633_v27 }
 0xf6b   :  { %v6145_v11 = vpop.eup %6144 }
 0xf6c   :  { %v2638_v60 = vsel %vm2637_vm3, %v6143_v42, %v2634_v3  ;;  %v2646_v16 = vmul.f32 %v6145_v11, %v2509_v54  ;;  %v2256_v2 = vpop.permute.xlu2 %2255  ;;  %vm2625_vm3 = vcmp.eq.f32.partialorder %v2624_v17, 8.507059e+37  ;;  %vm2651_vm9 = vweird.f32 %v6145_v11 }
 0xf6d   :  { %2776 = vmatpush.msra.mxu0 %v2256_v2  ;;  %v2643_v24 = vsel %vm2640_vm13, %v2642_v13, %v2638_v60  ;;  %v2628_v14 = vsel %vm2625_vm3, %v2627_v12, %v2623_v28  ;;  %vm2652_vm10 = vmor %vm2650_vm4, %vm2651_vm9 }
 0xf6e   :  { %v2647_v63 = vsub.f32 1.0, %v2646_v16  ;;  %5756 = vmatmul.msk.f32.vlgmr.msra.gmra.mxu0 %vm9137_vm6, %v2614_v62  ;;  %v2644_v55 = vmul.f32 %v7779_v34, %v2643_v24  ;;  %v2657_v34 = vor.u32 1.1754944e-38, %v2656_v7  ;;  %v2629_v38 = vmul.f32 %v7717_v8, %v2628_v14  ;;  %v9192_v14 = vld [vmem:[#allocation19_spill] sm:$0xff] }
 0xf6f   :  { %5765 = vmatpush.xpose.msk.msrb.mxu0 %vm481_vm0, %v6707_v19 }
 0xf70   :  { %5759 = vmatmul.msk.f32.vlgmr.msra.gmra.mxu1 %vm9137_vm6, %v2644_v55  ;;  %v2648_v6 = vmul.f32 %v6145_v11, %v2647_v63 }
 0xf71   :  { %3376 = vmatpush.msra.mxu1 %v7093_v1 }
 0xf72   :  { %v2649_v42 = vadd.f32 %v6145_v11, %v2648_v6  ;;  %v6326_v6 = vld [vmem:[%s9082_s8] ss:$0 sm:$0xff] }
 0xf73   :  { %5766 = vmatpush.xpose.msk.msrb.mxu0 %vm481_vm0, %v6709_v20  ;;  %3377 = vmatpush.msra.mxu1 %v7104_v58 }
 0xf74   :  { %v2653_v36 = vsel %vm2652_vm10, %v6145_v11, %v2649_v42  ;;  %vm9209_vm10 = vcmask 254976  }
 0xf75   :  { %3378 = vmatpush.msra.mxu1 %v7108_v5  ;;  %v2658_v9 = vsel %vm2655_vm11, %v2657_v34, %v2653_v36  ;;  %vm9210_vm11 = vmmov %vm9209_vm10 }
 0xf76   :  { %5757 = vmatmul.msk.f32.gmra.mxu0 %vm9137_vm6, %v2629_v38  ;;  %v2659_v23 = vmul.f32 %v7783_v61, %v2658_v9  ;;  %v9193_v9 = vld [vmem:[#allocation20_spill] sm:$0xff] }
 0xf77   :  { %5767 = vmatpush.xpose.msk.msrb.mxu0 %vm481_vm0, %v6713_v21  ;;  %3379 = vmatpush.msra.mxu1 %v7112_v29 }
 0xf78   :  { %5760 = vmatmul.msk.f32.gmra.mxu1 %vm9137_vm6, %v2659_v23 }
 0xf7b   :  { %5768 = vmatpush.xpose.msk.msrb.mxu0 %vm481_vm0, %v6717_v22 }
 0xf7f   :  { %5789 = vmatpush.xpose.msk.msra.mxu0 %vm481_vm0, %v6994_v4 }
 0xf83   :  { %5790 = vmatpush.xpose.msk.msra.mxu0 %vm481_vm0, %v7071_v49 }
 0xf87   :  { %5791 = vmatpush.xpose.msk.msra.mxu0 %vm481_vm0, %v7066_v37 }
 0xf8b   :  { %5792 = vmatpush.xpose.msk.msra.mxu0 %vm481_vm0, %v7079_v40 }
 0xfac   :  { %v2716_v8 = vpop.f32.mrf.mxu2 }
 0xfad   :  { %2817 = vrot.lane.b32.xlu1 %v2716_v8, %s6429_s21 }
 0xfb1   :  { %v2747_v61 = vpop.f32.mrf.mxu3 }
 0xfb2   :  { %2825 = vrot.lane.b32.xlu2 %v2747_v61, %s6428_s20 }
 0xfb6   :  { %v2719_v54 = vpop.f32.mrf.mxu2 }
 0xfb9   :  { %v2750_v35 = vpop.f32.mrf.mxu3 }
 0xfba   :  { %2819 = vrot.lane.b32.xlu2 %v2719_v54, %s6429_s21  ;;  %v9194_v54 = vld [vmem:[#allocation4_spill] sm:$0xff] }
 0xfbb   :  { %v2685_v57 = vpop.f32.mrf.mxu1 }
 0xfc3   :  { %v2688_v48 = vpop.f32.mrf.mxu1 }
 0xfeb   :  { %v2778_v41 = vpop.f32.mrf.mxu0 }
 0xfec   :  { %2833 = vrot.lane.b32.xlu0 %v2778_v41, %s6430_s22 }
 0xfed   :  { %v2809_v46 = vpop.f32.mrf.mxu1 }
 0xfee   :  { %2841 = vrot.lane.b32.xlu1 %v2809_v46, %s9176_s4 }
 0xff3   :  { %v2781_v27 = vpop.f32.mrf.mxu0 }
 0xff4   :  { %2827 = vrot.lane.b32.xlu0 %v2750_v35, %s6428_s20 }
 0xff5   :  { %v2812_v10 = vpop.f32.mrf.mxu1 }
 0xff6   :  { %2843 = vrot.lane.b32.xlu2 %v2812_v10, %s9176_s4  ;;  %2835 = vrot.lane.b32.xlu1 %v2781_v27, %s6430_s22 }
0x100c   :  { %v2826_v15 = vpop.permute.xlu2 %2825 }
0x1014   :  { %v2820_v60 = vpop.permute.xlu2 %2819 }
0x1015   :  { %v2848_v2 = vsel %vm481_vm0, %v2688_v48, %v2820_v60 }
0x101f   :  { %v2818_v3 = vpop.permute.xlu1 %2817 }
0x1020   :  { %v2847_v18 = vsel %vm481_vm0, %v2685_v57, %v2818_v3 }
0x1021   :  { %v2849_v13 = vsel %vm1069_vm14, %v2847_v18, %v2826_v15 }
0x1050   :  { %v2844_v55 = vpop.permute.xlu2 %2843 }
0x105e   :  { %v2834_v11 = vpop.permute.xlu0 %2833 }
0x105f   :  { %v2851_v17 = vsel %vm1072_vm15, %v2849_v13, %v2834_v11 }
0x1060   :  { %v2842_v25 = vpop.permute.xlu1 %2841 }
0x1061   :  { %v2853_v16 = vsel %vm1075_vm2, %v2851_v17, %v2842_v25 }
0x1062   :  { %5761 = vmatmul.msk.f32.vlgmr.msrb.gmra.mxu2 %vm180_vm1, %v2853_v16 }
0x1063   :  { %3405 = vmatpush.msrb.mxu2 %v7161_v30 }
0x1065   :  { %3406 = vmatpush.msrb.mxu2 %v7163_v32 }
0x1066   :  { %v2828_v62 = vpop.permute.xlu0 %2827 }
0x1067   :  { %v2850_v24 = vsel %vm1069_vm14, %v2848_v2, %v2828_v62  ;;  %3407 = vmatpush.msrb.mxu2 %v7319_v47 }
0x1068   :  { %v2836_v63 = vpop.permute.xlu1 %2835 }
0x1069   :  { %v2852_v28 = vsel %vm1072_vm15, %v2850_v24, %v2836_v63  ;;  %3408 = vmatpush.msrb.mxu2 %v7327_v52 }
0x106a   :  { %v2854_v12 = vsel %vm1075_vm2, %v2852_v28, %v2844_v55 }
0x106b   :  { %5762 = vmatmul.msk.f32.gmra.mxu2 %vm180_vm1, %v2854_v12 }
0x10e5   :  { %v2878_v7 = vpop.f32.mrf.mxu2 }
0x10e6   :  { %v2879_v45 = vadd.f32 %v6326_v6, %v2878_v7 }
0x10e8   :  { %v2884_v42 = vadd.f32 %v2879_v45, %v9192_v14  ;;  %v6327_v14 = vld [vmem:[%s9084_s9] ss:$0 sm:$0xff] }
0x10ea   :  { %v2886_v34 = vsel %vm180_vm1, %v2884_v42, 0.0 }
0x10eb   :  { %2887 = vadd.xlane.f32.xlu0 %v2886_v34 }
0x10ee   :  { %v2881_v38 = vpop.f32.mrf.mxu2 }
0x10ef   :  { %v2882_v36 = vadd.f32 %v6326_v6, %v2881_v38 }
0x10f1   :  { %v2885_v23 = vadd.f32 %v2882_v36, %v9193_v9  ;;  %v6328_v36 = vld [vmem:[%s9084_s9 + $0x1] ss:$0 sm:$0xff] }
0x10f3   :  { %v2889_v8 = vsel %vm1115_vm5, %v2885_v23, 0.0 }
0x10f4   :  { %2890 = vadd.xlane.f32.xlu1 %v2889_v8  ;;  %v6329_v8 = vld [vmem:[%s9085_s1] sm:$0xff] }
0x115e   :  { %v2888_v61 = vpop.xlane.xlu0 %2887 }
0x115f   :  { %v2892_v57 = vmul.f32 %v2888_v61, %v9194_v54 }
0x1161   :  { %v2894_v48 = vsub.f32 %v2884_v42, %v2892_v57 }
0x1163   :  { %v2896_v41 = vmul.f32 %v2894_v48, %v2894_v48 }
0x1165   :  { %v2898_v46 = vsel %vm180_vm1, %v2896_v41, 0.0 }
0x1166   :  { %2899 = vadd.xlane.f32.xlu2 %v2898_v46  ;;  %v9196_v46 = vld [vmem:[#allocation6_spill] sm:$0xff] }
0x1167   :  { %v2891_v35 = vpop.xlane.xlu1 %2890 }
0x1168   :  { %v2893_v27 = vmul.f32 %v2891_v35, %v9194_v54 }
0x116a   :  { %v2895_v10 = vsub.f32 %v2885_v23, %v2893_v27  ;;  %v9197_v27 = vld [vmem:[#allocation10_spill] sm:$0xff] }
0x116c   :  { %v2897_v15 = vmul.f32 %v2895_v10, %v2895_v10 }
0x116e   :  { %v2901_v3 = vsel %vm1115_vm5, %v2897_v15, 0.0 }
0x116f   :  { %2902 = vadd.xlane.f32.xlu0 %v2901_v3  ;;  %v9198_v3 = vld [vmem:[#allocation13_spill] sm:$0xff] }
0x11d9   :  { %v2900_v18 = vpop.xlane.xlu2 %2899 }
0x11da   :  { %v2904_v11 = vmul.f32 %v2900_v18, %v9194_v54  ;;  %v6330_v18 = vld [vmem:[%s9085_s1 + $0x8] sm:$0x3] }
0x11dc   :  { %v2906_v13 = vadd.f32 1e-05, %v2904_v11 }
0x11de   :  { %6146 = vrsqrt.f32 %v2906_v13  ;;  %vm2914_vm13 = vweird.f32 %v2906_v13 }
0x11e2   :  { %v2903_v17 = vpop.xlane.xlu0 %2902 }
0x11e3   :  { %v2905_v25 = vmul.f32 %v2903_v17, %v9194_v54 }
0x11e4   :  { %v6147_v60 = vpop.eup %6146 }
0x11e5   :  { %v2909_v16 = vmul.f32 %v6147_v60, %v2906_v13  ;;  %v2907_v2 = vadd.f32 1e-05, %v2905_v25  ;;  %vm2915_vm12 = vweird.f32 %v6147_v60  ;;  %v9199_v25 = vld [vmem:[#allocation8_spill] sm:$0xff] }
0x11e6   :  { %vm2916_vm8 = vmor %vm2914_vm13, %vm2915_vm12 }
0x11e7   :  { %v2910_v62 = vmul.f32 %v6147_v60, %v2909_v16  ;;  %6148 = vrsqrt.f32 %v2907_v2  ;;  %vm2924_vm9 = vweird.f32 %v2907_v2  ;;  %v9201_v16 = vld [vmem:[#allocation12_spill] sm:$0xff]  ;;  %vm9211_vm12 = vmmov %vm9209_vm10 }
0x11e8   :  { %vm9212_vm13 = vmmov %vm9209_vm10 }
0x11e9   :  { %v2911_v24 = vmul.f32 0.5, %v2910_v62 }
0x11eb   :  { %v2912_v63 = vsub.f32 1.5, %v2911_v24  ;;  %v9202_v24 = vld [vmem:[#allocation14_spill] sm:$0xff] }
0x11ed   :  { %v6149_v55 = vpop.eup %6148  ;;  %v2913_v28 = vmul.f32 %v6147_v60, %v2912_v63 }
0x11ee   :  { %v2919_v12 = vmul.f32 %v6149_v55, %v2907_v2  ;;  %vm2925_vm3 = vweird.f32 %v6149_v55 }
0x11ef   :  { %v2917_v7 = vsel %vm2916_vm8, %v6147_v60, %v2913_v28  ;;  %vm2926_vm4 = vmor %vm2924_vm9, %vm2925_vm3  ;;  %v9200_v60 = vld [vmem:[#allocation9_spill] sm:$0xff]  ;;  %v9204_v28 = vld [vmem:[#allocation16_spill] sm:$0xff] }
0x11f0   :  { %v2928_v6 = vmul.f32 %v2917_v7, %v2894_v48  ;;  %v2920_v45 = vmul.f32 %v6149_v55, %v2919_v12  ;;  %v9195_v48 = vld [vmem:[#allocation5_spill] sm:$0xff]  ;;  %v9206_v7 = vld [vmem:[#allocation18_spill] sm:$0xff]  ;;  %vm9213_vm8 = vmmov %vm9209_vm10 }
0x11f1   :  { %v9205_v12 = vld [vmem:[#allocation17_spill] sm:$0xff]  ;;  %vm9214_vm3 = vmmov %vm9213_vm8 }
0x11f2   :  { %v2930_v42 = vmul.f32 %v6327_v14, %v2928_v6  ;;  %v2921_v34 = vmul.f32 0.5, %v2920_v45  ;;  %v6332_v45 = vld [vmem:[%s9088_s12 + $0x38] sm:$0xff]  ;;  %vm9215_vm9 = vmmov %vm9214_vm3 }
0x11f4   :  { %v2922_v38 = vsub.f32 1.5, %v2921_v34  ;;  %v7937_v9 = vadd.f32 %v6328_v36, %v2930_v42  ;;  %v6334_v42 = vld [vmem:[%s9088_s12 + $0x28] sm:$0xff]  ;;  %v6335_v34 = vld [vmem:[%s9088_s12 + $0x20] sm:$0xff] }
0x11f6   :  { %v2923_v23 = vmul.f32 %v6149_v55, %v2922_v38  ;;  %v2934_v61 = vadd.f32 %v6329_v8, %v7937_v9  ;;  %v6336_v38 = vld [vmem:[%s9088_s12 + $0x18] sm:$0xff] }
0x11f8   :  { %v2927_v57 = vsel %vm2926_vm4, %v6149_v55, %v2923_v23  ;;  %5763 = vmatmul.msk.f32.vlgmr.msrb.gmra.mxu3 %vm180_vm1, %v2934_v61  ;;  %v9203_v55 = vld [vmem:[#allocation15_spill] sm:$0xff]  ;;  %v6339_v61 = vld [vmem:[%s9088_s12] sm:$0xff]  ;;  %vm9216_vm4 = vmmov %vm9214_vm3 }
0x11f9   :  { %3434 = vmatpush.msrb.mxu3 %v9195_v48  ;;  %v2929_v41 = vmul.f32 %v2927_v57, %v2895_v10  ;;  %v6331_v10 = vld [vmem:[%s9077_s6 + $0x3] ss:$0 sm:$0xff]  ;;  %v6338_v23 = vld [vmem:[%s9088_s12 + $0x8] sm:$0xff] }
0x11fb   :  { %3435 = vmatpush.msrb.mxu3 %v9196_v46  ;;  %v2931_v35 = vmul.f32 %v6327_v14, %v2929_v41  ;;  %v6333_v14 = vld [vmem:[%s9088_s12 + $0x30] sm:$0xff]  ;;  %v6340_v41 = vld [vmem:[%s9087_s10 + $0x20] sm:$0xff] }
0x11fd   :  { %3436 = vmatpush.msrb.mxu3 %v9197_v27  ;;  %v7947_v15 = vadd.f32 %v6328_v36, %v2931_v35  ;;  %v6337_v36 = vld [vmem:[%s9088_s12 + $0x10] sm:$0xff]  ;;  %v6341_v35 = vld [vmem:[%s9083_s7 + $0x48] sm:$0xff] }
0x11ff   :  { %3437 = vmatpush.msrb.mxu3 %v9198_v3  ;;  %v2935_v11 = vadd.f32 %v6330_v18, %v7947_v15  ;;  %v6342_v18 = vld [vmem:[%s9087_s10 + $0x18] sm:$0xff] }
0x1201   :  { %5764 = vmatmul.msk.f32.gmra.mxu3 %vm180_vm1, %v2935_v11  ;;  %v6343_v11 = vld [vmem:[%s9083_s7 + $0x40] sm:$0xff] }
0x127b   :  { %v2959_v13 = vpop.f32.mrf.mxu3 }
0x127c   :  { %v2960_v17 = vadd.f32 %v6331_v10, %v2959_v13  ;;  %v6344_v13 = vld [vmem:[%s9087_s10 + $0x10] sm:$0xff] }
0x127e   :  { %2975 = vrot.lane.b32.xlu0 %v2960_v17, %s6423_s29  ;;  %2967 = vrot.lane.b32.xlu2 %v2960_v17, %s6426_s27 }
0x127f   :  { %2971 = vrot.lane.b32.xlu1 %v2960_v17, %s6422_s28  ;;  %5769 = vmatmul.msk.f32.vlgmr.msrb.gmra.mxu0 %vm481_vm0, %v2960_v17 }
0x1280   :  { %3463 = vmatpush.msrb.mxu0 %v9199_v25 }
0x1282   :  { %3464 = vmatpush.msrb.mxu0 %v9200_v60 }
0x1284   :  { %3465 = vmatpush.msrb.mxu0 %v9201_v16  ;;  %v2962_v2 = vpop.f32.mrf.mxu3 }
0x1285   :  { %v2963_v62 = vadd.f32 %v6331_v10, %v2962_v2  ;;  %v6345_v10 = vld [vmem:[%s9083_s7 + $0x38] sm:$0xff] }
0x1286   :  { %3466 = vmatpush.msrb.mxu0 %v9202_v24  ;;  %2979 = vrot.lane.b32.xlu2 %v2960_v17, %s6425_s30  ;;  %v6346_v17 = vld [vmem:[%s9087_s10 + $0x8] sm:$0xff] }
0x1287   :  { %2969 = vrot.lane.b32.xlu0 %v2963_v62, %s6426_s27  ;;  %2973 = vrot.lane.b32.xlu1 %v2963_v62, %s6422_s28 }
0x1288   :  { %5770 = vmatmul.msk.f32.gmra.mxu0 %vm481_vm0, %v2963_v62 }
0x128f   :  { %2981 = vrot.lane.b32.xlu0 %v2963_v62, %s6425_s30  ;;  %2977 = vrot.lane.b32.xlu1 %v2963_v62, %s6423_s29 }
0x12d8   :  { %v2968_v63 = vpop.permute.xlu2 %2967 }
0x12d9   :  { %5775 = vmatmul.msk.f32.vlgmr.msrb.gmra.mxu1 %vm481_vm0, %v2968_v63  ;;  %v6347_v63 = vld [vmem:[%s9083_s7 + $0x30] sm:$0xff] }
0x12da   :  { %3492 = vmatpush.msrb.mxu1 %v9203_v55 }
0x12dc   :  { %3493 = vmatpush.msrb.mxu1 %v9204_v28 }
0x12de   :  { %3494 = vmatpush.msrb.mxu1 %v9205_v12 }
0x12e0   :  { %3495 = vmatpush.msrb.mxu1 %v9206_v7  ;;  %v2980_v6 = vpop.permute.xlu2 %2979 }
0x12e1   :  { %5793 = vmatmul.msk.f32.vlgmr.msra.gmra.mxu0 %vm481_vm0, %v2980_v6  ;;  %v6348_v6 = vld [vmem:[%s9083_s7 + $0x28] sm:$0xff] }
0x12e2   :  { %3667 = vmatpush.msra.mxu0 %v6332_v45  ;;  %v6349_v45 = vld [vmem:[%s9087_s10] sm:$0xff] }
0x12e4   :  { %3668 = vmatpush.msra.mxu0 %v6333_v14 }
0x12e6   :  { %3669 = vmatpush.msra.mxu0 %v6334_v42  ;;  %v9207_v42 = vld [vmem:[#allocation7_spill] sm:$0xff] }
0x12e8   :  { %3670 = vmatpush.msra.mxu0 %v6335_v34 }
0x12ea   :  { %3671 = vmatpush.msra.mxu0 %v6336_v38 }
0x12ec   :  { %3672 = vmatpush.msra.mxu0 %v6337_v36 }
0x12ee   :  { %3673 = vmatpush.msra.mxu0 %v6338_v23 }
0x12f0   :  { %v2976_v8 = vpop.permute.xlu0 %2975  ;;  %3674 = vmatpush.msra.mxu0 %v6339_v61  ;;  %v9208_v61 = vld [vmem:[#allocation11_spill] sm:$0xff] }
0x12f1   :  { %v2972_v57 = vpop.permute.xlu1 %2971  ;;  %5787 = vmatmul.msk.f32.vlgmr.msra.gmra.mxu3 %vm481_vm0, %v2976_v8 }
0x12f2   :  { %5781 = vmatmul.msk.f32.vlgmr.msra.gmra.mxu2 %vm481_vm0, %v2972_v57  ;;  %3639 = vmatpush.msra.mxu3 %v6340_v41 }
0x12f3   :  { %3560 = vmatpush.msra.mxu2 %v6341_v35 }
0x12f4   :  { %3640 = vmatpush.msra.mxu3 %v6342_v18 }
0x12f5   :  { %3561 = vmatpush.msra.mxu2 %v6343_v11 }
0x12f6   :  { %3641 = vmatpush.msra.mxu3 %v6344_v13 }
0x12f7   :  { %3562 = vmatpush.msra.mxu2 %v6345_v10 }
0x12f8   :  { %3642 = vmatpush.msra.mxu3 %v6346_v17 }
0x12f9   :  { %v2970_v2 = vpop.permute.xlu0 %2969  ;;  %v2974_v62 = vpop.permute.xlu1 %2973  ;;  %3563 = vmatpush.msra.mxu2 %v6347_v63 }
0x12fa   :  { %5776 = vmatmul.msk.f32.gmra.mxu1 %vm481_vm0, %v2970_v2  ;;  %5782 = vmatmul.msk.f32.gmra.mxu2 %vm481_vm0, %v2974_v62 }
0x12fb   :  { %3564 = vmatpush.msra.mxu2 %v6348_v6  ;;  %3643 = vmatpush.msra.mxu3 %v6349_v45 }
0x12fc   :  { %v3004_v14 = vpop.f32.mrf.mxu0 }
0x12fd   :  { %v3005_v34 = vadd.f32 %v3004_v14, %v9207_v42 }
0x12ff   :  { %v3118_v38 = vsel %vm1075_vm2, %v3005_v34, -inf }
0x1300   :  { %3119 = vmax.xlane.f32.xlu2 %v3118_v38 }
0x1301   :  { %v2982_v36 = vpop.permute.xlu0 %2981  ;;  %v2978_v23 = vpop.permute.xlu1 %2977 }
0x1302   :  { %5788 = vmatmul.msk.f32.gmra.mxu3 %vm481_vm0, %v2978_v23  ;;  %5794 = vmatmul.msk.f32.gmra.mxu0 %vm481_vm0, %v2982_v36 }
0x1305   :  { %v3007_v8 = vpop.f32.mrf.mxu0 }
0x1306   :  { %v3008_v57 = vadd.f32 %v3007_v8, %v9208_v61 }
0x1308   :  { %v3121_v41 = vsel %vm9209_vm10, %v3008_v57, -inf  ;;  %vm9217_vm10 = vmmov %vm9214_vm3 }
0x1309   :  { %3122 = vmax.xlane.f32.xlu0 %v3121_v41 }
0x1356   :  { %v3031_v35 = vpop.f32.mrf.mxu1 }
0x1357   :  { %v3032_v18 = vadd.f32 %v3031_v35, %v9207_v42 }
0x1359   :  { %v3124_v11 = vsel %vm1075_vm2, %v3032_v18, -inf }
0x135a   :  { %3125 = vmax.xlane.f32.xlu1 %v3124_v11 }
0x135e   :  { %v3112_v38 = vpop.f32.mrf.mxu0 }
0x135f   :  { %v3113_v11 = vadd.f32 %v3112_v38, %v9207_v42 }
0x1373   :  { %v3120_v2 = vpop.xlane.xlu2 %3119 }
0x1374   :  { %v3085_v13 = vpop.f32.mrf.mxu3  ;;  %v3148_v36 = vsub.f32 %v3005_v34, %v3120_v2 }
0x1375   :  { %v3058_v10 = vpop.f32.mrf.mxu2  ;;  %v3086_v17 = vadd.f32 %v3085_v13, %v9207_v42 }
0x1376   :  { %v3059_v62 = vadd.f32 %v3058_v10, %v9207_v42  ;;  %v3158_v41 = vmul.f32 1.442695, %v3148_v36 }
0x1377   :  { %v3034_v63 = vpop.f32.mrf.mxu1  ;;  %v3136_v6 = vsel %vm1075_vm2, %v3086_v17, -inf }
0x1378   :  { %v3035_v45 = vadd.f32 %v3034_v63, %v9208_v61  ;;  %3137 = vmax.xlane.f32.xlu0 %v3136_v6  ;;  %v3130_v14 = vsel %vm1075_vm2, %v3059_v62, -inf  ;;  %6150 = vpow2.f32 %v3158_v41  ;;  %v3142_v6 = vsel %vm1075_vm2, %v3113_v11, -inf }
0x1379   :  { %3131 = vmax.xlane.f32.xlu2 %v3130_v14 }
0x137a   :  { %v3127_v23 = vsel %vm9210_vm11, %v3035_v45, -inf  ;;  %vm9218_vm11 = vmmov %vm9214_vm3 }
0x137b   :  { %3128 = vmax.xlane.f32.xlu1 %v3127_v23 }
0x137c   :  { %v3123_v8 = vpop.xlane.xlu0 %3122 }
0x137d   :  { %v3061_v35 = vpop.f32.mrf.mxu2  ;;  %v3149_v10 = vsub.f32 %v3008_v57, %v3123_v8 }
0x137e   :  { %v3062_v13 = vadd.f32 %v3061_v35, %v9208_v61  ;;  %v8056_v23 = vpop.eup %6150 }
0x137f   :  { %v3115_v63 = vpop.f32.mrf.mxu0  ;;  %v3160_v34 = vmul.f32 1.442695, %v3149_v10 }
0x1380   :  { %v3133_v7 = vsel %vm9211_vm12, %v3062_v13, -inf  ;;  %v3116_v2 = vadd.f32 %v3115_v63, %v9208_v61 }
0x1381   :  { %3134 = vmax.xlane.f32.xlu2 %v3133_v7  ;;  %6152 = vpow2.f32 %v3160_v34  ;;  %v3178_v7 = vsel %vm1075_vm2, %v8056_v23, 0.0 }
0x1382   :  { %v3145_v57 = vsel %vm9213_vm8, %v3116_v2, -inf }
0x1383   :  { %3143 = vmax.xlane.f32.xlu1 %v3142_v6 }
0x1385   :  { %v3088_v14 = vpop.f32.mrf.mxu3 }
0x1386   :  { %v3089_v36 = vadd.f32 %v3088_v14, %v9208_v61 }
0x1387   :  { %v8062_v8 = vpop.eup %6152 }
0x1388   :  { %v3139_v38 = vsel %vm9212_vm13, %v3089_v36, -inf  ;;  %v3181_v41 = vsel %vm9214_vm3, %v8062_v8, 0.0 }
0x1389   :  { %3140 = vmax.xlane.f32.xlu0 %v3139_v38  ;;  %3146 = vmax.xlane.f32.xlu2 %v3145_v57 }
0x138b   :  { %3179 = vadd.xlane.f32.xlu1 %v3178_v7 }
0x1391   :  { %3182 = vadd.xlane.f32.xlu2 %v3181_v41 }
0x13cd   :  { %v3126_v35 = vpop.xlane.xlu1 %3125 }
0x13ce   :  { %v3150_v10 = vsub.f32 %v3032_v18, %v3126_v35 }
0x13d0   :  { %v3162_v63 = vmul.f32 1.442695, %v3150_v10 }
0x13d2   :  { %6154 = vpow2.f32 %v3162_v63 }
0x13d8   :  { %v8066_v6 = vpop.eup %6154 }
0x13d9   :  { %v3184_v34 = vsel %vm1075_vm2, %v8066_v6, 0.0 }
0x13da   :  { %3185 = vadd.xlane.f32.xlu0 %v3184_v34 }
0x13eb   :  { %v3138_v14 = vpop.xlane.xlu0 %3137 }
0x13ec   :  { %v3154_v38 = vsub.f32 %v3086_v17, %v3138_v14  ;;  %v3132_v57 = vpop.xlane.xlu2 %3131 }
0x13ed   :  { %v3152_v7 = vsub.f32 %v3059_v62, %v3132_v57 }
0x13ee   :  { %v3170_v61 = vmul.f32 1.442695, %v3154_v38  ;;  %v3129_v42 = vpop.xlane.xlu1 %3128 }
0x13ef   :  { %v3166_v12 = vmul.f32 1.442695, %v3152_v7  ;;  %v3151_v28 = vsub.f32 %v3035_v45, %v3129_v42 }
0x13f0   :  { %6156 = vpow2.f32 %v3170_v61 }
0x13f1   :  { %6158 = vpow2.f32 %v3166_v12  ;;  %v3164_v41 = vmul.f32 1.442695, %v3151_v28 }
0x13f3   :  { %6160 = vpow2.f32 %v3164_v41 }
0x13f4   :  { %v3135_v18 = vpop.xlane.xlu2 %3134 }
0x13f5   :  { %v3153_v35 = vsub.f32 %v3062_v13, %v3135_v18 }
0x13f6   :  { %v8070_v10 = vpop.eup %6156  ;;  %v3144_v63 = vpop.xlane.xlu1 %3143 }
0x13f7   :  { %v8072_v55 = vpop.eup %6158  ;;  %v3168_v34 = vmul.f32 1.442695, %v3153_v35  ;;  %v3156_v24 = vsub.f32 %v3113_v11, %v3144_v63  ;;  %v3196_v17 = vsel %vm1075_vm2, %v8070_v10, 0.0 }
0x13f8   :  { %3197 = vadd.xlane.f32.xlu2 %v3196_v17  ;;  %v3190_v42 = vsel %vm1075_vm2, %v8072_v55, 0.0 }
0x13f9   :  { %v8078_v61 = vpop.eup %6160  ;;  %6162 = vpow2.f32 %v3168_v34  ;;  %v3174_v28 = vmul.f32 1.442695, %v3156_v24  ;;  %3191 = vadd.xlane.f32.xlu1 %v3190_v42 }
0x13fa   :  { %v3187_v12 = vsel %vm9215_vm9, %v8078_v61, 0.0 }
0x13fb   :  { %6164 = vpow2.f32 %v3174_v28  ;;  %3188 = vadd.xlane.f32.xlu0 %v3187_v12 }
0x13fc   :  { %v3141_v62 = vpop.xlane.xlu0 %3140  ;;  %v3147_v45 = vpop.xlane.xlu2 %3146 }
0x13fd   :  { %v3155_v11 = vsub.f32 %v3089_v36, %v3141_v62  ;;  %v3157_v13 = vsub.f32 %v3116_v2, %v3147_v45 }
0x13fe   :  { %v3180_v14 = vpop.xlane.xlu1 %3179 }
0x13ff   :  { %v8082_v38 = vpop.eup %6162  ;;  %v3172_v57 = vmul.f32 1.442695, %v3155_v11  ;;  %v3176_v7 = vmul.f32 1.442695, %v3157_v13  ;;  %6166 = vrcp.f32 %v3180_v14  ;;  %v3219_v28 = vand.u32 2147483648, %v3180_v14 }
0x1400   :  { %v3193_v41 = vsel %vm9216_vm4, %v8082_v38, 0.0  ;;  %v3217_v45 = vand.u32 2147483647, %v3180_v14  ;;  %vm3213_vm13 = vweird.f32 %v3180_v14 }
0x1401   :  { %v8086_v24 = vpop.eup %6164  ;;  %6168 = vpow2.f32 %v3172_v57  ;;  %3194 = vadd.xlane.f32.xlu1 %v3193_v41 }
0x1402   :  { %6170 = vpow2.f32 %v3176_v7  ;;  %v3202_v18 = vsel %vm1075_vm2, %v8086_v24, 0.0  ;;  %v3220_v7 = vor.u32 1.1754944e-38, %v3219_v28  ;;  %vm3218_vm3 = vcmp.eq.f32.partialorder %v3217_v45, 8.507059e+37 }
0x1403   :  { %3203 = vadd.xlane.f32.xlu0 %v3202_v18 }
0x1404   :  { %v3183_v36 = vpop.xlane.xlu2 %3182 }
0x1405   :  { %v6167_v2 = vpop.eup %6166  ;;  %6172 = vrcp.f32 %v3183_v36  ;;  %v3234_v16 = vand.u32 2147483648, %v3183_v36  ;;  %v3232_v25 = vand.u32 2147483647, %v3183_v36  ;;  %vm3228_vm4 = vweird.f32 %v3183_v36 }
0x1406   :  { %v3209_v35 = vmul.f32 %v6167_v2, %v3180_v14  ;;  %vm3214_vm12 = vweird.f32 %v6167_v2 }
0x1407   :  { %v8090_v63 = vpop.eup %6168  ;;  %vm3215_vm8 = vmor %vm3213_vm13, %vm3214_vm12 }
0x1408   :  { %v8092_v34 = vpop.eup %6170  ;;  %v3210_v17 = vsub.f32 1.0, %v3209_v35  ;;  %v3199_v42 = vsel %vm9217_vm10, %v8090_v63, 0.0 }
0x1409   :  { %3200 = vadd.xlane.f32.xlu2 %v3199_v42  ;;  %v3205_v12 = vsel %vm9218_vm11, %v8092_v34, 0.0  ;;  %vm3233_vm11 = vcmp.eq.f32.partialorder %v3232_v25, 8.507059e+37 }
0x140a   :  { %v3211_v62 = vmul.f32 %v6167_v2, %v3210_v17  ;;  %3206 = vadd.xlane.f32.xlu1 %v3205_v12  ;;  %v3235_v12 = vor.u32 1.1754944e-38, %v3234_v16 }
0x140b   :  { %v6173_v11 = vpop.eup %6172 }
0x140c   :  { %v3212_v13 = vadd.f32 %v6167_v2, %v3211_v62  ;;  %v3224_v57 = vmul.f32 %v6173_v11, %v3183_v36  ;;  %vm3229_vm9 = vweird.f32 %v6173_v11 }
0x140d   :  { %vm3230_vm10 = vmor %vm3228_vm4, %vm3229_vm9 }
0x140e   :  { %v3216_v41 = vsel %vm3215_vm8, %v6167_v2, %v3212_v13  ;;  %v3225_v18 = vsub.f32 1.0, %v3224_v57 }
0x140f   :  { %v3221_v35 = vsel %vm3218_vm3, %v3220_v7, %v3216_v41  ;;  %v6350_v41 = vld [vmem:[%s9142_s23 + $0x20] sm:$0xff] }
0x1410   :  { %v3222_v42 = vmul.f32 %v8056_v23, %v3221_v35  ;;  %v3226_v60 = vmul.f32 %v6173_v11, %v3225_v18  ;;  %v6351_v18 = vld [vmem:[%s9142_s23 + $0x18] sm:$0xff]  ;;  %v6352_v35 = vld [vmem:[%s9142_s23 + $0x10] sm:$0xff] }
0x1412   :  { %v3227_v17 = vadd.f32 %v6173_v11, %v3226_v60  ;;  %5795 = vmatmul.msk.f32.vlgmr.msra.gmra.mxu1 %vm1075_vm2, %v3222_v42  ;;  %v6354_v42 = vld [vmem:[%s9142_s23] sm:$0xff] }
0x1414   :  { %v3231_v14 = vsel %vm3230_vm10, %v6173_v11, %v3227_v17 }
0x1415   :  { %v3236_v62 = vsel %vm3233_vm11, %v3235_v12, %v3231_v14 }
0x1416   :  { %v3237_v2 = vmul.f32 %v8062_v8, %v3236_v62 }
0x141a   :  { %5796 = vmatmul.msk.f32.gmra.mxu1 %vm1075_vm2, %v3237_v2 }
0x144d   :  { %v3186_v28 = vpop.xlane.xlu0 %3185 }
0x144e   :  { %6174 = vrcp.f32 %v3186_v28  ;;  %v3249_v57 = vand.u32 2147483648, %v3186_v28  ;;  %v3247_v60 = vand.u32 2147483647, %v3186_v28  ;;  %vm3243_vm13 = vweird.f32 %v3186_v28 }
0x1450   :  { %v3250_v16 = vor.u32 1.1754944e-38, %v3249_v57  ;;  %vm3248_vm3 = vcmp.eq.f32.partialorder %v3247_v60, 8.507059e+37 }
0x1454   :  { %v6175_v45 = vpop.eup %6174 }
0x1455   :  { %v3239_v23 = vmul.f32 %v6175_v45, %v3186_v28  ;;  %vm3244_vm12 = vweird.f32 %v6175_v45 }
0x1456   :  { %vm3245_vm8 = vmor %vm3243_vm13, %vm3244_vm12 }
0x1457   :  { %v3240_v13 = vsub.f32 1.0, %v3239_v23 }
0x1459   :  { %v3241_v7 = vmul.f32 %v6175_v45, %v3240_v13 }
0x145b   :  { %v3242_v36 = vadd.f32 %v6175_v45, %v3241_v7 }
0x145d   :  { %v3246_v25 = vsel %vm3245_vm8, %v6175_v45, %v3242_v36 }
0x145e   :  { %v3251_v11 = vsel %vm3248_vm3, %v3250_v16, %v3246_v25 }
0x145f   :  { %v3252_v8 = vmul.f32 %v8066_v6, %v3251_v11  ;;  %v6353_v6 = vld [vmem:[%s9142_s23 + $0x8] sm:$0xff] }
0x1461   :  { %5797 = vmatmul.msk.f32.vlgmr.msrb.gmra.mxu2 %vm1075_vm2, %v3252_v8 }
0x1462   :  { %3849 = vmatpush.msrb.mxu2 %v6350_v41 }
0x1464   :  { %3850 = vmatpush.msrb.mxu2 %v6351_v18 }
0x1466   :  { %3851 = vmatpush.msrb.mxu2 %v6352_v35 }
0x1468   :  { %3852 = vmatpush.msrb.mxu2 %v6353_v6 }
0x146a   :  { %3853 = vmatpush.msrb.mxu2 %v6354_v42 }
0x146b   :  { %v3198_v17 = vpop.xlane.xlu2 %3197 }
0x146c   :  { %v3192_v12 = vpop.xlane.xlu1 %3191  ;;  %6176 = vrcp.f32 %v3198_v17  ;;  %v3307_v7 = vand.u32 2147483647, %v3198_v17  ;;  %v3309_v16 = vand.u32 2147483648, %v3198_v17  ;;  %vm3303_vm11 = vweird.f32 %v3198_v17 }
0x146d   :  { %6178 = vrcp.f32 %v3192_v12  ;;  %v3277_v36 = vand.u32 2147483647, %v3192_v12  ;;  %v3279_v8 = vand.u32 2147483648, %v3192_v12  ;;  %vm3273_vm10 = vweird.f32 %v3192_v12 }
0x146e   :  { %v3189_v14 = vpop.xlane.xlu0 %3188  ;;  %vm3308_vm12 = vcmp.eq.f32.partialorder %v3307_v7, 8.507059e+37 }
0x146f   :  { %6180 = vrcp.f32 %v3189_v14  ;;  %vm8128_vm13 = vcmp.eq.f32.partialorder %v3277_v36, 8.507059e+37  ;;  %v3280_v27 = vor.u32 1.1754944e-38, %v3279_v8  ;;  %v3262_v46 = vand.u32 2147483647, %v3189_v14 }
0x1472   :  { %v6177_v62 = vpop.eup %6176 }
0x1473   :  { %v6179_v2 = vpop.eup %6178  ;;  %v3299_v28 = vmul.f32 %v6177_v62, %v3198_v17  ;;  %vm3304_vm9 = vweird.f32 %v6177_v62 }
0x1474   :  { %v3269_v45 = vmul.f32 %v6179_v2, %v3192_v12  ;;  %v8119_v23 = vpop.xlane.xlu1 %3194  ;;  %vm3274_vm4 = vweird.f32 %v6179_v2  ;;  %vm3305_vm8 = vmor %vm3303_vm11, %vm3304_vm9  ;;  %vm3258_vm9 = vweird.f32 %v3189_v14 }
0x1475   :  { %v8121_v13 = vpop.eup %6180  ;;  %v3300_v57 = vsub.f32 1.0, %v3299_v28  ;;  %6182 = vrcp.f32 %v8119_v23  ;;  %vm3275_vm3 = vmor %vm3273_vm10, %vm3274_vm4  ;;  %vm8152_vm4 = vcmp.eq.f32.partialorder %v3262_v46, 8.507059e+37  ;;  %v6355_v28 = vld [vmem:[%s9142_s23 + $0x70] sm:$0xff] }
0x1476   :  { %v3270_v60 = vsub.f32 1.0, %v3269_v45  ;;  %v3254_v25 = vmul.f32 %v8121_v13, %v3189_v14  ;;  %v8125_v11 = vpop.xlane.xlu0 %3203  ;;  %v3310_v45 = vor.u32 1.1754944e-38, %v3309_v16  ;;  %vm3259_vm6 = vweird.f32 %v8121_v13 }
0x1477   :  { %v3301_v41 = vmul.f32 %v6177_v62, %v3300_v57  ;;  %6184 = vrcp.f32 %v8125_v11  ;;  %vm8162_vm10 = vmor %vm3258_vm9, %vm3259_vm6 }
0x1478   :  { %v3271_v18 = vmul.f32 %v6179_v2, %v3270_v60  ;;  %v3255_v35 = vsub.f32 1.0, %v3254_v25  ;;  %v3264_v25 = vand.u32 2147483648, %v3189_v14 }
0x1479   :  { %v3302_v6 = vadd.f32 %v6177_v62, %v3301_v41 }
0x147a   :  { %v3272_v42 = vadd.f32 %v6179_v2, %v3271_v18  ;;  %v3256_v3 = vmul.f32 %v8121_v13, %v3255_v35 }
0x147b   :  { %v8133_v57 = vpop.eup %6182  ;;  %v3306_v60 = vsel %vm3305_vm8, %v6177_v62, %v3302_v6 }
0x147c   :  { %v3276_v12 = vsel %vm3275_vm3, %v6179_v2, %v3272_v42  ;;  %v3311_v41 = vsel %vm3308_vm12, %v3310_v45, %v3306_v60  ;;  %v3284_v17 = vmul.f32 %v8133_v57, %v8119_v23  ;;  %v8138_v7 = vpop.xlane.xlu2 %3200  ;;  %v3257_v62 = vadd.f32 %v8121_v13, %v3256_v3 }
0x147d   :  { %v8140_v36 = vpop.eup %6184  ;;  %v3281_v16 = vsel %vm8128_vm13, %v3280_v27, %v3276_v12  ;;  %v3312_v18 = vmul.f32 %v8070_v10, %v3311_v41  ;;  %v8146_v8 = vpop.xlane.xlu1 %3206  ;;  %6186 = vrcp.f32 %v8138_v7  ;;  %v3292_v27 = vand.u32 2147483647, %v8119_v23  ;;  %v6356_v12 = vld [vmem:[%s9142_s23 + $0x48] sm:$0xff] }
0x147e   :  { %v3282_v2 = vmul.f32 %v8072_v55, %v3281_v16  ;;  %v3285_v35 = vsub.f32 1.0, %v3284_v17  ;;  %v3329_v6 = vmul.f32 %v8140_v36, %v8125_v11  ;;  %v3294_v10 = vand.u32 2147483648, %v8119_v23  ;;  %v6357_v16 = vld [vmem:[%s9142_s23 + $0x68] sm:$0xff] }
0x147f   :  { %6188 = vrcp.f32 %v8146_v8  ;;  %5801 = vmatmul.msk.f32.vlgmr.msrb.gmra.mxu0 %vm1075_vm2, %v3312_v18  ;;  %v3265_v55 = vor.u32 1.1754944e-38, %v3264_v25  ;;  %vm3289_vm11 = vweird.f32 %v8133_v57  ;;  %vm3288_vm12 = vweird.f32 %v8119_v23 }
0x1480   :  { %v3286_v46 = vmul.f32 %v8133_v57, %v3285_v35  ;;  %v3330_v14 = vsub.f32 1.0, %v3329_v6  ;;  %5799 = vmatmul.msk.f32.vlgmr.msrb.gmra.mxu3 %vm1075_vm2, %v3282_v2  ;;  %3931 = vmatpush.msrb.mxu0 %v6355_v28  ;;  %v3337_v45 = vand.u32 2147483647, %v8125_v11  ;;  %v3339_v60 = vand.u32 2147483648, %v8125_v11  ;;  %vm8191_vm13 = vmor %vm3288_vm12, %vm3289_vm11  ;;  %v6358_v35 = vld [vmem:[%s9142_s23 + $0x40] sm:$0xff]  ;;  %v6361_v28 = vld [vmem:[%s9142_s23 + $0x58] sm:$0xff] }
0x1481   :  { %v3261_v25 = vsel %vm8162_vm10, %v8121_v13, %v3257_v62  ;;  %3890 = vmatpush.msrb.mxu3 %v6356_v12  ;;  %vm3334_vm6 = vweird.f32 %v8140_v36  ;;  %vm3293_vm8 = vcmp.eq.f32.partialorder %v3292_v27, 8.507059e+37  ;;  %v3295_v62 = vor.u32 1.1754944e-38, %v3294_v10  ;;  %v6359_v27 = vld [vmem:[%s9142_s23 + $0x60] sm:$0xff] }
0x1482   :  { %v3287_v41 = vadd.f32 %v8133_v57, %v3286_v46  ;;  %v3331_v17 = vmul.f32 %v8140_v36, %v3330_v14  ;;  %v3266_v23 = vsel %vm8152_vm4, %v3265_v55, %v3261_v25  ;;  %3932 = vmatpush.msrb.mxu0 %v6357_v16  ;;  %vm3333_vm3 = vweird.f32 %v8125_v11  ;;  %v6360_v11 = vld [vmem:[%s9142_s23 + $0x38] sm:$0xff]  ;;  %v6363_v16 = vld [vmem:[%s9142_s23 + $0x50] sm:$0xff] }
0x1483   :  { %v6187_v13 = vpop.eup %6186  ;;  %v3267_v2 = vmul.f32 %v8078_v61, %v3266_v23  ;;  %3891 = vmatpush.msrb.mxu3 %v6358_v35  ;;  %vm3335_vm9 = vmor %vm3333_vm3, %vm3334_vm6  ;;  %v3340_v10 = vor.u32 1.1754944e-38, %v3339_v60  ;;  %vm3338_vm4 = vcmp.eq.f32.partialorder %v3337_v45, 8.507059e+37  ;;  %v3322_v25 = vand.u32 2147483647, %v8138_v7 }
0x1484   :  { %v3332_v6 = vadd.f32 %v8140_v36, %v3331_v17  ;;  %v3314_v42 = vmul.f32 %v6187_v13, %v8138_v7  ;;  %v3291_v3 = vsel %vm8191_vm13, %v8133_v57, %v3287_v41  ;;  %3933 = vmatpush.msrb.mxu0 %v6359_v27  ;;  %v3324_v12 = vand.u32 2147483648, %v8138_v7 }
0x1485   :  { %v6189_v61 = vpop.eup %6188  ;;  %5798 = vmatmul.msk.f32.gmra.mxu2 %vm1075_vm2, %v3267_v2  ;;  %v3296_v55 = vsel %vm3293_vm8, %v3295_v62, %v3291_v3  ;;  %3892 = vmatpush.msrb.mxu3 %v6360_v11  ;;  %vm3319_vm10 = vweird.f32 %v6187_v13  ;;  %v3352_v18 = vand.u32 2147483647, %v8146_v8  ;;  %v3354_v62 = vand.u32 2147483648, %v8146_v8 }
0x1486   :  { %v3336_v57 = vsel %vm3335_vm9, %v8140_v36, %v3332_v6  ;;  %v3344_v46 = vmul.f32 %v6189_v61, %v8146_v8  ;;  %v3315_v14 = vsub.f32 1.0, %v3314_v42  ;;  %3934 = vmatpush.msrb.mxu0 %v6361_v28  ;;  %v3297_v41 = vmul.f32 %v8082_v38, %v3296_v55  ;;  %v6362_v36 = vld [vmem:[%s9142_s23 + $0x30] sm:$0xff] }
0x1487   :  { %v3341_v60 = vsel %vm3338_vm4, %v3340_v10, %v3336_v57  ;;  %3893 = vmatpush.msrb.mxu3 %v6362_v36  ;;  %vm3349_vm11 = vweird.f32 %v6189_v61  ;;  %vm3318_vm12 = vweird.f32 %v8138_v7  ;;  %v3325_v35 = vor.u32 1.1754944e-38, %v3324_v12 }
0x1488   :  { %v3342_v45 = vmul.f32 %v8086_v24, %v3341_v60  ;;  %v3345_v17 = vsub.f32 1.0, %v3344_v46  ;;  %v3316_v23 = vmul.f32 %v6187_v13, %v3315_v14  ;;  %3935 = vmatpush.msrb.mxu0 %v6363_v16  ;;  %5800 = vmatmul.msk.f32.gmra.mxu3 %vm1075_vm2, %v3297_v41  ;;  %v6364_v24 = vld [vmem:[%s9142_s23 + $0x28] sm:$0xff]  ;;  %vm3320_vm6 = vmor %vm3318_vm12, %vm3319_vm10  ;;  %vm3348_vm13 = vweird.f32 %v8146_v8 }
0x1489   :  { %3894 = vmatpush.msrb.mxu3 %v6364_v24  ;;  %vm3323_vm8 = vcmp.eq.f32.partialorder %v3322_v25, 8.507059e+37  ;;  %vm3350_vm3 = vmor %vm3348_vm13, %vm3349_vm11  ;;  %v3355_v3 = vor.u32 1.1754944e-38, %v3354_v62  ;;  %vm3353_vm9 = vcmp.eq.f32.partialorder %v3352_v18, 8.507059e+37 }
0x148a   :  { %v3346_v38 = vmul.f32 %v6189_v61, %v3345_v17  ;;  %v3317_v2 = vadd.f32 %v6187_v13, %v3316_v23  ;;  %5803 = vmatmul.msk.f32.vlgmr.msrb.gmra.mxu1 %vm1075_vm2, %v3342_v45 }
0x148c   :  { %v3347_v6 = vadd.f32 %v6189_v61, %v3346_v38  ;;  %v3321_v42 = vsel %vm3320_vm6, %v6187_v13, %v3317_v2 }
0x148d   :  { %v3326_v27 = vsel %vm3323_vm8, %v3325_v35, %v3321_v42 }
0x148e   :  { %v3327_v7 = vmul.f32 %v8090_v63, %v3326_v27  ;;  %v3351_v10 = vsel %vm3350_vm3, %v6189_v61, %v3347_v6  ;;  %v6365_v27 = vld [vmem:[%s9082_s8 + $0x1] ss:$0 sm:$0xff] }
0x148f   :  { %v3356_v55 = vsel %vm3353_vm9, %v3355_v3, %v3351_v10  ;;  %v3381_v8 = vpop.f32.mrf.mxu1 }
0x1490   :  { %5802 = vmatmul.msk.f32.gmra.mxu0 %vm1075_vm2, %v3327_v7  ;;  %v3357_v11 = vmul.f32 %v8092_v34, %v3356_v55 }
0x1492   :  { %5804 = vmatmul.msk.f32.gmra.mxu1 %vm1075_vm2, %v3357_v11 }
0x1497   :  { %v3384_v13 = vpop.f32.mrf.mxu1 }
0x14e4   :  { %v3410_v57 = vpop.f32.mrf.mxu2 }
0x14e5   :  { %3505 = vrot.lane.b32.xlu0 %v3410_v57, %s6429_s21 }
0x14fc   :  { %v3468_v46 = vpop.f32.mrf.mxu0 }
0x14fd   :  { %3521 = vrot.lane.b32.xlu1 %v3468_v46, %s6430_s22 }
0x1503   :  { %v3439_v14 = vpop.f32.mrf.mxu3 }
0x1504   :  { %3513 = vrot.lane.b32.xlu2 %v3439_v14, %s6428_s20 }
0x1507   :  { %v3497_v63 = vpop.f32.mrf.mxu1 }
0x1508   :  { %3529 = vrot.lane.b32.xlu0 %v3497_v63, %s9176_s4  ;;  %v3413_v61 = vpop.f32.mrf.mxu2 }
0x150b   :  { %v3442_v28 = vpop.f32.mrf.mxu3 }
0x150c   :  { %3507 = vrot.lane.b32.xlu2 %v3413_v61, %s6429_s21 }
0x150d   :  { %v3471_v34 = vpop.f32.mrf.mxu0 }
0x150e   :  { %3523 = vrot.lane.b32.xlu1 %v3471_v34, %s6430_s22 }
0x150f   :  { %v3500_v60 = vpop.f32.mrf.mxu1 }
0x1510   :  { %3515 = vrot.lane.b32.xlu0 %v3442_v28, %s6428_s20 }
0x1514   :  { %3531 = vrot.lane.b32.xlu2 %v3500_v60, %s9176_s4 }
0x1557   :  { %v3506_v12 = vpop.permute.xlu0 %3505 }
0x1558   :  { %v3535_v36 = vsel %vm481_vm0, %v3381_v8, %v3506_v12 }
0x155e   :  { %v3514_v25 = vpop.permute.xlu2 %3513 }
0x155f   :  { %v3537_v45 = vsel %vm1069_vm14, %v3535_v36, %v3514_v25 }
0x1566   :  { %v3508_v17 = vpop.permute.xlu2 %3507 }
0x1567   :  { %v3536_v62 = vsel %vm481_vm0, %v3384_v13, %v3508_v17 }
0x156e   :  { %v3532_v35 = vpop.permute.xlu2 %3531 }
0x156f   :  { %v3522_v41 = vpop.permute.xlu1 %3521 }
0x1570   :  { %v3539_v23 = vsel %vm1072_vm15, %v3537_v45, %v3522_v41 }
0x157a   :  { %v3530_v16 = vpop.permute.xlu0 %3529 }
0x157b   :  { %v3541_v18 = vsel %vm1075_vm2, %v3539_v23, %v3530_v16 }
0x157c   :  { %5805 = vmatmul.msk.f32.vlgmr.msra.gmra.mxu2 %vm180_vm1, %v3541_v18 }
0x1580   :  { %v3524_v2 = vpop.permute.xlu1 %3523 }
0x1582   :  { %v3516_v38 = vpop.permute.xlu0 %3515 }
0x1583   :  { %v3538_v24 = vsel %vm1069_vm14, %v3536_v62, %v3516_v38 }
0x1584   :  { %v3540_v6 = vsel %vm1072_vm15, %v3538_v24, %v3524_v2 }
0x1585   :  { %v3542_v42 = vsel %vm1075_vm2, %v3540_v6, %v3532_v35 }
0x1586   :  { %5806 = vmatmul.msk.f32.gmra.mxu2 %vm180_vm1, %v3542_v42 }
0x15ff   :  { %v3566_v3 = vpop.f32.mrf.mxu2 }
0x1600   :  { %v3567_v7 = vadd.f32 %v6365_v27, %v3566_v3 }
0x1602   :  { %v3572_v10 = vadd.f32 %v3567_v7, %v7937_v9  ;;  %v6366_v7 = vld [vmem:[%s9084_s9 + $0x2] ss:$0 sm:$0xff] }
0x1604   :  { %v3574_v55 = vsel %vm180_vm1, %v3572_v10, 0.0 }
0x1605   :  { %3575 = vadd.xlane.f32.xlu0 %v3574_v55 }
0x1609   :  { %v3569_v11 = vpop.f32.mrf.mxu2 }
0x160a   :  { %v3570_v57 = vadd.f32 %v6365_v27, %v3569_v11  ;;  %v6367_v11 = vld [vmem:[%s9084_s9 + $0x3] ss:$0 sm:$0xff] }
0x160c   :  { %v3573_v8 = vadd.f32 %v3570_v57, %v7947_v15 }
0x160e   :  { %v3577_v46 = vsel %vm1115_vm5, %v3573_v8, 0.0 }
0x160f   :  { %3578 = vadd.xlane.f32.xlu1 %v3577_v46 }
0x1678   :  { %v3576_v13 = vpop.xlane.xlu0 %3575 }
0x1679   :  { %v3580_v14 = vmul.f32 %v3576_v13, %v9194_v54 }
0x167b   :  { %v3582_v63 = vsub.f32 %v3572_v10, %v3580_v14 }
0x167d   :  { %v3584_v61 = vmul.f32 %v3582_v63, %v3582_v63 }
0x167f   :  { %v3586_v34 = vsel %vm180_vm1, %v3584_v61, 0.0 }
0x1680   :  { %3587 = vadd.xlane.f32.xlu2 %v3586_v34 }
0x1682   :  { %v3579_v28 = vpop.xlane.xlu1 %3578 }
0x1683   :  { %v3581_v9 = vmul.f32 %v3579_v28, %v9194_v54  ;;  %v6368_v28 = vld [vmem:[%s9086_s11] ss:$0 sm:$0xff] }
0x1685   :  { %v3583_v60 = vsub.f32 %v3573_v8, %v3581_v9 }
0x1687   :  { %v3585_v25 = vmul.f32 %v3583_v60, %v3583_v60 }
0x1689   :  { %v3589_v12 = vsel %vm1115_vm5, %v3585_v25, 0.0 }
0x168a   :  { %3590 = vadd.xlane.f32.xlu0 %v3589_v12 }
0x16f3   :  { %v3588_v15 = vpop.xlane.xlu2 %3587 }
0x16f4   :  { %v3592_v41 = vmul.f32 %v3588_v15, %v9194_v54 }
0x16f6   :  { %v3594_v36 = vadd.f32 1e-05, %v3592_v41 }
0x16f8   :  { %6190 = vrsqrt.f32 %v3594_v36  ;;  %vm3602_vm10 = vweird.f32 %v3594_v36 }
0x16fd   :  { %v3591_v45 = vpop.xlane.xlu0 %3590 }
0x16fe   :  { %v6191_v17 = vpop.eup %6190  ;;  %v3593_v23 = vmul.f32 %v3591_v45, %v9194_v54 }
0x16ff   :  { %v3597_v16 = vmul.f32 %v6191_v17, %v3594_v36  ;;  %vm3603_vm4 = vweird.f32 %v6191_v17 }
0x1700   :  { %v3595_v18 = vadd.f32 1e-05, %v3593_v23  ;;  %vm3604_vm11 = vmor %vm3602_vm10, %vm3603_vm4 }
0x1701   :  { %v3598_v62 = vmul.f32 %v6191_v17, %v3597_v16 }
0x1702   :  { %6192 = vrsqrt.f32 %v3595_v18  ;;  %vm3612_vm6 = vweird.f32 %v3595_v18 }
0x1703   :  { %v3599_v38 = vmul.f32 0.5, %v3598_v62 }
0x1705   :  { %v3600_v2 = vsub.f32 1.5, %v3599_v38 }
0x1707   :  { %v3601_v24 = vmul.f32 %v6191_v17, %v3600_v2 }
0x1708   :  { %v6193_v35 = vpop.eup %6192 }
0x1709   :  { %v3605_v6 = vsel %vm3604_vm11, %v6191_v17, %v3601_v24  ;;  %v3607_v42 = vmul.f32 %v6193_v35, %v3595_v18  ;;  %vm3613_vm12 = vweird.f32 %v6193_v35 }
0x170a   :  { %v3616_v3 = vmul.f32 %v3605_v6, %v3582_v63  ;;  %vm3614_vm13 = vmor %vm3612_vm6, %vm3613_vm12 }
0x170b   :  { %v3608_v27 = vmul.f32 %v6193_v35, %v3607_v42 }
0x170c   :  { %v3618_v10 = vmul.f32 %v6366_v7, %v3616_v3 }
0x170d   :  { %v3609_v55 = vmul.f32 0.5, %v3608_v27 }
0x170e   :  { %v3620_v57 = vadd.f32 %v6367_v11, %v3618_v10 }
0x170f   :  { %v3610_v8 = vsub.f32 1.5, %v3609_v55 }
0x1710   :  { %5807 = vmatmul.msk.f32.vlgmr.msra.gmra.mxu3 %vm180_vm1, %v3620_v57 }
0x1711   :  { %v3611_v46 = vmul.f32 %v6193_v35, %v3610_v8 }
0x1713   :  { %v3615_v13 = vsel %vm3614_vm13, %v6193_v35, %v3611_v46 }
0x1714   :  { %v3617_v14 = vmul.f32 %v3615_v13, %v3583_v60  ;;  %v6369_v60 = vld [vmem:[%s9089_s13] ss:$0 sm:$0xff] }
0x1716   :  { %v3619_v63 = vmul.f32 %v6366_v7, %v3617_v14 }
0x1718   :  { %v3621_v61 = vadd.f32 %v6367_v11, %v3619_v63 }
0x171a   :  { %5808 = vmatmul.msk.f32.gmra.mxu3 %vm180_vm1, %v3621_v61 }
0x1793   :  { %v3645_v34 = vpop.f32.mrf.mxu3 }
0x1794   :  { %v3646_v9 = vadd.f32 %v6368_v28, %v3645_v34 }
0x1796   :  { %v3651_v25 = vmax.f32 %v3646_v9, 0.0 }
0x1798   :  { %5809 = vmatmul.msk.f32.vlgmr.msra.gmra.mxu0 %vm1952_vm7, %v3651_v25 }
0x179d   :  { %v3648_v12 = vpop.f32.mrf.mxu3 }
0x179e   :  { %v3649_v15 = vadd.f32 %v6368_v28, %v3648_v12 }
0x17a0   :  { %v3652_v41 = vmax.f32 %v3649_v15, 0.0 }
0x17a2   :  { %5810 = vmatmul.msk.f32.gmra.mxu0 %vm1952_vm7, %v3652_v41 }
0x1815   :  { %v3676_v36 = vpop.f32.mrf.mxu0 }
0x1816   :  { %v3677_v45 = vadd.f32 %v6369_v60, %v3676_v36 }
0x1818   :  { %v3682_v17 = vadd.f32 %v3677_v45, %v3620_v57  ;;  %v6370_v45 = vld [vmem:[%s9084_s9 + $0x4] ss:$0 sm:$0xff] }
0x181a   :  { %v3684_v23 = vsel %vm180_vm1, %v3682_v17, 0.0 }
0x181b   :  { %3685 = vadd.xlane.f32.xlu1 %v3684_v23 }
0x181f   :  { %v3679_v16 = vpop.f32.mrf.mxu0 }
0x1820   :  { %v3680_v18 = vadd.f32 %v6369_v60, %v3679_v16  ;;  %v6371_v16 = vld [vmem:[%s9084_s9 + $0x5] ss:$0 sm:$0xff] }
0x1822   :  { %v3683_v62 = vadd.f32 %v3680_v18, %v3621_v61 }
0x1824   :  { %v3687_v38 = vsel %vm1115_vm5, %v3683_v62, 0.0 }
0x1825   :  { %3688 = vadd.xlane.f32.xlu2 %v3687_v38 }
0x188e   :  { %v3686_v2 = vpop.xlane.xlu1 %3685 }
0x188f   :  { %v3690_v24 = vmul.f32 %v3686_v2, %v9194_v54 }
0x1891   :  { %v3692_v35 = vsub.f32 %v3682_v17, %v3690_v24 }
0x1893   :  { %v3694_v6 = vmul.f32 %v3692_v35, %v3692_v35 }
0x1895   :  { %v3696_v42 = vsel %vm180_vm1, %v3694_v6, 0.0 }
0x1896   :  { %3697 = vadd.xlane.f32.xlu0 %v3696_v42 }
0x1898   :  { %v3689_v3 = vpop.xlane.xlu2 %3688 }
0x1899   :  { %v3691_v27 = vmul.f32 %v3689_v3, %v9194_v54 }
0x189b   :  { %v3693_v7 = vsub.f32 %v3683_v62, %v3691_v27  ;;  %v5815_v27 = vld [vmem:[%s9090_s14 + $0x48] sm:$0xff] }
0x189c   :  { %3808 = vmatpush.msra.mxu1 %v5815_v27 }
0x189d   :  { %v3695_v10 = vmul.f32 %v3693_v7, %v3693_v7 }
0x189f   :  { %v3699_v55 = vsel %vm1115_vm5, %v3695_v10, 0.0  ;;  %v5813_v10 = vld [vmem:[%s9090_s14 + $0x38] sm:$0xff] }
0x18a0   :  { %3700 = vadd.xlane.f32.xlu1 %v3699_v55  ;;  %v5812_v55 = vld [vmem:[%s9090_s14 + $0x30] sm:$0xff] }
0x1909   :  { %v3698_v11 = vpop.xlane.xlu0 %3697 }
0x190a   :  { %v3702_v57 = vmul.f32 %v3698_v11, %v9194_v54  ;;  %v5811_v11 = vld [vmem:[%s9090_s14 + $0x28] sm:$0xff] }
0x190c   :  { %v3704_v8 = vadd.f32 1e-05, %v3702_v57 }
0x190e   :  { %6194 = vrsqrt.f32 %v3704_v8  ;;  %vm3712_vm3 = vweird.f32 %v3704_v8 }
0x1913   :  { %v3701_v46 = vpop.xlane.xlu1 %3700 }
0x1914   :  { %v6195_v13 = vpop.eup %6194  ;;  %v3703_v14 = vmul.f32 %v3701_v46, %v9194_v54 }
0x1915   :  { %v3707_v63 = vmul.f32 %v6195_v13, %v3704_v8  ;;  %vm3713_vm8 = vweird.f32 %v6195_v13 }
0x1916   :  { %v3705_v61 = vadd.f32 1e-05, %v3703_v14  ;;  %vm3714_vm9 = vmor %vm3712_vm3, %vm3713_vm8  ;;  %vm9229_vm8 = vcmask 1041408  }
0x1917   :  { %v3708_v34 = vmul.f32 %v6195_v13, %v3707_v63 }
0x1918   :  { %6196 = vrsqrt.f32 %v3705_v61  ;;  %vm3722_vm10 = vweird.f32 %v3705_v61 }
0x1919   :  { %v3709_v28 = vmul.f32 0.5, %v3708_v34 }
0x191b   :  { %v3710_v9 = vsub.f32 1.5, %v3709_v28 }
0x191d   :  { %v3711_v25 = vmul.f32 %v6195_v13, %v3710_v9 }
0x191e   :  { %v6197_v12 = vpop.eup %6196 }
0x191f   :  { %v3715_v15 = vsel %vm3714_vm9, %v6195_v13, %v3711_v25  ;;  %v3717_v41 = vmul.f32 %v6197_v12, %v3705_v61  ;;  %vm3723_vm4 = vweird.f32 %v6197_v12  ;;  %v6372_v25 = vld [vmem:[%s9077_s6] ss:$0 sm:$0xff] }
0x1920   :  { %v3726_v36 = vmul.f32 %v3715_v15, %v3692_v35  ;;  %vm3724_vm11 = vmor %vm3722_vm10, %vm3723_vm4 }
0x1921   :  { %v3718_v60 = vmul.f32 %v6197_v12, %v3717_v41  ;;  %vm9230_vm10 = vmmov %vm9229_vm8 }
0x1922   :  { %v3728_v17 = vmul.f32 %v6370_v45, %v3726_v36 }
0x1923   :  { %v3719_v23 = vmul.f32 0.5, %v3718_v60  ;;  %v6373_v60 = vld [vmem:[%s9077_s6 + $0x1] ss:$0 sm:$0xff] }
0x1924   :  { %v8303_v18 = vadd.f32 %v6371_v16, %v3728_v17 }
0x1925   :  { %v3720_v62 = vsub.f32 1.5, %v3719_v23 }
0x1926   :  { %9227 = vst [vmem:[#allocation19_spill] sm:$0xff] %v8303_v18  ;;  %5819 = vmatmul.msk.f32.vlgmr.msrb.gmra.mxu2 %vm180_vm1, %v8303_v18  ;;  %5821 = vmatmul.msk.f32.vlgmr.msrb.gmra.mxu3 %vm180_vm1, %v8303_v18  ;;  %v3732_v38 = vsel %vm180_vm1, %v8303_v18, 0.0 }
0x1927   :  { %v3721_v2 = vmul.f32 %v6197_v12, %v3720_v62  ;;  %5823 = vmatmul.msk.f32.vlgmr.msrb.gmra.mxu0 %vm180_vm1, %v8303_v18  ;;  %3733 = vadd.xlane.f32.xlu2 %v3732_v38 }
0x1929   :  { %v3725_v24 = vsel %vm3724_vm11, %v6197_v12, %v3721_v2  ;;  %v6374_v2 = vld [vmem:[%s9077_s6 + $0x2] ss:$0 sm:$0xff]  ;;  %vm9235_vm11 = vcmask 74752  }
0x192a   :  { %v3727_v35 = vmul.f32 %v3725_v24, %v3693_v7  ;;  %v5814_v7 = vld [vmem:[%s9090_s14 + $0x40] sm:$0xff] }
0x192b   :  { %3809 = vmatpush.msra.mxu1 %v5814_v7 }
0x192c   :  { %v3729_v6 = vmul.f32 %v6370_v45, %v3727_v35 }
0x192d   :  { %3810 = vmatpush.msra.mxu1 %v5813_v10 }
0x192e   :  { %v8313_v42 = vadd.f32 %v6371_v16, %v3729_v6 }
0x192f   :  { %3811 = vmatpush.msra.mxu1 %v5812_v55 }
0x1930   :  { %9228 = vst [vmem:[#allocation20_spill] sm:$0xff] %v8313_v42  ;;  %5820 = vmatmul.msk.f32.gmra.mxu2 %vm180_vm1, %v8313_v42  ;;  %5822 = vmatmul.msk.f32.gmra.mxu3 %vm180_vm1, %v8313_v42  ;;  %v3735_v3 = vsel %vm1115_vm5, %v8313_v42, 0.0 }
0x1931   :  { %5824 = vmatmul.msk.f32.gmra.mxu0 %vm180_vm1, %v8313_v42  ;;  %3736 = vadd.xlane.f32.xlu0 %v3735_v3 }
0x1932   :  { %3812 = vmatpush.msra.mxu1 %v5811_v11 }
0x199a   :  { %v3734_v57 = vpop.xlane.xlu2 %3733 }
0x199b   :  { %v3738_v8 = vmul.f32 %v3734_v57, %v9194_v54 }
0x199d   :  { %v8340_v46 = vsub.f32 %v8303_v18, %v3738_v8 }
0x199f   :  { %v3742_v13 = vmul.f32 %v8340_v46, %v8340_v46 }
0x19a1   :  { %v3744_v14 = vsel %vm180_vm1, %v3742_v13, 0.0 }
0x19a2   :  { %3745 = vadd.xlane.f32.xlu1 %v3744_v14 }
0x19a4   :  { %v3737_v63 = vpop.xlane.xlu0 %3736  ;;  %v3937_v62 = vpop.f32.mrf.mxu0 }
0x19a5   :  { %v3739_v61 = vmul.f32 %v3737_v63, %v9194_v54 }
0x19a7   :  { %v8347_v34 = vsub.f32 %v8313_v42, %v3739_v61 }
0x19a9   :  { %v3855_v28 = vpop.f32.mrf.mxu2  ;;  %v3743_v9 = vmul.f32 %v8347_v34, %v8347_v34  ;;  %v3896_v15 = vpop.f32.mrf.mxu3 }
0x19aa   :  { %v8354_v12 = vadd.f32 %v6372_v25, %v3855_v28  ;;  %v3897_v17 = vadd.f32 %v6373_v60, %v3896_v15 }
0x19ab   :  { %v3747_v41 = vsel %vm1115_vm5, %v3743_v9, 0.0 }
0x19ac   :  { %3867 = vrot.lane.b32.xlu0 %v8354_v12, %s6422_s28  ;;  %3748 = vadd.xlane.f32.xlu2 %v3747_v41 }
0x19ae   :  { %v3940_v38 = vpop.f32.mrf.mxu0 }
0x19af   :  { %v8389_v24 = vadd.f32 %v6374_v2, %v3940_v38 }
0x19b3   :  { %v3899_v36 = vpop.f32.mrf.mxu3  ;;  %v3858_v23 = vpop.f32.mrf.mxu2 }
0x19b4   :  { %v3900_v45 = vadd.f32 %v6373_v60, %v3899_v36  ;;  %v8375_v16 = vadd.f32 %v6372_v25, %v3858_v23 }
0x19b6   :  { %5825 = vmatpush.xpose.msk.msrb.mxu1 %vm481_vm0, %v3900_v45  ;;  %3906 = vrot.lane.b32.xlu0 %v3900_v45, %s6426_s27 }
0x19ba   :  { %5826 = vmatpush.xpose.msk.msrb.mxu1 %vm481_vm0, %v3897_v17 }
0x19bb   :  { %3904 = vrot.lane.b32.xlu1 %v3897_v17, %s6426_s27 }
0x19be   :  { %3910 = vrot.lane.b32.xlu0 %v3900_v45, %s6422_s28 }
0x19c3   :  { %3908 = vrot.lane.b32.xlu1 %v3897_v17, %s6422_s28 }
0x19c4   :  { %3863 = vrot.lane.b32.xlu2 %v8354_v12, %s6426_s27 }
0x19c6   :  { %3918 = vrot.lane.b32.xlu0 %v3900_v45, %s6425_s30 }
0x19cb   :  { %3914 = vrot.lane.b32.xlu1 %v3900_v45, %s6423_s29  ;;  %v6375_v45 = vld [vmem:[%s9084_s9 + $0x6] ss:$0 sm:$0xff] }
0x19cc   :  { %3916 = vrot.lane.b32.xlu2 %v3897_v17, %s6425_s30 }
0x19ce   :  { %3875 = vrot.lane.b32.xlu0 %v8354_v12, %s6425_s30 }
0x19d3   :  { %3912 = vrot.lane.b32.xlu1 %v3897_v17, %s6423_s29 }
0x19d4   :  { %3865 = vrot.lane.b32.xlu2 %v8375_v16, %s6426_s27 }
0x19d6   :  { %3869 = vrot.lane.b32.xlu0 %v8375_v16, %s6422_s28 }
0x19db   :  { %3877 = vrot.lane.b32.xlu1 %v8375_v16, %s6425_s30 }
0x19dc   :  { %3871 = vrot.lane.b32.xlu2 %v8354_v12, %s6423_s29 }
0x19e3   :  { %3947 = vrot.lane.b32.xlu1 %v8389_v24, %s6426_s27 }
0x19e4   :  { %3873 = vrot.lane.b32.xlu2 %v8375_v16, %s6423_s29 }
0x1a15   :  { %v3746_v35 = vpop.xlane.xlu1 %3745 }
0x1a16   :  { %v3750_v6 = vmul.f32 %v3746_v35, %v9194_v54  ;;  %v8405_v35 = vadd.f32 %v6374_v2, %v3937_v62 }
0x1a18   :  { %v3752_v3 = vadd.f32 1e-05, %v3750_v6 }
0x1a1a   :  { %6198 = vrsqrt.f32 %v3752_v3  ;;  %vm3760_vm6 = vweird.f32 %v3752_v3 }
0x1a1e   :  { %v3868_v10 = vpop.permute.xlu0 %3867 }
0x1a1f   :  { %v3749_v27 = vpop.xlane.xlu2 %3748 }
0x1a20   :  { %v6199_v7 = vpop.eup %6198  ;;  %v3751_v55 = vmul.f32 %v3749_v27, %v9194_v54 }
0x1a21   :  { %v3755_v11 = vmul.f32 %v6199_v7, %v3752_v3  ;;  %vm3761_vm12 = vweird.f32 %v6199_v7 }
0x1a22   :  { %v3753_v57 = vadd.f32 1e-05, %v3751_v55  ;;  %vm3762_vm13 = vmor %vm3760_vm6, %vm3761_vm12  ;;  %vm9236_vm12 = vcmask 80896  }
0x1a23   :  { %v3756_v8 = vmul.f32 %v6199_v7, %v3755_v11  ;;  %vm9237_vm6 = vmmov %vm9236_vm12 }
0x1a24   :  { %6200 = vrsqrt.f32 %v3753_v57  ;;  %vm3770_vm9 = vweird.f32 %v3753_v57 }
0x1a25   :  { %v3757_v13 = vmul.f32 0.5, %v3756_v8 }
0x1a27   :  { %v3758_v14 = vsub.f32 1.5, %v3757_v13  ;;  %v3864_v63 = vpop.permute.xlu2 %3863 }
0x1a28   :  { %v3907_v61 = vpop.permute.xlu0 %3906 }
0x1a29   :  { %v3759_v28 = vmul.f32 %v6199_v7, %v3758_v14  ;;  %5829 = vmatpush.xpose.msk.msra.mxu2 %vm481_vm0, %v3907_v61 }
0x1a2a   :  { %v6201_v9 = vpop.eup %6200 }
0x1a2b   :  { %v3763_v25 = vsel %vm3762_vm13, %v6199_v7, %v3759_v28  ;;  %v3765_v15 = vmul.f32 %v6201_v9, %v3753_v57  ;;  %vm3771_vm3 = vweird.f32 %v6201_v9  ;;  %vm9238_vm13 = vmmov %vm9237_vm6 }
0x1a2c   :  { %v3774_v41 = vmul.f32 %v3763_v25, %v8340_v46  ;;  %v6376_v46 = vld [vmem:[%s9084_s9 + $0x7] ss:$0 sm:$0xff]  ;;  %vm3772_vm4 = vmor %vm3770_vm9, %vm3771_vm3 }
0x1a2d   :  { %v3766_v36 = vmul.f32 %v6201_v9, %v3765_v15  ;;  %v3905_v60 = vpop.permute.xlu1 %3904  ;;  %vm9240_vm3 = vmmov %vm9237_vm6 }
0x1a2e   :  { %v3776_v17 = vmul.f32 %v6375_v45, %v3774_v41  ;;  %5830 = vmatpush.xpose.msk.msra.mxu2 %vm481_vm0, %v3905_v60  ;;  %v6005_v41 = vld [vmem:[%s9091_s15 + $0x1] ss:$0 sm:$0xff] }
0x1a2f   :  { %v3767_v23 = vmul.f32 0.5, %v3766_v36  ;;  %v3917_v38 = vpop.permute.xlu2 %3916 }
0x1a30   :  { %v3778_v6 = vadd.f32 %v6376_v46, %v3776_v17  ;;  %v3911_v3 = vpop.permute.xlu0 %3910  ;;  %v9233_v17 = vld [vmem:[#allocation2_spill] sm:$0xff] }
0x1a31   :  { %v3768_v27 = vsub.f32 1.5, %v3767_v23  ;;  %5831 = vmatmul.msk.f32.vlgmr.msra.gmra.mxu2 %vm481_vm0, %v3864_v63  ;;  %5833 = vmatpush.xpose.msk.msra.mxu3 %vm481_vm0, %v3911_v3 }
0x1a32   :  { %5845 = vmatpush.msk.msrb.mxu2 %vm9229_vm8, %v8389_v24  ;;  %5817 = vmatmul.msk.f32.vlgmr.msra.gmra.mxu1 %vm180_vm1, %v3778_v6  ;;  %vm9239_vm8 = vmmov %vm9235_vm11 }
0x1a33   :  { %v3769_v7 = vmul.f32 %v6201_v9, %v3768_v27  ;;  %vm9241_vm9 = vmmov %vm9239_vm8 }
0x1a34   :  { %4383 = vmatpush.msrb.mxu2 %v8405_v35 }
0x1a35   :  { %v3773_v62 = vsel %vm3772_vm4, %v6201_v9, %v3769_v7  ;;  %v3909_v2 = vpop.permute.xlu1 %3908  ;;  %vm9242_vm4 = vmmov %vm9239_vm8 }
0x1a36   :  { %v3775_v55 = vmul.f32 %v3773_v62, %v8347_v34  ;;  %5834 = vmatpush.xpose.msk.msra.mxu3 %vm481_vm0, %v3909_v2 }
0x1a37   :  { %v3866_v11 = vpop.permute.xlu2 %3865 }
0x1a38   :  { %v3919_v8 = vpop.permute.xlu0 %3918  ;;  %v3777_v13 = vmul.f32 %v6375_v45, %v3775_v55 }
0x1a39   :  { %5832 = vmatmul.msk.f32.gmra.mxu2 %vm481_vm0, %v3866_v11  ;;  %5835 = vmatmul.msk.f32.vlgmr.msra.gmra.mxu3 %vm481_vm0, %v3868_v10 }
0x1a3a   :  { %5841 = vmatpush.xpose.msk.msra.mxu1 %vm481_vm0, %v3919_v8  ;;  %v3779_v14 = vadd.f32 %v6376_v46, %v3777_v13 }
0x1a3c   :  { %5818 = vmatmul.msk.f32.gmra.mxu1 %vm180_vm1, %v3779_v14 }
0x1a3d   :  { %v3915_v57 = vpop.permute.xlu1 %3914 }
0x1a3e   :  { %5842 = vmatpush.xpose.msk.msra.mxu1 %vm481_vm0, %v3917_v38  ;;  %5837 = vmatpush.xpose.msk.msra.mxu0 %vm481_vm0, %v3915_v57  ;;  %v9234_v38 = vld [vmem:[#allocation3_spill] sm:$0xff] }
0x1a3f   :  { %v3872_v61 = vpop.permute.xlu2 %3871 }
0x1a40   :  { %v3876_v34 = vpop.permute.xlu0 %3875 }
0x1a44   :  { %5827 = vmatmul.msk.f32.vlgmr.msrb.gmra.mxu1 %vm481_vm0, %v8354_v12 }
0x1a45   :  { %v3913_v63 = vpop.permute.xlu1 %3912 }
0x1a46   :  { %5838 = vmatpush.xpose.msk.msra.mxu0 %vm481_vm0, %v3913_v63 }
0x1a47   :  { %v3874_v9 = vpop.permute.xlu2 %3873 }
0x1a48   :  { %v3870_v28 = vpop.permute.xlu0 %3869 }
0x1a49   :  { %5836 = vmatmul.msk.f32.gmra.mxu3 %vm481_vm0, %v3870_v28  ;;  %5839 = vmatmul.msk.f32.vlgmr.msra.gmra.mxu0 %vm481_vm0, %v3872_v61 }
0x1a4c   :  { %5828 = vmatmul.msk.f32.gmra.mxu1 %vm481_vm0, %v8375_v16 }
0x1a4d   :  { %v3878_v10 = vpop.permute.xlu1 %3877 }
0x1a51   :  { %5840 = vmatmul.msk.f32.gmra.mxu0 %vm481_vm0, %v3874_v9 }
0x1a54   :  { %5843 = vmatmul.msk.f32.vlgmr.msra.gmra.mxu1 %vm481_vm0, %v3876_v34 }
0x1a55   :  { %v3948_v25 = vpop.permute.xlu1 %3947 }
0x1a56   :  { %5848 = vmatpush.msk.msrb.mxu3 %vm9230_vm10, %v3948_v25  ;;  %vm9243_vm10 = vmmov %vm9240_vm3 }
0x1a5c   :  { %5844 = vmatmul.msk.f32.gmra.mxu1 %vm481_vm0, %v3878_v10 }
0x1aaf   :  { %v8433_v12 = vpop.f32.mrf.mxu1 }
0x1ab0   :  { %9231 = vst [vmem:[#allocation21_spill] sm:$0xff] %v8433_v12 }
0x1ab4   :  { %v4021_v15 = vpop.f32.mrf.mxu2 }
0x1ab5   :  { %v4022_v13 = vadd.f32 %v4021_v15, %v9234_v38 }
0x1ab7   :  { %v4126_v63 = vsel %vm9240_vm3, %v4022_v13, -inf }
0x1ab9   :  { %v3817_v36 = vpop.f32.mrf.mxu1 }
0x1aba   :  { %v8438_v16 = vadd.f32 %v6005_v41, %v3817_v36 }
0x1abc   :  { %9232 = vst [vmem:[#allocation22_spill] sm:$0xff] %v8438_v16  ;;  %v4024_v60 = vpop.f32.mrf.mxu2  ;;  %v4052_v45 = vpop.f32.mrf.mxu3 }
0x1abd   :  { %v8441_v23 = vadd.f32 %v4024_v60, %v9233_v17  ;;  %v4053_v46 = vadd.f32 %v4052_v45, %v9234_v38 }
0x1abf   :  { %v4129_v6 = vsel %vm9235_vm11, %v8441_v23, -inf  ;;  %v4132_v3 = vsel %vm9236_vm12, %v4053_v46, -inf  ;;  %vm9244_vm11 = vmmov %vm9242_vm4 }
0x1ac0   :  { %4130 = vmax.xlane.f32.xlu1 %v4129_v6  ;;  %4133 = vmax.xlane.f32.xlu0 %v4132_v3  ;;  %vm9245_vm12 = vmmov %vm9240_vm3 }
0x1ac1   :  { %v3990_v27 = vpop.f32.mrf.mxu1 }
0x1ac2   :  { %v8448_v7 = vadd.f32 %v3990_v27, %v9234_v38 }
0x1ac4   :  { %v4120_v55 = vsel %vm9237_vm6, %v8448_v7, -inf  ;;  %vm9246_vm6 = vmmov %vm9240_vm3 }
0x1ac6   :  { %v4083_v62 = vpop.f32.mrf.mxu0 }
0x1ac7   :  { %v4084_v2 = vadd.f32 %v4083_v62, %v9234_v38 }
0x1ac8   :  { %4121 = vmax.xlane.f32.xlu0 %v4120_v55 }
0x1ac9   :  { %v4138_v11 = vsel %vm9238_vm13, %v4084_v2, -inf  ;;  %v3993_v34 = vpop.f32.mrf.mxu1  ;;  %vm9247_vm13 = vcmask 1041408  }
0x1aca   :  { %4139 = vmax.xlane.f32.xlu2 %v4138_v11  ;;  %v3994_v28 = vadd.f32 %v3993_v34, %v9233_v17 }
0x1acc   :  { %v4055_v8 = vpop.f32.mrf.mxu3  ;;  %v4123_v9 = vsel %vm9241_vm9, %v3994_v28, -inf  ;;  %vm9250_vm9 = vmmov %vm9242_vm4 }
0x1acd   :  { %v8456_v14 = vadd.f32 %v4055_v8, %v9233_v17 }
0x1ace   :  { %v4086_v61 = vpop.f32.mrf.mxu0 }
0x1acf   :  { %v4135_v57 = vsel %vm9239_vm8, %v8456_v14, -inf  ;;  %v4087_v10 = vadd.f32 %v4086_v61, %v9233_v17  ;;  %vm9248_vm8 = vmmov %vm9240_vm3 }
0x1ad0   :  { %4136 = vmax.xlane.f32.xlu1 %v4135_v57  ;;  %vm9249_vm3 = vmmov %vm9247_vm13 }
0x1ad1   :  { %v4141_v25 = vsel %vm9242_vm4, %v4087_v10, -inf  ;;  %v4114_v15 = vpop.f32.mrf.mxu1 }
0x1ad2   :  { %4127 = vmax.xlane.f32.xlu2 %v4126_v63  ;;  %v8468_v41 = vadd.f32 %v4114_v15, %v9234_v38 }
0x1ad4   :  { %v4144_v36 = vsel %vm9243_vm10, %v8468_v41, -inf  ;;  %vm9251_vm10 = vmmov %vm9242_vm4 }
0x1ad8   :  { %4124 = vmax.xlane.f32.xlu1 %v4123_v9 }
0x1ad9   :  { %v4117_v60 = vpop.f32.mrf.mxu1 }
0x1ada   :  { %4142 = vmax.xlane.f32.xlu2 %v4141_v25  ;;  %v8479_v45 = vadd.f32 %v4117_v60, %v9233_v17 }
0x1adc   :  { %3962 = vrot.lane.b32.xlu0 %v8389_v24, %s6425_s30  ;;  %v4147_v38 = vsel %vm9244_vm11, %v8479_v45, -inf  ;;  %vm9252_vm11 = vmmov %vm9246_vm6 }
0x1ae2   :  { %4145 = vmax.xlane.f32.xlu2 %v4144_v36 }
0x1ae4   :  { %3952 = vrot.lane.b32.xlu0 %v8389_v24, %s6422_s28 }
0x1af1   :  { %3960 = vrot.lane.b32.xlu1 %v8405_v35, %s6425_s30 }
0x1afa   :  { %3945 = vrot.lane.b32.xlu2 %v8405_v35, %s6426_s27 }
0x1b0e   :  { %4148 = vmax.xlane.f32.xlu0 %v4147_v38 }
0x1b33   :  { %v4134_v6 = vpop.xlane.xlu0 %4133  ;;  %v4131_v62 = vpop.xlane.xlu1 %4130 }
0x1b34   :  { %v4154_v3 = vsub.f32 %v4053_v46, %v4134_v6  ;;  %v4153_v25 = vsub.f32 %v8441_v23, %v4131_v62 }
0x1b36   :  { %v4168_v27 = vmul.f32 1.442695, %v4154_v3 }
0x1b38   :  { %6202 = vpow2.f32 %v4168_v27 }
0x1b3b   :  { %v4122_v61 = vpop.xlane.xlu0 %4121 }
0x1b3d   :  { %v4140_v55 = vpop.xlane.xlu2 %4139 }
0x1b3e   :  { %v8483_v11 = vpop.eup %6202  ;;  %v4156_v8 = vsub.f32 %v4084_v2, %v4140_v55  ;;  %v4166_v2 = vmul.f32 1.442695, %v4153_v25 }
0x1b3f   :  { %v4192_v57 = vsel %vm9245_vm12, %v8483_v11, 0.0  ;;  %vm9253_vm12 = vmmov %vm9242_vm4 }
0x1b40   :  { %v4172_v34 = vmul.f32 1.442695, %v4156_v8  ;;  %4193 = vadd.xlane.f32.xlu1 %v4192_v57 }
0x1b42   :  { %6204 = vpow2.f32 %v4172_v34 }
0x1b43   :  { %v4137_v17 = vpop.xlane.xlu1 %4136 }
0x1b44   :  { %v4155_v62 = vsub.f32 %v8456_v14, %v4137_v17 }
0x1b45   :  { %v4128_v63 = vpop.xlane.xlu2 %4127 }
0x1b46   :  { %v4152_v9 = vsub.f32 %v4022_v13, %v4128_v63  ;;  %v4150_v13 = vsub.f32 %v8448_v7, %v4122_v61  ;;  %v4170_v34 = vmul.f32 1.442695, %v4155_v62  ;;  %v6380_v62 = vld [vmem:[%s9083_s7 + $0x8] sm:$0xff] }
0x1b48   :  { %v8488_v46 = vpop.eup %6204  ;;  %v4164_v15 = vmul.f32 1.442695, %v4152_v9 }
0x1b49   :  { %v4198_v36 = vsel %vm9246_vm6, %v8488_v46, 0.0 }
0x1b4a   :  { %6206 = vpow2.f32 %v4164_v15  ;;  %4199 = vadd.xlane.f32.xlu0 %v4198_v36 }
0x1b4b   :  { %v4125_v60 = vpop.xlane.xlu1 %4124  ;;  %6208 = vpow2.f32 %v4166_v2 }
0x1b4c   :  { %v4151_v38 = vsub.f32 %v3994_v28, %v4125_v60  ;;  %v4160_v28 = vmul.f32 1.442695, %v4150_v13  ;;  %v6379_v13 = vld [vmem:[%s9083_s7 + $0x10] sm:$0xff] }
0x1b4d   :  { %v4143_v6 = vpop.xlane.xlu2 %4142 }
0x1b4e   :  { %v4162_v3 = vmul.f32 1.442695, %v4151_v38  ;;  %v4157_v27 = vsub.f32 %v4087_v10, %v4143_v6  ;;  %v3963_v55 = vpop.permute.xlu0 %3962 }
0x1b4f   :  { %5857 = vmatpush.msk.msra.mxu2 %vm9247_vm13, %v3963_v55  ;;  %vm9254_vm13 = vmmov %vm9242_vm4 }
0x1b50   :  { %v8494_v23 = vpop.eup %6206  ;;  %6210 = vpow2.f32 %v4162_v3  ;;  %v4174_v8 = vmul.f32 1.442695, %v4157_v27  ;;  %v6378_v27 = vld [vmem:[%s9083_s7 + $0x18] sm:$0xff] }
0x1b51   :  { %v4186_v57 = vsel %vm9248_vm8, %v8494_v23, 0.0  ;;  %v8499_v10 = vpop.eup %6208 }
0x1b52   :  { %6212 = vpow2.f32 %v4174_v8  ;;  %4187 = vadd.xlane.f32.xlu2 %v4186_v57  ;;  %v4189_v15 = vsel %vm9251_vm10, %v8499_v10, 0.0  ;;  %v6381_v57 = vld [vmem:[%s9083_s7] sm:$0xff]  ;;  %vm9255_vm10 = vmmov %vm9246_vm6 }
0x1b53   :  { %6214 = vpow2.f32 %v4160_v28 }
0x1b54   :  { %6216 = vpow2.f32 %v4170_v34 }
0x1b55   :  { %v4146_v63 = vpop.xlane.xlu2 %4145 }
0x1b56   :  { %v8501_v9 = vpop.eup %6210  ;;  %v3953_v7 = vpop.permute.xlu0 %3952  ;;  %v4158_v61 = vsub.f32 %v8468_v41, %v4146_v63  ;;  %v6377_v41 = vld [vmem:[%s9083_s7 + $0x20] sm:$0xff] }
0x1b57   :  { %5851 = vmatpush.msk.msrb.mxu0 %vm9249_vm3, %v3953_v7  ;;  %v4183_v14 = vsel %vm9250_vm9, %v8501_v9, 0.0 }
0x1b58   :  { %v8506_v17 = vpop.eup %6212  ;;  %4184 = vadd.xlane.f32.xlu1 %v4183_v14  ;;  %v4176_v36 = vmul.f32 1.442695, %v4158_v61 }
0x1b59   :  { %v4201_v25 = vsel %vm9242_vm4, %v8506_v17, 0.0  ;;  %v8513_v2 = vpop.eup %6214 }
0x1b5a   :  { %4202 = vadd.xlane.f32.xlu0 %v4201_v25  ;;  %4190 = vadd.xlane.f32.xlu2 %v4189_v15  ;;  %v8515_v38 = vpop.eup %6216  ;;  %6218 = vpow2.f32 %v4176_v36  ;;  %v4180_v6 = vsel %vm9252_vm11, %v8513_v2, 0.0 }
0x1b5b   :  { %v4195_v3 = vsel %vm9253_vm12, %v8515_v38, 0.0 }
0x1b5d   :  { %v3946_v60 = vpop.permute.xlu2 %3945 }
0x1b5e   :  { %4414 = vmatpush.msrb.mxu3 %v3946_v60 }
0x1b60   :  { %4572 = vmatpush.msra.mxu3 %v6377_v41  ;;  %v8533_v8 = vpop.eup %6218 }
0x1b61   :  { %v4204_v28 = vsel %vm9246_vm6, %v8533_v8, 0.0 }
0x1b62   :  { %4573 = vmatpush.msra.mxu3 %v6378_v27  ;;  %4181 = vadd.xlane.f32.xlu0 %v4180_v6 }
0x1b63   :  { %4196 = vadd.xlane.f32.xlu2 %v4195_v3  ;;  %v3961_v55 = vpop.permute.xlu1 %3960 }
0x1b64   :  { %4574 = vmatpush.msra.mxu3 %v6379_v13  ;;  %4507 = vmatpush.msra.mxu2 %v3961_v55 }
0x1b66   :  { %4575 = vmatpush.msra.mxu3 %v6380_v62 }
0x1b68   :  { %4576 = vmatpush.msra.mxu3 %v6381_v57 }
0x1b6a   :  { %4205 = vadd.xlane.f32.xlu0 %v4204_v28 }
0x1b7b   :  { %3957 = vrot.lane.b32.xlu2 %v8389_v24, %s6423_s29 }
0x1b7e   :  { %3955 = vrot.lane.b32.xlu0 %v8405_v35, %s6423_s29 }
0x1b81   :  { %v4149_v34 = vpop.xlane.xlu0 %4148 }
0x1b82   :  { %v4159_v63 = vsub.f32 %v8479_v45, %v4149_v34 }
0x1b84   :  { %v4178_v7 = vmul.f32 1.442695, %v4159_v63 }
0x1b86   :  { %6220 = vpow2.f32 %v4178_v7 }
0x1b8c   :  { %v8545_v14 = vpop.eup %6220 }
0x1b8d   :  { %v4207_v61 = vsel %vm9254_vm13, %v8545_v14, 0.0  ;;  %vm9256_vm13 = vcmask 1041408  }
0x1b8e   :  { %4208 = vadd.xlane.f32.xlu1 %v4207_v61 }
0x1ba7   :  { %3950 = vrot.lane.b32.xlu1 %v8405_v35, %s6422_s28 }
0x1bb3   :  { %v8551_v25 = vpop.xlane.xlu1 %4193 }
0x1bbd   :  { %v8553_v24 = vpop.xlane.xlu0 %4199 }
0x1bc5   :  { %v4188_v15 = vpop.xlane.xlu2 %4187 }
0x1bc6   :  { %6222 = vrcp.f32 %v4188_v15  ;;  %v4251_v27 = vand.u32 2147483648, %v4188_v15  ;;  %v4249_v55 = vand.u32 2147483647, %v4188_v15  ;;  %vm4245_vm3 = vweird.f32 %v4188_v15 }
0x1bc8   :  { %v4252_v62 = vor.u32 1.1754944e-38, %v4251_v27  ;;  %vm4250_vm4 = vcmp.eq.f32.partialorder %v4249_v55, 8.507059e+37 }
0x1bcb   :  { %v8555_v60 = vpop.xlane.xlu1 %4184 }
0x1bcc   :  { %v6223_v36 = vpop.eup %6222  ;;  %6224 = vrcp.f32 %v8555_v60 }
0x1bcd   :  { %v4241_v45 = vmul.f32 %v6223_v36, %v4188_v15  ;;  %v8557_v41 = vpop.xlane.xlu0 %4202  ;;  %v4191_v6 = vpop.xlane.xlu2 %4190  ;;  %vm4246_vm8 = vweird.f32 %v6223_v36 }
0x1bce   :  { %6226 = vrcp.f32 %v4191_v6  ;;  %vm4247_vm9 = vmor %vm4245_vm3, %vm4246_vm8  ;;  %vm4260_vm12 = vweird.f32 %v4191_v6 }
0x1bcf   :  { %v4242_v3 = vsub.f32 1.0, %v4241_v45  ;;  %6228 = vrcp.f32 %v8553_v24 }
0x1bd1   :  { %v4243_v35 = vmul.f32 %v6223_v36, %v4242_v3 }
0x1bd2   :  { %v8561_v57 = vpop.eup %6224 }
0x1bd3   :  { %v4244_v13 = vadd.f32 %v6223_v36, %v4243_v35  ;;  %v4226_v15 = vmul.f32 %v8561_v57, %v8555_v60  ;;  %v4266_v35 = vand.u32 2147483648, %v4191_v6 }
0x1bd4   :  { %v6227_v7 = vpop.eup %6226 }
0x1bd5   :  { %v4248_v28 = vsel %vm4247_vm9, %v6223_v36, %v4244_v13  ;;  %v4182_v34 = vpop.xlane.xlu0 %4181  ;;  %v8565_v45 = vpop.eup %6228  ;;  %v4256_v16 = vmul.f32 %v6227_v7, %v4191_v6  ;;  %vm4261_vm11 = vweird.f32 %v6227_v7  ;;  %v4264_v13 = vand.u32 2147483647, %v4191_v6 }
0x1bd6   :  { %v8563_v63 = vpop.xlane.xlu2 %4196  ;;  %v4253_v61 = vsel %vm4250_vm4, %v4252_v62, %v4248_v28  ;;  %6230 = vrcp.f32 %v4182_v34  ;;  %v4301_v36 = vmul.f32 %v8565_v45, %v8553_v24  ;;  %v4227_v62 = vsub.f32 1.0, %v4226_v15  ;;  %vm4262_vm6 = vmor %vm4260_vm12, %vm4261_vm11 }
0x1bd7   :  { %v4254_v3 = vmul.f32 %v8494_v23, %v4253_v61  ;;  %6232 = vrcp.f32 %v8557_v41  ;;  %v4257_v27 = vsub.f32 1.0, %v4256_v16  ;;  %vm4265_vm8 = vcmp.eq.f32.partialorder %v4264_v13, 8.507059e+37  ;;  %vm9257_vm4 = vmmov %vm9255_vm10 }
0x1bd8   :  { %v4302_v48 = vsub.f32 1.0, %v4301_v36  ;;  %v4219_v6 = vand.u32 2147483647, %v4182_v34  ;;  %v4228_v42 = vmul.f32 %v8561_v57, %v4227_v62  ;;  %vm4215_vm9 = vweird.f32 %v4182_v34 }
0x1bd9   :  { %5849 = vmatmul.msk.f32.vlgmr.msrb.gmra.mxu3 %vm9255_vm10, %v4254_v3  ;;  %v4258_v55 = vmul.f32 %v6227_v7, %v4257_v27  ;;  %v4267_v3 = vor.u32 1.1754944e-38, %v4266_v35  ;;  %vm4306_vm10 = vweird.f32 %v8565_v45  ;;  %v4311_v62 = vand.u32 2147483648, %v8553_v24 }
0x1bda   :  { %5876 = vmatpush.xpose.msk.msrb.mxu3 %vm481_vm0, %v7043_v39  ;;  %v4303_v18 = vmul.f32 %v8565_v45, %v4302_v48  ;;  %vm4231_vm11 = vweird.f32 %v8561_v57  ;;  %v4229_v48 = vadd.f32 %v8561_v57, %v4228_v42 }
0x1bdb   :  { %v4259_v28 = vadd.f32 %v6227_v7, %v4258_v55  ;;  %v4221_v55 = vand.u32 2147483648, %v4182_v34 }
0x1bdc   :  { %v6231_v23 = vpop.eup %6230 }
0x1bdd   :  { %v4211_v61 = vmul.f32 %v6231_v23, %v4182_v34  ;;  %v8576_v12 = vpop.xlane.xlu0 %4205  ;;  %v8582_v39 = vpop.eup %6232  ;;  %v4263_v27 = vsel %vm4262_vm6, %v6227_v7, %v4259_v28  ;;  %vm4216_vm3 = vweird.f32 %v6231_v23  ;;  %vm4220_vm6 = vcmp.eq.f32.partialorder %v4219_v6, 8.507059e+37 }
0x1bde   :  { %v3958_v16 = vpop.permute.xlu2 %3957  ;;  %6234 = vrcp.f32 %v8576_v12  ;;  %5877 = vmatpush.xpose.msk.msrb.mxu3 %vm481_vm0, %v7041_v33  ;;  %v4268_v54 = vsel %vm4265_vm8, %v4267_v3, %v4263_v27  ;;  %v4316_v33 = vmul.f32 %v8582_v39, %v8557_v41  ;;  %vm4217_vm12 = vmor %vm4215_vm9, %vm4216_vm3  ;;  %v4304_v34 = vadd.f32 %v8565_v45, %v4303_v18 }
0x1bdf   :  { %5854 = vmatpush.msk.msrb.mxu1 %vm9256_vm13, %v3958_v16  ;;  %v4212_v15 = vsub.f32 1.0, %v4211_v61  ;;  %v4269_v35 = vmul.f32 %v8499_v10, %v4268_v54  ;;  %v4222_v54 = vor.u32 1.1754944e-38, %v4221_v55  ;;  %v4236_v28 = vand.u32 2147483648, %v8555_v60 }
0x1be0   :  { %v4317_v61 = vsub.f32 1.0, %v4316_v33  ;;  %vm4230_vm13 = vweird.f32 %v8555_v60  ;;  %v4234_v3 = vand.u32 2147483647, %v8555_v60  ;;  %vm4305_vm8 = vweird.f32 %v8553_v24 }
0x1be1   :  { %v4213_v36 = vmul.f32 %v6231_v23, %v4212_v15  ;;  %5850 = vmatmul.msk.f32.gmra.mxu3 %vm9257_vm4, %v4269_v35  ;;  %v4309_v15 = vand.u32 2147483647, %v8553_v24  ;;  %vm4232_vm3 = vmor %vm4230_vm13, %vm4231_vm11  ;;  %v4312_v24 = vor.u32 1.1754944e-38, %v4311_v62  ;;  %vm4335_vm13 = vweird.f32 %v8576_v12 }
0x1be2   :  { %5878 = vmatpush.xpose.msk.msrb.mxu3 %vm481_vm0, %v7055_v31  ;;  %vm4307_vm9 = vmor %vm4305_vm8, %vm4306_vm10  ;;  %v4318_v27 = vmul.f32 %v8582_v39, %v4317_v61  ;;  %vm4320_vm8 = vweird.f32 %v8557_v41  ;;  %v4324_v62 = vand.u32 2147483647, %v8557_v41  ;;  %6236 = vrcp.f32 %v8551_v25 }
0x1be3   :  { %v4214_v13 = vadd.f32 %v6231_v23, %v4213_v36  ;;  %v4308_v60 = vsel %vm4307_vm9, %v8565_v45, %v4304_v34  ;;  %vm4310_vm11 = vcmp.eq.f32.partialorder %v4309_v15, 8.507059e+37  ;;  %v4339_v45 = vand.u32 2147483647, %v8576_v12 }
0x1be4   :  { %v8592_v7 = vpop.eup %6234  ;;  %v4313_v55 = vsel %vm4310_vm11, %v4312_v24, %v4308_v60  ;;  %v4319_v35 = vadd.f32 %v8582_v39, %v4318_v27  ;;  %6238 = vrcp.f32 %v8563_v63  ;;  %v4281_v34 = vand.u32 2147483648, %v8551_v25  ;;  %v6382_v24 = vld [vmem:[%s9142_s23 + $0x98] sm:$0xff] }
0x1be5   :  { %v4218_v10 = vsel %vm4217_vm12, %v6231_v23, %v4214_v13  ;;  %v4331_v31 = vmul.f32 %v8592_v7, %v8576_v12  ;;  %vm4235_vm12 = vcmp.eq.f32.partialorder %v4234_v3, 8.507059e+37  ;;  %vm4336_vm10 = vweird.f32 %v8592_v7 }
0x1be6   :  { %v4223_v16 = vsel %vm4220_vm6, %v4222_v54, %v4218_v10  ;;  %5879 = vmatpush.xpose.msk.msrb.mxu3 %vm481_vm0, %v7097_v59  ;;  %v4233_v59 = vsel %vm4232_vm3, %v8561_v57, %v4229_v48  ;;  %vm4321_vm6 = vweird.f32 %v8582_v39  ;;  %v4341_v57 = vand.u32 2147483648, %v8576_v12  ;;  %vm4337_vm3 = vmor %vm4335_vm13, %vm4336_vm10 }
0x1be7   :  { %v4224_v42 = vmul.f32 %v8513_v2, %v4223_v16  ;;  %v4332_v23 = vsub.f32 1.0, %v4331_v31  ;;  %v4237_v2 = vor.u32 1.1754944e-38, %v4236_v28  ;;  %v4314_v13 = vmul.f32 %v8488_v46, %v4313_v55  ;;  %vm4322_vm9 = vmor %vm4320_vm8, %vm4321_vm6 }
0x1be8   :  { %v4323_v12 = vsel %vm4322_vm9, %v8582_v39, %v4319_v35  ;;  %vm4340_vm11 = vcmp.eq.f32.partialorder %v4339_v45, 8.507059e+37  ;;  %vm4325_vm10 = vcmp.eq.f32.partialorder %v4324_v62, 8.507059e+37  ;;  %vm9259_vm6 = vmmov %vm9257_vm4  ;;  %v4279_v28 = vand.u32 2147483647, %v8551_v25  ;;  %v6386_v35 = vld [vmem:[%s9142_s23 + $0x78] sm:$0xff] }
0x1be9   :  { %v4333_v18 = vmul.f32 %v8592_v7, %v4332_v23  ;;  %5846 = vmatmul.msk.f32.vlgmr.msrb.gmra.mxu2 %vm9257_vm4, %v4224_v42  ;;  %v4238_v6 = vsel %vm4235_vm12, %v4237_v2, %v4233_v59  ;;  %vm9258_vm12 = vmmov %vm9257_vm4  ;;  %v4282_v23 = vor.u32 1.1754944e-38, %v4281_v34  ;;  %v4296_v59 = vand.u32 2147483648, %v8563_v63 }
0x1bea   :  { %5870 = vmatpush.xpose.msk.msrb.mxu2 %vm481_vm0, %v7000_v51  ;;  %v4326_v51 = vand.u32 2147483648, %v8557_v41  ;;  %v4239_v33 = vmul.f32 %v8501_v9, %v4238_v6  ;;  %vm9260_vm13 = vmmov %vm9257_vm4 }
0x1beb   :  { %v4334_v36 = vadd.f32 %v8592_v7, %v4333_v18  ;;  %v4297_v27 = vor.u32 1.1754944e-38, %v4296_v59 }
0x1bec   :  { %v4327_v46 = vor.u32 1.1754944e-38, %v4326_v51 }
0x1bed   :  { %v4338_v48 = vsel %vm4337_vm3, %v8592_v7, %v4334_v36  ;;  %v6385_v36 = vld [vmem:[%s9142_s23 + $0x80] sm:$0xff] }
0x1bee   :  { %5871 = vmatpush.xpose.msk.msrb.mxu2 %vm481_vm0, %v7081_v53  ;;  %v4342_v53 = vor.u32 1.1754944e-38, %v4341_v57  ;;  %v4328_v41 = vsel %vm4325_vm10, %v4327_v46, %v4323_v12 }
0x1bf0   :  { %v3956_v54 = vpop.permute.xlu0 %3955  ;;  %v4343_v9 = vsel %vm4340_vm11, %v4342_v53, %v4338_v48 }
0x1bf1   :  { %5847 = vmatmul.msk.f32.gmra.mxu2 %vm9257_vm4, %v4239_v33  ;;  %4476 = vmatpush.msrb.mxu1 %v3956_v54  ;;  %v4344_v7 = vmul.f32 %v8533_v8, %v4343_v9 }
0x1bf2   :  { %5872 = vmatpush.xpose.msk.msrb.mxu2 %vm481_vm0, %v7077_v50  ;;  %5855 = vmatmul.msk.f32.vlgmr.msrb.gmra.mxu1 %vm9258_vm12, %v4314_v13  ;;  %v4329_v50 = vmul.f32 %v8506_v17, %v4328_v41  ;;  %vm4275_vm12 = vweird.f32 %v8551_v25 }
0x1bf3   :  { %5864 = vmatpush.xpose.msk.msra.mxu1 %vm481_vm0, %v6707_v19  ;;  %v6237_v19 = vpop.eup %6236 }
0x1bf4   :  { %vm4276_vm3 = vweird.f32 %v6237_v19 }
0x1bf5   :  { %vm4277_vm10 = vmor %vm4275_vm12, %vm4276_vm3 }
0x1bf6   :  { %5873 = vmatpush.xpose.msk.msrb.mxu2 %vm481_vm0, %v7095_v56 }
0x1bf7   :  { %5865 = vmatpush.xpose.msk.msra.mxu1 %vm481_vm0, %v6709_v20 }
0x1bf9   :  { %5858 = vmatmul.msk.f32.vlgmr.msra.gmra.mxu2 %vm9259_vm6, %v4344_v7  ;;  %vm4280_vm6 = vcmp.eq.f32.partialorder %v4279_v28, 8.507059e+37 }
0x1bfa   :  { %5076 = vmatpush.msra.mxu2 %v7093_v1  ;;  %5856 = vmatmul.msk.f32.gmra.mxu1 %vm9260_vm13, %v4329_v50  ;;  %v4271_v1 = vmul.f32 %v6237_v19, %v8551_v25  ;;  %v4294_v25 = vand.u32 2147483647, %v8563_v63 }
0x1bfb   :  { %5866 = vmatpush.xpose.msk.msra.mxu1 %vm481_vm0, %v6713_v21  ;;  %v6239_v21 = vpop.eup %6238 }
0x1bfc   :  { %5077 = vmatpush.msra.mxu2 %v7104_v58  ;;  %v4272_v56 = vsub.f32 1.0, %v4271_v1  ;;  %vm4295_vm12 = vcmp.eq.f32.partialorder %v4294_v25, 8.507059e+37 }
0x1bfe   :  { %5078 = vmatpush.msra.mxu2 %v7108_v5  ;;  %v4273_v5 = vmul.f32 %v6237_v19, %v4272_v56 }
0x1bff   :  { %5867 = vmatpush.xpose.msk.msra.mxu1 %vm481_vm0, %v6717_v22 }
0x1c00   :  { %5079 = vmatpush.msra.mxu2 %v7112_v29 }
0x1c01   :  { %v4209_v20 = vpop.xlane.xlu1 %4208 }
0x1c02   :  { %6240 = vrcp.f32 %v4209_v20  ;;  %v4356_v17 = vand.u32 2147483648, %v4209_v20  ;;  %v4354_v39 = vand.u32 2147483647, %v4209_v20  ;;  %vm4350_vm9 = vweird.f32 %v4209_v20 }
0x1c03   :  { %5888 = vmatpush.xpose.msk.msrb.mxu1 %vm481_vm0, %v6994_v4  ;;  %v4286_v4 = vmul.f32 %v6239_v21, %v8563_v63 }
0x1c04   :  { %vm4355_vm11 = vcmp.eq.f32.partialorder %v4354_v39, 8.507059e+37 }
0x1c05   :  { %v4287_v10 = vsub.f32 1.0, %v4286_v4 }
0x1c07   :  { %5889 = vmatpush.xpose.msk.msrb.mxu1 %vm481_vm0, %v7071_v49  ;;  %v4274_v49 = vadd.f32 %v6237_v19, %v4273_v5  ;;  %v4288_v3 = vmul.f32 %v6239_v21, %v4287_v10  ;;  %v9265_v10 = vld [vmem:[#allocation4_spill] sm:$0xff] }
0x1c08   :  { %v6241_v58 = vpop.eup %6240 }
0x1c09   :  { %v4346_v22 = vmul.f32 %v6241_v58, %v4209_v20  ;;  %vm4351_vm8 = vweird.f32 %v6241_v58  ;;  %v4278_v16 = vsel %vm4277_vm10, %v6237_v19, %v4274_v49  ;;  %v4289_v18 = vadd.f32 %v6239_v21, %v4288_v3 }
0x1c0a   :  { %vm4352_vm4 = vmor %vm4350_vm9, %vm4351_vm8  ;;  %v4283_v15 = vsel %vm4280_vm6, %v4282_v23, %v4278_v16  ;;  %vm4291_vm8 = vweird.f32 %v6239_v21  ;;  %vm4290_vm9 = vweird.f32 %v8563_v63  ;;  %v6384_v63 = vld [vmem:[%s9142_s23 + $0x88] sm:$0xff] }
0x1c0b   :  { %5890 = vmatpush.xpose.msk.msrb.mxu1 %vm481_vm0, %v7066_v37  ;;  %v4347_v29 = vsub.f32 1.0, %v4346_v22  ;;  %v4357_v37 = vor.u32 1.1754944e-38, %v4356_v17  ;;  %v4284_v60 = vmul.f32 %v8483_v11, %v4283_v15  ;;  %vm4292_vm3 = vmor %vm4290_vm9, %vm4291_vm8  ;;  %v6383_v11 = vld [vmem:[%s9142_s23 + $0x90] sm:$0xff]  ;;  %v9263_v22 = vld [vmem:[#allocation19_spill] sm:$0xff] }
0x1c0c   :  { %v9264_v17 = vld [vmem:[#allocation20_spill] sm:$0xff] }
0x1c0d   :  { %v4348_v8 = vmul.f32 %v6241_v58, %v4347_v29 }
0x1c0f   :  { %5891 = vmatpush.xpose.msk.msrb.mxu1 %vm481_vm0, %v7079_v40  ;;  %v4349_v31 = vadd.f32 %v6241_v58, %v4348_v8 }
0x1c11   :  { %v4353_v61 = vsel %vm4352_vm4, %v6241_v58, %v4349_v31  ;;  %vm9261_vm4 = vmmov %vm9260_vm13 }
0x1c12   :  { %v4358_v40 = vsel %vm4355_vm11, %v4357_v37, %v4353_v61  ;;  %vm9262_vm11 = vmmov %vm9261_vm4 }
0x1c13   :  { %v4359_v42 = vmul.f32 %v8545_v14, %v4358_v40  ;;  %v4293_v14 = vsel %vm4292_vm3, %v6239_v21, %v4289_v18 }
0x1c14   :  { %v4298_v6 = vsel %vm4295_vm12, %v4297_v27, %v4293_v14 }
0x1c15   :  { %5859 = vmatmul.msk.f32.gmra.mxu2 %vm9260_vm13, %v4359_v42  ;;  %v4299_v55 = vmul.f32 %v8515_v38, %v4298_v6 }
0x1c19   :  { %v3951_v2 = vpop.permute.xlu1 %3950 }
0x1c1a   :  { %4445 = vmatpush.msrb.mxu0 %v3951_v2 }
0x1c1b   :  { %5852 = vmatmul.msk.f32.vlgmr.msrb.gmra.mxu0 %vm9261_vm4, %v4284_v60  ;;  %vm9280_vm4 = vcmask 254976  }
0x1c1c   :  { %4653 = vmatpush.msra.mxu0 %v6382_v24  ;;  %vm9281_vm12 = vmmov %vm9280_vm4 }
0x1c1e   :  { %4654 = vmatpush.msra.mxu0 %v6383_v11 }
0x1c20   :  { %4655 = vmatpush.msra.mxu0 %v6384_v63 }
0x1c22   :  { %4656 = vmatpush.msra.mxu0 %v6385_v36 }
0x1c23   :  { %5853 = vmatmul.msk.f32.gmra.mxu0 %vm9262_vm11, %v4299_v55  ;;  %vm9282_vm11 = vmmov %vm9280_vm4 }
0x1c24   :  { %4657 = vmatpush.msra.mxu0 %v6386_v35  ;;  %v6388_v35 = vld [vmem:[%s9084_s9] ss:$0 sm:$0xff] }
0x1c26   :  { %5882 = vmatpush.xpose.msk.msrb.mxu0 %vm481_vm0, %v6988_v0 }
0x1c2a   :  { %5883 = vmatpush.xpose.msk.msrb.mxu0 %vm481_vm0, %v7030_v26 }
0x1c2e   :  { %5884 = vmatpush.xpose.msk.msrb.mxu0 %vm481_vm0, %v7057_v44 }
0x1c32   :  { %5885 = vmatpush.xpose.msk.msrb.mxu0 %vm481_vm0, %v7047_v43 }
0x1c5c   :  { %v4416_v38 = vpop.f32.mrf.mxu3 }
0x1c5d   :  { %4517 = vrot.lane.b32.xlu2 %v4416_v38, %s6429_s21 }
0x1c64   :  { %v4419_v44 = vpop.f32.mrf.mxu3 }
0x1c6c   :  { %v4385_v57 = vpop.f32.mrf.mxu2 }
0x1c6f   :  { %v4478_v51 = vpop.f32.mrf.mxu1 }
0x1c70   :  { %4533 = vrot.lane.b32.xlu0 %v4478_v51, %s6430_s22  ;;  %v6389_v51 = vld [vmem:[%s9084_s9 + $0x1] ss:$0 sm:$0xff] }
0x1c74   :  { %v4388_v45 = vpop.f32.mrf.mxu2 }
0x1c77   :  { %v4481_v0 = vpop.f32.mrf.mxu1 }
0x1c7c   :  { %v4509_v33 = vpop.f32.mrf.mxu2 }
0x1c7d   :  { %4541 = vrot.lane.b32.xlu2 %v4509_v33, %s9176_s4 }
0x1c85   :  { %4535 = vrot.lane.b32.xlu2 %v4481_v0, %s6430_s22  ;;  %v6390_v0 = vld [vmem:[%s9085_s1] sm:$0xff] }
0x1c98   :  { %v4447_v26 = vpop.f32.mrf.mxu0  ;;  %v4512_v43 = vpop.f32.mrf.mxu2 }
0x1c99   :  { %4525 = vrot.lane.b32.xlu1 %v4447_v26, %s6428_s20 }
0x1ca0   :  { %v4450_v13 = vpop.f32.mrf.mxu0 }
0x1ca1   :  { %4519 = vrot.lane.b32.xlu1 %v4419_v44, %s6429_s21  ;;  %4527 = vrot.lane.b32.xlu0 %v4450_v13, %s6428_s20 }
0x1ca9   :  { %4543 = vrot.lane.b32.xlu1 %v4512_v43, %s9176_s4  ;;  %v9266_v43 = vld [vmem:[#allocation5_spill] sm:$0xff] }
0x1cb7   :  { %v4518_v62 = vpop.permute.xlu2 %4517 }
0x1cb8   :  { %v4547_v54 = vsel %vm481_vm0, %v4385_v57, %v4518_v62 }
0x1cd7   :  { %v4542_v46 = vpop.permute.xlu2 %4541 }
0x1cdf   :  { %v4536_v1 = vpop.permute.xlu2 %4535 }
0x1ce2   :  { %v4534_v53 = vpop.permute.xlu0 %4533 }
0x1d0b   :  { %v4526_v48 = vpop.permute.xlu1 %4525 }
0x1d0c   :  { %v4549_v12 = vsel %vm1069_vm14, %v4547_v54, %v4526_v48  ;;  %v9267_v54 = vld [vmem:[#allocation6_spill] sm:$0xff] }
0x1d0d   :  { %v4551_v9 = vsel %vm1072_vm15, %v4549_v12, %v4534_v53  ;;  %v9268_v53 = vld [vmem:[#allocation10_spill] sm:$0xff] }
0x1d0e   :  { %v4553_v41 = vsel %vm1075_vm2, %v4551_v9, %v4542_v46  ;;  %v9269_v46 = vld [vmem:[#allocation13_spill] sm:$0xff] }
0x1d0f   :  { %5860 = vmatmul.msk.f32.vlgmr.msra.gmra.mxu3 %vm180_vm1, %v4553_v41 }
0x1d10   :  { %5105 = vmatpush.msra.mxu3 %v7161_v30 }
0x1d12   :  { %5106 = vmatpush.msra.mxu3 %v7163_v32  ;;  %v6387_v32 = vld [vmem:[%s9082_s8] ss:$0 sm:$0xff] }
0x1d13   :  { %v4520_v7 = vpop.permute.xlu1 %4519  ;;  %v4528_v19 = vpop.permute.xlu0 %4527 }
0x1d14   :  { %5107 = vmatpush.msra.mxu3 %v7319_v47  ;;  %v4548_v50 = vsel %vm481_vm0, %v4388_v45, %v4520_v7  ;;  %v6391_v7 = vld [vmem:[%s9085_s1 + $0x8] sm:$0x3] }
0x1d15   :  { %v4550_v20 = vsel %vm1069_vm14, %v4548_v50, %v4528_v19 }
0x1d16   :  { %5108 = vmatpush.msra.mxu3 %v7327_v52  ;;  %v4552_v56 = vsel %vm1072_vm15, %v4550_v20, %v4536_v1  ;;  %v6392_v20 = vld [vmem:[%s9077_s6 + $0x3] ss:$0 sm:$0xff] }
0x1d1b   :  { %v4544_v21 = vpop.permute.xlu1 %4543 }
0x1d1c   :  { %v4554_v58 = vsel %vm1075_vm2, %v4552_v56, %v4544_v21  ;;  %v9270_v21 = vld [vmem:[#allocation8_spill] sm:$0xff]  ;;  %v9271_v56 = vld [vmem:[#allocation9_spill] sm:$0xff] }
0x1d1d   :  { %5861 = vmatmul.msk.f32.gmra.mxu3 %vm180_vm1, %v4554_v58  ;;  %v9272_v58 = vld [vmem:[#allocation12_spill] sm:$0xff] }
0x1d92   :  { %v4578_v30 = vpop.f32.mrf.mxu3 }
0x1d93   :  { %v4579_v47 = vadd.f32 %v6387_v32, %v4578_v30  ;;  %v9273_v30 = vld [vmem:[#allocation14_spill] sm:$0xff] }
0x1d95   :  { %v4584_v5 = vadd.f32 %v4579_v47, %v9263_v22 }
0x1d97   :  { %v4586_v52 = vsel %vm180_vm1, %v4584_v5, 0.0 }
0x1d98   :  { %4587 = vadd.xlane.f32.xlu0 %v4586_v52  ;;  %v9275_v52 = vld [vmem:[#allocation16_spill] sm:$0xff] }
0x1da0   :  { %v4581_v4 = vpop.f32.mrf.mxu3 }
0x1da1   :  { %v4582_v29 = vadd.f32 %v6387_v32, %v4581_v4  ;;  %v9276_v4 = vld [vmem:[#allocation17_spill] sm:$0xff] }
0x1da3   :  { %v4585_v8 = vadd.f32 %v4582_v29, %v9264_v17  ;;  %v9277_v29 = vld [vmem:[#allocation18_spill] sm:$0xff] }
0x1da5   :  { %v4589_v39 = vsel %vm1115_vm5, %v4585_v8, 0.0 }
0x1da6   :  { %4590 = vadd.xlane.f32.xlu2 %v4589_v39  ;;  %v6394_v39 = vld [vmem:[%s9088_s12 + $0x30] sm:$0xff] }
0x1e0b   :  { %v4588_v49 = vpop.xlane.xlu0 %4587 }
0x1e0c   :  { %v4592_v31 = vmul.f32 %v4588_v49, %v9265_v10  ;;  %v6395_v49 = vld [vmem:[%s9088_s12 + $0x28] sm:$0xff] }
0x1e0e   :  { %v4594_v34 = vsub.f32 %v4584_v5, %v4592_v31  ;;  %v9274_v5 = vld [vmem:[#allocation15_spill] sm:$0xff] }
0x1e10   :  { %v4596_v37 = vmul.f32 %v4594_v34, %v4594_v34 }
0x1e12   :  { %v4598_v28 = vsel %vm180_vm1, %v4596_v37, 0.0  ;;  %v6397_v37 = vld [vmem:[%s9088_s12 + $0x18] sm:$0xff] }
0x1e13   :  { %4599 = vadd.xlane.f32.xlu1 %v4598_v28  ;;  %v6398_v28 = vld [vmem:[%s9088_s12 + $0x10] sm:$0xff] }
0x1e19   :  { %v4591_v61 = vpop.xlane.xlu2 %4590 }
0x1e1a   :  { %v4593_v40 = vmul.f32 %v4591_v61, %v9265_v10  ;;  %v6399_v61 = vld [vmem:[%s9088_s12 + $0x8] sm:$0xff] }
0x1e1c   :  { %v4595_v16 = vsub.f32 %v4585_v8, %v4593_v40  ;;  %v6393_v8 = vld [vmem:[%s9088_s12 + $0x38] sm:$0xff] }
0x1e1e   :  { %v4597_v3 = vmul.f32 %v4595_v16, %v4595_v16 }
0x1e20   :  { %v4601_v42 = vsel %vm1115_vm5, %v4597_v3, 0.0  ;;  %v6401_v3 = vld [vmem:[%s9083_s7 + $0x48] sm:$0xff] }
0x1e21   :  { %4602 = vadd.xlane.f32.xlu0 %v4601_v42  ;;  %v6402_v42 = vld [vmem:[%s9083_s7 + $0x40] sm:$0xff] }
0x1e86   :  { %v4600_v23 = vpop.xlane.xlu1 %4599 }
0x1e87   :  { %v4604_v15 = vmul.f32 %v4600_v23, %v9265_v10  ;;  %v6403_v23 = vld [vmem:[%s9083_s7 + $0x38] sm:$0xff] }
0x1e89   :  { %v4606_v18 = vadd.f32 1e-05, %v4604_v15  ;;  %v6404_v15 = vld [vmem:[%s9083_s7 + $0x30] sm:$0xff] }
0x1e8b   :  { %6242 = vrsqrt.f32 %v4606_v18  ;;  %vm4614_vm6 = vweird.f32 %v4606_v18 }
0x1e91   :  { %v6243_v59 = vpop.eup %6242 }
0x1e92   :  { %v4609_v60 = vmul.f32 %v6243_v59, %v4606_v18  ;;  %vm4615_vm10 = vweird.f32 %v6243_v59  ;;  %v6405_v18 = vld [vmem:[%s9083_s7 + $0x28] sm:$0xff] }
0x1e93   :  { %vm4616_vm13 = vmor %vm4614_vm6, %vm4615_vm10 }
0x1e94   :  { %v4610_v25 = vmul.f32 %v6243_v59, %v4609_v60  ;;  %v4603_v2 = vpop.xlane.xlu0 %4602  ;;  %v9278_v60 = vld [vmem:[#allocation7_spill] sm:$0xff]  ;;  %vm9283_vm10 = vmmov %vm9280_vm4 }
0x1e95   :  { %v4605_v14 = vmul.f32 %v4603_v2, %v9265_v10  ;;  %vm9284_vm6 = vmmov %vm9280_vm4 }
0x1e96   :  { %v4611_v27 = vmul.f32 0.5, %v4610_v25 }
0x1e97   :  { %v4607_v24 = vadd.f32 1e-05, %v4605_v14 }
0x1e98   :  { %v4612_v11 = vsub.f32 1.5, %v4611_v27 }
0x1e99   :  { %6244 = vrsqrt.f32 %v4607_v24  ;;  %vm4624_vm9 = vweird.f32 %v4607_v24 }
0x1e9a   :  { %v4613_v6 = vmul.f32 %v6243_v59, %v4612_v11  ;;  %v6406_v11 = vld [vmem:[%s9087_s10 + $0x20] sm:$0xff] }
0x1e9c   :  { %v4617_v63 = vsel %vm4616_vm13, %v6243_v59, %v4613_v6  ;;  %vm9285_vm13 = vmmov %vm9280_vm4 }
0x1e9d   :  { %v4628_v55 = vmul.f32 %v4617_v63, %v4594_v34  ;;  %v6396_v34 = vld [vmem:[%s9088_s12 + $0x20] sm:$0xff]  ;;  %v6407_v63 = vld [vmem:[%s9087_s10 + $0x18] sm:$0xff] }
0x1e9f   :  { %v6245_v36 = vpop.eup %6244  ;;  %v4630_v38 = vmul.f32 %v6388_v35, %v4628_v55  ;;  %v9279_v55 = vld [vmem:[#allocation11_spill] sm:$0xff] }
0x1ea0   :  { %v4619_v57 = vmul.f32 %v6245_v36, %v4607_v24  ;;  %vm4625_vm8 = vweird.f32 %v6245_v36 }
0x1ea1   :  { %v8746_v45 = vadd.f32 %v6389_v51, %v4630_v38  ;;  %vm4626_vm3 = vmor %vm4624_vm9, %vm4625_vm8 }
0x1ea2   :  { %v4620_v33 = vmul.f32 %v6245_v36, %v4619_v57  ;;  %vm9286_vm8 = vmmov %vm9280_vm4 }
0x1ea3   :  { %v4634_v26 = vadd.f32 %v6390_v0, %v8746_v45  ;;  %vm9287_vm9 = vmmov %vm9280_vm4 }
0x1ea4   :  { %v4621_v44 = vmul.f32 0.5, %v4620_v33  ;;  %v6410_v33 = vld [vmem:[%s9087_s10] sm:$0xff] }
0x1ea5   :  { %5862 = vmatmul.msk.f32.vlgmr.msra.gmra.mxu0 %vm180_vm1, %v4634_v26 }
0x1ea6   :  { %v4622_v13 = vsub.f32 1.5, %v4621_v44  ;;  %5134 = vmatpush.msra.mxu0 %v9266_v43 }
0x1ea8   :  { %v4623_v62 = vmul.f32 %v6245_v36, %v4622_v13  ;;  %5135 = vmatpush.msra.mxu0 %v9267_v54 }
0x1eaa   :  { %v4627_v48 = vsel %vm4626_vm3, %v6245_v36, %v4623_v62  ;;  %5136 = vmatpush.msra.mxu0 %v9268_v53 }
0x1eab   :  { %v4629_v12 = vmul.f32 %v4627_v48, %v4595_v16  ;;  %v6400_v16 = vld [vmem:[%s9088_s12] sm:$0xff] }
0x1eac   :  { %5137 = vmatpush.msra.mxu0 %v9269_v46 }
0x1ead   :  { %v4631_v9 = vmul.f32 %v6388_v35, %v4629_v12  ;;  %v6408_v35 = vld [vmem:[%s9087_s10 + $0x10] sm:$0xff] }
0x1eaf   :  { %v8757_v41 = vadd.f32 %v6389_v51, %v4631_v9  ;;  %v6409_v51 = vld [vmem:[%s9087_s10 + $0x8] sm:$0xff] }
0x1eb1   :  { %v4635_v50 = vadd.f32 %v6391_v7, %v8757_v41 }
0x1eb3   :  { %5863 = vmatmul.msk.f32.gmra.mxu0 %vm180_vm1, %v4635_v50 }
0x1f22   :  { %v4659_v19 = vpop.f32.mrf.mxu0 }
0x1f23   :  { %v4660_v1 = vadd.f32 %v6392_v20, %v4659_v19 }
0x1f25   :  { %4671 = vrot.lane.b32.xlu1 %v4660_v1, %s6422_s28  ;;  %4667 = vrot.lane.b32.xlu2 %v4660_v1, %s6426_s27 }
0x1f26   :  { %5868 = vmatmul.msk.f32.vlgmr.msra.gmra.mxu1 %vm481_vm0, %v4660_v1 }
0x1f27   :  { %5163 = vmatpush.msra.mxu1 %v9270_v21 }
0x1f29   :  { %5164 = vmatpush.msra.mxu1 %v9271_v56 }
0x1f2b   :  { %5165 = vmatpush.msra.mxu1 %v9272_v58 }
0x1f2d   :  { %5166 = vmatpush.msra.mxu1 %v9273_v30  ;;  %4679 = vrot.lane.b32.xlu2 %v4660_v1, %s6425_s30 }
0x1f30   :  { %v4662_v32 = vpop.f32.mrf.mxu0 }
0x1f31   :  { %v4663_v47 = vadd.f32 %v6392_v20, %v4662_v32 }
0x1f33   :  { %4673 = vrot.lane.b32.xlu1 %v4663_v47, %s6422_s28  ;;  %4669 = vrot.lane.b32.xlu0 %v4663_v47, %s6426_s27 }
0x1f34   :  { %5869 = vmatmul.msk.f32.gmra.mxu1 %vm481_vm0, %v4663_v47 }
0x1f35   :  { %4681 = vrot.lane.b32.xlu2 %v4663_v47, %s6425_s30 }
0x1f3b   :  { %4675 = vrot.lane.b32.xlu0 %v4660_v1, %s6423_s29 }
0x1f43   :  { %4677 = vrot.lane.b32.xlu0 %v4663_v47, %s6423_s29 }
0x1f7f   :  { %v4668_v22 = vpop.permute.xlu2 %4667 }
0x1f80   :  { %5874 = vmatmul.msk.f32.vlgmr.msrb.gmra.mxu2 %vm481_vm0, %v4668_v22 }
0x1f81   :  { %5192 = vmatpush.msrb.mxu2 %v9274_v5 }
0x1f83   :  { %5193 = vmatpush.msrb.mxu2 %v9275_v52 }
0x1f85   :  { %5194 = vmatpush.msrb.mxu2 %v9276_v4 }
0x1f87   :  { %5195 = vmatpush.msrb.mxu2 %v9277_v29  ;;  %v4680_v17 = vpop.permute.xlu2 %4679 }
0x1f88   :  { %5892 = vmatmul.msk.f32.vlgmr.msrb.gmra.mxu1 %vm481_vm0, %v4680_v17 }
0x1f89   :  { %5367 = vmatpush.msrb.mxu1 %v6393_v8 }
0x1f8b   :  { %5368 = vmatpush.msrb.mxu1 %v6394_v39 }
0x1f8d   :  { %5369 = vmatpush.msrb.mxu1 %v6395_v49 }
0x1f8f   :  { %v4682_v31 = vpop.permute.xlu2 %4681  ;;  %5370 = vmatpush.msrb.mxu1 %v6396_v34 }
0x1f90   :  { %5893 = vmatmul.msk.f32.gmra.mxu1 %vm481_vm0, %v4682_v31 }
0x1f91   :  { %5371 = vmatpush.msrb.mxu1 %v6397_v37 }
0x1f93   :  { %5372 = vmatpush.msrb.mxu1 %v6398_v28 }
0x1f95   :  { %5373 = vmatpush.msrb.mxu1 %v6399_v61 }
0x1f97   :  { %v4672_v40 = vpop.permute.xlu1 %4671  ;;  %5374 = vmatpush.msrb.mxu1 %v6400_v16 }
0x1f98   :  { %5880 = vmatmul.msk.f32.vlgmr.msrb.gmra.mxu3 %vm481_vm0, %v4672_v40 }
0x1f99   :  { %5260 = vmatpush.msrb.mxu3 %v6401_v3 }
0x1f9b   :  { %5261 = vmatpush.msrb.mxu3 %v6402_v42 }
0x1f9d   :  { %5262 = vmatpush.msrb.mxu3 %v6403_v23 }
0x1f9f   :  { %5263 = vmatpush.msrb.mxu3 %v6404_v15 }
0x1fa1   :  { %5264 = vmatpush.msrb.mxu3 %v6405_v18 }
0x1fa3   :  { %v4704_v59 = vpop.f32.mrf.mxu1 }
0x1fa4   :  { %v4705_v25 = vadd.f32 %v4704_v59, %v9278_v60 }
0x1fa5   :  { %v4674_v2 = vpop.permute.xlu1 %4673  ;;  %v4670_v14 = vpop.permute.xlu0 %4669 }
0x1fa6   :  { %v4818_v27 = vsel %vm1075_vm2, %v4705_v25, -inf  ;;  %5875 = vmatmul.msk.f32.gmra.mxu2 %vm481_vm0, %v4670_v14  ;;  %5881 = vmatmul.msk.f32.gmra.mxu3 %vm481_vm0, %v4674_v2 }
0x1fa7   :  { %4819 = vmax.xlane.f32.xlu1 %v4818_v27 }
0x1fad   :  { %v4676_v24 = vpop.permute.xlu0 %4675 }
0x1fae   :  { %5886 = vmatmul.msk.f32.vlgmr.msrb.gmra.mxu0 %vm481_vm0, %v4676_v24 }
0x1faf   :  { %5339 = vmatpush.msrb.mxu0 %v6406_v11 }
0x1fb1   :  { %v4707_v6 = vpop.f32.mrf.mxu1  ;;  %5340 = vmatpush.msrb.mxu0 %v6407_v63 }
0x1fb2   :  { %v4708_v36 = vadd.f32 %v4707_v6, %v9279_v55 }
0x1fb3   :  { %5341 = vmatpush.msrb.mxu0 %v6408_v35 }
0x1fb4   :  { %v4821_v38 = vsel %vm9280_vm4, %v4708_v36, -inf }
0x1fb5   :  { %4822 = vmax.xlane.f32.xlu2 %v4821_v38  ;;  %v4678_v57 = vpop.permute.xlu0 %4677  ;;  %5342 = vmatpush.msrb.mxu0 %v6409_v51 }
0x1fb6   :  { %5887 = vmatmul.msk.f32.gmra.mxu0 %vm481_vm0, %v4678_v57 }
0x1fb7   :  { %5343 = vmatpush.msrb.mxu0 %v6410_v33 }
0x2003   :  { %v4731_v0 = vpop.f32.mrf.mxu2 }
0x2004   :  { %v4732_v26 = vadd.f32 %v4731_v0, %v9278_v60 }
0x2005   :  { %v4812_v44 = vpop.f32.mrf.mxu1 }
0x2006   :  { %v4813_v13 = vadd.f32 %v4812_v44, %v9278_v60  ;;  %v4824_v43 = vsel %vm1075_vm2, %v4732_v26, -inf }
0x2007   :  { %4825 = vmax.xlane.f32.xlu0 %v4824_v43 }
0x2008   :  { %v4842_v62 = vsel %vm1075_vm2, %v4813_v13, -inf }
0x2009   :  { %4843 = vmax.xlane.f32.xlu1 %v4842_v62 }
0x200d   :  { %v4815_v9 = vpop.f32.mrf.mxu1 }
0x200e   :  { %v4816_v50 = vadd.f32 %v4815_v9, %v9279_v55 }
0x2010   :  { %v4845_v19 = vsel %vm9281_vm12, %v4816_v50, -inf }
0x201a   :  { %v4820_v54 = vpop.xlane.xlu1 %4819 }
0x201b   :  { %v4758_v48 = vpop.f32.mrf.mxu3  ;;  %v4848_v12 = vsub.f32 %v4705_v25, %v4820_v54 }
0x201c   :  { %v4759_v53 = vadd.f32 %v4758_v48, %v9278_v60 }
0x201d   :  { %v4858_v7 = vmul.f32 1.442695, %v4848_v12 }
0x201e   :  { %v4830_v46 = vsel %vm1075_vm2, %v4759_v53, -inf }
0x201f   :  { %4831 = vmax.xlane.f32.xlu2 %v4830_v46  ;;  %6246 = vpow2.f32 %v4858_v7 }
0x2025   :  { %v8860_v56 = vpop.eup %6246 }
0x2026   :  { %v4878_v52 = vsel %vm1075_vm2, %v8860_v56, 0.0 }
0x2027   :  { %4846 = vmax.xlane.f32.xlu2 %v4845_v19 }
0x2028   :  { %v4823_v20 = vpop.xlane.xlu2 %4822 }
0x2029   :  { %v4734_v1 = vpop.f32.mrf.mxu2  ;;  %v4849_v58 = vsub.f32 %v4708_v36, %v4823_v20  ;;  %v4761_v22 = vpop.f32.mrf.mxu3 }
0x202a   :  { %v4735_v21 = vadd.f32 %v4734_v1, %v9279_v55  ;;  %v4762_v29 = vadd.f32 %v4761_v22, %v9279_v55 }
0x202b   :  { %v4785_v30 = vpop.f32.mrf.mxu0  ;;  %v4860_v4 = vmul.f32 1.442695, %v4849_v58 }
0x202c   :  { %v4786_v32 = vadd.f32 %v4785_v30, %v9278_v60  ;;  %v4827_v47 = vsel %vm9282_vm11, %v4735_v21, -inf  ;;  %v4833_v39 = vsel %vm9283_vm10, %v4762_v29, -inf  ;;  %vm9288_vm10 = vmmov %vm9284_vm6 }
0x202d   :  { %4828 = vmax.xlane.f32.xlu0 %v4827_v47  ;;  %6248 = vpow2.f32 %v4860_v4 }
0x202e   :  { %v4836_v5 = vsel %vm1075_vm2, %v4786_v32, -inf }
0x202f   :  { %4837 = vmax.xlane.f32.xlu1 %v4836_v5  ;;  %4879 = vadd.xlane.f32.xlu2 %v4878_v52 }
0x2033   :  { %v4788_v17 = vpop.f32.mrf.mxu0  ;;  %v8871_v31 = vpop.eup %6248 }
0x2034   :  { %v4789_v8 = vadd.f32 %v4788_v17, %v9279_v55  ;;  %v4881_v34 = vsel %vm9285_vm13, %v8871_v31, 0.0 }
0x2035   :  { %4834 = vmax.xlane.f32.xlu0 %v4833_v39 }
0x2036   :  { %v4839_v49 = vsel %vm9284_vm6, %v4789_v8, -inf }
0x2037   :  { %4840 = vmax.xlane.f32.xlu1 %v4839_v49 }
0x203d   :  { %4882 = vadd.xlane.f32.xlu0 %v4881_v34 }
0x207a   :  { %v4826_v37 = vpop.xlane.xlu0 %4825 }
0x207b   :  { %v4850_v28 = vsub.f32 %v4732_v26, %v4826_v37 }
0x207c   :  { %v4844_v61 = vpop.xlane.xlu1 %4843 }
0x207d   :  { %v4862_v40 = vmul.f32 1.442695, %v4850_v28  ;;  %v4856_v16 = vsub.f32 %v4813_v13, %v4844_v61 }
0x207f   :  { %6250 = vpow2.f32 %v4862_v40  ;;  %v4874_v3 = vmul.f32 1.442695, %v4856_v16 }
0x2081   :  { %6252 = vpow2.f32 %v4874_v3 }
0x2085   :  { %v8875_v42 = vpop.eup %6250 }
0x2086   :  { %v4884_v23 = vsel %vm1075_vm2, %v8875_v42, 0.0 }
0x2087   :  { %v8879_v15 = vpop.eup %6252  ;;  %4885 = vadd.xlane.f32.xlu1 %v4884_v23 }
0x2088   :  { %v4902_v18 = vsel %vm1075_vm2, %v8879_v15, 0.0 }
0x2089   :  { %4903 = vadd.xlane.f32.xlu2 %v4902_v18 }
0x2092   :  { %v4832_v59 = vpop.xlane.xlu2 %4831 }
0x2093   :  { %v4852_v60 = vsub.f32 %v4759_v53, %v4832_v59 }
0x2095   :  { %v4866_v25 = vmul.f32 1.442695, %v4852_v60 }
0x2097   :  { %6254 = vpow2.f32 %v4866_v25 }
0x209a   :  { %v4847_v2 = vpop.xlane.xlu2 %4846 }
0x209b   :  { %v4857_v14 = vsub.f32 %v4816_v50, %v4847_v2 }
0x209d   :  { %v8883_v27 = vpop.eup %6254  ;;  %v4876_v24 = vmul.f32 1.442695, %v4857_v14 }
0x209e   :  { %v4890_v11 = vsel %vm1075_vm2, %v8883_v27, 0.0 }
0x209f   :  { %6256 = vpow2.f32 %v4876_v24  ;;  %4891 = vadd.xlane.f32.xlu0 %v4890_v11 }
0x20a0   :  { %v4829_v6 = vpop.xlane.xlu0 %4828 }
0x20a1   :  { %v4851_v63 = vsub.f32 %v4735_v21, %v4829_v6 }
0x20a2   :  { %v4838_v55 = vpop.xlane.xlu1 %4837  ;;  %v4880_v36 = vpop.xlane.xlu2 %4879 }
0x20a3   :  { %v4864_v35 = vmul.f32 1.442695, %v4851_v63  ;;  %v4854_v38 = vsub.f32 %v4786_v32, %v4838_v55  ;;  %6258 = vrcp.f32 %v4880_v36  ;;  %v4919_v9 = vand.u32 2147483648, %v4880_v36 }
0x20a4   :  { %v4917_v19 = vand.u32 2147483647, %v4880_v36  ;;  %vm4913_vm4 = vweird.f32 %v4880_v36 }
0x20a5   :  { %v8887_v57 = vpop.eup %6256  ;;  %6260 = vpow2.f32 %v4864_v35  ;;  %v4870_v51 = vmul.f32 1.442695, %v4854_v38  ;;  %v4920_v58 = vor.u32 1.1754944e-38, %v4919_v9 }
0x20a6   :  { %v4905_v33 = vsel %vm9286_vm8, %v8887_v57, 0.0  ;;  %vm4918_vm11 = vcmp.eq.f32.partialorder %v4917_v19, 8.507059e+37 }
0x20a7   :  { %6262 = vpow2.f32 %v4870_v51  ;;  %4906 = vadd.xlane.f32.xlu0 %v4905_v33 }
0x20a8   :  { %v4835_v0 = vpop.xlane.xlu0 %4834 }
0x20a9   :  { %v6259_v26 = vpop.eup %6258  ;;  %v4853_v44 = vsub.f32 %v4762_v29, %v4835_v0 }
0x20aa   :  { %v4909_v13 = vmul.f32 %v6259_v26, %v4880_v36  ;;  %v4841_v43 = vpop.xlane.xlu1 %4840  ;;  %vm4914_vm3 = vweird.f32 %v6259_v26 }
0x20ab   :  { %v8891_v62 = vpop.eup %6260  ;;  %v4868_v54 = vmul.f32 1.442695, %v4853_v44  ;;  %v4855_v48 = vsub.f32 %v4789_v8, %v4841_v43  ;;  %vm4915_vm12 = vmor %vm4913_vm4, %vm4914_vm3 }
0x20ac   :  { %v4910_v53 = vsub.f32 1.0, %v4909_v13  ;;  %v4887_v12 = vsel %vm9287_vm9, %v8891_v62, 0.0 }
0x20ad   :  { %v8895_v46 = vpop.eup %6262  ;;  %6264 = vpow2.f32 %v4868_v54  ;;  %v4872_v7 = vmul.f32 1.442695, %v4855_v48  ;;  %4888 = vadd.xlane.f32.xlu1 %v4887_v12 }
0x20ae   :  { %v4911_v50 = vmul.f32 %v6259_v26, %v4910_v53  ;;  %v4896_v20 = vsel %vm1075_vm2, %v8895_v46, 0.0 }
0x20af   :  { %6266 = vpow2.f32 %v4872_v7  ;;  %4897 = vadd.xlane.f32.xlu2 %v4896_v20 }
0x20b0   :  { %v4912_v1 = vadd.f32 %v6259_v26, %v4911_v50  ;;  %v4883_v21 = vpop.xlane.xlu0 %4882 }
0x20b1   :  { %6268 = vrcp.f32 %v4883_v21  ;;  %v4934_v39 = vand.u32 2147483648, %v4883_v21  ;;  %v4932_v34 = vand.u32 2147483647, %v4883_v21  ;;  %vm4928_vm8 = vweird.f32 %v4883_v21 }
0x20b2   :  { %v4916_v30 = vsel %vm4915_vm12, %v6259_v26, %v4912_v1 }
0x20b3   :  { %v8899_v32 = vpop.eup %6264  ;;  %v4921_v47 = vsel %vm4918_vm11, %v4920_v58, %v4916_v30  ;;  %v4935_v37 = vor.u32 1.1754944e-38, %v4934_v39  ;;  %vm4933_vm3 = vcmp.eq.f32.partialorder %v4932_v34, 8.507059e+37 }
0x20b4   :  { %v4922_v22 = vmul.f32 %v8860_v56, %v4921_v47  ;;  %v4893_v5 = vsel %vm9288_vm10, %v8899_v32, 0.0 }
0x20b5   :  { %v8904_v52 = vpop.eup %6266  ;;  %4894 = vadd.xlane.f32.xlu1 %v4893_v5 }
0x20b6   :  { %5894 = vmatmul.msk.f32.vlgmr.msra.gmra.mxu2 %vm1075_vm2, %v4922_v22  ;;  %v4899_v4 = vsel %vm9284_vm6, %v8904_v52, 0.0 }
0x20b7   :  { %v6269_v29 = vpop.eup %6268  ;;  %4900 = vadd.xlane.f32.xlu2 %v4899_v4 }
0x20b8   :  { %v4924_v17 = vmul.f32 %v6269_v29, %v4883_v21  ;;  %vm4929_vm13 = vweird.f32 %v6269_v29 }
0x20b9   :  { %vm4930_vm9 = vmor %vm4928_vm8, %vm4929_vm13 }
0x20ba   :  { %v4925_v8 = vsub.f32 1.0, %v4924_v17 }
0x20bc   :  { %v4926_v49 = vmul.f32 %v6269_v29, %v4925_v8 }
0x20be   :  { %v4927_v56 = vadd.f32 %v6269_v29, %v4926_v49 }
0x20c0   :  { %v4931_v28 = vsel %vm4930_vm9, %v6269_v29, %v4927_v56 }
0x20c1   :  { %v4936_v61 = vsel %vm4933_vm3, %v4935_v37, %v4931_v28 }
0x20c2   :  { %v4937_v40 = vmul.f32 %v8871_v31, %v4936_v61 }
0x20c4   :  { %5895 = vmatmul.msk.f32.gmra.mxu2 %vm1075_vm2, %v4937_v40 }
0x20fa   :  { %v4886_v16 = vpop.xlane.xlu1 %4885 }
0x20fb   :  { %6270 = vrcp.f32 %v4886_v16  ;;  %v4949_v2 = vand.u32 2147483648, %v4886_v16  ;;  %v4947_v24 = vand.u32 2147483647, %v4886_v16  ;;  %vm4943_vm12 = vweird.f32 %v4886_v16 }
0x20fc   :  { %v4904_v3 = vpop.xlane.xlu2 %4903 }
0x20fd   :  { %6272 = vrcp.f32 %v4904_v3  ;;  %v5039_v6 = vand.u32 2147483648, %v4904_v3  ;;  %v5037_v55 = vand.u32 2147483647, %v4904_v3  ;;  %v4950_v36 = vor.u32 1.1754944e-38, %v4949_v2 }
0x20fe   :  { %vm4948_vm6 = vcmp.eq.f32.partialorder %v4947_v24, 8.507059e+37  ;;  %vm5033_vm13 = vweird.f32 %v4904_v3 }
0x20ff   :  { %v5040_v33 = vor.u32 1.1754944e-38, %v5039_v6  ;;  %vm5038_vm9 = vcmp.eq.f32.partialorder %v5037_v55, 8.507059e+37 }
0x2101   :  { %v6271_v23 = vpop.eup %6270 }
0x2102   :  { %v4939_v18 = vmul.f32 %v6271_v23, %v4886_v16  ;;  %vm4944_vm4 = vweird.f32 %v6271_v23 }
0x2103   :  { %v6273_v59 = vpop.eup %6272  ;;  %vm4945_vm10 = vmor %vm4943_vm12, %vm4944_vm4 }
0x2104   :  { %v4940_v60 = vsub.f32 1.0, %v4939_v18  ;;  %v5029_v25 = vmul.f32 %v6273_v59, %v4904_v3  ;;  %vm5034_vm11 = vweird.f32 %v6273_v59 }
0x2105   :  { %vm5035_vm8 = vmor %vm5033_vm13, %vm5034_vm11 }
0x2106   :  { %v4941_v14 = vmul.f32 %v6271_v23, %v4940_v60  ;;  %v5030_v11 = vsub.f32 1.0, %v5029_v25 }
0x2108   :  { %v4942_v63 = vadd.f32 %v6271_v23, %v4941_v14  ;;  %v5031_v31 = vmul.f32 %v6273_v59, %v5030_v11 }
0x210a   :  { %v4946_v35 = vsel %vm4945_vm10, %v6271_v23, %v4942_v63  ;;  %v5032_v38 = vadd.f32 %v6273_v59, %v5031_v31 }
0x210b   :  { %v4951_v51 = vsel %vm4948_vm6, %v4950_v36, %v4946_v35 }
0x210c   :  { %v4952_v0 = vmul.f32 %v8875_v42, %v4951_v51  ;;  %v5036_v26 = vsel %vm5035_vm8, %v6273_v59, %v5032_v38 }
0x210d   :  { %v5041_v44 = vsel %vm5038_vm9, %v5040_v33, %v5036_v26 }
0x210e   :  { %v5042_v13 = vmul.f32 %v8879_v15, %v5041_v44  ;;  %5896 = vmatmul.msk.f32.vlgmr.msra.gmra.mxu3 %vm1075_vm2, %v4952_v0 }
0x2110   :  { %5902 = vmatmul.msk.f32.vlgmr.msrb.gmra.mxu2 %vm1075_vm2, %v5042_v13 }
0x2112   :  { %v4892_v43 = vpop.xlane.xlu0 %4891 }
0x2113   :  { %6274 = vrcp.f32 %v4892_v43  ;;  %v4979_v9 = vand.u32 2147483648, %v4892_v43  ;;  %v4977_v42 = vand.u32 2147483647, %v4892_v43  ;;  %vm4973_vm4 = vweird.f32 %v4892_v43 }
0x2115   :  { %v4980_v15 = vor.u32 1.1754944e-38, %v4979_v9  ;;  %vm4978_vm11 = vcmp.eq.f32.partialorder %v4977_v42, 8.507059e+37 }
0x2119   :  { %v6275_v54 = vpop.eup %6274 }
0x211a   :  { %v4969_v48 = vmul.f32 %v6275_v54, %v4892_v43  ;;  %v4907_v53 = vpop.xlane.xlu0 %4906  ;;  %vm4974_vm3 = vweird.f32 %v6275_v54 }
0x211b   :  { %6276 = vrcp.f32 %v4907_v53  ;;  %vm4975_vm12 = vmor %vm4973_vm4, %vm4974_vm3  ;;  %v5054_v29 = vand.u32 2147483648, %v4907_v53  ;;  %vm5048_vm6 = vweird.f32 %v4907_v53  ;;  %v5052_v8 = vand.u32 2147483647, %v4907_v53 }
0x211c   :  { %v4970_v12 = vsub.f32 1.0, %v4969_v48 }
0x211d   :  { %v5055_v40 = vor.u32 1.1754944e-38, %v5054_v29  ;;  %vm5053_vm8 = vcmp.eq.f32.partialorder %v5052_v8, 8.507059e+37 }
0x211e   :  { %v4971_v7 = vmul.f32 %v6275_v54, %v4970_v12 }
0x2120   :  { %v4972_v50 = vadd.f32 %v6275_v54, %v4971_v7  ;;  %v4889_v19 = vpop.xlane.xlu1 %4888 }
0x2121   :  { %v6277_v20 = vpop.eup %6276  ;;  %6278 = vrcp.f32 %v4889_v19  ;;  %v4962_v16 = vand.u32 2147483647, %v4889_v19  ;;  %v4964_v3 = vand.u32 2147483648, %v4889_v19  ;;  %vm4958_vm3 = vweird.f32 %v4889_v19 }
0x2122   :  { %v4976_v1 = vsel %vm4975_vm12, %v6275_v54, %v4972_v50  ;;  %v5044_v21 = vmul.f32 %v6277_v20, %v4907_v53  ;;  %v4898_v58 = vpop.xlane.xlu2 %4897  ;;  %vm5049_vm10 = vweird.f32 %v6277_v20 }
0x2123   :  { %v4981_v30 = vsel %vm4978_vm11, %v4980_v15, %v4976_v1  ;;  %6280 = vrcp.f32 %v4898_v58  ;;  %vm8917_vm13 = vmor %vm5048_vm6, %vm5049_vm10  ;;  %v5009_v59 = vand.u32 2147483648, %v4898_v58  ;;  %v5007_v14 = vand.u32 2147483647, %v4898_v58 }
0x2124   :  { %v4982_v47 = vmul.f32 %v8883_v27, %v4981_v30  ;;  %v5045_v22 = vsub.f32 1.0, %v5044_v21  ;;  %vm4963_vm11 = vcmp.eq.f32.partialorder %v4962_v16, 8.507059e+37  ;;  %v4965_v11 = vor.u32 1.1754944e-38, %v4964_v3 }
0x2125   :  { %vm5003_vm10 = vweird.f32 %v4898_v58  ;;  %v5010_v35 = vor.u32 1.1754944e-38, %v5009_v59 }
0x2126   :  { %v5046_v5 = vmul.f32 %v6277_v20, %v5045_v22  ;;  %5898 = vmatmul.msk.f32.vlgmr.msra.gmra.mxu0 %vm1075_vm2, %v4982_v47 }
0x2127   :  { %v6279_v4 = vpop.eup %6278 }
0x2128   :  { %v5047_v17 = vadd.f32 %v6277_v20, %v5046_v5  ;;  %v4954_v39 = vmul.f32 %v6279_v4, %v4889_v19  ;;  %v4895_v49 = vpop.xlane.xlu1 %4894  ;;  %vm4959_vm9 = vweird.f32 %v6279_v4 }
0x2129   :  { %v6281_v34 = vpop.eup %6280  ;;  %6282 = vrcp.f32 %v4895_v49  ;;  %vm4960_vm12 = vmor %vm4958_vm3, %vm4959_vm9  ;;  %v4992_v44 = vand.u32 2147483647, %v4895_v49  ;;  %v4994_v13 = vand.u32 2147483648, %v4895_v49  ;;  %vm4988_vm9 = vweird.f32 %v4895_v49 }
0x212a   :  { %v4955_v37 = vsub.f32 1.0, %v4954_v39  ;;  %v4999_v27 = vmul.f32 %v6281_v34, %v4898_v58  ;;  %v4901_v28 = vpop.xlane.xlu2 %4900  ;;  %v5051_v61 = vsel %vm8917_vm13, %v6277_v20, %v5047_v17  ;;  %vm5004_vm4 = vweird.f32 %v6281_v34 }
0x212b   :  { %6284 = vrcp.f32 %v4901_v28  ;;  %v5056_v60 = vsel %vm5053_vm8, %v5055_v40, %v5051_v61  ;;  %vm5005_vm6 = vmor %vm5003_vm10, %vm5004_vm4  ;;  %vm5008_vm13 = vcmp.eq.f32.partialorder %v5007_v14, 8.507059e+37  ;;  %v5024_v53 = vand.u32 2147483648, %v4901_v28 }
0x212c   :  { %v4956_v23 = vmul.f32 %v6279_v4, %v4955_v37  ;;  %v5000_v18 = vsub.f32 1.0, %v4999_v27  ;;  %v5057_v6 = vmul.f32 %v8887_v57, %v5056_v60  ;;  %v5022_v7 = vand.u32 2147483647, %v4901_v28 }
0x212d   :  { %v4995_v42 = vor.u32 1.1754944e-38, %v4994_v13 }
0x212e   :  { %v4957_v25 = vadd.f32 %v6279_v4, %v4956_v23  ;;  %v5001_v2 = vmul.f32 %v6281_v34, %v5000_v18  ;;  %5903 = vmatmul.msk.f32.gmra.mxu2 %vm1075_vm2, %v5057_v6 }
0x212f   :  { %v6283_v24 = vpop.eup %6282 }
0x2130   :  { %v5002_v63 = vadd.f32 %v6281_v34, %v5001_v2  ;;  %v4984_v31 = vmul.f32 %v6283_v24, %v4895_v49  ;;  %v4961_v55 = vsel %vm4960_vm12, %v6279_v4, %v4957_v25  ;;  %vm4989_vm8 = vweird.f32 %v6283_v24  ;;  %v6411_v2 = vld [vmem:[%s9082_s8 + $0x1] ss:$0 sm:$0xff] }
0x2131   :  { %v6285_v36 = vpop.eup %6284  ;;  %v4966_v38 = vsel %vm4963_vm11, %v4965_v11, %v4961_v55  ;;  %vm4990_vm4 = vmor %vm4988_vm9, %vm4989_vm8  ;;  %vm4993_vm12 = vcmp.eq.f32.partialorder %v4992_v44, 8.507059e+37  ;;  %vm5018_vm11 = vweird.f32 %v4901_v28 }
0x2132   :  { %v5006_v51 = vsel %vm5005_vm6, %v6281_v34, %v5002_v63  ;;  %v4985_v33 = vsub.f32 1.0, %v4984_v31  ;;  %v5014_v0 = vmul.f32 %v6285_v36, %v4901_v28  ;;  %v4967_v43 = vmul.f32 %v8891_v62, %v4966_v38 }
0x2133   :  { %v5011_v26 = vsel %vm5008_vm13, %v5010_v35, %v5006_v51  ;;  %vm5019_vm3 = vweird.f32 %v6285_v36  ;;  %vm5023_vm6 = vcmp.eq.f32.partialorder %v5022_v7, 8.507059e+37 }
0x2134   :  { %v5012_v57 = vmul.f32 %v8895_v46, %v5011_v26  ;;  %v4986_v54 = vmul.f32 %v6283_v24, %v4985_v33  ;;  %v5015_v48 = vsub.f32 1.0, %v5014_v0  ;;  %5897 = vmatmul.msk.f32.gmra.mxu3 %vm1075_vm2, %v4967_v43  ;;  %vm5020_vm10 = vmor %vm5018_vm11, %vm5019_vm3  ;;  %v5025_v46 = vor.u32 1.1754944e-38, %v5024_v53 }
0x2136   :  { %v4987_v12 = vadd.f32 %v6283_v24, %v4986_v54  ;;  %v5016_v9 = vmul.f32 %v6285_v36, %v5015_v48  ;;  %5900 = vmatmul.msk.f32.vlgmr.msra.gmra.mxu1 %vm1075_vm2, %v5012_v57 }
0x2138   :  { %v5017_v50 = vadd.f32 %v6285_v36, %v5016_v9  ;;  %v4991_v62 = vsel %vm4990_vm4, %v6283_v24, %v4987_v12 }
0x2139   :  { %v4996_v19 = vsel %vm4993_vm12, %v4995_v42, %v4991_v62  ;;  %v5081_v58 = vpop.f32.mrf.mxu2  ;;  %v6412_v62 = vld [vmem:[%s9084_s9 + $0x2] ss:$0 sm:$0xff] }
0x213a   :  { %v4997_v20 = vmul.f32 %v8899_v32, %v4996_v19  ;;  %v5021_v15 = vsel %vm5020_vm10, %v6285_v36, %v5017_v50  ;;  %v6413_v19 = vld [vmem:[%s9084_s9 + $0x3] ss:$0 sm:$0xff]  ;;  %vm3828_vm10 = vcmask 162896  }
0x213b   :  { %v5026_v1 = vsel %vm5023_vm6, %v5025_v46, %v5021_v15 }
0x213c   :  { %5899 = vmatmul.msk.f32.gmra.mxu0 %vm1075_vm2, %v4997_v20  ;;  %v5027_v21 = vmul.f32 %v8904_v52, %v5026_v1 }
0x213e   :  { %5901 = vmatmul.msk.f32.gmra.mxu1 %vm1075_vm2, %v5027_v21 }
0x2147   :  { %v5084_v30 = vpop.f32.mrf.mxu2 }
0x2191   :  { %v5110_v47 = vpop.f32.mrf.mxu3 }
0x2192   :  { %5205 = vrot.lane.b32.xlu0 %v5110_v47, %s6429_s21 }
0x2193   :  { %v5197_v22 = vpop.f32.mrf.mxu2 }
0x219a   :  { %5229 = vrot.lane.b32.xlu0 %v5197_v22, %s9176_s4 }
0x21a3   :  { %v5139_v5 = vpop.f32.mrf.mxu0 }
0x21a4   :  { %5213 = vrot.lane.b32.xlu1 %v5139_v5, %s6428_s20 }
0x21b1   :  { %v5200_v17 = vpop.f32.mrf.mxu2 }
0x21b3   :  { %v5168_v32 = vpop.f32.mrf.mxu1 }
0x21b4   :  { %5221 = vrot.lane.b32.xlu2 %v5168_v32, %s6430_s22 }
0x21b7   :  { %v5113_v4 = vpop.f32.mrf.mxu3 }
0x21b8   :  { %5207 = vrot.lane.b32.xlu1 %v5113_v4, %s6429_s21 }
0x21b9   :  { %v5142_v52 = vpop.f32.mrf.mxu0 }
0x21ba   :  { %5215 = vrot.lane.b32.xlu0 %v5142_v52, %s6428_s20 }
0x21bb   :  { %v5171_v29 = vpop.f32.mrf.mxu1 }
0x21bc   :  { %5223 = vrot.lane.b32.xlu2 %v5171_v29, %s6430_s22 }
0x21c0   :  { %5231 = vrot.lane.b32.xlu1 %v5200_v17, %s9176_s4 }
0x2204   :  { %v5206_v8 = vpop.permute.xlu0 %5205 }
0x2205   :  { %v5235_v39 = vsel %vm481_vm0, %v5081_v58, %v5206_v8 }
0x220c   :  { %v5230_v37 = vpop.permute.xlu0 %5229 }
0x220e   :  { %v5222_v34 = vpop.permute.xlu2 %5221 }
0x2216   :  { %v5214_v49 = vpop.permute.xlu1 %5213  ;;  %v5224_v23 = vpop.permute.xlu2 %5223 }
0x2217   :  { %v5237_v56 = vsel %vm1069_vm14, %v5235_v39, %v5214_v49  ;;  %v6414_v39 = vld [vmem:[%s9086_s11] ss:$0 sm:$0xff] }
0x2218   :  { %v5239_v27 = vsel %vm1072_vm15, %v5237_v56, %v5222_v34 }
0x2219   :  { %v5241_v28 = vsel %vm1075_vm2, %v5239_v27, %v5230_v37 }
0x221a   :  { %5904 = vmatmul.msk.f32.vlgmr.msrb.gmra.mxu3 %vm180_vm1, %v5241_v28 }
0x222a   :  { %v5208_v61 = vpop.permute.xlu1 %5207 }
0x222b   :  { %v5236_v40 = vsel %vm481_vm0, %v5084_v30, %v5208_v61  ;;  %v6415_v61 = vld [vmem:[%s9089_s13] ss:$0 sm:$0xff] }
0x222c   :  { %v5216_v16 = vpop.permute.xlu0 %5215 }
0x222d   :  { %v5238_v3 = vsel %vm1069_vm14, %v5236_v40, %v5216_v16 }
0x222e   :  { %v5240_v59 = vsel %vm1072_vm15, %v5238_v3, %v5224_v23 }
0x2232   :  { %v5232_v18 = vpop.permute.xlu1 %5231 }
0x2233   :  { %v5242_v60 = vsel %vm1075_vm2, %v5240_v59, %v5232_v18 }
0x2234   :  { %5905 = vmatmul.msk.f32.gmra.mxu3 %vm180_vm1, %v5242_v60 }
0x229d   :  { %v5266_v25 = vpop.f32.mrf.mxu3 }
0x229e   :  { %v5267_v14 = vadd.f32 %v6411_v2, %v5266_v25 }
0x22a0   :  { %v5272_v24 = vadd.f32 %v5267_v14, %v8746_v45 }
0x22a2   :  { %v5274_v11 = vsel %vm180_vm1, %v5272_v24, 0.0 }
0x22a3   :  { %5275 = vadd.xlane.f32.xlu0 %v5274_v11 }
0x22b7   :  { %v5269_v6 = vpop.f32.mrf.mxu3 }
0x22b8   :  { %v5270_v63 = vadd.f32 %v6411_v2, %v5269_v6 }
0x22ba   :  { %v5273_v31 = vadd.f32 %v5270_v63, %v8757_v41 }
0x22bc   :  { %v5277_v55 = vsel %vm1115_vm5, %v5273_v31, 0.0 }
0x22bd   :  { %5278 = vadd.xlane.f32.xlu2 %v5277_v55 }
0x2316   :  { %v5276_v36 = vpop.xlane.xlu0 %5275 }
0x2317   :  { %v5280_v35 = vmul.f32 %v5276_v36, %v9265_v10 }
0x2319   :  { %v5282_v38 = vsub.f32 %v5272_v24, %v5280_v35 }
0x231b   :  { %v5284_v51 = vmul.f32 %v5282_v38, %v5282_v38 }
0x231d   :  { %v5286_v33 = vsel %vm180_vm1, %v5284_v51, 0.0 }
0x231e   :  { %5287 = vadd.xlane.f32.xlu1 %v5286_v33 }
0x2330   :  { %v5279_v0 = vpop.xlane.xlu2 %5278 }
0x2331   :  { %v5281_v45 = vmul.f32 %v5279_v0, %v9265_v10 }
0x2333   :  { %v5283_v26 = vsub.f32 %v5273_v31, %v5281_v45 }
0x2335   :  { %v5285_v44 = vmul.f32 %v5283_v26, %v5283_v26 }
0x2337   :  { %v5289_v13 = vsel %vm1115_vm5, %v5285_v44, 0.0 }
0x2338   :  { %5290 = vadd.xlane.f32.xlu0 %v5289_v13 }
0x2391   :  { %v5288_v41 = vpop.xlane.xlu1 %5287 }
0x2392   :  { %v5292_v43 = vmul.f32 %v5288_v41, %v9265_v10 }
0x2394   :  { %v5294_v57 = vadd.f32 1e-05, %v5292_v43 }
0x2396   :  { %6286 = vrsqrt.f32 %v5294_v57  ;;  %vm5302_vm14 = vweird.f32 %v5294_v57 }
0x239c   :  { %v6287_v54 = vpop.eup %6286 }
0x239d   :  { %v5297_v48 = vmul.f32 %v6287_v54, %v5294_v57  ;;  %vm5303_vm0 = vweird.f32 %v6287_v54  ;;  %v6416_v57 = vld [vmem:[%s9084_s9 + $0x4] ss:$0 sm:$0xff] }
0x239e   :  { %vm5304_vm15 = vmor %vm5302_vm14, %vm5303_vm0 }
0x239f   :  { %v5298_v53 = vmul.f32 %v6287_v54, %v5297_v48 }
0x23a1   :  { %v5299_v12 = vmul.f32 0.5, %v5298_v53  ;;  %v6417_v53 = vld [vmem:[%s9084_s9 + $0x5] ss:$0 sm:$0xff] }
0x23a3   :  { %v5300_v9 = vsub.f32 1.5, %v5299_v12 }
0x23a5   :  { %v5301_v7 = vmul.f32 %v6287_v54, %v5300_v9 }
0x23a7   :  { %v5305_v42 = vsel %vm5304_vm15, %v6287_v54, %v5301_v7 }
0x23a8   :  { %v5316_v50 = vmul.f32 %v5305_v42, %v5282_v38 }
0x23aa   :  { %v5318_v46 = vmul.f32 %v6412_v62, %v5316_v50 }
0x23ab   :  { %v5291_v15 = vpop.xlane.xlu0 %5290 }
0x23ac   :  { %v5320_v20 = vadd.f32 %v6413_v19, %v5318_v46  ;;  %v5293_v1 = vmul.f32 %v5291_v15, %v9265_v10 }
0x23ae   :  { %5906 = vmatmul.msk.f32.vlgmr.msrb.gmra.mxu0 %vm180_vm1, %v5320_v20  ;;  %v5295_v21 = vadd.f32 1e-05, %v5293_v1 }
0x23b0   :  { %6288 = vrsqrt.f32 %v5295_v21  ;;  %vm5312_vm13 = vweird.f32 %v5295_v21 }
0x23b6   :  { %v6289_v58 = vpop.eup %6288 }
0x23b7   :  { %v5307_v30 = vmul.f32 %v6289_v58, %v5295_v21  ;;  %vm5313_vm2 = vweird.f32 %v6289_v58 }
0x23b8   :  { %vm5314_vm8 = vmor %vm5312_vm13, %vm5313_vm2 }
0x23b9   :  { %v5308_v47 = vmul.f32 %v6289_v58, %v5307_v30 }
0x23bb   :  { %v5309_v22 = vmul.f32 0.5, %v5308_v47 }
0x23bd   :  { %v5310_v5 = vsub.f32 1.5, %v5309_v22  ;;  %v6418_v22 = vld [vmem:[%s9091_s15 + $0x1] ss:$0 sm:$0xff] }
0x23bf   :  { %v5311_v32 = vmul.f32 %v6289_v58, %v5310_v5  ;;  %v9291_v5 = vld [vmem:[#allocation21_spill] sm:$0xff] }
0x23c1   :  { %v5315_v4 = vsel %vm5314_vm8, %v6289_v58, %v5311_v32  ;;  %v3815_v32 = vadd.f32 %v6418_v22, %v9291_v5  ;;  %vm5574_vm8 = vcmask 326896  }
0x23c2   :  { %v5317_v52 = vmul.f32 %v5315_v4, %v5283_v26 }
0x23c4   :  { %v5319_v29 = vmul.f32 %v6412_v62, %v5317_v52 }
0x23c6   :  { %v5321_v17 = vadd.f32 %v6413_v19, %v5319_v29 }
0x23c8   :  { %5907 = vmatmul.msk.f32.gmra.mxu0 %vm180_vm1, %v5321_v17 }
0x242b   :  { %v5345_v8 = vpop.f32.mrf.mxu0 }
0x242c   :  { %v5346_v49 = vadd.f32 %v6414_v39, %v5345_v8 }
0x242e   :  { %v5351_v34 = vmax.f32 %v5346_v49, 0.0 }
0x2430   :  { %5908 = vmatmul.msk.f32.vlgmr.msrb.gmra.mxu1 %vm1952_vm7, %v5351_v34 }
0x2445   :  { %v5348_v56 = vpop.f32.mrf.mxu0 }
0x2446   :  { %v5349_v37 = vadd.f32 %v6414_v39, %v5348_v56  ;;  %v9292_v56 = vld [vmem:[#allocation22_spill] sm:$0xff] }
0x2448   :  { %v5352_v27 = vmax.f32 %v5349_v37, 0.0 }
0x244a   :  { %5909 = vmatmul.msk.f32.gmra.mxu1 %vm1952_vm7, %v5352_v27 }
0x24ad   :  { %v5376_v28 = vpop.f32.mrf.mxu1 }
0x24ae   :  { %v5377_v40 = vadd.f32 %v6415_v61, %v5376_v28 }
0x24b0   :  { %v5382_v16 = vadd.f32 %v5377_v40, %v5320_v20  ;;  %v5922_v40 = vld [vmem:[%s9090_s14 + $0x98] sm:$0xff] }
0x24b1   :  { %5554 = vmatpush.msra.mxu3 %v5922_v40 }
0x24b2   :  { %v5384_v3 = vsel %vm180_vm1, %v5382_v16, 0.0 }
0x24b3   :  { %5385 = vadd.xlane.f32.xlu2 %v5384_v3  ;;  %v5921_v3 = vld [vmem:[%s9090_s14 + $0x90] sm:$0xff] }
0x24b4   :  { %5555 = vmatpush.msra.mxu3 %v5921_v3 }
0x24c7   :  { %v5379_v23 = vpop.f32.mrf.mxu1 }
0x24c8   :  { %v5380_v18 = vadd.f32 %v6415_v61, %v5379_v23  ;;  %v5914_v61 = vld [vmem:[%s9090_s14 + $0x70] sm:$0xff]  ;;  %v5912_v23 = vld [vmem:[%s9090_s14 + $0x60] sm:$0xff] }
0x24c9   :  { %5508 = vmatpush.msra.mxu2 %v5914_v61 }
0x24ca   :  { %v5383_v59 = vadd.f32 %v5380_v18, %v5321_v17  ;;  %v5920_v18 = vld [vmem:[%s9090_s14 + $0x88] sm:$0xff] }
0x24cb   :  { %5556 = vmatpush.msra.mxu3 %v5920_v18 }
0x24cc   :  { %v5387_v60 = vsel %vm1115_vm5, %v5383_v59, 0.0 }
0x24cd   :  { %5388 = vadd.xlane.f32.xlu1 %v5387_v60  ;;  %v5919_v60 = vld [vmem:[%s9090_s14 + $0x80] sm:$0xff] }
0x24ce   :  { %5557 = vmatpush.msra.mxu3 %v5919_v60 }
0x2526   :  { %v5386_v25 = vpop.xlane.xlu2 %5385 }
0x2527   :  { %v5390_v2 = vmul.f32 %v5386_v25, %v9265_v10 }
0x2529   :  { %v5392_v14 = vsub.f32 %v5382_v16, %v5390_v2  ;;  %v5913_v16 = vld [vmem:[%s9090_s14 + $0x68] sm:$0xff] }
0x252a   :  { %5509 = vmatpush.msra.mxu2 %v5913_v16 }
0x252b   :  { %v5394_v24 = vmul.f32 %v5392_v14, %v5392_v14 }
0x252c   :  { %5510 = vmatpush.msra.mxu2 %v5912_v23 }
0x252d   :  { %v5396_v11 = vsel %vm180_vm1, %v5394_v24, 0.0  ;;  %v5910_v24 = vld [vmem:[%s9090_s14 + $0x50] sm:$0xff] }
0x252e   :  { %5397 = vadd.xlane.f32.xlu0 %v5396_v11  ;;  %v5918_v11 = vld [vmem:[%s9090_s14 + $0x78] sm:$0xff] }
0x252f   :  { %5558 = vmatpush.msra.mxu3 %v5918_v11 }
0x2540   :  { %v5389_v6 = vpop.xlane.xlu1 %5388 }
0x2541   :  { %v5391_v63 = vmul.f32 %v5389_v6, %v9265_v10 }
0x2543   :  { %v5393_v31 = vsub.f32 %v5383_v59, %v5391_v63  ;;  %v5911_v59 = vld [vmem:[%s9090_s14 + $0x58] sm:$0xff] }
0x2544   :  { %5511 = vmatpush.msra.mxu2 %v5911_v59 }
0x2545   :  { %v5395_v55 = vmul.f32 %v5393_v31, %v5393_v31 }
0x2546   :  { %5512 = vmatpush.msra.mxu2 %v5910_v24 }
0x2547   :  { %v5399_v36 = vsel %vm1115_vm5, %v5395_v55, 0.0 }
0x2548   :  { %5400 = vadd.xlane.f32.xlu2 %v5399_v36 }
0x25a1   :  { %v5398_v35 = vpop.xlane.xlu0 %5397 }
0x25a2   :  { %v5402_v38 = vmul.f32 %v5398_v35, %v9265_v10 }
0x25a4   :  { %v5404_v51 = vadd.f32 1e-05, %v5402_v38 }
0x25a6   :  { %6290 = vrsqrt.f32 %v5404_v51  ;;  %vm5412_vm9 = vweird.f32 %v5404_v51 }
0x25ac   :  { %v6291_v33 = vpop.eup %6290 }
0x25ad   :  { %v5407_v0 = vmul.f32 %v6291_v33, %v5404_v51  ;;  %vm5413_vm7 = vweird.f32 %v6291_v33 }
0x25ae   :  { %vm5414_vm3 = vmor %vm5412_vm9, %vm5413_vm7  ;;  %vm5530_vm7 = vcmask 238752   ;;  %vm5576_vm9 = vcmask 320752  }
0x25af   :  { %v5408_v45 = vmul.f32 %v6291_v33, %v5407_v0  ;;  %v6419_v0 = vld [vmem:[%s9084_s9 + $0x6] ss:$0 sm:$0xff] }
0x25b1   :  { %v5409_v26 = vmul.f32 0.5, %v5408_v45 }
0x25b3   :  { %v5410_v44 = vsub.f32 1.5, %v5409_v26  ;;  %v6420_v26 = vld [vmem:[%s9084_s9 + $0x7] ss:$0 sm:$0xff] }
0x25b5   :  { %v5411_v13 = vmul.f32 %v6291_v33, %v5410_v44 }
0x25b7   :  { %v5415_v41 = vsel %vm5414_vm3, %v6291_v33, %v5411_v13 }
0x25b8   :  { %v5426_v43 = vmul.f32 %v5415_v41, %v5392_v14 }
0x25ba   :  { %v5428_v54 = vmul.f32 %v6416_v57, %v5426_v43 }
0x25bb   :  { %v5401_v48 = vpop.xlane.xlu2 %5400 }
0x25bc   :  { %v5430_v12 = vadd.f32 %v6417_v53, %v5428_v54  ;;  %v5403_v9 = vmul.f32 %v5401_v48, %v9265_v10 }
0x25be   :  { %v5432_v7 = vsel %vm180_vm1, %v5430_v12, 0.0  ;;  %v5405_v42 = vadd.f32 1e-05, %v5403_v9 }
0x25bf   :  { %5433 = vadd.xlane.f32.xlu1 %v5432_v7 }
0x25c0   :  { %6292 = vrsqrt.f32 %v5405_v42  ;;  %vm5422_vm12 = vweird.f32 %v5405_v42 }
0x25c6   :  { %v6293_v50 = vpop.eup %6292 }
0x25c7   :  { %v5417_v62 = vmul.f32 %v6293_v50, %v5405_v42  ;;  %vm5423_vm4 = vweird.f32 %v6293_v50 }
0x25c8   :  { %vm5424_vm11 = vmor %vm5422_vm12, %vm5423_vm4 }
0x25c9   :  { %v5418_v46 = vmul.f32 %v6293_v50, %v5417_v62  ;;  %v6006_v62 = vld [vmem:[%s9091_s15 + $0x2] ss:$0 sm:$0xff] }
0x25cb   :  { %v5419_v19 = vmul.f32 0.5, %v5418_v46  ;;  %v6007_v46 = vld [vmem:[%s9091_s15 + $0x3] ss:$0 sm:$0xff] }
0x25cd   :  { %v5420_v20 = vsub.f32 1.5, %v5419_v19 }
0x25cf   :  { %v5421_v15 = vmul.f32 %v6293_v50, %v5420_v20 }
0x25d1   :  { %v5425_v1 = vsel %vm5424_vm11, %v6293_v50, %v5421_v15 }
0x25d2   :  { %v5427_v21 = vmul.f32 %v5425_v1, %v5393_v31 }
0x25d4   :  { %v5429_v58 = vmul.f32 %v6416_v57, %v5427_v21 }
0x25d6   :  { %v5431_v30 = vadd.f32 %v6417_v53, %v5429_v58 }
0x25d8   :  { %v5435_v47 = vsel %vm1115_vm5, %v5431_v30, 0.0 }
0x25d9   :  { %5436 = vadd.xlane.f32.xlu0 %v5435_v47 }
0x25ed   :  { %3822 = vrot.lane.b32.xlu0 %v3815_v32, %s6433_s18 }
0x2632   :  { %v5434_v4 = vpop.xlane.xlu1 %5433 }
0x2633   :  { %v5438_v52 = vmul.f32 %v5434_v4, %v9265_v10 }
0x2635   :  { %v5440_v29 = vsub.f32 %v5430_v12, %v5438_v52 }
0x2637   :  { %v5442_v17 = vmul.f32 %v5440_v29, %v5440_v29 }
0x2639   :  { %v5444_v8 = vsel %vm180_vm1, %v5442_v17, 0.0 }
0x263a   :  { %5445 = vadd.xlane.f32.xlu2 %v5444_v8 }
0x264c   :  { %v5437_v39 = vpop.xlane.xlu0 %5436 }
0x264d   :  { %v5439_v49 = vmul.f32 %v5437_v39, %v9265_v10 }
0x264f   :  { %v9003_v34 = vsub.f32 %v5431_v30, %v5439_v49 }
0x2651   :  { %v5443_v37 = vmul.f32 %v9003_v34, %v9003_v34 }
0x2652   :  { %3824 = vrot.lane.b32.xlu2 %v9292_v56, %s6433_s18 }
0x2653   :  { %v5447_v27 = vsel %vm1115_vm5, %v5443_v37, 0.0  ;;  %vm3830_vm5 = vcmask 156752  }
0x2654   :  { %5448 = vadd.xlane.f32.xlu1 %v5447_v27 }
0x265f   :  { %v3823_v28 = vpop.permute.xlu0 %3822 }
0x2660   :  { %3829 = vst.msk [vmem:[%s9092_s16] sm:$0xff] %vm3828_vm10, %v3823_v28 }
0x26ad   :  { %v5446_v25 = vpop.xlane.xlu2 %5445 }
0x26ae   :  { %v5450_v2 = vmul.f32 %v5446_v25, %v9265_v10 }
0x26b0   :  { %v5452_v14 = vadd.f32 1e-05, %v5450_v2 }
0x26b2   :  { %6294 = vrsqrt.f32 %v5452_v14  ;;  %vm5460_vm0 = vweird.f32 %v5452_v14 }
0x26b5   :  { %v3825_v6 = vpop.permute.xlu2 %3824 }
0x26b6   :  { %3831 = vst.msk [vmem:[%s9092_s16 + $0x8] sm:$0x3] %vm3830_vm5, %v3825_v6 }
0x26b8   :  { %v6295_v63 = vpop.eup %6294 }
0x26b9   :  { %v5455_v31 = vmul.f32 %v6295_v63, %v5452_v14  ;;  %vm5461_vm6 = vweird.f32 %v6295_v63 }
0x26ba   :  { %vm5462_vm14 = vmor %vm5460_vm0, %vm5461_vm6 }
0x26bb   :  { %v5456_v55 = vmul.f32 %v6295_v63, %v5455_v31 }
0x26bd   :  { %v5457_v36 = vmul.f32 0.5, %v5456_v55 }
0x26bf   :  { %v5458_v35 = vsub.f32 1.5, %v5457_v36 }
0x26c1   :  { %v5459_v38 = vmul.f32 %v6295_v63, %v5458_v35 }
0x26c3   :  { %v5463_v51 = vsel %vm5462_vm14, %v6295_v63, %v5459_v38 }
0x26c4   :  { %v5474_v33 = vmul.f32 %v5463_v51, %v5440_v29 }
0x26c6   :  { %v5476_v45 = vmul.f32 %v6419_v0, %v5474_v33 }
0x26c7   :  { %v5449_v13 = vpop.xlane.xlu1 %5448 }
0x26c8   :  { %v5478_v44 = vadd.f32 %v6420_v26, %v5476_v45  ;;  %v5451_v41 = vmul.f32 %v5449_v13, %v9265_v10 }
0x26ca   :  { %5916 = vmatmul.msk.f32.vlgmr.msra.gmra.mxu2 %vm180_vm1, %v5478_v44  ;;  %5924 = vmatmul.msk.f32.vlgmr.msra.gmra.mxu3 %vm180_vm1, %v5478_v44  ;;  %v5453_v43 = vadd.f32 1e-05, %v5451_v41 }
0x26cc   :  { %6296 = vrsqrt.f32 %v5453_v43  ;;  %vm5470_vm2 = vweird.f32 %v5453_v43 }
0x26d2   :  { %v6297_v57 = vpop.eup %6296 }
0x26d3   :  { %v5465_v54 = vmul.f32 %v6297_v57, %v5453_v43  ;;  %vm5471_vm15 = vweird.f32 %v6297_v57 }
0x26d4   :  { %vm5472_vm13 = vmor %vm5470_vm2, %vm5471_vm15 }
0x26d5   :  { %v5466_v48 = vmul.f32 %v6297_v57, %v5465_v54 }
0x26d7   :  { %v5467_v53 = vmul.f32 0.5, %v5466_v48 }
0x26d9   :  { %v5468_v12 = vsub.f32 1.5, %v5467_v53 }
0x26db   :  { %v5469_v9 = vmul.f32 %v6297_v57, %v5468_v12 }
0x26dd   :  { %v5473_v7 = vsel %vm5472_vm13, %v6297_v57, %v5469_v9 }
0x26de   :  { %v5475_v42 = vmul.f32 %v5473_v7, %v9003_v34 }
0x26e0   :  { %v5477_v50 = vmul.f32 %v6419_v0, %v5475_v42 }
0x26e2   :  { %v5479_v10 = vadd.f32 %v6420_v26, %v5477_v50 }
0x26e4   :  { %5917 = vmatmul.msk.f32.gmra.mxu2 %vm180_vm1, %v5479_v10  ;;  %5925 = vmatmul.msk.f32.gmra.mxu3 %vm180_vm1, %v5479_v10  ;;  %vm5528_vm1 = vcmask 244896  }
0x274d   :  { %v5514_v19 = vpop.f32.mrf.mxu2  ;;  %v5560_v20 = vpop.f32.mrf.mxu3 }
0x274e   :  { %v5515_v15 = vadd.f32 %v6006_v62, %v5514_v19  ;;  %v5561_v1 = vadd.f32 %v6007_v46, %v5560_v20 }
0x2750   :  { %5568 = vrot.lane.b32.xlu2 %v5561_v1, %s6434_s24  ;;  %5522 = vrot.lane.b32.xlu1 %v5515_v15, %s6435_s25 }
0x2767   :  { %v5517_v21 = vpop.f32.mrf.mxu2  ;;  %v5563_v30 = vpop.f32.mrf.mxu3 }
0x2768   :  { %v5518_v58 = vadd.f32 %v6006_v62, %v5517_v21  ;;  %v5564_v47 = vadd.f32 %v6007_v46, %v5563_v30 }
0x276a   :  { %5524 = vrot.lane.b32.xlu0 %v5518_v58, %s6435_s25 }
0x2772   :  { %5570 = vrot.lane.b32.xlu0 %v5564_v47, %s6434_s24 }
0x27aa   :  { %v5569_v5 = vpop.permute.xlu2 %5568 }
0x27c2   :  { %v5523_v22 = vpop.permute.xlu1 %5522 }
0x27c3   :  { %5529 = vst.msk [vmem:[%s9092_s16] sm:$0xff] %vm5528_vm1, %v5523_v22 }
0x27c4   :  { %5575 = vst.msk [vmem:[%s9092_s16] sm:$0xff] %vm5574_vm8, %v5569_v5 }
0x27dc   :  { %v5525_v32 = vpop.permute.xlu0 %5524 }
0x27dd   :  { %5531 = vst.msk [vmem:[%s9092_s16 + $0x8] sm:$0x3] %vm5530_vm7, %v5525_v32 }
0x27e4   :  { %v5571_v4 = vpop.permute.xlu0 %5570 }
0x27e5   :  { %5577 = vst.msk [vmem:[%s9092_s16 + $0x8] sm:$0x3] %vm5576_vm9, %v5571_v4 }

</bundles_post_ra>
